<compile_context>
chip_gen: v5e
topology: v5e:2x2
jax: 0.10.0
libtpu: 0.0.40
codegen_flags: <defaults>
</compile_context>

<pallas_src>
import functools

import jax
import jax.numpy as jnp
from jax.experimental import pallas as pl
from jax.experimental.pallas import tpu as pltpu

BN_EPS = 1e-5
CP = 128                        # lane-padded channel width (vreg lane count)


@functools.lru_cache(maxsize=None)
def _vmem_limit():
    """Derive a generous VMEM cap from the hardware; fall back to a safe 32 MiB."""
    try:
        cap = pltpu.get_tpu_info().vmem_capacity_bytes
        return int(min(cap * 3 // 4, 100 * 1024 * 1024))
    except Exception:
        return 32 * 1024 * 1024


# ------------------------------ Pallas kernels -------------------------------

def _conv_relu_stats_kernel(xp_ref, w_ref, mask_ref, y_ref, sum_ref, sq_ref, *, h, w):
    """3x3 conv (pad=1) + ReLU + per-image BN-statistics for one image.

    xp_ref   : (1, Lpad, Cin) f32  zero-padded image, flattened (Hp*Wp) rows
    w_ref    : (9, Cin, CP)   bf16 tap-major weights, Cout zero-padded to CP lanes
    mask_ref : (H*Wp, 1)      f32  hoisted wrap-column mask (1 real / 0 wrap)
    y_ref    : (1, H*Wp, CP)  bf16 masked ReLU(conv) in the "wide" (H, Wp) layout
    sum/sq   : (1, 1, CP)     f32  per-program partial statistics
    """
    wp = w + 2
    hww = h * wp

    # 9 taps of the 3x3 stencil == 9 contiguous row-slices of the flattened padded
    # image (static offset dh*wp + dw).  Accumulate in a local f32 value so the
    # output block is written exactly once (no per-tap RMW through the store slot).
    acc = None
    for t in range(9):
        dh, dw = divmod(t, 3)
        tap = xp_ref[0, pl.ds(dh * wp + dw, hww), :].astype(jnp.bfloat16)
        part = jnp.dot(tap, w_ref[t], preferred_element_type=jnp.float32)
        acc = part if acc is None else acc + part

    # ReLU, then zero the (wp - w) wrap-around columns via the hoisted mask so they
    # contribute nothing to the BN statistics (true count N*H*W used downstream).
    y = jnp.maximum(acc, 0.0) * mask_ref[...]          # (hww, CP) * (hww, 1)

    sum_ref[0] = jnp.sum(y, axis=0, keepdims=True)
    sq_ref[0] = jnp.sum(y * y, axis=0, keepdims=True)
    y_ref[0] = y.astype(y_ref.dtype)                   # single lane-dense bf16 store


def _bn_apply_kernel(y_ref, sum_ref, sq_ref, o_ref, *, m_count):
    """Normalize one image with the global (N*H*W) batch statistics (lane-dense)."""
    inv_m = 1.0 / m_count
    mean = sum_ref[...] * inv_m                        # (1, CP)
    var = sum_ref.dtype.type(0.0) + sq_ref[...] * inv_m - mean * mean
    inv = jax.lax.rsqrt(var + BN_EPS)
    yn = (y_ref[0].astype(jnp.float32) - mean) * inv   # full-lane compute
    o_ref[0] = yn.astype(o_ref.dtype)                  # unmasked 128-lane store


def _bn_gap_kernel(y_ref, sum_ref, sq_ref, o_ref, *, m_count, hw):
    """Fused BatchNorm + global average pool for one image of the final layer."""
    inv_m = 1.0 / m_count
    mean = sum_ref[...] * inv_m
    var = sq_ref[...] * inv_m - mean * mean
    inv = jax.lax.rsqrt(var + BN_EPS)
    # wrap columns were zeroed in pass 1, so summing all rows / true pixel count
    # gives the per-image spatial mean.
    s = jnp.sum(y_ref[0].astype(jnp.float32), axis=0, keepdims=True) * (1.0 / hw)
    o_ref[0] = (s - mean) * inv                        # (1, CP) lane-dense row


# ------------------------------ kernel wrappers -------------------------------

def conv_relu_stats(xp_flat, w9, mask, h, w):
    n, l_pad, cin = xp_flat.shape
    wp = w + 2
    hww = h * wp
    flops = 2 * n * 9 * hww * cin * CP
    bytes_accessed = (xp_flat.size * 4 + w9.size * 2 + mask.size * 4
                      + n * hww * CP * 2 + 2 * n * CP * 4)
    y, psum, psq = pl.pallas_call(
        functools.partial(_conv_relu_stats_kernel, h=h, w=w),
        out_shape=(jax.ShapeDtypeStruct((n, hww, CP), jnp.bfloat16),
                   jax.ShapeDtypeStruct((n, 1, CP), jnp.float32),
                   jax.ShapeDtypeStruct((n, 1, CP), jnp.float32)),
        grid=(n,),
        in_specs=[pl.BlockSpec((1, l_pad, cin), lambda i: (i, 0, 0)),
                  pl.BlockSpec((9, cin, CP), lambda i: (0, 0, 0)),
                  pl.BlockSpec((hww, 1), lambda i: (0, 0))],
        out_specs=(pl.BlockSpec((1, hww, CP), lambda i: (i, 0, 0)),
                   pl.BlockSpec((1, 1, CP), lambda i: (i, 0, 0)),
                   pl.BlockSpec((1, 1, CP), lambda i: (i, 0, 0))),
        compiler_params=pltpu.CompilerParams(
            dimension_semantics=("parallel",),          # per-program partial stats
            vmem_limit_bytes=_vmem_limit()),
        cost_estimate=pl.CostEstimate(flops=flops, transcendentals=0,
                                      bytes_accessed=bytes_accessed),
    )(xp_flat, w9, mask)
    # Tiny XLA reduction of the per-image partials -> global BN statistics.
    ssum = jnp.sum(psum, axis=0)                        # (1, CP)
    ssq = jnp.sum(psq, axis=0)                          # (1, CP)
    return y, ssum, ssq


def bn_apply(y, ssum, ssq, m_count, cout, h, w):
    n, hww, _ = y.shape
    wp = w + 2
    flops = 4 * n * hww * CP
    bytes_accessed = n * hww * CP * 2 * 2 + 2 * CP * 4
    yn = pl.pallas_call(
        functools.partial(_bn_apply_kernel, m_count=float(m_count)),
        out_shape=jax.ShapeDtypeStruct((n, hww, CP), jnp.bfloat16),
        grid=(n,),
        in_specs=[pl.BlockSpec((1, hww, CP), lambda i: (i, 0, 0)),
                  pl.BlockSpec((1, CP), lambda i: (0, 0)),
                  pl.BlockSpec((1, CP), lambda i: (0, 0))],
        out_specs=pl.BlockSpec((1, hww, CP), lambda i: (i, 0, 0)),
        compiler_params=pltpu.CompilerParams(
            dimension_semantics=("parallel",),
            vmem_limit_bytes=_vmem_limit()),
        cost_estimate=pl.CostEstimate(flops=flops, transcendentals=n * CP,
                                      bytes_accessed=bytes_accessed),
    )(y, ssum, ssq)
    # Drop the wrap-around columns of the wide layout and the padded lanes here
    # (XLA glue, fused with the next layer's sampling/padding) -> (N, H, W, Cout).
    return yn.reshape(n, h, wp, CP)[:, :, :w, :cout]


def bn_gap(y, ssum, ssq, m_count, h, w):
    n, hww, _ = y.shape
    flops = n * hww * CP + 4 * n * CP
    bytes_accessed = n * hww * CP * 2 + n * CP * 4 + 2 * CP * 4
    out = pl.pallas_call(
        functools.partial(_bn_gap_kernel, m_count=float(m_count), hw=float(h * w)),
        out_shape=jax.ShapeDtypeStruct((n, 1, CP), jnp.float32),
        grid=(n,),
        in_specs=[pl.BlockSpec((1, hww, CP), lambda i: (i, 0, 0)),
                  pl.BlockSpec((1, CP), lambda i: (0, 0)),
                  pl.BlockSpec((1, CP), lambda i: (0, 0))],
        out_specs=pl.BlockSpec((1, 1, CP), lambda i: (i, 0, 0)),
        compiler_params=pltpu.CompilerParams(
            dimension_semantics=("parallel",),
            vmem_limit_bytes=_vmem_limit()),
        cost_estimate=pl.CostEstimate(flops=flops, transcendentals=n * CP,
                                      bytes_accessed=bytes_accessed),
    )(y, ssum, ssq)
    return out.reshape(n, CP)


# --------------------------------- JAX glue -----------------------------------

def identity(x, p):
    return x


def downsample(x, p):
    # F.max_pool2d(kernel_size=2) applied p times (NHWC layout)
    for _ in range(p):
        n, h, w, c = x.shape
        x = x.reshape(n, h // 2, 2, w // 2, 2, c).max(axis=(2, 4))
    return x


def upsample(x, p):
    # F.interpolate(scale_factor=2**|p|, mode='nearest') via broadcast (no jnp.repeat)
    f = 2 ** abs(p)
    n, h, w, c = x.shape
    x = jnp.broadcast_to(x[:, :, None, :, None, :], (n, h, f, w, f, c))
    return x.reshape(n, h * f, w * f, c)


def sampling_func(p):
    if p == 0:
        return identity
    return downsample if p > 0 else upsample


def pad_and_flatten(x_nhwc):
    """Zero-pad spatially and flatten the (Hp, Wp) rows (kept f32 for robust
    unaligned row-slicing inside the conv kernel; the 9x im2col lives in VMEM only)."""
    n, h, w, c = x_nhwc.shape
    hp, wp = h + 2, w + 2
    xp = jnp.pad(x_nhwc.astype(jnp.float32), ((0, 0), (1, 1), (1, 1), (0, 0)))
    flat = xp.reshape(n, hp * wp, c)
    l_pad = ((hp * wp + 2 + 7) // 8) * 8          # last tap reads 2 rows past the image
    return jnp.pad(flat, ((0, 0), (0, l_pad - hp * wp), (0, 0)))


def make_mask(h, w):
    """Hoisted wrap-column mask for the wide (H, Wp) layout: (H*Wp, 1) f32."""
    wp = w + 2
    col = jnp.arange(h * wp, dtype=jnp.int32) % wp
    return (col < w).astype(jnp.float32).reshape(h * wp, 1)


def init_params(key, ncat, channels, leng):
    ins = [3] + [channels] * (leng - 1)
    outs = [channels] * (leng - 1) + [ncat]
    params = []
    for ci, co in zip(ins, outs):
        key, sub = jax.random.split(key)
        bound = 1.0 / jnp.sqrt(ci * 9.0)          # PyTorch Conv2d default init-ish
        wt = jax.random.uniform(sub, (co, ci, 3, 3), jnp.float32, -bound, bound)
        params.append(wt)                         # PyTorch layout (Cout, Cin, Kh, Kw)
    return params


def prep_weights(params):
    """Hoisted, one-time: (Cout,Cin,3,3) -> tap-major (9, Cin, CP) bf16, lane-padded."""
    w9s, couts = [], []
    for wt in params:
        cout, cin = wt.shape[0], wt.shape[1]
        w9 = jnp.transpose(wt, (2, 3, 1, 0)).reshape(9, cin, cout)   # tap t = kh*3+kw
        w9 = jnp.pad(w9, ((0, 0), (0, 0), (0, CP - cout))).astype(jnp.bfloat16)
        w9s.append(w9)
        couts.append(cout)
    return tuple(w9s), tuple(couts)


def forward(w9s, x_nchw, *, relative_path, couts):
    out = jnp.transpose(x_nchw, (0, 2, 3, 1))     # NCHW -> NHWC
    last = len(w9s) - 1
    for li, (w9, p) in enumerate(zip(w9s, relative_path)):
        out = sampling_func(p)(out, p)
        n, h, w, _ = out.shape
        xp_flat = pad_and_flatten(out)
        mask = make_mask(h, w)
        y, ssum, ssq = conv_relu_stats(xp_flat, w9, mask, h, w)   # Pallas pass 1
        m_count = n * h * w                                        # BN stats over N*H*W
        if li < last:
            out = bn_apply(y, ssum, ssq, m_count, couts[li], h, w)  # Pallas pass 2
        else:
            out = bn_gap(y, ssum, ssq, m_count, h, w)[:, :couts[li]]  # fused BN + GAP
    return out


# ------------------------------ pure-JAX reference ----------------------------

def reference_forward(params, x_nchw, relative_path):
    out = jnp.transpose(x_nchw, (0, 2, 3, 1))
    for wt, p in zip(params, relative_path):
        out = sampling_func(p)(out, p)
        y = jax.lax.conv_general_dilated(
            out, jnp.transpose(wt, (2, 3, 1, 0)),
            window_strides=(1, 1), padding=((1, 1), (1, 1)),
            dimension_numbers=('NHWC', 'HWIO', 'NHWC'),
            precision=jax.lax.Precision.HIGHEST)
        y = jnp.maximum(y, 0.0)
        mean = jnp.mean(y, axis=(0, 1, 2), keepdims=True)
        var = jnp.mean((y - mean) ** 2, axis=(0, 1, 2), keepdims=True)
        out = (y - mean) * jax.lax.rsqrt(var + BN_EPS)
    return jnp.mean(out, axis=(1, 2))


# ------------------------------------ main -------------------------------------

if __name__ == "__main__":
    ncat, channels, leng = 10, 16, 4
    relative_path = (0, 1, -1, 0)   # identity, maxpool /2, nearest x2, identity

    key = jax.random.PRNGKey(0)
    kp, kx = jax.random.split(key)
    params = init_params(kp, ncat, channels, leng)
    x = jax.random.normal(kx, (2, 3, 16, 16), jnp.float32)   # NCHW, like PyTorch

    w9s, couts = prep_weights(params)
    fwd = jax.jit(functools.partial(forward, relative_path=relative_path, couts=couts))
    out = jax.block_until_ready(fwd(w9s, x))
    assert out.shape == (2, ncat), out.shape

    ref = reference_forward(params, x, relative_path)
    max_err = float(jnp.max(jnp.abs(out - ref)))
    # Mixed-precision path (bf16 MXU operands + bf16 activation storage, f32 stats).
    assert bool(jnp.allclose(out, ref, atol=5e-2, rtol=5e-2)), max_err

    print("KERNEL_OK")
</pallas_src>

<mosaic_0001>
module attributes {stable_mosaic.version = 11 : i64} {
  func.func @_conv_relu_stats_kernel(%arg0: i32, %arg1: memref<1x328x3xf32, #tpu.memory_space<vmem>>, %arg2: memref<9x3x128xbf16, #tpu.memory_space<vmem>>, %arg3: memref<288x1xf32, #tpu.memory_space<vmem>>, %arg4: memref<1x288x128xbf16, #tpu.memory_space<vmem>>, %arg5: memref<1x1x128xf32, #tpu.memory_space<vmem>>, %arg6: memref<1x1x128xf32, #tpu.memory_space<vmem>>) attributes {dimension_semantics = [#tpu.dimension_semantics<parallel>], iteration_bounds = array<i64: 2>, scalar_prefetch = 0 : i64, scratch_operands = 0 : i64, tpu.core_type = #tpu.core_type<tc>, window_params = [{transform_indices = @transform_0, window_bounds = array<i64: 1, 328, 3>}, {pipeline_mode = #tpu.pipeline_mode<synchronous>, transform_indices = @transform_1, window_bounds = array<i64: 9, 3, 128>}, {pipeline_mode = #tpu.pipeline_mode<synchronous>, transform_indices = @transform_2, window_bounds = array<i64: 288, 1>}, {transform_indices = @transform_3, window_bounds = array<i64: 1, 288, 128>}, {transform_indices = @transform_4, window_bounds = array<i64: 1, 1, 128>}, {transform_indices = @transform_5, window_bounds = array<i64: 1, 1, 128>}]} {
    %c0 = arith.constant 0 : index
    %c0_0 = arith.constant 0 : index
    %c0_1 = arith.constant 0 : index
    %0 = vector.load %arg1[%c0, %c0_0, %c0_1] : memref<1x328x3xf32, #tpu.memory_space<vmem>>, vector<1x288x3xf32>
    %1 = vector.shape_cast %0 : vector<1x288x3xf32> to vector<288x3xf32>
    %2 = arith.truncf %1 : vector<288x3xf32> to vector<288x3xbf16>
    %c0_2 = arith.constant 0 : index
    %c0_3 = arith.constant 0 : index
    %c0_4 = arith.constant 0 : index
    %3 = vector.load %arg2[%c0_2, %c0_3, %c0_4] : memref<9x3x128xbf16, #tpu.memory_space<vmem>>, vector<1x3x128xbf16>
    %4 = vector.shape_cast %3 : vector<1x3x128xbf16> to vector<3x128xbf16>
    %cst = arith.constant dense<0.000000e+00> : vector<288x128xf32>
    %5 = tpu.matmul %2, %4, %cst {dimension_numbers = #tpu.dot_dimension_numbers<[1], [0], [0], [1], [0, 0, 1, 1], [], []>} : vector<288x3xbf16>, vector<3x128xbf16>, vector<288x128xf32> -> vector<288x128xf32>
    %c0_5 = arith.constant 0 : index
    %c1 = arith.constant 1 : index
    %c0_6 = arith.constant 0 : index
    %6 = vector.load %arg1[%c0_5, %c1, %c0_6] : memref<1x328x3xf32, #tpu.memory_space<vmem>>, vector<1x288x3xf32>
    %7 = vector.shape_cast %6 : vector<1x288x3xf32> to vector<288x3xf32>
    %8 = arith.truncf %7 : vector<288x3xf32> to vector<288x3xbf16>
    %c1_7 = arith.constant 1 : index
    %c0_8 = arith.constant 0 : index
    %c0_9 = arith.constant 0 : index
    %9 = vector.load %arg2[%c1_7, %c0_8, %c0_9] : memref<9x3x128xbf16, #tpu.memory_space<vmem>>, vector<1x3x128xbf16>
    %10 = vector.shape_cast %9 : vector<1x3x128xbf16> to vector<3x128xbf16>
    %cst_10 = arith.constant dense<0.000000e+00> : vector<288x128xf32>
    %11 = tpu.matmul %8, %10, %cst_10 {dimension_numbers = #tpu.dot_dimension_numbers<[1], [0], [0], [1], [0, 0, 1, 1], [], []>} : vector<288x3xbf16>, vector<3x128xbf16>, vector<288x128xf32> -> vector<288x128xf32>
    %12 = arith.addf %5, %11 : vector<288x128xf32>
    %c0_11 = arith.constant 0 : index
    %c2 = arith.constant 2 : index
    %c0_12 = arith.constant 0 : index
    %13 = vector.load %arg1[%c0_11, %c2, %c0_12] : memref<1x328x3xf32, #tpu.memory_space<vmem>>, vector<1x288x3xf32>
    %14 = vector.shape_cast %13 : vector<1x288x3xf32> to vector<288x3xf32>
    %15 = arith.truncf %14 : vector<288x3xf32> to vector<288x3xbf16>
    %c2_13 = arith.constant 2 : index
    %c0_14 = arith.constant 0 : index
    %c0_15 = arith.constant 0 : index
    %16 = vector.load %arg2[%c2_13, %c0_14, %c0_15] : memref<9x3x128xbf16, #tpu.memory_space<vmem>>, vector<1x3x128xbf16>
    %17 = vector.shape_cast %16 : vector<1x3x128xbf16> to vector<3x128xbf16>
    %cst_16 = arith.constant dense<0.000000e+00> : vector<288x128xf32>
    %18 = tpu.matmul %15, %17, %cst_16 {dimension_numbers = #tpu.dot_dimension_numbers<[1], [0], [0], [1], [0, 0, 1, 1], [], []>} : vector<288x3xbf16>, vector<3x128xbf16>, vector<288x128xf32> -> vector<288x128xf32>
    %19 = arith.addf %12, %18 : vector<288x128xf32>
    %c0_17 = arith.constant 0 : index
    %c18 = arith.constant 18 : index
    %c0_18 = arith.constant 0 : index
    %20 = vector.load %arg1[%c0_17, %c18, %c0_18] : memref<1x328x3xf32, #tpu.memory_space<vmem>>, vector<1x288x3xf32>
    %21 = vector.shape_cast %20 : vector<1x288x3xf32> to vector<288x3xf32>
    %22 = arith.truncf %21 : vector<288x3xf32> to vector<288x3xbf16>
    %c3 = arith.constant 3 : index
    %c0_19 = arith.constant 0 : index
    %c0_20 = arith.constant 0 : index
    %23 = vector.load %arg2[%c3, %c0_19, %c0_20] : memref<9x3x128xbf16, #tpu.memory_space<vmem>>, vector<1x3x128xbf16>
    %24 = vector.shape_cast %23 : vector<1x3x128xbf16> to vector<3x128xbf16>
    %cst_21 = arith.constant dense<0.000000e+00> : vector<288x128xf32>
    %25 = tpu.matmul %22, %24, %cst_21 {dimension_numbers = #tpu.dot_dimension_numbers<[1], [0], [0], [1], [0, 0, 1, 1], [], []>} : vector<288x3xbf16>, vector<3x128xbf16>, vector<288x128xf32> -> vector<288x128xf32>
    %26 = arith.addf %19, %25 : vector<288x128xf32>
    %c0_22 = arith.constant 0 : index
    %c19 = arith.constant 19 : index
    %c0_23 = arith.constant 0 : index
    %27 = vector.load %arg1[%c0_22, %c19, %c0_23] : memref<1x328x3xf32, #tpu.memory_space<vmem>>, vector<1x288x3xf32>
    %28 = vector.shape_cast %27 : vector<1x288x3xf32> to vector<288x3xf32>
    %29 = arith.truncf %28 : vector<288x3xf32> to vector<288x3xbf16>
    %c4 = arith.constant 4 : index
    %c0_24 = arith.constant 0 : index
    %c0_25 = arith.constant 0 : index
    %30 = vector.load %arg2[%c4, %c0_24, %c0_25] : memref<9x3x128xbf16, #tpu.memory_space<vmem>>, vector<1x3x128xbf16>
    %31 = vector.shape_cast %30 : vector<1x3x128xbf16> to vector<3x128xbf16>
    %cst_26 = arith.constant dense<0.000000e+00> : vector<288x128xf32>
    %32 = tpu.matmul %29, %31, %cst_26 {dimension_numbers = #tpu.dot_dimension_numbers<[1], [0], [0], [1], [0, 0, 1, 1], [], []>} : vector<288x3xbf16>, vector<3x128xbf16>, vector<288x128xf32> -> vector<288x128xf32>
    %33 = arith.addf %26, %32 : vector<288x128xf32>
    %c0_27 = arith.constant 0 : index
    %c20 = arith.constant 20 : index
    %c0_28 = arith.constant 0 : index
    %34 = vector.load %arg1[%c0_27, %c20, %c0_28] : memref<1x328x3xf32, #tpu.memory_space<vmem>>, vector<1x288x3xf32>
    %35 = vector.shape_cast %34 : vector<1x288x3xf32> to vector<288x3xf32>
    %36 = arith.truncf %35 : vector<288x3xf32> to vector<288x3xbf16>
    %c5 = arith.constant 5 : index
    %c0_29 = arith.constant 0 : index
    %c0_30 = arith.constant 0 : index
    %37 = vector.load %arg2[%c5, %c0_29, %c0_30] : memref<9x3x128xbf16, #tpu.memory_space<vmem>>, vector<1x3x128xbf16>
    %38 = vector.shape_cast %37 : vector<1x3x128xbf16> to vector<3x128xbf16>
    %cst_31 = arith.constant dense<0.000000e+00> : vector<288x128xf32>
    %39 = tpu.matmul %36, %38, %cst_31 {dimension_numbers = #tpu.dot_dimension_numbers<[1], [0], [0], [1], [0, 0, 1, 1], [], []>} : vector<288x3xbf16>, vector<3x128xbf16>, vector<288x128xf32> -> vector<288x128xf32>
    %40 = arith.addf %33, %39 : vector<288x128xf32>
    %c0_32 = arith.constant 0 : index
    %c36 = arith.constant 36 : index
    %c0_33 = arith.constant 0 : index
    %41 = vector.load %arg1[%c0_32, %c36, %c0_33] : memref<1x328x3xf32, #tpu.memory_space<vmem>>, vector<1x288x3xf32>
    %42 = vector.shape_cast %41 : vector<1x288x3xf32> to vector<288x3xf32>
    %43 = arith.truncf %42 : vector<288x3xf32> to vector<288x3xbf16>
    %c6 = arith.constant 6 : index
    %c0_34 = arith.constant 0 : index
    %c0_35 = arith.constant 0 : index
    %44 = vector.load %arg2[%c6, %c0_34, %c0_35] : memref<9x3x128xbf16, #tpu.memory_space<vmem>>, vector<1x3x128xbf16>
    %45 = vector.shape_cast %44 : vector<1x3x128xbf16> to vector<3x128xbf16>
    %cst_36 = arith.constant dense<0.000000e+00> : vector<288x128xf32>
    %46 = tpu.matmul %43, %45, %cst_36 {dimension_numbers = #tpu.dot_dimension_numbers<[1], [0], [0], [1], [0, 0, 1, 1], [], []>} : vector<288x3xbf16>, vector<3x128xbf16>, vector<288x128xf32> -> vector<288x128xf32>
    %47 = arith.addf %40, %46 : vector<288x128xf32>
    %c0_37 = arith.constant 0 : index
    %c37 = arith.constant 37 : index
    %c0_38 = arith.constant 0 : index
    %48 = vector.load %arg1[%c0_37, %c37, %c0_38] : memref<1x328x3xf32, #tpu.memory_space<vmem>>, vector<1x288x3xf32>
    %49 = vector.shape_cast %48 : vector<1x288x3xf32> to vector<288x3xf32>
    %50 = arith.truncf %49 : vector<288x3xf32> to vector<288x3xbf16>
    %c7 = arith.constant 7 : index
    %c0_39 = arith.constant 0 : index
    %c0_40 = arith.constant 0 : index
    %51 = vector.load %arg2[%c7, %c0_39, %c0_40] : memref<9x3x128xbf16, #tpu.memory_space<vmem>>, vector<1x3x128xbf16>
    %52 = vector.shape_cast %51 : vector<1x3x128xbf16> to vector<3x128xbf16>
    %cst_41 = arith.constant dense<0.000000e+00> : vector<288x128xf32>
    %53 = tpu.matmul %50, %52, %cst_41 {dimension_numbers = #tpu.dot_dimension_numbers<[1], [0], [0], [1], [0, 0, 1, 1], [], []>} : vector<288x3xbf16>, vector<3x128xbf16>, vector<288x128xf32> -> vector<288x128xf32>
    %54 = arith.addf %47, %53 : vector<288x128xf32>
    %c0_42 = arith.constant 0 : index
    %c38 = arith.constant 38 : index
    %c0_43 = arith.constant 0 : index
    %55 = vector.load %arg1[%c0_42, %c38, %c0_43] : memref<1x328x3xf32, #tpu.memory_space<vmem>>, vector<1x288x3xf32>
    %56 = vector.shape_cast %55 : vector<1x288x3xf32> to vector<288x3xf32>
    %57 = arith.truncf %56 : vector<288x3xf32> to vector<288x3xbf16>
    %c8 = arith.constant 8 : index
    %c0_44 = arith.constant 0 : index
    %c0_45 = arith.constant 0 : index
    %58 = vector.load %arg2[%c8, %c0_44, %c0_45] : memref<9x3x128xbf16, #tpu.memory_space<vmem>>, vector<1x3x128xbf16>
    %59 = vector.shape_cast %58 : vector<1x3x128xbf16> to vector<3x128xbf16>
    %cst_46 = arith.constant dense<0.000000e+00> : vector<288x128xf32>
    %60 = tpu.matmul %57, %59, %cst_46 {dimension_numbers = #tpu.dot_dimension_numbers<[1], [0], [0], [1], [0, 0, 1, 1], [], []>} : vector<288x3xbf16>, vector<3x128xbf16>, vector<288x128xf32> -> vector<288x128xf32>
    %61 = arith.addf %54, %60 : vector<288x128xf32>
    %cst_47 = arith.constant 0.000000e+00 : f32
    %62 = vector.broadcast %cst_47 : f32 to vector<288x128xf32>
    %63 = arith.maximumf %61, %62 : vector<288x128xf32>
    %c0_48 = arith.constant 0 : index
    %c0_49 = arith.constant 0 : index
    %64 = vector.load %arg3[%c0_48, %c0_49] : memref<288x1xf32, #tpu.memory_space<vmem>>, vector<288x1xf32>
    %65 = vector.broadcast %64 : vector<288x1xf32> to vector<288x128xf32>
    %66 = arith.mulf %63, %65 : vector<288x128xf32>
    %cst_50 = arith.constant dense<0.000000e+00> : vector<128xf32>
    %67 = vector.multi_reduction <add>, %66, %cst_50 [0] : vector<288x128xf32> to vector<128xf32>
    %68 = vector.shape_cast %67 : vector<128xf32> to vector<1x128xf32>
    %c0_51 = arith.constant 0 : index
    %c0_52 = arith.constant 0 : index
    %c0_53 = arith.constant 0 : index
    %69 = vector.load %arg5[%c0_51, %c0_52, %c0_53] : memref<1x1x128xf32, #tpu.memory_space<vmem>>, vector<1x1x128xf32>
    %70 = vector.shape_cast %69 : vector<1x1x128xf32> to vector<1x128xf32>
    %71 = vector.shape_cast %68 : vector<1x128xf32> to vector<1x1x128xf32>
    tpu.vector_store %arg5[%c0_51, %c0_52, %c0_53], %71 {strides = array<i32>} : memref<1x1x128xf32, #tpu.memory_space<vmem>>, vector<1x1x128xf32>,
    %72 = arith.mulf %66, %66 : vector<288x128xf32>
    %cst_54 = arith.constant dense<0.000000e+00> : vector<128xf32>
    %73 = vector.multi_reduction <add>, %72, %cst_54 [0] : vector<288x128xf32> to vector<128xf32>
    %74 = vector.shape_cast %73 : vector<128xf32> to vector<1x128xf32>
    %c0_55 = arith.constant 0 : index
    %c0_56 = arith.constant 0 : index
    %c0_57 = arith.constant 0 : index
    %75 = vector.load %arg6[%c0_55, %c0_56, %c0_57] : memref<1x1x128xf32, #tpu.memory_space<vmem>>, vector<1x1x128xf32>
    %76 = vector.shape_cast %75 : vector<1x1x128xf32> to vector<1x128xf32>
    %77 = vector.shape_cast %74 : vector<1x128xf32> to vector<1x1x128xf32>
    tpu.vector_store %arg6[%c0_55, %c0_56, %c0_57], %77 {strides = array<i32>} : memref<1x1x128xf32, #tpu.memory_space<vmem>>, vector<1x1x128xf32>,
    %78 = arith.truncf %66 : vector<288x128xf32> to vector<288x128xbf16>
    %c0_58 = arith.constant 0 : index
    %c0_59 = arith.constant 0 : index
    %c0_60 = arith.constant 0 : index
    %79 = vector.load %arg4[%c0_58, %c0_59, %c0_60] : memref<1x288x128xbf16, #tpu.memory_space<vmem>>, vector<1x288x128xbf16>
    %80 = vector.shape_cast %79 : vector<1x288x128xbf16> to vector<288x128xbf16>
    %81 = vector.shape_cast %78 : vector<288x128xbf16> to vector<1x288x128xbf16>
    tpu.vector_store %arg4[%c0_58, %c0_59, %c0_60], %81 {strides = array<i32>} : memref<1x288x128xbf16, #tpu.memory_space<vmem>>, vector<1x288x128xbf16>,
    return
  }
  func.func @transform_0(%arg0: i32) -> (i32, i32, i32) {
    %c0_i32 = arith.constant 0 : i32
    %c0_i32_0 = arith.constant 0 : i32
    %c0_i32_1 = arith.constant 0 : i32
    return %arg0, %c0_i32, %c0_i32_0 : i32, i32, i32
  }
  func.func @transform_1(%arg0: i32) -> (i32, i32, i32) {
    %c0_i32 = arith.constant 0 : i32
    %c0_i32_0 = arith.constant 0 : i32
    %c0_i32_1 = arith.constant 0 : i32
    %c0_i32_2 = arith.constant 0 : i32
    return %c0_i32, %c0_i32_0, %c0_i32_1 : i32, i32, i32
  }
  func.func @transform_2(%arg0: i32) -> (i32, i32) {
    %c0_i32 = arith.constant 0 : i32
    %c0_i32_0 = arith.constant 0 : i32
    %c0_i32_1 = arith.constant 0 : i32
    return %c0_i32, %c0_i32_0 : i32, i32
  }
  func.func @transform_3(%arg0: i32) -> (i32, i32, i32) {
    %c0_i32 = arith.constant 0 : i32
    %c0_i32_0 = arith.constant 0 : i32
    %c0_i32_1 = arith.constant 0 : i32
    return %arg0, %c0_i32, %c0_i32_0 : i32, i32, i32
  }
  func.func @transform_4(%arg0: i32) -> (i32, i32, i32) {
    %c0_i32 = arith.constant 0 : i32
    %c0_i32_0 = arith.constant 0 : i32
    %c0_i32_1 = arith.constant 0 : i32
    return %arg0, %c0_i32, %c0_i32_0 : i32, i32, i32
  }
  func.func @transform_5(%arg0: i32) -> (i32, i32, i32) {
    %c0_i32 = arith.constant 0 : i32
    %c0_i32_0 = arith.constant 0 : i32
    %c0_i32_1 = arith.constant 0 : i32
    return %arg0, %c0_i32, %c0_i32_0 : i32, i32, i32
  }
}

module attributes {stable_mosaic.version = 11 : i64} {
  func.func @_bn_apply_kernel(%arg0: i32, %arg1: memref<1x288x128xbf16, #tpu.memory_space<vmem>>, %arg2: memref<1x128xf32, #tpu.memory_space<vmem>>, %arg3: memref<1x128xf32, #tpu.memory_space<vmem>>, %arg4: memref<1x288x128xbf16, #tpu.memory_space<vmem>>) attributes {dimension_semantics = [#tpu.dimension_semantics<parallel>], iteration_bounds = array<i64: 2>, scalar_prefetch = 0 : i64, scratch_operands = 0 : i64, tpu.core_type = #tpu.core_type<tc>, window_params = [{transform_indices = @transform_0, window_bounds = array<i64: 1, 288, 128>}, {pipeline_mode = #tpu.pipeline_mode<synchronous>, transform_indices = @transform_1, window_bounds = array<i64: 1, 128>}, {pipeline_mode = #tpu.pipeline_mode<synchronous>, transform_indices = @transform_2, window_bounds = array<i64: 1, 128>}, {transform_indices = @transform_3, window_bounds = array<i64: 1, 288, 128>}]} {
    %c0 = arith.constant 0 : index
    %c0_0 = arith.constant 0 : index
    %0 = vector.load %arg2[%c0, %c0_0] : memref<1x128xf32, #tpu.memory_space<vmem>>, vector<1x128xf32>
    %cst = arith.constant 0.001953125 : f32
    %1 = vector.broadcast %cst : f32 to vector<1x128xf32>
    %2 = arith.mulf %0, %1 : vector<1x128xf32>
    %c0_1 = arith.constant 0 : index
    %c0_2 = arith.constant 0 : index
    %3 = vector.load %arg3[%c0_1, %c0_2] : memref<1x128xf32, #tpu.memory_space<vmem>>, vector<1x128xf32>
    %cst_3 = arith.constant 0.001953125 : f32
    %4 = vector.broadcast %cst_3 : f32 to vector<1x128xf32>
    %5 = arith.mulf %3, %4 : vector<1x128xf32>
    %cst_4 = arith.constant 0.000000e+00 : f32
    %6 = vector.broadcast %cst_4 : f32 to vector<1x128xf32>
    %7 = arith.addf %6, %5 : vector<1x128xf32>
    %8 = arith.mulf %2, %2 : vector<1x128xf32>
    %9 = arith.subf %7, %8 : vector<1x128xf32>
    %cst_5 = arith.constant 9.99999974E-6 : f32
    %10 = vector.broadcast %cst_5 : f32 to vector<1x128xf32>
    %11 = arith.addf %9, %10 : vector<1x128xf32>
    %12 = math.rsqrt %11 : vector<1x128xf32>
    %c0_6 = arith.constant 0 : index
    %c0_7 = arith.constant 0 : index
    %c0_8 = arith.constant 0 : index
    %13 = vector.load %arg1[%c0_6, %c0_7, %c0_8] : memref<1x288x128xbf16, #tpu.memory_space<vmem>>, vector<1x288x128xbf16>
    %14 = vector.shape_cast %13 : vector<1x288x128xbf16> to vector<288x128xbf16>
    %15 = arith.extf %14 : vector<288x128xbf16> to vector<288x128xf32>
    %16 = vector.broadcast %2 : vector<1x128xf32> to vector<288x128xf32>
    %17 = arith.subf %15, %16 : vector<288x128xf32>
    %18 = vector.broadcast %12 : vector<1x128xf32> to vector<288x128xf32>
    %19 = arith.mulf %17, %18 : vector<288x128xf32>
    %20 = arith.truncf %19 : vector<288x128xf32> to vector<288x128xbf16>
    %c0_9 = arith.constant 0 : index
    %c0_10 = arith.constant 0 : index
    %c0_11 = arith.constant 0 : index
    %21 = vector.load %arg4[%c0_9, %c0_10, %c0_11] : memref<1x288x128xbf16, #tpu.memory_space<vmem>>, vector<1x288x128xbf16>
    %22 = vector.shape_cast %21 : vector<1x288x128xbf16> to vector<288x128xbf16>
    %23 = vector.shape_cast %20 : vector<288x128xbf16> to vector<1x288x128xbf16>
    tpu.vector_store %arg4[%c0_9, %c0_10, %c0_11], %23 {strides = array<i32>} : memref<1x288x128xbf16, #tpu.memory_space<vmem>>, vector<1x288x128xbf16>,
    return
  }
  func.func @transform_0(%arg0: i32) -> (i32, i32, i32) {
    %c0_i32 = arith.constant 0 : i32
    %c0_i32_0 = arith.constant 0 : i32
    %c0_i32_1 = arith.constant 0 : i32
    return %arg0, %c0_i32, %c0_i32_0 : i32, i32, i32
  }
  func.func @transform_1(%arg0: i32) -> (i32, i32) {
    %c0_i32 = arith.constant 0 : i32
    %c0_i32_0 = arith.constant 0 : i32
    %c0_i32_1 = arith.constant 0 : i32
    return %c0_i32, %c0_i32_0 : i32, i32
  }
  func.func @transform_2(%arg0: i32) -> (i32, i32) {
    %c0_i32 = arith.constant 0 : i32
    %c0_i32_0 = arith.constant 0 : i32
    %c0_i32_1 = arith.constant 0 : i32
    return %c0_i32, %c0_i32_0 : i32, i32
  }
  func.func @transform_3(%arg0: i32) -> (i32, i32, i32) {
    %c0_i32 = arith.constant 0 : i32
    %c0_i32_0 = arith.constant 0 : i32
    %c0_i32_1 = arith.constant 0 : i32
    return %arg0, %c0_i32, %c0_i32_0 : i32, i32, i32
  }
}

module attributes {stable_mosaic.version = 11 : i64} {
  func.func @_bn_apply_kernel(%arg0: i32, %arg1: memref<1x80x128xbf16, #tpu.memory_space<vmem>>, %arg2: memref<1x128xf32, #tpu.memory_space<vmem>>, %arg3: memref<1x128xf32, #tpu.memory_space<vmem>>, %arg4: memref<1x80x128xbf16, #tpu.memory_space<vmem>>) attributes {dimension_semantics = [#tpu.dimension_semantics<parallel>], iteration_bounds = array<i64: 2>, scalar_prefetch = 0 : i64, scratch_operands = 0 : i64, tpu.core_type = #tpu.core_type<tc>, window_params = [{transform_indices = @transform_0, window_bounds = array<i64: 1, 80, 128>}, {pipeline_mode = #tpu.pipeline_mode<synchronous>, transform_indices = @transform_1, window_bounds = array<i64: 1, 128>}, {pipeline_mode = #tpu.pipeline_mode<synchronous>, transform_indices = @transform_2, window_bounds = array<i64: 1, 128>}, {transform_indices = @transform_3, window_bounds = array<i64: 1, 80, 128>}]} {
    %c0 = arith.constant 0 : index
    %c0_0 = arith.constant 0 : index
    %0 = vector.load %arg2[%c0, %c0_0] : memref<1x128xf32, #tpu.memory_space<vmem>>, vector<1x128xf32>
    %cst = arith.constant 7.812500e-03 : f32
    %1 = vector.broadcast %cst : f32 to vector<1x128xf32>
    %2 = arith.mulf %0, %1 : vector<1x128xf32>
    %c0_1 = arith.constant 0 : index
    %c0_2 = arith.constant 0 : index
    %3 = vector.load %arg3[%c0_1, %c0_2] : memref<1x128xf32, #tpu.memory_space<vmem>>, vector<1x128xf32>
    %cst_3 = arith.constant 7.812500e-03 : f32
    %4 = vector.broadcast %cst_3 : f32 to vector<1x128xf32>
    %5 = arith.mulf %3, %4 : vector<1x128xf32>
    %cst_4 = arith.constant 0.000000e+00 : f32
    %6 = vector.broadcast %cst_4 : f32 to vector<1x128xf32>
    %7 = arith.addf %6, %5 : vector<1x128xf32>
    %8 = arith.mulf %2, %2 : vector<1x128xf32>
    %9 = arith.subf %7, %8 : vector<1x128xf32>
    %cst_5 = arith.constant 9.99999974E-6 : f32
    %10 = vector.broadcast %cst_5 : f32 to vector<1x128xf32>
    %11 = arith.addf %9, %10 : vector<1x128xf32>
    %12 = math.rsqrt %11 : vector<1x128xf32>
    %c0_6 = arith.constant 0 : index
    %c0_7 = arith.constant 0 : index
    %c0_8 = arith.constant 0 : index
    %13 = vector.load %arg1[%c0_6, %c0_7, %c0_8] : memref<1x80x128xbf16, #tpu.memory_space<vmem>>, vector<1x80x128xbf16>
    %14 = vector.shape_cast %13 : vector<1x80x128xbf16> to vector<80x128xbf16>
    %15 = arith.extf %14 : vector<80x128xbf16> to vector<80x128xf32>
    %16 = vector.broadcast %2 : vector<1x128xf32> to vector<80x128xf32>
    %17 = arith.subf %15, %16 : vector<80x128xf32>
    %18 = vector.broadcast %12 : vector<1x128xf32> to vector<80x128xf32>
    %19 = arith.mulf %17, %18 : vector<80x128xf32>
    %20 = arith.truncf %19 : vector<80x128xf32> to vector<80x128xbf16>
    %c0_9 = arith.constant 0 : index
    %c0_10 = arith.constant 0 : index
    %c0_11 = arith.constant 0 : index
    %21 = vector.load %arg4[%c0_9, %c0_10, %c0_11] : memref<1x80x128xbf16, #tpu.memory_space<vmem>>, vector<1x80x128xbf16>
    %22 = vector.shape_cast %21 : vector<1x80x128xbf16> to vector<80x128xbf16>
    %23 = vector.shape_cast %20 : vector<80x128xbf16> to vector<1x80x128xbf16>
    tpu.vector_store %arg4[%c0_9, %c0_10, %c0_11], %23 {strides = array<i32>} : memref<1x80x128xbf16, #tpu.memory_space<vmem>>, vector<1x80x128xbf16>,
    return
  }
  func.func @transform_0(%arg0: i32) -> (i32, i32, i32) {
    %c0_i32 = arith.constant 0 : i32
    %c0_i32_0 = arith.constant 0 : i32
    %c0_i32_1 = arith.constant 0 : i32
    return %arg0, %c0_i32, %c0_i32_0 : i32, i32, i32
  }
  func.func @transform_1(%arg0: i32) -> (i32, i32) {
    %c0_i32 = arith.constant 0 : i32
    %c0_i32_0 = arith.constant 0 : i32
    %c0_i32_1 = arith.constant 0 : i32
    return %c0_i32, %c0_i32_0 : i32, i32
  }
  func.func @transform_2(%arg0: i32) -> (i32, i32) {
    %c0_i32 = arith.constant 0 : i32
    %c0_i32_0 = arith.constant 0 : i32
    %c0_i32_1 = arith.constant 0 : i32
    return %c0_i32, %c0_i32_0 : i32, i32
  }
  func.func @transform_3(%arg0: i32) -> (i32, i32, i32) {
    %c0_i32 = arith.constant 0 : i32
    %c0_i32_0 = arith.constant 0 : i32
    %c0_i32_1 = arith.constant 0 : i32
    return %arg0, %c0_i32, %c0_i32_0 : i32, i32, i32
  }
}

module attributes {stable_mosaic.version = 11 : i64} {
  func.func @_conv_relu_stats_kernel(%arg0: i32, %arg1: memref<1x104x16xf32, #tpu.memory_space<vmem>>, %arg2: memref<9x16x128xbf16, #tpu.memory_space<vmem>>, %arg3: memref<80x1xf32, #tpu.memory_space<vmem>>, %arg4: memref<1x80x128xbf16, #tpu.memory_space<vmem>>, %arg5: memref<1x1x128xf32, #tpu.memory_space<vmem>>, %arg6: memref<1x1x128xf32, #tpu.memory_space<vmem>>) attributes {dimension_semantics = [#tpu.dimension_semantics<parallel>], iteration_bounds = array<i64: 2>, scalar_prefetch = 0 : i64, scratch_operands = 0 : i64, tpu.core_type = #tpu.core_type<tc>, window_params = [{transform_indices = @transform_0, window_bounds = array<i64: 1, 104, 16>}, {pipeline_mode = #tpu.pipeline_mode<synchronous>, transform_indices = @transform_1, window_bounds = array<i64: 9, 16, 128>}, {pipeline_mode = #tpu.pipeline_mode<synchronous>, transform_indices = @transform_2, window_bounds = array<i64: 80, 1>}, {transform_indices = @transform_3, window_bounds = array<i64: 1, 80, 128>}, {transform_indices = @transform_4, window_bounds = array<i64: 1, 1, 128>}, {transform_indices = @transform_5, window_bounds = array<i64: 1, 1, 128>}]} {
    %c0 = arith.constant 0 : index
    %c0_0 = arith.constant 0 : index
    %c0_1 = arith.constant 0 : index
    %0 = vector.load %arg1[%c0, %c0_0, %c0_1] : memref<1x104x16xf32, #tpu.memory_space<vmem>>, vector<1x80x16xf32>
    %1 = vector.shape_cast %0 : vector<1x80x16xf32> to vector<80x16xf32>
    %2 = arith.truncf %1 : vector<80x16xf32> to vector<80x16xbf16>
    %c0_2 = arith.constant 0 : index
    %c0_3 = arith.constant 0 : index
    %c0_4 = arith.constant 0 : index
    %3 = vector.load %arg2[%c0_2, %c0_3, %c0_4] : memref<9x16x128xbf16, #tpu.memory_space<vmem>>, vector<1x16x128xbf16>
    %4 = vector.shape_cast %3 : vector<1x16x128xbf16> to vector<16x128xbf16>
    %cst = arith.constant dense<0.000000e+00> : vector<80x128xf32>
    %5 = tpu.matmul %2, %4, %cst {dimension_numbers = #tpu.dot_dimension_numbers<[1], [0], [0], [1], [0, 0, 1, 1], [], []>} : vector<80x16xbf16>, vector<16x128xbf16>, vector<80x128xf32> -> vector<80x128xf32>
    %c0_5 = arith.constant 0 : index
    %c1 = arith.constant 1 : index
    %c0_6 = arith.constant 0 : index
    %6 = vector.load %arg1[%c0_5, %c1, %c0_6] : memref<1x104x16xf32, #tpu.memory_space<vmem>>, vector<1x80x16xf32>
    %7 = vector.shape_cast %6 : vector<1x80x16xf32> to vector<80x16xf32>
    %8 = arith.truncf %7 : vector<80x16xf32> to vector<80x16xbf16>
    %c1_7 = arith.constant 1 : index
    %c0_8 = arith.constant 0 : index
    %c0_9 = arith.constant 0 : index
    %9 = vector.load %arg2[%c1_7, %c0_8, %c0_9] : memref<9x16x128xbf16, #tpu.memory_space<vmem>>, vector<1x16x128xbf16>
    %10 = vector.shape_cast %9 : vector<1x16x128xbf16> to vector<16x128xbf16>
    %cst_10 = arith.constant dense<0.000000e+00> : vector<80x128xf32>
    %11 = tpu.matmul %8, %10, %cst_10 {dimension_numbers = #tpu.dot_dimension_numbers<[1], [0], [0], [1], [0, 0, 1, 1], [], []>} : vector<80x16xbf16>, vector<16x128xbf16>, vector<80x128xf32> -> vector<80x128xf32>
    %12 = arith.addf %5, %11 : vector<80x128xf32>
    %c0_11 = arith.constant 0 : index
    %c2 = arith.constant 2 : index
    %c0_12 = arith.constant 0 : index
    %13 = vector.load %arg1[%c0_11, %c2, %c0_12] : memref<1x104x16xf32, #tpu.memory_space<vmem>>, vector<1x80x16xf32>
    %14 = vector.shape_cast %13 : vector<1x80x16xf32> to vector<80x16xf32>
    %15 = arith.truncf %14 : vector<80x16xf32> to vector<80x16xbf16>
    %c2_13 = arith.constant 2 : index
    %c0_14 = arith.constant 0 : index
    %c0_15 = arith.constant 0 : index
    %16 = vector.load %arg2[%c2_13, %c0_14, %c0_15] : memref<9x16x128xbf16, #tpu.memory_space<vmem>>, vector<1x16x128xbf16>
    %17 = vector.shape_cast %16 : vector<1x16x128xbf16> to vector<16x128xbf16>
    %cst_16 = arith.constant dense<0.000000e+00> : vector<80x128xf32>
    %18 = tpu.matmul %15, %17, %cst_16 {dimension_numbers = #tpu.dot_dimension_numbers<[1], [0], [0], [1], [0, 0, 1, 1], [], []>} : vector<80x16xbf16>, vector<16x128xbf16>, vector<80x128xf32> -> vector<80x128xf32>
    %19 = arith.addf %12, %18 : vector<80x128xf32>
    %c0_17 = arith.constant 0 : index
    %c10 = arith.constant 10 : index
    %c0_18 = arith.constant 0 : index
    %20 = vector.load %arg1[%c0_17, %c10, %c0_18] : memref<1x104x16xf32, #tpu.memory_space<vmem>>, vector<1x80x16xf32>
    %21 = vector.shape_cast %20 : vector<1x80x16xf32> to vector<80x16xf32>
    %22 = arith.truncf %21 : vector<80x16xf32> to vector<80x16xbf16>
    %c3 = arith.constant 3 : index
    %c0_19 = arith.constant 0 : index
    %c0_20 = arith.constant 0 : index
    %23 = vector.load %arg2[%c3, %c0_19, %c0_20] : memref<9x16x128xbf16, #tpu.memory_space<vmem>>, vector<1x16x128xbf16>
    %24 = vector.shape_cast %23 : vector<1x16x128xbf16> to vector<16x128xbf16>
    %cst_21 = arith.constant dense<0.000000e+00> : vector<80x128xf32>
    %25 = tpu.matmul %22, %24, %cst_21 {dimension_numbers = #tpu.dot_dimension_numbers<[1], [0], [0], [1], [0, 0, 1, 1], [], []>} : vector<80x16xbf16>, vector<16x128xbf16>, vector<80x128xf32> -> vector<80x128xf32>
    %26 = arith.addf %19, %25 : vector<80x128xf32>
    %c0_22 = arith.constant 0 : index
    %c11 = arith.constant 11 : index
    %c0_23 = arith.constant 0 : index
    %27 = vector.load %arg1[%c0_22, %c11, %c0_23] : memref<1x104x16xf32, #tpu.memory_space<vmem>>, vector<1x80x16xf32>
    %28 = vector.shape_cast %27 : vector<1x80x16xf32> to vector<80x16xf32>
    %29 = arith.truncf %28 : vector<80x16xf32> to vector<80x16xbf16>
    %c4 = arith.constant 4 : index
    %c0_24 = arith.constant 0 : index
    %c0_25 = arith.constant 0 : index
    %30 = vector.load %arg2[%c4, %c0_24, %c0_25] : memref<9x16x128xbf16, #tpu.memory_space<vmem>>, vector<1x16x128xbf16>
    %31 = vector.shape_cast %30 : vector<1x16x128xbf16> to vector<16x128xbf16>
    %cst_26 = arith.constant dense<0.000000e+00> : vector<80x128xf32>
    %32 = tpu.matmul %29, %31, %cst_26 {dimension_numbers = #tpu.dot_dimension_numbers<[1], [0], [0], [1], [0, 0, 1, 1], [], []>} : vector<80x16xbf16>, vector<16x128xbf16>, vector<80x128xf32> -> vector<80x128xf32>
    %33 = arith.addf %26, %32 : vector<80x128xf32>
    %c0_27 = arith.constant 0 : index
    %c12 = arith.constant 12 : index
    %c0_28 = arith.constant 0 : index
    %34 = vector.load %arg1[%c0_27, %c12, %c0_28] : memref<1x104x16xf32, #tpu.memory_space<vmem>>, vector<1x80x16xf32>
    %35 = vector.shape_cast %34 : vector<1x80x16xf32> to vector<80x16xf32>
    %36 = arith.truncf %35 : vector<80x16xf32> to vector<80x16xbf16>
    %c5 = arith.constant 5 : index
    %c0_29 = arith.constant 0 : index
    %c0_30 = arith.constant 0 : index
    %37 = vector.load %arg2[%c5, %c0_29, %c0_30] : memref<9x16x128xbf16, #tpu.memory_space<vmem>>, vector<1x16x128xbf16>
    %38 = vector.shape_cast %37 : vector<1x16x128xbf16> to vector<16x128xbf16>
    %cst_31 = arith.constant dense<0.000000e+00> : vector<80x128xf32>
    %39 = tpu.matmul %36, %38, %cst_31 {dimension_numbers = #tpu.dot_dimension_numbers<[1], [0], [0], [1], [0, 0, 1, 1], [], []>} : vector<80x16xbf16>, vector<16x128xbf16>, vector<80x128xf32> -> vector<80x128xf32>
    %40 = arith.addf %33, %39 : vector<80x128xf32>
    %c0_32 = arith.constant 0 : index
    %c20 = arith.constant 20 : index
    %c0_33 = arith.constant 0 : index
    %41 = vector.load %arg1[%c0_32, %c20, %c0_33] : memref<1x104x16xf32, #tpu.memory_space<vmem>>, vector<1x80x16xf32>
    %42 = vector.shape_cast %41 : vector<1x80x16xf32> to vector<80x16xf32>
    %43 = arith.truncf %42 : vector<80x16xf32> to vector<80x16xbf16>
    %c6 = arith.constant 6 : index
    %c0_34 = arith.constant 0 : index
    %c0_35 = arith.constant 0 : index
    %44 = vector.load %arg2[%c6, %c0_34, %c0_35] : memref<9x16x128xbf16, #tpu.memory_space<vmem>>, vector<1x16x128xbf16>
    %45 = vector.shape_cast %44 : vector<1x16x128xbf16> to vector<16x128xbf16>
    %cst_36 = arith.constant dense<0.000000e+00> : vector<80x128xf32>
    %46 = tpu.matmul %43, %45, %cst_36 {dimension_numbers = #tpu.dot_dimension_numbers<[1], [0], [0], [1], [0, 0, 1, 1], [], []>} : vector<80x16xbf16>, vector<16x128xbf16>, vector<80x128xf32> -> vector<80x128xf32>
    %47 = arith.addf %40, %46 : vector<80x128xf32>
    %c0_37 = arith.constant 0 : index
    %c21 = arith.constant 21 : index
    %c0_38 = arith.constant 0 : index
    %48 = vector.load %arg1[%c0_37, %c21, %c0_38] : memref<1x104x16xf32, #tpu.memory_space<vmem>>, vector<1x80x16xf32>
    %49 = vector.shape_cast %48 : vector<1x80x16xf32> to vector<80x16xf32>
    %50 = arith.truncf %49 : vector<80x16xf32> to vector<80x16xbf16>
    %c7 = arith.constant 7 : index
    %c0_39 = arith.constant 0 : index
    %c0_40 = arith.constant 0 : index
    %51 = vector.load %arg2[%c7, %c0_39, %c0_40] : memref<9x16x128xbf16, #tpu.memory_space<vmem>>, vector<1x16x128xbf16>
    %52 = vector.shape_cast %51 : vector<1x16x128xbf16> to vector<16x128xbf16>
    %cst_41 = arith.constant dense<0.000000e+00> : vector<80x128xf32>
    %53 = tpu.matmul %50, %52, %cst_41 {dimension_numbers = #tpu.dot_dimension_numbers<[1], [0], [0], [1], [0, 0, 1, 1], [], []>} : vector<80x16xbf16>, vector<16x128xbf16>, vector<80x128xf32> -> vector<80x128xf32>
    %54 = arith.addf %47, %53 : vector<80x128xf32>
    %c0_42 = arith.constant 0 : index
    %c22 = arith.constant 22 : index
    %c0_43 = arith.constant 0 : index
    %55 = vector.load %arg1[%c0_42, %c22, %c0_43] : memref<1x104x16xf32, #tpu.memory_space<vmem>>, vector<1x80x16xf32>
    %56 = vector.shape_cast %55 : vector<1x80x16xf32> to vector<80x16xf32>
    %57 = arith.truncf %56 : vector<80x16xf32> to vector<80x16xbf16>
    %c8 = arith.constant 8 : index
    %c0_44 = arith.constant 0 : index
    %c0_45 = arith.constant 0 : index
    %58 = vector.load %arg2[%c8, %c0_44, %c0_45] : memref<9x16x128xbf16, #tpu.memory_space<vmem>>, vector<1x16x128xbf16>
    %59 = vector.shape_cast %58 : vector<1x16x128xbf16> to vector<16x128xbf16>
    %cst_46 = arith.constant dense<0.000000e+00> : vector<80x128xf32>
    %60 = tpu.matmul %57, %59, %cst_46 {dimension_numbers = #tpu.dot_dimension_numbers<[1], [0], [0], [1], [0, 0, 1, 1], [], []>} : vector<80x16xbf16>, vector<16x128xbf16>, vector<80x128xf32> -> vector<80x128xf32>
    %61 = arith.addf %54, %60 : vector<80x128xf32>
    %cst_47 = arith.constant 0.000000e+00 : f32
    %62 = vector.broadcast %cst_47 : f32 to vector<80x128xf32>
    %63 = arith.maximumf %61, %62 : vector<80x128xf32>
    %c0_48 = arith.constant 0 : index
    %c0_49 = arith.constant 0 : index
    %64 = vector.load %arg3[%c0_48, %c0_49] : memref<80x1xf32, #tpu.memory_space<vmem>>, vector<80x1xf32>
    %65 = vector.broadcast %64 : vector<80x1xf32> to vector<80x128xf32>
    %66 = arith.mulf %63, %65 : vector<80x128xf32>
    %cst_50 = arith.constant dense<0.000000e+00> : vector<128xf32>
    %67 = vector.multi_reduction <add>, %66, %cst_50 [0] : vector<80x128xf32> to vector<128xf32>
    %68 = vector.shape_cast %67 : vector<128xf32> to vector<1x128xf32>
    %c0_51 = arith.constant 0 : index
    %c0_52 = arith.constant 0 : index
    %c0_53 = arith.constant 0 : index
    %69 = vector.load %arg5[%c0_51, %c0_52, %c0_53] : memref<1x1x128xf32, #tpu.memory_space<vmem>>, vector<1x1x128xf32>
    %70 = vector.shape_cast %69 : vector<1x1x128xf32> to vector<1x128xf32>
    %71 = vector.shape_cast %68 : vector<1x128xf32> to vector<1x1x128xf32>
    tpu.vector_store %arg5[%c0_51, %c0_52, %c0_53], %71 {strides = array<i32>} : memref<1x1x128xf32, #tpu.memory_space<vmem>>, vector<1x1x128xf32>,
    %72 = arith.mulf %66, %66 : vector<80x128xf32>
    %cst_54 = arith.constant dense<0.000000e+00> : vector<128xf32>
    %73 = vector.multi_reduction <add>, %72, %cst_54 [0] : vector<80x128xf32> to vector<128xf32>
    %74 = vector.shape_cast %73 : vector<128xf32> to vector<1x128xf32>
    %c0_55 = arith.constant 0 : index
    %c0_56 = arith.constant 0 : index
    %c0_57 = arith.constant 0 : index
    %75 = vector.load %arg6[%c0_55, %c0_56, %c0_57] : memref<1x1x128xf32, #tpu.memory_space<vmem>>, vector<1x1x128xf32>
    %76 = vector.shape_cast %75 : vector<1x1x128xf32> to vector<1x128xf32>
    %77 = vector.shape_cast %74 : vector<1x128xf32> to vector<1x1x128xf32>
    tpu.vector_store %arg6[%c0_55, %c0_56, %c0_57], %77 {strides = array<i32>} : memref<1x1x128xf32, #tpu.memory_space<vmem>>, vector<1x1x128xf32>,
    %78 = arith.truncf %66 : vector<80x128xf32> to vector<80x128xbf16>
    %c0_58 = arith.constant 0 : index
    %c0_59 = arith.constant 0 : index
    %c0_60 = arith.constant 0 : index
    %79 = vector.load %arg4[%c0_58, %c0_59, %c0_60] : memref<1x80x128xbf16, #tpu.memory_space<vmem>>, vector<1x80x128xbf16>
    %80 = vector.shape_cast %79 : vector<1x80x128xbf16> to vector<80x128xbf16>
    %81 = vector.shape_cast %78 : vector<80x128xbf16> to vector<1x80x128xbf16>
    tpu.vector_store %arg4[%c0_58, %c0_59, %c0_60], %81 {strides = array<i32>} : memref<1x80x128xbf16, #tpu.memory_space<vmem>>, vector<1x80x128xbf16>,
    return
  }
  func.func @transform_0(%arg0: i32) -> (i32, i32, i32) {
    %c0_i32 = arith.constant 0 : i32
    %c0_i32_0 = arith.constant 0 : i32
    %c0_i32_1 = arith.constant 0 : i32
    return %arg0, %c0_i32, %c0_i32_0 : i32, i32, i32
  }
  func.func @transform_1(%arg0: i32) -> (i32, i32, i32) {
    %c0_i32 = arith.constant 0 : i32
    %c0_i32_0 = arith.constant 0 : i32
    %c0_i32_1 = arith.constant 0 : i32
    %c0_i32_2 = arith.constant 0 : i32
    return %c0_i32, %c0_i32_0, %c0_i32_1 : i32, i32, i32
  }
  func.func @transform_2(%arg0: i32) -> (i32, i32) {
    %c0_i32 = arith.constant 0 : i32
    %c0_i32_0 = arith.constant 0 : i32
    %c0_i32_1 = arith.constant 0 : i32
    return %c0_i32, %c0_i32_0 : i32, i32
  }
  func.func @transform_3(%arg0: i32) -> (i32, i32, i32) {
    %c0_i32 = arith.constant 0 : i32
    %c0_i32_0 = arith.constant 0 : i32
    %c0_i32_1 = arith.constant 0 : i32
    return %arg0, %c0_i32, %c0_i32_0 : i32, i32, i32
  }
  func.func @transform_4(%arg0: i32) -> (i32, i32, i32) {
    %c0_i32 = arith.constant 0 : i32
    %c0_i32_0 = arith.constant 0 : i32
    %c0_i32_1 = arith.constant 0 : i32
    return %arg0, %c0_i32, %c0_i32_0 : i32, i32, i32
  }
  func.func @transform_5(%arg0: i32) -> (i32, i32, i32) {
    %c0_i32 = arith.constant 0 : i32
    %c0_i32_0 = arith.constant 0 : i32
    %c0_i32_1 = arith.constant 0 : i32
    return %arg0, %c0_i32, %c0_i32_0 : i32, i32, i32
  }
}

module attributes {stable_mosaic.version = 11 : i64} {
  func.func @_conv_relu_stats_kernel(%arg0: i32, %arg1: memref<1x328x16xf32, #tpu.memory_space<vmem>>, %arg2: memref<9x16x128xbf16, #tpu.memory_space<vmem>>, %arg3: memref<288x1xf32, #tpu.memory_space<vmem>>, %arg4: memref<1x288x128xbf16, #tpu.memory_space<vmem>>, %arg5: memref<1x1x128xf32, #tpu.memory_space<vmem>>, %arg6: memref<1x1x128xf32, #tpu.memory_space<vmem>>) attributes {dimension_semantics = [#tpu.dimension_semantics<parallel>], iteration_bounds = array<i64: 2>, scalar_prefetch = 0 : i64, scratch_operands = 0 : i64, tpu.core_type = #tpu.core_type<tc>, window_params = [{transform_indices = @transform_0, window_bounds = array<i64: 1, 328, 16>}, {pipeline_mode = #tpu.pipeline_mode<synchronous>, transform_indices = @transform_1, window_bounds = array<i64: 9, 16, 128>}, {pipeline_mode = #tpu.pipeline_mode<synchronous>, transform_indices = @transform_2, window_bounds = array<i64: 288, 1>}, {transform_indices = @transform_3, window_bounds = array<i64: 1, 288, 128>}, {transform_indices = @transform_4, window_bounds = array<i64: 1, 1, 128>}, {transform_indices = @transform_5, window_bounds = array<i64: 1, 1, 128>}]} {
    %c0 = arith.constant 0 : index
    %c0_0 = arith.constant 0 : index
    %c0_1 = arith.constant 0 : index
    %0 = vector.load %arg1[%c0, %c0_0, %c0_1] : memref<1x328x16xf32, #tpu.memory_space<vmem>>, vector<1x288x16xf32>
    %1 = vector.shape_cast %0 : vector<1x288x16xf32> to vector<288x16xf32>
    %2 = arith.truncf %1 : vector<288x16xf32> to vector<288x16xbf16>
    %c0_2 = arith.constant 0 : index
    %c0_3 = arith.constant 0 : index
    %c0_4 = arith.constant 0 : index
    %3 = vector.load %arg2[%c0_2, %c0_3, %c0_4] : memref<9x16x128xbf16, #tpu.memory_space<vmem>>, vector<1x16x128xbf16>
    %4 = vector.shape_cast %3 : vector<1x16x128xbf16> to vector<16x128xbf16>
    %cst = arith.constant dense<0.000000e+00> : vector<288x128xf32>
    %5 = tpu.matmul %2, %4, %cst {dimension_numbers = #tpu.dot_dimension_numbers<[1], [0], [0], [1], [0, 0, 1, 1], [], []>} : vector<288x16xbf16>, vector<16x128xbf16>, vector<288x128xf32> -> vector<288x128xf32>
    %c0_5 = arith.constant 0 : index
    %c1 = arith.constant 1 : index
    %c0_6 = arith.constant 0 : index
    %6 = vector.load %arg1[%c0_5, %c1, %c0_6] : memref<1x328x16xf32, #tpu.memory_space<vmem>>, vector<1x288x16xf32>
    %7 = vector.shape_cast %6 : vector<1x288x16xf32> to vector<288x16xf32>
    %8 = arith.truncf %7 : vector<288x16xf32> to vector<288x16xbf16>
    %c1_7 = arith.constant 1 : index
    %c0_8 = arith.constant 0 : index
    %c0_9 = arith.constant 0 : index
    %9 = vector.load %arg2[%c1_7, %c0_8, %c0_9] : memref<9x16x128xbf16, #tpu.memory_space<vmem>>, vector<1x16x128xbf16>
    %10 = vector.shape_cast %9 : vector<1x16x128xbf16> to vector<16x128xbf16>
    %cst_10 = arith.constant dense<0.000000e+00> : vector<288x128xf32>
    %11 = tpu.matmul %8, %10, %cst_10 {dimension_numbers = #tpu.dot_dimension_numbers<[1], [0], [0], [1], [0, 0, 1, 1], [], []>} : vector<288x16xbf16>, vector<16x128xbf16>, vector<288x128xf32> -> vector<288x128xf32>
    %12 = arith.addf %5, %11 : vector<288x128xf32>
    %c0_11 = arith.constant 0 : index
    %c2 = arith.constant 2 : index
    %c0_12 = arith.constant 0 : index
    %13 = vector.load %arg1[%c0_11, %c2, %c0_12] : memref<1x328x16xf32, #tpu.memory_space<vmem>>, vector<1x288x16xf32>
    %14 = vector.shape_cast %13 : vector<1x288x16xf32> to vector<288x16xf32>
    %15 = arith.truncf %14 : vector<288x16xf32> to vector<288x16xbf16>
    %c2_13 = arith.constant 2 : index
    %c0_14 = arith.constant 0 : index
    %c0_15 = arith.constant 0 : index
    %16 = vector.load %arg2[%c2_13, %c0_14, %c0_15] : memref<9x16x128xbf16, #tpu.memory_space<vmem>>, vector<1x16x128xbf16>
    %17 = vector.shape_cast %16 : vector<1x16x128xbf16> to vector<16x128xbf16>
    %cst_16 = arith.constant dense<0.000000e+00> : vector<288x128xf32>
    %18 = tpu.matmul %15, %17, %cst_16 {dimension_numbers = #tpu.dot_dimension_numbers<[1], [0], [0], [1], [0, 0, 1, 1], [], []>} : vector<288x16xbf16>, vector<16x128xbf16>, vector<288x128xf32> -> vector<288x128xf32>
    %19 = arith.addf %12, %18 : vector<288x128xf32>
    %c0_17 = arith.constant 0 : index
    %c18 = arith.constant 18 : index
    %c0_18 = arith.constant 0 : index
    %20 = vector.load %arg1[%c0_17, %c18, %c0_18] : memref<1x328x16xf32, #tpu.memory_space<vmem>>, vector<1x288x16xf32>
    %21 = vector.shape_cast %20 : vector<1x288x16xf32> to vector<288x16xf32>
    %22 = arith.truncf %21 : vector<288x16xf32> to vector<288x16xbf16>
    %c3 = arith.constant 3 : index
    %c0_19 = arith.constant 0 : index
    %c0_20 = arith.constant 0 : index
    %23 = vector.load %arg2[%c3, %c0_19, %c0_20] : memref<9x16x128xbf16, #tpu.memory_space<vmem>>, vector<1x16x128xbf16>
    %24 = vector.shape_cast %23 : vector<1x16x128xbf16> to vector<16x128xbf16>
    %cst_21 = arith.constant dense<0.000000e+00> : vector<288x128xf32>
    %25 = tpu.matmul %22, %24, %cst_21 {dimension_numbers = #tpu.dot_dimension_numbers<[1], [0], [0], [1], [0, 0, 1, 1], [], []>} : vector<288x16xbf16>, vector<16x128xbf16>, vector<288x128xf32> -> vector<288x128xf32>
    %26 = arith.addf %19, %25 : vector<288x128xf32>
    %c0_22 = arith.constant 0 : index
    %c19 = arith.constant 19 : index
    %c0_23 = arith.constant 0 : index
    %27 = vector.load %arg1[%c0_22, %c19, %c0_23] : memref<1x328x16xf32, #tpu.memory_space<vmem>>, vector<1x288x16xf32>
    %28 = vector.shape_cast %27 : vector<1x288x16xf32> to vector<288x16xf32>
    %29 = arith.truncf %28 : vector<288x16xf32> to vector<288x16xbf16>
    %c4 = arith.constant 4 : index
    %c0_24 = arith.constant 0 : index
    %c0_25 = arith.constant 0 : index
    %30 = vector.load %arg2[%c4, %c0_24, %c0_25] : memref<9x16x128xbf16, #tpu.memory_space<vmem>>, vector<1x16x128xbf16>
    %31 = vector.shape_cast %30 : vector<1x16x128xbf16> to vector<16x128xbf16>
    %cst_26 = arith.constant dense<0.000000e+00> : vector<288x128xf32>
    %32 = tpu.matmul %29, %31, %cst_26 {dimension_numbers = #tpu.dot_dimension_numbers<[1], [0], [0], [1], [0, 0, 1, 1], [], []>} : vector<288x16xbf16>, vector<16x128xbf16>, vector<288x128xf32> -> vector<288x128xf32>
    %33 = arith.addf %26, %32 : vector<288x128xf32>
    %c0_27 = arith.constant 0 : index
    %c20 = arith.constant 20 : index
    %c0_28 = arith.constant 0 : index
    %34 = vector.load %arg1[%c0_27, %c20, %c0_28] : memref<1x328x16xf32, #tpu.memory_space<vmem>>, vector<1x288x16xf32>
    %35 = vector.shape_cast %34 : vector<1x288x16xf32> to vector<288x16xf32>
    %36 = arith.truncf %35 : vector<288x16xf32> to vector<288x16xbf16>
    %c5 = arith.constant 5 : index
    %c0_29 = arith.constant 0 : index
    %c0_30 = arith.constant 0 : index
    %37 = vector.load %arg2[%c5, %c0_29, %c0_30] : memref<9x16x128xbf16, #tpu.memory_space<vmem>>, vector<1x16x128xbf16>
    %38 = vector.shape_cast %37 : vector<1x16x128xbf16> to vector<16x128xbf16>
    %cst_31 = arith.constant dense<0.000000e+00> : vector<288x128xf32>
    %39 = tpu.matmul %36, %38, %cst_31 {dimension_numbers = #tpu.dot_dimension_numbers<[1], [0], [0], [1], [0, 0, 1, 1], [], []>} : vector<288x16xbf16>, vector<16x128xbf16>, vector<288x128xf32> -> vector<288x128xf32>
    %40 = arith.addf %33, %39 : vector<288x128xf32>
    %c0_32 = arith.constant 0 : index
    %c36 = arith.constant 36 : index
    %c0_33 = arith.constant 0 : index
    %41 = vector.load %arg1[%c0_32, %c36, %c0_33] : memref<1x328x16xf32, #tpu.memory_space<vmem>>, vector<1x288x16xf32>
    %42 = vector.shape_cast %41 : vector<1x288x16xf32> to vector<288x16xf32>
    %43 = arith.truncf %42 : vector<288x16xf32> to vector<288x16xbf16>
    %c6 = arith.constant 6 : index
    %c0_34 = arith.constant 0 : index
    %c0_35 = arith.constant 0 : index
    %44 = vector.load %arg2[%c6, %c0_34, %c0_35] : memref<9x16x128xbf16, #tpu.memory_space<vmem>>, vector<1x16x128xbf16>
    %45 = vector.shape_cast %44 : vector<1x16x128xbf16> to vector<16x128xbf16>
    %cst_36 = arith.constant dense<0.000000e+00> : vector<288x128xf32>
    %46 = tpu.matmul %43, %45, %cst_36 {dimension_numbers = #tpu.dot_dimension_numbers<[1], [0], [0], [1], [0, 0, 1, 1], [], []>} : vector<288x16xbf16>, vector<16x128xbf16>, vector<288x128xf32> -> vector<288x128xf32>
    %47 = arith.addf %40, %46 : vector<288x128xf32>
    %c0_37 = arith.constant 0 : index
    %c37 = arith.constant 37 : index
    %c0_38 = arith.constant 0 : index
    %48 = vector.load %arg1[%c0_37, %c37, %c0_38] : memref<1x328x16xf32, #tpu.memory_space<vmem>>, vector<1x288x16xf32>
    %49 = vector.shape_cast %48 : vector<1x288x16xf32> to vector<288x16xf32>
    %50 = arith.truncf %49 : vector<288x16xf32> to vector<288x16xbf16>
    %c7 = arith.constant 7 : index
    %c0_39 = arith.constant 0 : index
    %c0_40 = arith.constant 0 : index
    %51 = vector.load %arg2[%c7, %c0_39, %c0_40] : memref<9x16x128xbf16, #tpu.memory_space<vmem>>, vector<1x16x128xbf16>
    %52 = vector.shape_cast %51 : vector<1x16x128xbf16> to vector<16x128xbf16>
    %cst_41 = arith.constant dense<0.000000e+00> : vector<288x128xf32>
    %53 = tpu.matmul %50, %52, %cst_41 {dimension_numbers = #tpu.dot_dimension_numbers<[1], [0], [0], [1], [0, 0, 1, 1], [], []>} : vector<288x16xbf16>, vector<16x128xbf16>, vector<288x128xf32> -> vector<288x128xf32>
    %54 = arith.addf %47, %53 : vector<288x128xf32>
    %c0_42 = arith.constant 0 : index
    %c38 = arith.constant 38 : index
    %c0_43 = arith.constant 0 : index
    %55 = vector.load %arg1[%c0_42, %c38, %c0_43] : memref<1x328x16xf32, #tpu.memory_space<vmem>>, vector<1x288x16xf32>
    %56 = vector.shape_cast %55 : vector<1x288x16xf32> to vector<288x16xf32>
    %57 = arith.truncf %56 : vector<288x16xf32> to vector<288x16xbf16>
    %c8 = arith.constant 8 : index
    %c0_44 = arith.constant 0 : index
    %c0_45 = arith.constant 0 : index
    %58 = vector.load %arg2[%c8, %c0_44, %c0_45] : memref<9x16x128xbf16, #tpu.memory_space<vmem>>, vector<1x16x128xbf16>
    %59 = vector.shape_cast %58 : vector<1x16x128xbf16> to vector<16x128xbf16>
    %cst_46 = arith.constant dense<0.000000e+00> : vector<288x128xf32>
    %60 = tpu.matmul %57, %59, %cst_46 {dimension_numbers = #tpu.dot_dimension_numbers<[1], [0], [0], [1], [0, 0, 1, 1], [], []>} : vector<288x16xbf16>, vector<16x128xbf16>, vector<288x128xf32> -> vector<288x128xf32>
    %61 = arith.addf %54, %60 : vector<288x128xf32>
    %cst_47 = arith.constant 0.000000e+00 : f32
    %62 = vector.broadcast %cst_47 : f32 to vector<288x128xf32>
    %63 = arith.maximumf %61, %62 : vector<288x128xf32>
    %c0_48 = arith.constant 0 : index
    %c0_49 = arith.constant 0 : index
    %64 = vector.load %arg3[%c0_48, %c0_49] : memref<288x1xf32, #tpu.memory_space<vmem>>, vector<288x1xf32>
    %65 = vector.broadcast %64 : vector<288x1xf32> to vector<288x128xf32>
    %66 = arith.mulf %63, %65 : vector<288x128xf32>
    %cst_50 = arith.constant dense<0.000000e+00> : vector<128xf32>
    %67 = vector.multi_reduction <add>, %66, %cst_50 [0] : vector<288x128xf32> to vector<128xf32>
    %68 = vector.shape_cast %67 : vector<128xf32> to vector<1x128xf32>
    %c0_51 = arith.constant 0 : index
    %c0_52 = arith.constant 0 : index
    %c0_53 = arith.constant 0 : index
    %69 = vector.load %arg5[%c0_51, %c0_52, %c0_53] : memref<1x1x128xf32, #tpu.memory_space<vmem>>, vector<1x1x128xf32>
    %70 = vector.shape_cast %69 : vector<1x1x128xf32> to vector<1x128xf32>
    %71 = vector.shape_cast %68 : vector<1x128xf32> to vector<1x1x128xf32>
    tpu.vector_store %arg5[%c0_51, %c0_52, %c0_53], %71 {strides = array<i32>} : memref<1x1x128xf32, #tpu.memory_space<vmem>>, vector<1x1x128xf32>,
    %72 = arith.mulf %66, %66 : vector<288x128xf32>
    %cst_54 = arith.constant dense<0.000000e+00> : vector<128xf32>
    %73 = vector.multi_reduction <add>, %72, %cst_54 [0] : vector<288x128xf32> to vector<128xf32>
    %74 = vector.shape_cast %73 : vector<128xf32> to vector<1x128xf32>
    %c0_55 = arith.constant 0 : index
    %c0_56 = arith.constant 0 : index
    %c0_57 = arith.constant 0 : index
    %75 = vector.load %arg6[%c0_55, %c0_56, %c0_57] : memref<1x1x128xf32, #tpu.memory_space<vmem>>, vector<1x1x128xf32>
    %76 = vector.shape_cast %75 : vector<1x1x128xf32> to vector<1x128xf32>
    %77 = vector.shape_cast %74 : vector<1x128xf32> to vector<1x1x128xf32>
    tpu.vector_store %arg6[%c0_55, %c0_56, %c0_57], %77 {strides = array<i32>} : memref<1x1x128xf32, #tpu.memory_space<vmem>>, vector<1x1x128xf32>,
    %78 = arith.truncf %66 : vector<288x128xf32> to vector<288x128xbf16>
    %c0_58 = arith.constant 0 : index
    %c0_59 = arith.constant 0 : index
    %c0_60 = arith.constant 0 : index
    %79 = vector.load %arg4[%c0_58, %c0_59, %c0_60] : memref<1x288x128xbf16, #tpu.memory_space<vmem>>, vector<1x288x128xbf16>
    %80 = vector.shape_cast %79 : vector<1x288x128xbf16> to vector<288x128xbf16>
    %81 = vector.shape_cast %78 : vector<288x128xbf16> to vector<1x288x128xbf16>
    tpu.vector_store %arg4[%c0_58, %c0_59, %c0_60], %81 {strides = array<i32>} : memref<1x288x128xbf16, #tpu.memory_space<vmem>>, vector<1x288x128xbf16>,
    return
  }
  func.func @transform_0(%arg0: i32) -> (i32, i32, i32) {
    %c0_i32 = arith.constant 0 : i32
    %c0_i32_0 = arith.constant 0 : i32
    %c0_i32_1 = arith.constant 0 : i32
    return %arg0, %c0_i32, %c0_i32_0 : i32, i32, i32
  }
  func.func @transform_1(%arg0: i32) -> (i32, i32, i32) {
    %c0_i32 = arith.constant 0 : i32
    %c0_i32_0 = arith.constant 0 : i32
    %c0_i32_1 = arith.constant 0 : i32
    %c0_i32_2 = arith.constant 0 : i32
    return %c0_i32, %c0_i32_0, %c0_i32_1 : i32, i32, i32
  }
  func.func @transform_2(%arg0: i32) -> (i32, i32) {
    %c0_i32 = arith.constant 0 : i32
    %c0_i32_0 = arith.constant 0 : i32
    %c0_i32_1 = arith.constant 0 : i32
    return %c0_i32, %c0_i32_0 : i32, i32
  }
  func.func @transform_3(%arg0: i32) -> (i32, i32, i32) {
    %c0_i32 = arith.constant 0 : i32
    %c0_i32_0 = arith.constant 0 : i32
    %c0_i32_1 = arith.constant 0 : i32
    return %arg0, %c0_i32, %c0_i32_0 : i32, i32, i32
  }
  func.func @transform_4(%arg0: i32) -> (i32, i32, i32) {
    %c0_i32 = arith.constant 0 : i32
    %c0_i32_0 = arith.constant 0 : i32
    %c0_i32_1 = arith.constant 0 : i32
    return %arg0, %c0_i32, %c0_i32_0 : i32, i32, i32
  }
  func.func @transform_5(%arg0: i32) -> (i32, i32, i32) {
    %c0_i32 = arith.constant 0 : i32
    %c0_i32_0 = arith.constant 0 : i32
    %c0_i32_1 = arith.constant 0 : i32
    return %arg0, %c0_i32, %c0_i32_0 : i32, i32, i32
  }
}

module attributes {stable_mosaic.version = 11 : i64} {
  func.func @_bn_gap_kernel(%arg0: i32, %arg1: memref<1x288x128xbf16, #tpu.memory_space<vmem>>, %arg2: memref<1x128xf32, #tpu.memory_space<vmem>>, %arg3: memref<1x128xf32, #tpu.memory_space<vmem>>, %arg4: memref<1x1x128xf32, #tpu.memory_space<vmem>>) attributes {dimension_semantics = [#tpu.dimension_semantics<parallel>], iteration_bounds = array<i64: 2>, scalar_prefetch = 0 : i64, scratch_operands = 0 : i64, tpu.core_type = #tpu.core_type<tc>, window_params = [{transform_indices = @transform_0, window_bounds = array<i64: 1, 288, 128>}, {pipeline_mode = #tpu.pipeline_mode<synchronous>, transform_indices = @transform_1, window_bounds = array<i64: 1, 128>}, {pipeline_mode = #tpu.pipeline_mode<synchronous>, transform_indices = @transform_2, window_bounds = array<i64: 1, 128>}, {transform_indices = @transform_3, window_bounds = array<i64: 1, 1, 128>}]} {
    %c0 = arith.constant 0 : index
    %c0_0 = arith.constant 0 : index
    %0 = vector.load %arg2[%c0, %c0_0] : memref<1x128xf32, #tpu.memory_space<vmem>>, vector<1x128xf32>
    %cst = arith.constant 0.001953125 : f32
    %1 = vector.broadcast %cst : f32 to vector<1x128xf32>
    %2 = arith.mulf %0, %1 : vector<1x128xf32>
    %c0_1 = arith.constant 0 : index
    %c0_2 = arith.constant 0 : index
    %3 = vector.load %arg3[%c0_1, %c0_2] : memref<1x128xf32, #tpu.memory_space<vmem>>, vector<1x128xf32>
    %cst_3 = arith.constant 0.001953125 : f32
    %4 = vector.broadcast %cst_3 : f32 to vector<1x128xf32>
    %5 = arith.mulf %3, %4 : vector<1x128xf32>
    %6 = arith.mulf %2, %2 : vector<1x128xf32>
    %7 = arith.subf %5, %6 : vector<1x128xf32>
    %cst_4 = arith.constant 9.99999974E-6 : f32
    %8 = vector.broadcast %cst_4 : f32 to vector<1x128xf32>
    %9 = arith.addf %7, %8 : vector<1x128xf32>
    %10 = math.rsqrt %9 : vector<1x128xf32>
    %c0_5 = arith.constant 0 : index
    %c0_6 = arith.constant 0 : index
    %c0_7 = arith.constant 0 : index
    %11 = vector.load %arg1[%c0_5, %c0_6, %c0_7] : memref<1x288x128xbf16, #tpu.memory_space<vmem>>, vector<1x288x128xbf16>
    %12 = vector.shape_cast %11 : vector<1x288x128xbf16> to vector<288x128xbf16>
    %13 = arith.extf %12 : vector<288x128xbf16> to vector<288x128xf32>
    %cst_8 = arith.constant dense<0.000000e+00> : vector<128xf32>
    %14 = vector.multi_reduction <add>, %13, %cst_8 [0] : vector<288x128xf32> to vector<128xf32>
    %15 = vector.shape_cast %14 : vector<128xf32> to vector<1x128xf32>
    %cst_9 = arith.constant 3.906250e-03 : f32
    %16 = vector.broadcast %cst_9 : f32 to vector<1x128xf32>
    %17 = arith.mulf %15, %16 : vector<1x128xf32>
    %18 = arith.subf %17, %2 : vector<1x128xf32>
    %19 = arith.mulf %18, %10 : vector<1x128xf32>
    %c0_10 = arith.constant 0 : index
    %c0_11 = arith.constant 0 : index
    %c0_12 = arith.constant 0 : index
    %20 = vector.load %arg4[%c0_10, %c0_11, %c0_12] : memref<1x1x128xf32, #tpu.memory_space<vmem>>, vector<1x1x128xf32>
    %21 = vector.shape_cast %20 : vector<1x1x128xf32> to vector<1x128xf32>
    %22 = vector.shape_cast %19 : vector<1x128xf32> to vector<1x1x128xf32>
    tpu.vector_store %arg4[%c0_10, %c0_11, %c0_12], %22 {strides = array<i32>} : memref<1x1x128xf32, #tpu.memory_space<vmem>>, vector<1x1x128xf32>,
    return
  }
  func.func @transform_0(%arg0: i32) -> (i32, i32, i32) {
    %c0_i32 = arith.constant 0 : i32
    %c0_i32_0 = arith.constant 0 : i32
    %c0_i32_1 = arith.constant 0 : i32
    return %arg0, %c0_i32, %c0_i32_0 : i32, i32, i32
  }
  func.func @transform_1(%arg0: i32) -> (i32, i32) {
    %c0_i32 = arith.constant 0 : i32
    %c0_i32_0 = arith.constant 0 : i32
    %c0_i32_1 = arith.constant 0 : i32
    return %c0_i32, %c0_i32_0 : i32, i32
  }
  func.func @transform_2(%arg0: i32) -> (i32, i32) {
    %c0_i32 = arith.constant 0 : i32
    %c0_i32_0 = arith.constant 0 : i32
    %c0_i32_1 = arith.constant 0 : i32
    return %c0_i32, %c0_i32_0 : i32, i32
  }
  func.func @transform_3(%arg0: i32) -> (i32, i32, i32) {
    %c0_i32 = arith.constant 0 : i32
    %c0_i32_0 = arith.constant 0 : i32
    %c0_i32_1 = arith.constant 0 : i32
    return %arg0, %c0_i32, %c0_i32_0 : i32, i32, i32
  }
}

</mosaic_0001>

<bundles_post_ra>
// kernel: forward.9
= control target key start
LH: loop header
LB: loop body
LE: loop exit
PB: predicated region body
PF: predicated region fallthrough
CT: control target
= control target key end

     0   :  { %s710_s12 = smov 0   ;;  %s934_s0 = inlined_call_operand.vmem [shape: bf16[2,288,128], index: 0, kind: input, shape index: {}]   ;;  %s935_s1 = inlined_call_operand.vmem [shape: f32[1,128], index: 1, kind: input, shape index: {}]   ;;  %s936_s2 = inlined_call_operand.vmem [shape: f32[1,128], index: 2, kind: input, shape index: {}]   ;;  %s937_s3 = inlined_call_operand.vmem [shape: bf16[2,288,128], index: 3, kind: output, shape index: {}]  }
   0x1 LB: > { %s466_s13 = sadd.s32 4294967295, %s688_s12   ;;  %p470_p0 = scmp.ge.s32.totalorder %s688_s12, 1  ;;  %s688_s12 = sphi %s710_s12, %s13_s12  }
   0x2   : > { %p137_p1 = scmp.lt.s32.totalorder %s688_s12, 3 }
   0x4   : > { %p138_p2 = pnand %p470_p0, %p137_p1 }
   0x5   : > { %p161_p3 = scmp.lt.s32.totalorder (!%p138_p2), %s466_s13, 1 }
   0x6   : > { %141 = sbr.rel (%p138_p2) target bundleno = 62 (0x3e), region = 32 }
   0xb   : > { %v171_v0 = vld [vmem:[%s935_s1] sm:$0x1]  ;;  %s941_s13 = smov (!%p161_p3, %s466_s13), 1 }
   0xc   : > { %v173_v1 = vld [vmem:[%s936_s2] sm:$0x1]  ;;  %v172_v2 = vmul.f32 0.001953125, %v171_v0  ;;  %s671_s18 = smul.u32 144, %s941_s13 }
   0xd   : > { %v174_v3 = vmul.f32 0.001953125, %v173_v1 }
   0xe   : > { %v176_v4 = vmul.f32 %v172_v2, %v172_v2  ;;  %s732_s21 = scalar_lea.vmem %s934_s0, %s671_s18  ;;  %v737_v8 = vperm.slane %v172_v2, 0  ;;  %s860_s24 = scalar_lea.vmem %s937_s3, %s671_s18 }
   0xf   : > { %v476_v7 = vld [vmem:[%s732_s21] sm:$0xff]   ;;  %v637_v9 = vld [vmem:[%s732_s21 + $0x8] sm:$0xff]   ;;  %v638_v10 = vld [vmem:[%s732_s21 + $0x10] sm:$0xff]  }
  0x10   : > { %v177_v5 = vsub.f32 %v174_v3, %v176_v4  ;;  %v477_v11 = vunpack.c.l.bf16 %v476_v7  ;;  %v478_v12 = vunpack.c.h.bf16 %v476_v7  ;;  %v481_v13 = vunpack.c.l.bf16 %v637_v9  ;;  %v639_v14 = vld [vmem:[%s732_s21 + $0x18] sm:$0xff]   ;;  %v640_v17 = vld [vmem:[%s732_s21 + $0x20] sm:$0xff]   ;;  %v641_v19 = vld [vmem:[%s732_s21 + $0x28] sm:$0xff]  }
  0x11   : > { %v482_v15 = vunpack.c.h.bf16 %v637_v9  ;;  %v485_v16 = vunpack.c.l.bf16 %v638_v10  ;;  %v486_v18 = vunpack.c.h.bf16 %v638_v10  ;;  %v489_v21 = vunpack.c.l.bf16 %v639_v14  ;;  %v642_v23 = vld [vmem:[%s732_s21 + $0x30] sm:$0xff]   ;;  %v643_v28 = vld [vmem:[%s732_s21 + $0x38] sm:$0xff]   ;;  %v644_v33 = vld [vmem:[%s732_s21 + $0x40] sm:$0xff]  }
  0x12   : > { %v734_v6 = vadd.f32 1e-05, %v177_v5  ;;  %v746_v20 = vsub.f32 %v477_v11, %v737_v8  ;;  %v490_v22 = vunpack.c.h.bf16 %v639_v14  ;;  %v751_v24 = vsub.f32 %v478_v12, %v737_v8  ;;  %v645_v38 = vld [vmem:[%s732_s21 + $0x48] sm:$0xff]   ;;  %v646_v48 = vld [vmem:[%s732_s21 + $0x50] sm:$0xff]   ;;  %v647_v53 = vld [vmem:[%s732_s21 + $0x58] sm:$0xff]  }
  0x13   : > { %v754_v25 = vsub.f32 %v481_v13, %v737_v8  ;;  %v493_v26 = vunpack.c.l.bf16 %v640_v17  ;;  %v494_v27 = vunpack.c.h.bf16 %v640_v17  ;;  %v758_v29 = vsub.f32 %v482_v15, %v737_v8  ;;  %v648_v57 = vld [vmem:[%s732_s21 + $0x60] sm:$0xff]   ;;  %v649_v62 = vld [vmem:[%s732_s21 + $0x68] sm:$0xff]   ;;  %v650_v3 = vld [vmem:[%s732_s21 + $0x70] sm:$0xff]  }
  0x14   : > { %680 = vrsqrt.f32 %v734_v6  ;;  %vm185_vm0 = vweird.f32 %v734_v6  ;;  %v761_v30 = vsub.f32 %v485_v16, %v737_v8  ;;  %v497_v31 = vunpack.c.l.bf16 %v641_v19  ;;  %v651_v10 = vld [vmem:[%s732_s21 + $0x78] sm:$0xff]   ;;  %v652_v15 = vld [vmem:[%s732_s21 + $0x80] sm:$0xff]  }
  0x15   : > { %v498_v32 = vunpack.c.h.bf16 %v641_v19  ;;  %v765_v34 = vsub.f32 %v486_v18, %v737_v8  ;;  %v768_v35 = vsub.f32 %v489_v21, %v737_v8  ;;  %v501_v36 = vunpack.c.l.bf16 %v642_v23 }
  0x16   : > { %v502_v37 = vunpack.c.h.bf16 %v642_v23  ;;  %v772_v40 = vsub.f32 %v490_v22, %v737_v8  ;;  %v775_v41 = vsub.f32 %v493_v26, %v737_v8  ;;  %v505_v42 = vunpack.c.l.bf16 %v643_v28 }
  0x17   : > { %v506_v43 = vunpack.c.h.bf16 %v643_v28  ;;  %v779_v45 = vsub.f32 %v494_v27, %v737_v8  ;;  %v509_v46 = vunpack.c.l.bf16 %v644_v33  ;;  %v510_v47 = vunpack.c.h.bf16 %v644_v33  ;;  %v831_v33 = vld [vmem:[%s732_s21 + $0x88] sm:$0xff]  }
  0x18   : > { %v783_v49 = vsub.f32 %v497_v31, %v737_v8  ;;  %v786_v50 = vsub.f32 %v498_v32, %v737_v8  ;;  %v513_v51 = vunpack.c.l.bf16 %v645_v38  ;;  %v514_v52 = vunpack.c.h.bf16 %v645_v38 }
  0x19   : > { %v790_v55 = vsub.f32 %v501_v36, %v737_v8  ;;  %v793_v56 = vsub.f32 %v502_v37, %v737_v8  ;;  %v797_v58 = vsub.f32 %v505_v42, %v737_v8  ;;  %v800_v59 = vsub.f32 %v506_v43, %v737_v8 }
  0x1a   : > { %v681_v39 = vpop.eup %680  ;;  %v517_v60 = vunpack.c.l.bf16 %v646_v48  ;;  %v518_v61 = vunpack.c.h.bf16 %v646_v48  ;;  %v804_v0 = vsub.f32 %v509_v46, %v737_v8  ;;  %v807_v1 = vsub.f32 %v510_v47, %v737_v8 }
  0x1b   : > { %v180_v44 = vmul.f32 %v681_v39, %v734_v6  ;;  %vm186_vm1 = vweird.f32 %v681_v39  ;;  %v521_v2 = vunpack.c.l.bf16 %v647_v53  ;;  %v811_v4 = vsub.f32 %v513_v51, %v737_v8 }
  0x1c   : > { %v814_v5 = vsub.f32 %v514_v52, %v737_v8  ;;  %v522_v7 = vunpack.c.h.bf16 %v647_v53  ;;  %v525_v9 = vunpack.c.l.bf16 %v648_v57  ;;  %v526_v12 = vunpack.c.h.bf16 %v648_v57  ;;  %vm821_vm2 = vmor %vm185_vm0, %vm186_vm1 }
  0x1d   : > { %v181_v54 = vmul.f32 %v681_v39, %v180_v44  ;;  %v529_v13 = vunpack.c.l.bf16 %v649_v62  ;;  %v530_v14 = vunpack.c.h.bf16 %v649_v62  ;;  %v284_v17 = vsub.f32 %v517_v60, %v737_v8 }
  0x1e   : > { %v285_v18 = vsub.f32 %v518_v61, %v737_v8  ;;  %v533_v19 = vunpack.c.l.bf16 %v650_v3  ;;  %v534_v21 = vunpack.c.h.bf16 %v650_v3  ;;  %v286_v23 = vsub.f32 %v521_v2, %v737_v8 }
  0x1f   : > { %v182_v63 = vmul.f32 0.5, %v181_v54  ;;  %v537_v26 = vunpack.c.l.bf16 %v651_v10  ;;  %v538_v27 = vunpack.c.h.bf16 %v651_v10  ;;  %v287_v28 = vsub.f32 %v522_v7, %v737_v8 }
  0x20   : > { %v288_v31 = vsub.f32 %v525_v9, %v737_v8  ;;  %v541_v6 = vunpack.c.l.bf16 %v652_v15  ;;  %v542_v32 = vunpack.c.h.bf16 %v652_v15  ;;  %v289_v37 = vsub.f32 %v526_v12, %v737_v8 }
  0x21   : > { %v183_v11 = vsub.f32 1.5, %v182_v63  ;;  %v290_v38 = vsub.f32 %v529_v13, %v737_v8  ;;  %v291_v42 = vsub.f32 %v530_v14, %v737_v8  ;;  %v292_v44 = vsub.f32 %v533_v19, %v737_v8 }
  0x22   : > { %v293_v46 = vsub.f32 %v534_v21, %v737_v8  ;;  %v294_v47 = vsub.f32 %v537_v26, %v737_v8  ;;  %v295_v48 = vsub.f32 %v538_v27, %v737_v8  ;;  %v296_v51 = vsub.f32 %v541_v6, %v737_v8 }
  0x23   : > { %v184_v22 = vmul.f32 %v681_v39, %v183_v11  ;;  %v545_v52 = vunpack.c.l.bf16 %v831_v33 }
  0x25   : > { %v188_v36 = vsel %vm821_vm2, %v681_v39, %v184_v22  ;;  %v297_v39 = vsub.f32 %v542_v32, %v737_v8 }
  0x26   : > { %v838_v43 = vperm.slane %v188_v36, 0 }
  0x28   : > { %v303_v53 = vmul.f32 %v838_v43, %v746_v20  ;;  %v304_v54 = vmul.f32 %v838_v43, %v751_v24  ;;  %v305_v57 = vmul.f32 %v838_v43, %v754_v25  ;;  %v306_v60 = vmul.f32 %v838_v43, %v758_v29 }
  0x29   : > { %v307_v61 = vmul.f32 %v838_v43, %v761_v30  ;;  %v308_v20 = vmul.f32 %v838_v43, %v765_v34  ;;  %v309_v24 = vmul.f32 %v838_v43, %v768_v35  ;;  %v310_v25 = vmul.f32 %v838_v43, %v772_v40 }
  0x2a   : > { %v550_v29 = vpack.c.bf16 %v304_v54, %v303_v53  ;;  %v555_v62 = vpack.c.bf16 %v306_v60, %v305_v57  ;;  %v311_v63 = vmul.f32 %v838_v43, %v775_v41  ;;  %v312_v2 = vmul.f32 %v838_v43, %v779_v45 }
  0x2b   : > { %v560_v30 = vpack.c.bf16 %v308_v20, %v307_v61  ;;  %v565_v3 = vpack.c.bf16 %v310_v25, %v309_v24  ;;  %v313_v34 = vmul.f32 %v838_v43, %v783_v49  ;;  %v314_v35 = vmul.f32 %v838_v43, %v786_v50 }
  0x2c   : > { %551 = vst [vmem:[%s860_s24] sm:$0xff] %v550_v29   ;;  %v570_v40 = vpack.c.bf16 %v312_v2, %v311_v63  ;;  %v315_v7 = vmul.f32 %v838_v43, %v790_v55  ;;  %v316_v41 = vmul.f32 %v838_v43, %v793_v56  ;;  %v317_v45 = vmul.f32 %v838_v43, %v797_v58 }
  0x2d   : > { %654 = vst [vmem:[%s860_s24 + $0x8] sm:$0xff] %v555_v62   ;;  %v575_v9 = vpack.c.bf16 %v314_v35, %v313_v34  ;;  %v318_v49 = vmul.f32 %v838_v43, %v800_v59  ;;  %v319_v50 = vmul.f32 %v838_v43, %v804_v0  ;;  %v320_v10 = vmul.f32 %v838_v43, %v807_v1 }
  0x2e   : > { %655 = vst [vmem:[%s860_s24 + $0x10] sm:$0xff] %v560_v30   ;;  %v580_v55 = vpack.c.bf16 %v316_v41, %v315_v7  ;;  %v321_v56 = vmul.f32 %v838_v43, %v811_v4  ;;  %v322_v58 = vmul.f32 %v838_v43, %v814_v5  ;;  %v323_v11 = vmul.f32 %v838_v43, %v284_v17 }
  0x2f   : > { %656 = vst [vmem:[%s860_s24 + $0x18] sm:$0xff] %v565_v3   ;;  %v585_v59 = vpack.c.bf16 %v318_v49, %v317_v45  ;;  %v324_v12 = vmul.f32 %v838_v43, %v285_v18  ;;  %v325_v0 = vmul.f32 %v838_v43, %v286_v23  ;;  %v546_v1 = vunpack.c.h.bf16 %v831_v33 }
  0x30   : > { %657 = vst [vmem:[%s860_s24 + $0x20] sm:$0xff] %v570_v40   ;;  %v590_v13 = vpack.c.bf16 %v320_v10, %v319_v50  ;;  %v326_v14 = vmul.f32 %v838_v43, %v287_v28  ;;  %v327_v4 = vmul.f32 %v838_v43, %v288_v31  ;;  %v328_v5 = vmul.f32 %v838_v43, %v289_v37 }
  0x31   : > { %658 = vst [vmem:[%s860_s24 + $0x28] sm:$0xff] %v575_v9   ;;  %v595_v15 = vpack.c.bf16 %v322_v58, %v321_v56  ;;  %v329_v16 = vmul.f32 %v838_v43, %v290_v38  ;;  %v330_v17 = vmul.f32 %v838_v43, %v291_v42  ;;  %v298_v18 = vsub.f32 %v545_v52, %v737_v8 }
  0x32   : > { %659 = vst [vmem:[%s860_s24 + $0x30] sm:$0xff] %v580_v55   ;;  %v600_v19 = vpack.c.bf16 %v324_v12, %v323_v11  ;;  %v331_v21 = vmul.f32 %v838_v43, %v292_v44  ;;  %v332_v22 = vmul.f32 %v838_v43, %v293_v46  ;;  %v605_v23 = vpack.c.bf16 %v326_v14, %v325_v0 }
  0x33   : > { %660 = vst [vmem:[%s860_s24 + $0x38] sm:$0xff] %v585_v59   ;;  %v333_v26 = vmul.f32 %v838_v43, %v294_v47  ;;  %v334_v27 = vmul.f32 %v838_v43, %v295_v48  ;;  %v610_v28 = vpack.c.bf16 %v328_v5, %v327_v4  ;;  %v335_v31 = vmul.f32 %v838_v43, %v296_v51 }
  0x34   : > { %661 = vst [vmem:[%s860_s24 + $0x40] sm:$0xff] %v590_v13   ;;  %v336_v6 = vmul.f32 %v838_v43, %v297_v39  ;;  %v299_v32 = vsub.f32 %v546_v1, %v737_v8  ;;  %v615_v33 = vpack.c.bf16 %v330_v17, %v329_v16  ;;  %v337_v36 = vmul.f32 %v838_v43, %v298_v18 }
  0x35   : > { %662 = vst [vmem:[%s860_s24 + $0x48] sm:$0xff] %v595_v15   ;;  %v620_v37 = vpack.c.bf16 %v332_v22, %v331_v21  ;;  %v625_v42 = vpack.c.bf16 %v334_v27, %v333_v26 }
  0x36   : > { %663 = vst [vmem:[%s860_s24 + $0x50] sm:$0xff] %v600_v19   ;;  %v338_v38 = vmul.f32 %v838_v43, %v299_v32  ;;  %v630_v44 = vpack.c.bf16 %v336_v6, %v335_v31 }
  0x37   : > { %664 = vst [vmem:[%s860_s24 + $0x58] sm:$0xff] %v605_v23  }
  0x38   : > { %665 = vst [vmem:[%s860_s24 + $0x60] sm:$0xff] %v610_v28   ;;  %v635_v46 = vpack.c.bf16 %v338_v38, %v337_v36 }
  0x39   : > { %666 = vst [vmem:[%s860_s24 + $0x68] sm:$0xff] %v615_v33  }
  0x3a   : > { %667 = vst [vmem:[%s860_s24 + $0x70] sm:$0xff] %v620_v37  }
  0x3b   : > { %668 = vst [vmem:[%s860_s24 + $0x78] sm:$0xff] %v625_v42  }
  0x3c   : > { %669 = vst [vmem:[%s860_s24 + $0x80] sm:$0xff] %v630_v44  }
  0x3d   : > { %670 = vst [vmem:[%s860_s24 + $0x88] sm:$0xff] %v635_v46  }
  0x3e PF: > { %s13_s12 = sadd.s32 1, %s688_s12  }
  0x3f   : > { %p10_p4 = scmp.ge.s32.totalorder %s13_s12, 4  }
  0x41   :  { %12 = sbr.rel (!%p10_p4) target bundleno = 1 (0x1), region = 62 }

// kernel: forward.11
= control target key start
LH: loop header
LB: loop body
LE: loop exit
PB: predicated region body
PF: predicated region fallthrough
CT: control target
= control target key end

     0   :  { %s411_s12 = smov 0   ;;  %s441_s0 = inlined_call_operand.vmem [shape: bf16[2,80,128], index: 0, kind: input, shape index: {}]   ;;  %s442_s1 = inlined_call_operand.vmem [shape: f32[1,128], index: 1, kind: input, shape index: {}]   ;;  %s443_s2 = inlined_call_operand.vmem [shape: f32[1,128], index: 2, kind: input, shape index: {}]   ;;  %s444_s3 = inlined_call_operand.vmem [shape: bf16[2,80,128], index: 3, kind: output, shape index: {}]  }
   0x1 LB: > { %s310_s13 = sadd.s32 4294967295, %s389_s12   ;;  %p314_p0 = scmp.ge.s32.totalorder %s389_s12, 1  ;;  %s389_s12 = sphi %s411_s12, %s13_s12  }
   0x2   : > { %p137_p1 = scmp.lt.s32.totalorder %s389_s12, 3 }
   0x4   : > { %p138_p2 = pnand %p314_p0, %p137_p1 }
   0x5   : > { %p161_p3 = scmp.lt.s32.totalorder (!%p138_p2), %s310_s13, 1 }
   0x6   : > { %141 = sbr.rel (%p138_p2) target bundleno = 49 (0x31), region = 32 }
   0xb   : > { %v171_v0 = vld [vmem:[%s442_s1] sm:$0x1]  ;;  %s446_s13 = smov (!%p161_p3, %s310_s13), 1 }
   0xc   : > { %v173_v1 = vld [vmem:[%s443_s2] sm:$0x1]  ;;  %v172_v2 = vmul.f32 0.0078125, %v171_v0  ;;  %s372_s18 = smul.u32 40, %s446_s13 }
   0xd   : > { %v174_v3 = vmul.f32 0.0078125, %v173_v1 }
   0xe   : > { %v176_v4 = vmul.f32 %v172_v2, %v172_v2  ;;  %s165_s21 = scalar_lea.vmem %s441_s0, %s372_s18  ;;  %v210_v13 = vperm.slane %v172_v2, 0  ;;  %s170_s24 = scalar_lea.vmem %s444_s3, %s372_s18 }
   0xf   : > { %v320_v9 = vld [vmem:[%s165_s21] sm:$0xff]   ;;  %v364_v11 = vld [vmem:[%s165_s21 + $0x8] sm:$0xff]   ;;  %v365_v12 = vld [vmem:[%s165_s21 + $0x10] sm:$0xff]  }
  0x10   : > { %v177_v5 = vsub.f32 %v174_v3, %v176_v4  ;;  %v366_v14 = vld [vmem:[%s165_s21 + $0x18] sm:$0xff]   ;;  %v321_v16 = vunpack.c.l.bf16 %v320_v9  ;;  %v367_v17 = vld [vmem:[%s165_s21 + $0x20] sm:$0xff]   ;;  %v322_v18 = vunpack.c.h.bf16 %v320_v9  ;;  %v325_v19 = vunpack.c.l.bf16 %v364_v11 }
  0x11   : > { %v326_v20 = vunpack.c.h.bf16 %v364_v11  ;;  %v329_v21 = vunpack.c.l.bf16 %v365_v12  ;;  %v330_v23 = vunpack.c.h.bf16 %v365_v12  ;;  %v333_v24 = vunpack.c.l.bf16 %v366_v14 }
  0x12   : > { %v178_v6 = vadd.f32 1e-05, %v177_v5  ;;  %v334_v25 = vunpack.c.h.bf16 %v366_v14  ;;  %v337_v26 = vunpack.c.l.bf16 %v367_v17  ;;  %v338_v27 = vunpack.c.h.bf16 %v367_v17 }
  0x13   : > { %v212_v29 = vsub.f32 %v321_v16, %v210_v13  ;;  %v213_v30 = vsub.f32 %v322_v18, %v210_v13  ;;  %v214_v31 = vsub.f32 %v325_v19, %v210_v13  ;;  %v215_v32 = vsub.f32 %v326_v20, %v210_v13 }
  0x14   : > { %381 = vrsqrt.f32 %v178_v6  ;;  %vm185_vm0 = vweird.f32 %v178_v6  ;;  %v216_v33 = vsub.f32 %v329_v21, %v210_v13  ;;  %v217_v35 = vsub.f32 %v330_v23, %v210_v13 }
  0x15   : > { %v218_v36 = vsub.f32 %v333_v24, %v210_v13  ;;  %v219_v37 = vsub.f32 %v334_v25, %v210_v13  ;;  %v220_v39 = vsub.f32 %v337_v26, %v210_v13  ;;  %v221_v40 = vsub.f32 %v338_v27, %v210_v13 }
  0x1a   : > { %v382_v7 = vpop.eup %381 }
  0x1b   : > { %v180_v8 = vmul.f32 %v382_v7, %v178_v6  ;;  %vm186_vm1 = vweird.f32 %v382_v7 }
  0x1c   : > { %vm187_vm2 = vmor %vm185_vm0, %vm186_vm1 }
  0x1d   : > { %v181_v10 = vmul.f32 %v382_v7, %v180_v8 }
  0x1f   : > { %v182_v15 = vmul.f32 0.5, %v181_v10 }
  0x21   : > { %v183_v22 = vsub.f32 1.5, %v182_v15 }
  0x23   : > { %v184_v28 = vmul.f32 %v382_v7, %v183_v22 }
  0x25   : > { %v188_v34 = vsel %vm187_vm2, %v382_v7, %v184_v28 }
  0x26   : > { %v223_v38 = vperm.slane %v188_v34, 0 }
  0x28   : > { %v225_v41 = vmul.f32 %v223_v38, %v212_v29  ;;  %v226_v42 = vmul.f32 %v223_v38, %v213_v30  ;;  %v227_v43 = vmul.f32 %v223_v38, %v214_v31  ;;  %v228_v44 = vmul.f32 %v223_v38, %v215_v32 }
  0x29   : > { %v229_v45 = vmul.f32 %v223_v38, %v216_v33  ;;  %v230_v46 = vmul.f32 %v223_v38, %v217_v35  ;;  %v231_v47 = vmul.f32 %v223_v38, %v218_v36  ;;  %v232_v48 = vmul.f32 %v223_v38, %v219_v37 }
  0x2a   : > { %v342_v49 = vpack.c.bf16 %v226_v42, %v225_v41  ;;  %v347_v50 = vpack.c.bf16 %v228_v44, %v227_v43  ;;  %v233_v51 = vmul.f32 %v223_v38, %v220_v39  ;;  %v234_v52 = vmul.f32 %v223_v38, %v221_v40 }
  0x2b   : > { %v352_v53 = vpack.c.bf16 %v230_v46, %v229_v45  ;;  %v357_v54 = vpack.c.bf16 %v232_v48, %v231_v47 }
  0x2c   : > { %343 = vst [vmem:[%s170_s24] sm:$0xff] %v342_v49   ;;  %v362_v55 = vpack.c.bf16 %v234_v52, %v233_v51 }
  0x2d   : > { %368 = vst [vmem:[%s170_s24 + $0x8] sm:$0xff] %v347_v50  }
  0x2e   : > { %369 = vst [vmem:[%s170_s24 + $0x10] sm:$0xff] %v352_v53  }
  0x2f   : > { %370 = vst [vmem:[%s170_s24 + $0x18] sm:$0xff] %v357_v54  }
  0x30   : > { %371 = vst [vmem:[%s170_s24 + $0x20] sm:$0xff] %v362_v55  }
  0x31 PF: > { %s13_s12 = sadd.s32 1, %s389_s12  }
  0x32   : > { %p10_p4 = scmp.ge.s32.totalorder %s13_s12, 4  }
  0x34   :  { %12 = sbr.rel (!%p10_p4) target bundleno = 1 (0x1), region = 62 }

// kernel: forward.10
= control target key start
LH: loop header
LB: loop body
LE: loop exit
PB: predicated region body
PF: predicated region fallthrough
CT: control target
= control target key end

     0   :  { %s1417_s18 = smov 0   ;;  %s1674_s0 = inlined_call_operand.vmem [shape: f32[2,104,16], index: 0, kind: input, shape index: {}]   ;;  %s1675_s1 = inlined_call_operand.vmem [shape: bf16[9,16,128], index: 1, kind: input, shape index: {}]   ;;  %s1676_s2 = inlined_call_operand.vmem [shape: f32[80,1], index: 2, kind: input, shape index: {}]   ;;  %s1677_s3 = inlined_call_operand.vmem [shape: bf16[2,80,128], index: 3, kind: output, shape index: {0}]   ;;  %s1678_s4 = inlined_call_operand.vmem [shape: f32[2,1,128], index: 4, kind: output, shape index: {1}]   ;;  %s1679_s5 = inlined_call_operand.vmem [shape: f32[2,1,128], index: 5, kind: output, shape index: {2}]  }
   0x1 LB: > { %s1217_s19 = sadd.s32 4294967295, %s1384_s18   ;;  %p1221_p0 = scmp.ge.s32.totalorder %s1384_s18, 1  ;;  %s1384_s18 = sphi %s1417_s18, %s16_s18  }
   0x2   : > { %p192_p1 = scmp.lt.s32.totalorder %s1384_s18, 3 }
   0x4   : > { %p193_p2 = pnand %p1221_p0, %p192_p1 }
   0x5   : > { %p226_p3 = scmp.lt.s32.totalorder (!%p193_p2), %s1217_s19, 1 }
   0x6   : > { %196 = sbr.rel (%p193_p2) target bundleno = 362 (0x16a), region = 32 }
   0xb   : > { %v1324_v0 = vld [vmem:[%s1675_s1 + $0x8] sm:$0xff]  ;;  %v1325_v1 = vld [vmem:[%s1675_s1 + $0x10] sm:$0xff]  ;;  %v1323_v2 = vld [vmem:[%s1675_s1] sm:$0xff]  ;;  %s1681_s19 = smov (!%p226_p3, %s1217_s19), 1  ;;  %vm284_vm0 = vcmask 130048  }
   0xc   : > { %v1326_v3 = vld [vmem:[%s1675_s1 + $0x18] sm:$0xff]  ;;  %v1327_v4 = vld [vmem:[%s1675_s1 + $0x20] sm:$0xff]  ;;  %1361 = vmatpush.bf16.msra.mxu1 %v1324_v0  ;;  %1362 = vmatpush.bf16.msra.mxu2 %v1324_v0  ;;  %s1364_s30 = smul.u32 104, %s1681_s19  ;;  %v1329_v17 = vld [vmem:[%s1675_s1 + $0x30] sm:$0xff]  ;;  %s238_s22 = scalar_lea.vmem %s1678_s4, %s1681_s19 }
   0xd   : > { %1363 = vmatpush.bf16.msra.mxu3 %v1324_v0  ;;  %307 = vmatpush.bf16.msra.mxu0 %v1324_v0  ;;  %v1330_v18 = vld [vmem:[%s1675_s1 + $0x38] sm:$0xff]  ;;  %v1328_v19 = vld [vmem:[%s1675_s1 + $0x28] sm:$0xff]  ;;  %v1331_v20 = vld [vmem:[%s1675_s1 + $0x40] sm:$0xff]  ;;  %s1365_s14 = smul.u32 40, %s1681_s19  ;;  %s241_s25 = scalar_lea.vmem %s1679_s5, %s1681_s19 }
   0xe   : > { %s1446_s8 = scalar_lea.vmem %s1674_s0, %s1364_s30 }
   0xf   : > { %v262_v5 = vld [vmem:[%s1446_s8 + $0x11] sm:$0xff]  ;;  %v263_v6 = vld [vmem:[%s1446_s8 + $0x19] sm:$0xff]  ;;  %v264_v7 = vld [vmem:[%s1446_s8 + $0x21] sm:$0xff]  ;;  %s1649_s17 = scalar_lea.vmem %s1677_s3, %s1365_s14 }
  0x10   : > { %435 = vmatpush.bf16.msrb.mxu2 %v1325_v1  ;;  %362 = vmatpush.bf16.msrb.mxu1 %v1323_v2  ;;  %v271_v8 = vpack.c.bf16 %v263_v6, %v262_v5  ;;  %v265_v9 = vld [vmem:[%s1446_s8 + $0x29] sm:$0xff]  ;;  %v268_v10 = vld [vmem:[%s1446_s8 + $0x41] sm:$0xff]  ;;  %v266_v21 = vld [vmem:[%s1446_s8 + $0x31] sm:$0xff] }
  0x11   : > { %518 = vmatpush.bf16.msrb.mxu3 %v1326_v3  ;;  %601 = vmatpush.bf16.msrb.mxu0 %v1327_v4  ;;  %v269_v11 = vld [vmem:[%s1446_s8 + $0x49] sm:$0xff]  ;;  %v272_v12 = vpack.c.bf16 %v265_v9, %v264_v7  ;;  %v260_v14 = vld [vmem:[%s1446_s8 + $0x1] sm:$0xff]  ;;  %v267_v24 = vld [vmem:[%s1446_s8 + $0x39] sm:$0xff] }
  0x12   : > { %v274_v13 = vpack.c.bf16 %v269_v11, %v268_v10  ;;  %1231 = vmatmul.msk.bf16.vlgmr.msra.gmra.mxu1 %vm284_vm0, %v271_v8  ;;  %v261_v15 = vld [vmem:[%s1446_s8 + $0x9] sm:$0xff]  ;;  %v243_v22 = vld [vmem:[%s1446_s8] sm:$0xff]  ;;  %v473_v26 = vld [vmem:[%s1446_s8 + $0x12] sm:$0xff]  ;;  %v273_v30 = vpack.c.bf16 %v267_v24, %v266_v21  ;;  %v1386_v21 = vmov 0  }
  0x13   : > { %1232 = vmatmul.msk.bf16.vlgmr.msra.gmra.mxu2 %vm284_vm0, %v272_v12  ;;  %v270_v16 = vpack.c.bf16 %v261_v15, %v260_v14  ;;  %v244_v23 = vld [vmem:[%s1446_s8 + $0x8] sm:$0xff]  ;;  %v556_v29 = vld [vmem:[%s1446_s8 + $0x13] sm:$0xff]  ;;  %v557_v39 = vld [vmem:[%s1446_s8 + $0x1b] sm:$0xff]  ;;  %1375 = vset.pattern.permute.xlu0 %v1386_v21 }
  0x14   : > { %1234 = vmatmul.msk.bf16.vlgmr.msra.gmra.mxu3 %vm284_vm0, %v274_v13  ;;  %767 = vmatpush.bf16.msra.mxu2 %v1329_v17  ;;  %v472_v25 = vld [vmem:[%s1446_s8 + $0xa] sm:$0xff]  ;;  %v253_v27 = vpack.c.bf16 %v244_v23, %v243_v22  ;;  %v246_v34 = vld [vmem:[%s1446_s8 + $0x18] sm:$0xff]  ;;  %v389_v35 = vld [vmem:[%s1446_s8 + $0x2] sm:$0xff] }
  0x15   : > { %1230 = vmatmul.msk.bf16.vlgmr.msra.gmra.mxu0 %vm284_vm0, %v270_v16  ;;  %850 = vmatpush.bf16.msra.mxu3 %v1330_v18  ;;  %v555_v28 = vld [vmem:[%s1446_s8 + $0xb] sm:$0xff]  ;;  %v482_v31 = vpack.c.bf16 %v473_v26, %v472_v25  ;;  %v474_v36 = vld [vmem:[%s1446_s8 + $0x1a] sm:$0xff]  ;;  %v475_v37 = vld [vmem:[%s1446_s8 + $0x22] sm:$0xff]  ;;  %v399_v41 = vpack.c.bf16 %v472_v25, %v389_v35 }
  0x16   : > { %684 = vmatpush.bf16.msra.mxu1 %v1328_v19  ;;  %933 = vmatpush.bf16.msra.mxu0 %v1331_v20  ;;  %v565_v32 = vpack.c.bf16 %v556_v29, %v555_v28  ;;  %v245_v33 = vld [vmem:[%s1446_s8 + $0x10] sm:$0xff]  ;;  %v558_v40 = vld [vmem:[%s1446_s8 + $0x23] sm:$0xff]  ;;  %v483_v42 = vpack.c.bf16 %v475_v37, %v474_v36  ;;  %v400_v51 = vpack.c.bf16 %v474_v36, %v473_v26  ;;  %v250_v55 = vld [vmem:[%s1446_s8 + $0x38] sm:$0xff] }
  0x17   : > { %v254_v38 = vpack.c.bf16 %v246_v34, %v245_v33  ;;  %v566_v43 = vpack.c.bf16 %v558_v40, %v557_v39  ;;  %v247_v44 = vld [vmem:[%s1446_s8 + $0x20] sm:$0xff]  ;;  %v248_v45 = vld [vmem:[%s1446_s8 + $0x28] sm:$0xff]  ;;  %v477_v47 = vld [vmem:[%s1446_s8 + $0x32] sm:$0xff]  ;;  %1376 = vset.pattern.permute.xlu1 %v1386_v21  ;;  %1377 = vset.pattern.permute.xlu2 %v1386_v21 }
  0x18   : > { %v476_v46 = vld [vmem:[%s1446_s8 + $0x2a] sm:$0xff]  ;;  %v255_v48 = vpack.c.bf16 %v248_v45, %v247_v44  ;;  %v560_v50 = vld [vmem:[%s1446_s8 + $0x33] sm:$0xff]  ;;  %v479_v57 = vld [vmem:[%s1446_s8 + $0x42] sm:$0xff] }
  0x19   : > { %v559_v49 = vld [vmem:[%s1446_s8 + $0x2b] sm:$0xff]  ;;  %v484_v52 = vpack.c.bf16 %v477_v47, %v476_v46  ;;  %v478_v56 = vld [vmem:[%s1446_s8 + $0x3a] sm:$0xff]  ;;  %v562_v60 = vld [vmem:[%s1446_s8 + $0x43] sm:$0xff]  ;;  %v401_v61 = vpack.c.bf16 %v476_v46, %v475_v37 }
  0x1a   : > { %v567_v53 = vpack.c.bf16 %v560_v50, %v559_v49  ;;  %v249_v54 = vld [vmem:[%s1446_s8 + $0x30] sm:$0xff]  ;;  %v561_v59 = vld [vmem:[%s1446_s8 + $0x3b] sm:$0xff]  ;;  %v485_v62 = vpack.c.bf16 %v479_v57, %v478_v56  ;;  %v252_v1 = vld [vmem:[%s1446_s8 + $0x48] sm:$0xff]  ;;  %v402_v7 = vpack.c.bf16 %v478_v56, %v477_v47 }
  0x1b   : > { %v256_v58 = vpack.c.bf16 %v250_v55, %v249_v54  ;;  %v568_v63 = vpack.c.bf16 %v562_v60, %v561_v59  ;;  %v251_v0 = vld [vmem:[%s1446_s8 + $0x40] sm:$0xff]  ;;  %v480_v2 = vld [vmem:[%s1446_s8 + $0x4a] sm:$0xff]  ;;  %v481_v3 = vld [vmem:[%s1446_s8 + $0x52] sm:$0xff] }
  0x1c   : > { %v257_v4 = vpack.c.bf16 %v252_v1, %v251_v0  ;;  %v563_v5 = vld [vmem:[%s1446_s8 + $0x4b] sm:$0xff]  ;;  %v564_v6 = vld [vmem:[%s1446_s8 + $0x53] sm:$0xff]  ;;  %v486_v8 = vpack.c.bf16 %v481_v3, %v480_v2  ;;  %v805_v13 = vld [vmem:[%s1446_s8 + $0x1d] sm:$0xff]  ;;  %v403_v17 = vpack.c.bf16 %v480_v2, %v479_v57 }
  0x1d   : > { %v569_v9 = vpack.c.bf16 %v564_v6, %v563_v5  ;;  %v638_v10 = vld [vmem:[%s1446_s8 + $0xc] sm:$0xff]  ;;  %v639_v11 = vld [vmem:[%s1446_s8 + $0x14] sm:$0xff]  ;;  %v888_v16 = vld [vmem:[%s1446_s8 + $0x1e] sm:$0xff] }
  0x1e   : > { %v804_v12 = vld [vmem:[%s1446_s8 + $0x15] sm:$0xff]  ;;  %v648_v14 = vpack.c.bf16 %v639_v11, %v638_v10  ;;  %v980_v20 = vld [vmem:[%s1676_s2] sm:$0xff]  ;;  %v807_v25 = vld [vmem:[%s1446_s8 + $0x2d] sm:$0xff] }
  0x1f   : > { %v887_v15 = vld [vmem:[%s1446_s8 + $0x16] sm:$0xff]  ;;  %v814_v18 = vpack.c.bf16 %v805_v13, %v804_v12  ;;  %992 = vperm.xlu0 %1375, %v980_v20   ;;  %v641_v23 = vld [vmem:[%s1446_s8 + $0x24] sm:$0xff]  ;;  %v890_v28 = vld [vmem:[%s1446_s8 + $0x2e] sm:$0xff] }
  0x20   : > { %v897_v19 = vpack.c.bf16 %v888_v16, %v887_v15  ;;  %v640_v22 = vld [vmem:[%s1446_s8 + $0x1c] sm:$0xff]  ;;  %v806_v24 = vld [vmem:[%s1446_s8 + $0x25] sm:$0xff]  ;;  %v982_v33 = vld [vmem:[%s1676_s2 + $0x10] sm:$0xff] }
  0x21   : > { %v649_v26 = vpack.c.bf16 %v641_v23, %v640_v22  ;;  %v731_v29 = vpack.c.bf16 %v640_v22, %v639_v11  ;;  %1002 = vperm.xlu1 %1376, %v982_v33   ;;  %v642_v34 = vld [vmem:[%s1446_s8 + $0x2c] sm:$0xff]  ;;  %v643_v35 = vld [vmem:[%s1446_s8 + $0x34] sm:$0xff]  ;;  %v809_v37 = vld [vmem:[%s1446_s8 + $0x3d] sm:$0xff] }
  0x22   : > { %1239 = vmatmul.msk.bf16.vlgmr.msrb.gmra.mxu1 %vm284_vm0, %v253_v27  ;;  %v889_v27 = vld [vmem:[%s1446_s8 + $0x26] sm:$0xff]  ;;  %v808_v36 = vld [vmem:[%s1446_s8 + $0x35] sm:$0xff]  ;;  %v892_v40 = vld [vmem:[%s1446_s8 + $0x3e] sm:$0xff] }
  0x23   : > { %1233 = vmatmul.msk.bf16.gmra.mxu2 %vm284_vm0, %v273_v30  ;;  %v815_v30 = vpack.c.bf16 %v807_v25, %v806_v24  ;;  %v891_v39 = vld [vmem:[%s1446_s8 + $0x36] sm:$0xff]  ;;  %v811_v54 = vld [vmem:[%s1446_s8 + $0x4d] sm:$0xff]  ;;  %v984_v24 = vld [vmem:[%s1676_s2 + $0x20] sm:$0xff] }
  0x24   : > { %1261 = vmatmul.msk.bf16.vlgmr.msrb.gmra.mxu3 %vm284_vm0, %v482_v31  ;;  %v898_v31 = vpack.c.bf16 %v890_v28, %v889_v27  ;;  %v899_v44 = vpack.c.bf16 %v892_v40, %v891_v39  ;;  %v983_v46 = vld [vmem:[%s1676_s2 + $0x18] sm:$0xff]  ;;  %v894_v59 = vld [vmem:[%s1446_s8 + $0x4e] sm:$0xff]  ;;  %1012 = vperm.xlu2 %1377, %v984_v24  }
  0x25   : > { %1272 = vmatmul.msk.bf16.vlgmr.msrb.gmra.mxu0 %vm284_vm0, %v565_v32  ;;  %v981_v32 = vld [vmem:[%s1676_s2 + $0x8] sm:$0xff]  ;;  %v986_v2 = vld [vmem:[%s1676_s2 + $0x30] sm:$0xff]  ;;  %v813_v12 = vld [vmem:[%s1446_s8 + $0x5d] sm:$0xff] }
  0x26   : > { %v647_v10 = vld [vmem:[%s1446_s8 + $0x54] sm:$0xff] }
  0x27   : > { %997 = vperm.xlu0 %1375, %v981_v32   ;;  %v812_v11 = vld [vmem:[%s1446_s8 + $0x55] sm:$0xff]  ;;  %v985_v32 = vld [vmem:[%s1676_s2 + $0x28] sm:$0xff] }
  0x28   : > { %v895_v16 = vld [vmem:[%s1446_s8 + $0x56] sm:$0xff]  ;;  %v818_v20 = vpack.c.bf16 %v813_v12, %v812_v11 }
  0x29   : > { %1007 = vperm.xlu1 %1376, %v983_v46   ;;  %v987_v21 = vld [vmem:[%s1676_s2 + $0x38] sm:$0xff] }
  0x2c   : > { %1017 = vperm.xlu2 %1377, %v985_v32  }
  0x2f   : > { %1022 = vperm.xlu0 %1375, %v986_v2  }
  0x31   : > { %1027 = vperm.xlu1 %1376, %v987_v21  }
  0x32   : > { %1240 = vmatmul.msk.bf16.gmra.mxu1 %vm284_vm0, %v254_v38  ;;  %v650_v38 = vpack.c.bf16 %v643_v35, %v642_v34 }
  0x33   : > { %1250 = vmatmul.msk.bf16.vlgmr.msrb.gmra.mxu2 %vm284_vm0, %v399_v41 }
  0x34   : > { %1262 = vmatmul.msk.bf16.gmra.mxu3 %vm284_vm0, %v483_v42  ;;  %v732_v42 = vpack.c.bf16 %v642_v34, %v641_v23 }
  0x35   : > { %1273 = vmatmul.msk.bf16.gmra.mxu0 %vm284_vm0, %v566_v43  ;;  %v816_v43 = vpack.c.bf16 %v809_v37, %v808_v36 }
  0x42   : > { %1241 = vmatmul.msk.bf16.gmra.mxu1 %vm284_vm0, %v255_v48 }
  0x43   : > { %1251 = vmatmul.msk.bf16.gmra.mxu2 %vm284_vm0, %v400_v51  ;;  %v644_v51 = vld [vmem:[%s1446_s8 + $0x3c] sm:$0xff] }
  0x44   : > { %1263 = vmatmul.msk.bf16.gmra.mxu3 %vm284_vm0, %v484_v52  ;;  %v645_v52 = vld [vmem:[%s1446_s8 + $0x44] sm:$0xff] }
  0x45   : > { %1274 = vmatmul.msk.bf16.gmra.mxu0 %vm284_vm0, %v567_v53  ;;  %v810_v53 = vld [vmem:[%s1446_s8 + $0x45] sm:$0xff]  ;;  %v651_v56 = vpack.c.bf16 %v645_v52, %v644_v51 }
  0x52   : > { %1242 = vmatmul.msk.bf16.gmra.mxu1 %vm284_vm0, %v256_v58  ;;  %v893_v58 = vld [vmem:[%s1446_s8 + $0x46] sm:$0xff] }
  0x53   : > { %1252 = vmatmul.msk.bf16.gmra.mxu2 %vm284_vm0, %v401_v61  ;;  %v733_v61 = vpack.c.bf16 %v644_v51, %v643_v35  ;;  %v900_v0 = vpack.c.bf16 %v894_v59, %v893_v58  ;;  %v730_v35 = vld [vmem:[%s1446_s8 + $0x5c] sm:$0xff] }
  0x54   : > { %1264 = vmatmul.msk.bf16.gmra.mxu3 %vm284_vm0, %v485_v62  ;;  %v817_v62 = vpack.c.bf16 %v811_v54, %v810_v53  ;;  %v735_v40 = vpack.c.bf16 %v730_v35, %v647_v10  ;;  %v988_v53 = vld [vmem:[%s1676_s2 + $0x40] sm:$0xff] }
  0x55   : > { %1275 = vmatmul.msk.bf16.gmra.mxu0 %vm284_vm0, %v568_v63  ;;  %1032 = vperm.xlu2 %1377, %v988_v53  }
  0x62   : > { %1243 = vmatmul.msk.bf16.gmra.mxu1 %vm284_vm0, %v257_v4 }
  0x63   : > { %1253 = vmatmul.msk.bf16.gmra.mxu2 %vm284_vm0, %v402_v7  ;;  %v989_v7 = vld [vmem:[%s1676_s2 + $0x48] sm:$0xff] }
  0x64   : > { %1265 = vmatmul.msk.bf16.gmra.mxu3 %vm284_vm0, %v486_v8  ;;  %1037 = vperm.xlu0 %1375, %v989_v7  }
  0x65   : > { %1276 = vmatmul.msk.bf16.gmra.mxu0 %vm284_vm0, %v569_v9  ;;  %v646_v9 = vld [vmem:[%s1446_s8 + $0x4c] sm:$0xff] }
  0x72   : > { %1283 = vmatmul.msk.bf16.vlgmr.msra.gmra.mxu1 %vm284_vm0, %v648_v14  ;;  %v652_v14 = vpack.c.bf16 %v647_v10, %v646_v9 }
  0x73   : > { %1254 = vmatmul.msk.bf16.gmra.mxu2 %vm284_vm0, %v403_v17  ;;  %v896_v17 = vld [vmem:[%s1446_s8 + $0x5e] sm:$0xff] }
  0x74   : > { %1305 = vmatmul.msk.bf16.vlgmr.msra.gmra.mxu3 %vm284_vm0, %v814_v18  ;;  %v901_v23 = vpack.c.bf16 %v896_v17, %v895_v16 }
  0x75   : > { %1316 = vmatmul.msk.bf16.vlgmr.msra.gmra.mxu0 %vm284_vm0, %v897_v19  ;;  %v734_v19 = vpack.c.bf16 %v646_v9, %v645_v52 }
  0x82   : > { %1284 = vmatmul.msk.bf16.gmra.mxu1 %vm284_vm0, %v649_v26 }
  0x83   : > { %1294 = vmatmul.msk.bf16.vlgmr.msra.gmra.mxu2 %vm284_vm0, %v731_v29 }
  0x84   : > { %1306 = vmatmul.msk.bf16.gmra.mxu3 %vm284_vm0, %v815_v30 }
  0x85   : > { %1317 = vmatmul.msk.bf16.gmra.mxu0 %vm284_vm0, %v898_v31 }
  0x8f   : > { %v314_v41 = vpop.f32.mrf.mxu1 }
  0x92   : > { %1285 = vmatmul.msk.bf16.gmra.mxu1 %vm284_vm0, %v650_v38  ;;  %v309_v45 = vpop.f32.mrf.mxu0 }
  0x93   : > { %1295 = vmatmul.msk.bf16.gmra.mxu2 %vm284_vm0, %v732_v42 }
  0x94   : > { %1307 = vmatmul.msk.bf16.gmra.mxu3 %vm284_vm0, %v816_v43 }
  0x95   : > { %1318 = vmatmul.msk.bf16.gmra.mxu0 %vm284_vm0, %v899_v44 }
  0x96   : > { %v1567_v47 = vpop.f32.mrf.mxu2 }
  0x97   : > { %v1569_v48 = vpop.f32.mrf.mxu3  ;;  %v316_v49 = vpop.f32.mrf.mxu1 }
  0x9a   : > { %v311_v50 = vpop.f32.mrf.mxu0 }
  0x9e   : > { %v1575_v55 = vpop.f32.mrf.mxu2 }
  0x9f   : > { %v1577_v57 = vpop.f32.mrf.mxu3  ;;  %v364_v60 = vpop.f32.mrf.mxu1 }
  0xa0   : > { %v365_v63 = vadd.f32 %v364_v60, %v309_v45 }
  0xa2   : > { %1286 = vmatmul.msk.bf16.gmra.mxu1 %vm284_vm0, %v651_v56  ;;  %v603_v1 = vpop.f32.mrf.mxu0 }
  0xa3   : > { %1296 = vmatmul.msk.bf16.gmra.mxu2 %vm284_vm0, %v733_v61 }
  0xa4   : > { %1308 = vmatmul.msk.bf16.gmra.mxu3 %vm284_vm0, %v817_v62 }
  0xa5   : > { %1319 = vmatmul.msk.bf16.gmra.mxu0 %vm284_vm0, %v900_v0 }
  0xa6   : > { %v1588_v3 = vpop.f32.mrf.mxu2 }
  0xa7   : > { %v520_v4 = vpop.f32.mrf.mxu3  ;;  %v366_v5 = vpop.f32.mrf.mxu1 }
  0xa8   : > { %v367_v6 = vadd.f32 %v366_v5, %v311_v50 }
  0xaa   : > { %v605_v8 = vpop.f32.mrf.mxu0 }
  0xae   : > { %v326_v13 = vpop.f32.mrf.mxu2 }
  0xaf   : > { %v522_v15 = vpop.f32.mrf.mxu3  ;;  %v369_v18 = vpop.f32.mrf.mxu1 }
  0xb0   : > { %v370_v22 = vadd.f32 %v369_v18, %v314_v41 }
  0xb2   : > { %1287 = vmatmul.msk.bf16.gmra.mxu1 %vm284_vm0, %v652_v14  ;;  %v608_v25 = vpop.f32.mrf.mxu0 }
  0xb3   : > { %1297 = vmatmul.msk.bf16.gmra.mxu2 %vm284_vm0, %v734_v19 }
  0xb4   : > { %1309 = vmatmul.msk.bf16.gmra.mxu3 %vm284_vm0, %v818_v20 }
  0xb5   : > { %1320 = vmatmul.msk.bf16.gmra.mxu0 %vm284_vm0, %v901_v23 }
  0xb6   : > { %v437_v26 = vpop.f32.mrf.mxu2 }
  0xb7   : > { %v525_v27 = vpop.f32.mrf.mxu3  ;;  %v462_v28 = vadd.f32 %v437_v26, %v365_v63  ;;  %v371_v29 = vpop.f32.mrf.mxu1 }
  0xb8   : > { %v372_v30 = vadd.f32 %v371_v29, %v316_v49 }
  0xb9   : > { %v545_v31 = vadd.f32 %v520_v4, %v462_v28 }
  0xba   : > { %v610_v33 = vpop.f32.mrf.mxu0 }
  0xbb   : > { %v1612_v34 = vadd.f32 %v603_v1, %v545_v31 }
  0xbe   : > { %v439_v36 = vpop.f32.mrf.mxu2 }
  0xbf   : > { %v527_v37 = vpop.f32.mrf.mxu3  ;;  %v463_v38 = vadd.f32 %v439_v36, %v367_v6  ;;  %v374_v39 = vpop.f32.mrf.mxu1 }
  0xc0   : > { %v375_v41 = vadd.f32 %v374_v39, %v1567_v47 }
  0xc1   : > { %v546_v42 = vadd.f32 %v522_v15, %v463_v38 }
  0xc2   : > { %v613_v43 = vpop.f32.mrf.mxu0 }
  0xc3   : > { %1298 = vmatmul.msk.bf16.gmra.mxu2 %vm284_vm0, %v735_v40  ;;  %v1617_v44 = vadd.f32 %v605_v8, %v546_v42 }
  0xc6   : > { %v442_v45 = vpop.f32.mrf.mxu2 }
  0xc7   : > { %v530_v46 = vpop.f32.mrf.mxu3  ;;  %v464_v49 = vadd.f32 %v442_v45, %v370_v22  ;;  %v376_v50 = vpop.f32.mrf.mxu1 }
  0xc8   : > { %v377_v51 = vadd.f32 %v376_v50, %v1575_v55 }
  0xc9   : > { %v547_v52 = vadd.f32 %v525_v27, %v464_v49 }
  0xca   : > { %v615_v54 = vpop.f32.mrf.mxu0 }
  0xcb   : > { %v1623_v47 = vadd.f32 %v608_v25, %v547_v52 }
  0xce   : > { %v444_v56 = vpop.f32.mrf.mxu2 }
  0xcf   : > { %v532_v58 = vpop.f32.mrf.mxu3  ;;  %v465_v59 = vadd.f32 %v444_v56, %v372_v30  ;;  %v379_v60 = vpop.f32.mrf.mxu1 }
  0xd0   : > { %v380_v61 = vadd.f32 %v379_v60, %v1588_v3 }
  0xd1   : > { %v548_v62 = vadd.f32 %v527_v37, %v465_v59 }
  0xd2   : > { %v618_v63 = vpop.f32.mrf.mxu0 }
  0xd3   : > { %v1626_v0 = vadd.f32 %v610_v33, %v548_v62 }
  0xd6   : > { %v447_v55 = vpop.f32.mrf.mxu2 }
  0xd7   : > { %v535_v1 = vpop.f32.mrf.mxu3  ;;  %v466_v2 = vadd.f32 %v447_v55, %v375_v41  ;;  %v381_v4 = vpop.f32.mrf.mxu1 }
  0xd8   : > { %v382_v5 = vadd.f32 %v381_v4, %v326_v13 }
  0xd9   : > { %v549_v6 = vadd.f32 %v530_v46, %v466_v2 }
  0xda   : > { %v620_v7 = vpop.f32.mrf.mxu0 }
  0xdb   : > { %v1628_v8 = vadd.f32 %v613_v43, %v549_v6 }
  0xde   : > { %v449_v9 = vpop.f32.mrf.mxu2 }
  0xdf   : > { %v537_v10 = vpop.f32.mrf.mxu3  ;;  %v467_v11 = vadd.f32 %v449_v9, %v377_v51  ;;  %v384_v12 = vpop.f32.mrf.mxu1 }
  0xe0   : > { %v385_v28 = vadd.f32 %v384_v12, %v1569_v48  ;;  %v993_v51 = vpop.permute.xlu0 %992 }
  0xe1   : > { %v550_v14 = vadd.f32 %v532_v58, %v467_v11 }
  0xe2   : > { %v623_v15 = vpop.f32.mrf.mxu0 }
  0xe3   : > { %v1630_v3 = vadd.f32 %v615_v54, %v550_v14 }
  0xe6   : > { %v452_v16 = vpop.f32.mrf.mxu2 }
  0xe7   : > { %v540_v17 = vpop.f32.mrf.mxu3  ;;  %v468_v18 = vadd.f32 %v452_v16, %v380_v61  ;;  %v386_v19 = vpop.f32.mrf.mxu1 }
  0xe8   : > { %v387_v37 = vadd.f32 %v386_v19, %v1577_v57  ;;  %v998_v55 = vpop.permute.xlu0 %997 }
  0xe9   : > { %v551_v20 = vadd.f32 %v535_v1, %v468_v18 }
  0xea   : > { %v625_v13 = vpop.f32.mrf.mxu0 }
  0xeb   : > { %v1632_v21 = vadd.f32 %v618_v63, %v551_v20 }
  0xee   : > { %v454_v22 = vpop.f32.mrf.mxu2 }
  0xef   : > { %v542_v23 = vpop.f32.mrf.mxu3  ;;  %v469_v24 = vadd.f32 %v454_v22, %v382_v5  ;;  %v686_v25 = vpop.f32.mrf.mxu1 }
  0xf0   : > { %v711_v48 = vadd.f32 %v686_v25, %v1612_v34 }
  0xf1   : > { %v552_v26 = vadd.f32 %v537_v10, %v469_v24 }
  0xf2   : > { %v935_v32 = vpop.f32.mrf.mxu0 }
  0xf3   : > { %v1634_v27 = vadd.f32 %v620_v7, %v552_v26 }
  0xf6   : > { %v457_v29 = vpop.f32.mrf.mxu2 }
  0xf7   : > { %v852_v30 = vpop.f32.mrf.mxu3  ;;  %v470_v31 = vadd.f32 %v457_v29, %v385_v28  ;;  %v688_v35 = vpop.f32.mrf.mxu1 }
  0xf8   : > { %v712_v57 = vadd.f32 %v688_v35, %v1617_v44 }
  0xf9   : > { %v553_v33 = vadd.f32 %v540_v17, %v470_v31 }
  0xfa   : > { %v937_v42 = vpop.f32.mrf.mxu0 }
  0xfb   : > { %v1637_v36 = vadd.f32 %v623_v15, %v553_v33  ;;  %v1003_v15 = vpop.permute.xlu1 %1002 }
  0xfe   : > { %v459_v38 = vpop.f32.mrf.mxu2 }
  0xff   : > { %v471_v39 = vadd.f32 %v459_v38, %v387_v37  ;;  %v854_v40 = vpop.f32.mrf.mxu3  ;;  %v691_v45 = vpop.f32.mrf.mxu1 }
 0x100   : > { %v713_v1 = vadd.f32 %v691_v45, %v1623_v47 }
 0x101   : > { %v554_v41 = vadd.f32 %v542_v23, %v471_v39 }
 0x102   : > { %v940_v54 = vpop.f32.mrf.mxu0 }
 0x103   : > { %v1640_v43 = vadd.f32 %v625_v13, %v554_v41  ;;  %v1008_v31 = vpop.permute.xlu1 %1007 }
 0x106   : > { %v769_v46 = vpop.f32.mrf.mxu2 }
 0x107   : > { %v794_v49 = vadd.f32 %v769_v46, %v711_v48  ;;  %v857_v52 = vpop.f32.mrf.mxu3  ;;  %v693_v56 = vpop.f32.mrf.mxu1 }
 0x108   : > { %v714_v17 = vadd.f32 %v693_v56, %v1626_v0  ;;  %v1013_v48 = vpop.permute.xlu2 %1012 }
 0x109   : > { %v877_v50 = vadd.f32 %v852_v30, %v794_v49 }
 0x10a   : > { %v942_v5 = vpop.f32.mrf.mxu0 }
 0x10b   : > { %v960_v53 = vadd.f32 %v935_v32, %v877_v50 }
 0x10d   : > { %v970_v60 = vmax.f32 %v960_v53, 0.0 }
 0x10e   : > { %v771_v58 = vpop.f32.mrf.mxu2 }
 0x10f   : > { %v795_v59 = vadd.f32 %v771_v58, %v712_v57  ;;  %v1040_v63 = vmul.f32 %v993_v51, %v970_v60  ;;  %v859_v34 = vpop.f32.mrf.mxu3  ;;  %v696_v10 = vpop.f32.mrf.mxu1 }
 0x110   : > { %v715_v32 = vadd.f32 %v696_v10, %v1628_v8 }
 0x111   : > { %v878_v61 = vadd.f32 %v854_v40, %v795_v59  ;;  %v1066_v9 = vmul.f32 %v1040_v63, %v1040_v63 }
 0x112   : > { %v945_v23 = vpop.f32.mrf.mxu0 }
 0x113   : > { %v961_v62 = vadd.f32 %v937_v42, %v878_v61 }
 0x115   : > { %v971_v2 = vmax.f32 %v961_v62, 0.0 }
 0x116   : > { %v774_v4 = vpop.f32.mrf.mxu2 }
 0x117   : > { %v1041_v6 = vmul.f32 %v998_v55, %v971_v2  ;;  %v796_v7 = vadd.f32 %v774_v4, %v713_v1  ;;  %v862_v20 = vpop.f32.mrf.mxu3  ;;  %v698_v28 = vpop.f32.mrf.mxu1 }
 0x118   : > { %v716_v51 = vadd.f32 %v698_v28, %v1630_v3 }
 0x119   : > { %v1050_v44 = vadd.f32 %v1041_v6, %v1040_v63  ;;  %v1067_v11 = vmul.f32 %v1041_v6, %v1041_v6  ;;  %v1335_v12 = vpack.c.bf16 %v1041_v6, %v1040_v63  ;;  %v879_v14 = vadd.f32 %v857_v52, %v796_v7  ;;  %v1018_v63 = vpop.permute.xlu2 %1017 }
 0x11a   : > { %v947_v45 = vpop.f32.mrf.mxu0 }
 0x11b   : > { %v1076_v16 = vadd.f32 %v1067_v11, %v1066_v9  ;;  %1336 = vst [vmem:[%s1649_s17] sm:$0xff] %v1335_v12   ;;  %v962_v47 = vadd.f32 %v940_v54, %v879_v14  ;;  %v1023_v14 = vpop.permute.xlu0 %1022 }
 0x11d   : > { %v972_v18 = vmax.f32 %v962_v47, 0.0 }
 0x11e   : > { %v776_v19 = vpop.f32.mrf.mxu2 }
 0x11f   : > { %v1042_v13 = vmul.f32 %v1003_v15, %v972_v18  ;;  %v797_v22 = vadd.f32 %v776_v19, %v714_v17  ;;  %v864_v38 = vpop.f32.mrf.mxu3  ;;  %v701_v50 = vpop.f32.mrf.mxu1 }
 0x120   : > { %v717_v55 = vadd.f32 %v701_v50, %v1632_v21 }
 0x121   : > { %v1051_v24 = vadd.f32 %v1050_v44, %v1042_v13  ;;  %v1068_v25 = vmul.f32 %v1042_v13, %v1042_v13  ;;  %v880_v26 = vadd.f32 %v859_v34, %v797_v22 }
 0x122   : > { %v950_v62 = vpop.f32.mrf.mxu0 }
 0x123   : > { %v1077_v29 = vadd.f32 %v1076_v16, %v1068_v25  ;;  %v963_v30 = vadd.f32 %v942_v5, %v880_v26  ;;  %v1028_v25 = vpop.permute.xlu1 %1027 }
 0x125   : > { %v973_v33 = vmax.f32 %v963_v30, 0.0 }
 0x126   : > { %v779_v35 = vpop.f32.mrf.mxu2 }
 0x127   : > { %v1043_v37 = vmul.f32 %v1008_v31, %v973_v33  ;;  %v798_v0 = vadd.f32 %v779_v35, %v715_v32  ;;  %v867_v59 = vpop.f32.mrf.mxu3  ;;  %v703_v1 = vpop.f32.mrf.mxu1 }
 0x128   : > { %v718_v12 = vadd.f32 %v703_v1, %v1634_v27 }
 0x129   : > { %v1052_v39 = vadd.f32 %v1051_v24, %v1043_v37  ;;  %v1069_v40 = vmul.f32 %v1043_v37, %v1043_v37  ;;  %v1340_v41 = vpack.c.bf16 %v1043_v37, %v1042_v13  ;;  %v881_v42 = vadd.f32 %v862_v20, %v798_v0 }
 0x12a   : > { %v952_v16 = vpop.f32.mrf.mxu0 }
 0x12b   : > { %v1078_v46 = vadd.f32 %v1077_v29, %v1069_v40  ;;  %1357 = vst [vmem:[%s1649_s17 + $0x8] sm:$0xff] %v1340_v41   ;;  %v964_v49 = vadd.f32 %v945_v23, %v881_v42  ;;  %v1033_v42 = vpop.permute.xlu2 %1032 }
 0x12d   : > { %v974_v52 = vmax.f32 %v964_v49, 0.0 }
 0x12e   : > { %v781_v53 = vpop.f32.mrf.mxu2 }
 0x12f   : > { %v1044_v8 = vmul.f32 %v1013_v48, %v974_v52  ;;  %v799_v54 = vadd.f32 %v781_v53, %v716_v51  ;;  %v869_v11 = vpop.f32.mrf.mxu3  ;;  %v706_v18 = vpop.f32.mrf.mxu1 }
 0x130   : > { %v719_v24 = vadd.f32 %v706_v18, %v1637_v36 }
 0x131   : > { %v1053_v57 = vadd.f32 %v1052_v39, %v1044_v8  ;;  %v1070_v56 = vmul.f32 %v1044_v8, %v1044_v8  ;;  %v882_v58 = vadd.f32 %v864_v38, %v799_v54 }
 0x132   : > { %v955_v31 = vpop.f32.mrf.mxu0 }
 0x133   : > { %v1079_v60 = vadd.f32 %v1078_v46, %v1070_v56  ;;  %v965_v61 = vadd.f32 %v947_v45, %v882_v58 }
 0x135   : > { %v975_v34 = vmax.f32 %v965_v61, 0.0 }
 0x136   : > { %v784_v2 = vpop.f32.mrf.mxu2 }
 0x137   : > { %v1045_v4 = vmul.f32 %v1018_v63, %v975_v34  ;;  %v800_v3 = vadd.f32 %v784_v2, %v717_v55  ;;  %v872_v28 = vpop.f32.mrf.mxu3  ;;  %v708_v0 = vpop.f32.mrf.mxu1 }
 0x138   : > { %v720_v40 = vadd.f32 %v708_v0, %v1640_v43 }
 0x139   : > { %v1054_v5 = vadd.f32 %v1053_v57, %v1045_v4  ;;  %v1071_v6 = vmul.f32 %v1045_v4, %v1045_v4  ;;  %v1345_v7 = vpack.c.bf16 %v1045_v4, %v1044_v8  ;;  %v883_v9 = vadd.f32 %v867_v59, %v800_v3  ;;  %v1038_v57 = vpop.permute.xlu0 %1037 }
 0x13a   : > { %v957_v52 = vpop.f32.mrf.mxu0 }
 0x13b   : > { %v1080_v10 = vadd.f32 %v1079_v60, %v1071_v6  ;;  %1358 = vst [vmem:[%s1649_s17 + $0x10] sm:$0xff] %v1345_v7   ;;  %v966_v44 = vadd.f32 %v950_v62, %v883_v9 }
 0x13d   : > { %v976_v15 = vmax.f32 %v966_v44, 0.0 }
 0x13e   : > { %v786_v47 = vpop.f32.mrf.mxu2 }
 0x13f   : > { %v1046_v21 = vmul.f32 %v1023_v14, %v976_v15  ;;  %v801_v17 = vadd.f32 %v786_v47, %v718_v12  ;;  %v874_v46 = vpop.f32.mrf.mxu3 }
 0x141   : > { %v884_v19 = vadd.f32 %v869_v11, %v801_v17  ;;  %v1055_v20 = vadd.f32 %v1054_v5, %v1046_v21  ;;  %v1072_v13 = vmul.f32 %v1046_v21, %v1046_v21 }
 0x143   : > { %v967_v22 = vadd.f32 %v952_v16, %v884_v19  ;;  %v1081_v23 = vadd.f32 %v1080_v10, %v1072_v13 }
 0x145   : > { %v977_v26 = vmax.f32 %v967_v22, 0.0 }
 0x146   : > { %v789_v29 = vpop.f32.mrf.mxu2 }
 0x147   : > { %v1047_v27 = vmul.f32 %v1028_v25, %v977_v26  ;;  %v802_v30 = vadd.f32 %v789_v29, %v719_v24 }
 0x149   : > { %v1056_v32 = vadd.f32 %v1055_v20, %v1047_v27  ;;  %v1073_v33 = vmul.f32 %v1047_v27, %v1047_v27  ;;  %v1350_v35 = vpack.c.bf16 %v1047_v27, %v1046_v21  ;;  %v885_v37 = vadd.f32 %v872_v28, %v802_v30 }
 0x14b   : > { %v1082_v38 = vadd.f32 %v1081_v23, %v1073_v33  ;;  %1359 = vst [vmem:[%s1649_s17 + $0x18] sm:$0xff] %v1350_v35   ;;  %v968_v39 = vadd.f32 %v955_v31, %v885_v37 }
 0x14d   : > { %v978_v41 = vmax.f32 %v968_v39, 0.0 }
 0x14e   : > { %v791_v36 = vpop.f32.mrf.mxu2 }
 0x14f   : > { %v1048_v45 = vmul.f32 %v1033_v42, %v978_v41  ;;  %v803_v48 = vadd.f32 %v791_v36, %v720_v40 }
 0x151   : > { %v1057_v49 = vadd.f32 %v1056_v32, %v1048_v45  ;;  %v1074_v50 = vmul.f32 %v1048_v45, %v1048_v45  ;;  %v886_v51 = vadd.f32 %v874_v46, %v803_v48 }
 0x153   : > { %v1083_v53 = vadd.f32 %v1082_v38, %v1074_v50  ;;  %v969_v8 = vadd.f32 %v957_v52, %v886_v51 }
 0x155   : > { %v979_v54 = vmax.f32 %v969_v8, 0.0 }
 0x157   : > { %v1049_v56 = vmul.f32 %v1038_v57, %v979_v54 }
 0x159   : > { %v1058_v58 = vadd.f32 %v1057_v49, %v1049_v56  ;;  %v1075_v59 = vmul.f32 %v1049_v56, %v1049_v56  ;;  %v1355_v43 = vpack.c.bf16 %v1049_v56, %v1048_v45 }
 0x15b   : > { %v1059_v60 = vrot.slane %v1058_v58, 4  ;;  %v1084_v61 = vadd.f32 %v1083_v53, %v1075_v59  ;;  %1360 = vst [vmem:[%s1649_s17 + $0x20] sm:$0xff] %v1355_v43  }
 0x15d   : > { %v1060_v62 = vadd.f32 %v1059_v60, %v1058_v58  ;;  %v1085_v63 = vrot.slane %v1084_v61, 4 }
 0x15f   : > { %v1061_v55 = vrot.slane %v1060_v62, 2  ;;  %v1086_v34 = vadd.f32 %v1085_v63, %v1084_v61 }
 0x161   : > { %v1062_v1 = vadd.f32 %v1061_v55, %v1060_v62  ;;  %v1087_v2 = vrot.slane %v1086_v34, 2 }
 0x163   : > { %v1063_v4 = vrot.slane %v1062_v1, 1  ;;  %v1088_v3 = vadd.f32 %v1087_v2, %v1086_v34 }
 0x165   : > { %v1064_v5 = vadd.f32 %v1063_v4, %v1062_v1  ;;  %v1089_v6 = vrot.slane %v1088_v3, 1 }
 0x167   : > { %1065 = vst [vmem:[%s238_s22] sm:$0x1] %v1064_v5  ;;  %v1090_v7 = vadd.f32 %v1089_v6, %v1088_v3 }
 0x169   : > { %1091 = vst [vmem:[%s241_s25] sm:$0x1] %v1090_v7 }
 0x16a PF: > { %s16_s18 = sadd.s32 1, %s1384_s18  }
 0x16b   : > { %p13_p4 = scmp.ge.s32.totalorder %s16_s18, 4  }
 0x16d   :  { %15 = sbr.rel (!%p13_p4) target bundleno = 1 (0x1), region = 94 }

// kernel: forward.8
= control target key start
LH: loop header
LB: loop body
LE: loop exit
PB: predicated region body
PF: predicated region fallthrough
CT: control target
= control target key end

     0   :  { %s3336_s18 = smov 0   ;;  %s4335_s0 = inlined_call_operand.vmem [shape: f32[2,328,3], index: 0, kind: input, shape index: {}]   ;;  %s4336_s1 = inlined_call_operand.vmem [shape: bf16[9,3,128], index: 1, kind: input, shape index: {}]   ;;  %s4337_s2 = inlined_call_operand.vmem [shape: f32[288,1], index: 2, kind: input, shape index: {}]   ;;  %s4338_s3 = inlined_call_operand.vmem [shape: bf16[2,288,128], index: 3, kind: output, shape index: {0}]   ;;  %s4339_s4 = inlined_call_operand.vmem [shape: f32[2,1,128], index: 4, kind: output, shape index: {1}]   ;;  %s4340_s5 = inlined_call_operand.vmem [shape: f32[2,1,128], index: 5, kind: output, shape index: {2}]  }
   0x1 LB: > { %s2992_s19 = sadd.s32 4294967295, %s3302_s18   ;;  %p2996_p0 = scmp.ge.s32.totalorder %s3302_s18, 1  ;;  %s3302_s18 = sphi %s3336_s18, %s16_s18  }
   0x2   : > { %p192_p1 = scmp.lt.s32.totalorder %s3302_s18, 3 }
   0x4   : > { %p193_p2 = pnand %p2996_p0, %p192_p1 }
   0x5   : > { %p226_p3 = scmp.lt.s32.totalorder (!%p193_p2), %s2992_s19, 1 }
   0x6   : > { %196 = sbr.rel (%p193_p2) target bundleno = 826 (0x33a), region = 32 }
   0xb   : > { %v2999_v0 = vld [vmem:[%s4336_s1 + $0x2] sm:$0x3]  ;;  %vm409_vm0 = vcmask 1040384   ;;  %vm410_vm1 = vcmask 1041408   ;;  %v3304_v1 = vmov 65535   ;;  %s4342_s19 = smov (!%p226_p3, %s2992_s19), 1 }
   0xc   : > { %v411_v2 = vsel %vm409_vm0, 4294967295, %v3304_v1  ;;  %v3036_v3 = vld [vmem:[%s4336_s1 + $0x4] sm:$0x3]  ;;  %v297_v4 = vld [vmem:[%s4336_s1] sm:$0x3]  ;;  %s3281_s28 = smul.u32 328, %s4342_s19  ;;  %s238_s7 = scalar_lea.vmem %s4339_s4, %s4342_s19 }
   0xd   : > { %v3353_v5 = vsel %vm410_vm1, %v411_v2, 0  ;;  %v3074_v6 = vld [vmem:[%s4336_s1 + $0x8] sm:$0x3]  ;;  %vm354_vm2 = vcmask 23552   ;;  %v3055_v23 = vld [vmem:[%s4336_s1 + $0x6] sm:$0x3]  ;;  %s241_s10 = scalar_lea.vmem %s4340_s5, %s4342_s19 }
   0xe   : > { %v414_v7 = vand.u32 %v2999_v0, %v3353_v5  ;;  %v782_v8 = vand.u32 %v3036_v3, %v3353_v5  ;;  %v570_v9 = vand.u32 %v3353_v5, %v297_v4  ;;  %v1278_v10 = vand.u32 %v3074_v6, %v3353_v5  ;;  %s3368_s6 = scalar_lea.vmem %s4335_s0, %s3281_s28  ;;  %v3112_v61 = vld [vmem:[%s4336_s1 + $0xc] sm:$0x3]  ;;  %v3131_v62 = vld [vmem:[%s4336_s1 + $0xe] sm:$0x3]  ;;  %v3093_v63 = vld [vmem:[%s4336_s1 + $0xa] sm:$0x3] }
   0xf   : > { %v308_v11 = vld [vmem:[%s3368_s6 + $0x51] sm:$0xff]  ;;  %v309_v12 = vld [vmem:[%s3368_s6 + $0x59] sm:$0xff]  ;;  %v318_v13 = vld [vmem:[%s3368_s6 + $0xa1] sm:$0xff]  ;;  %v1030_v24 = vand.u32 %v3055_v23, %v3353_v5  ;;  %v1774_v0 = vand.u32 %v3112_v61, %v3353_v5  ;;  %v2022_v1 = vand.u32 %v3131_v62, %v3353_v5  ;;  %v1526_v2 = vand.u32 %v3093_v63, %v3353_v5  ;;  %s3282_s11 = smul.u32 144, %s4342_s19 }
  0x10   : > { %3278 = vmatpush.bf16.msra.mxu1 %v414_v7  ;;  %3279 = vmatpush.bf16.msra.mxu2 %v414_v7  ;;  %v339_v14 = vpack.c.bf16 %v309_v12, %v308_v11  ;;  %v319_v15 = vld [vmem:[%s3368_s6 + $0xa9] sm:$0xff]  ;;  %v298_v16 = vld [vmem:[%s3368_s6 + $0x1] sm:$0xff]  ;;  %v328_v20 = vld [vmem:[%s3368_s6 + $0xf1] sm:$0xff] }
  0x11   : > { %423 = vmatpush.bf16.msra.mxu0 %v414_v7  ;;  %v299_v17 = vld [vmem:[%s3368_s6 + $0x9] sm:$0xff]  ;;  %3280 = vmatpush.bf16.msra.mxu3 %v414_v7  ;;  %v344_v18 = vpack.c.bf16 %v319_v15, %v318_v13  ;;  %v329_v21 = vld [vmem:[%s3368_s6 + $0xf9] sm:$0xff]  ;;  %v310_v25 = vld [vmem:[%s3368_s6 + $0x61] sm:$0xff]  ;;  %s4091_s16 = scalar_lea.vmem %s4338_s3, %s3282_s11 }
  0x12   : > { %v334_v19 = vpack.c.bf16 %v299_v17, %v298_v16  ;;  %v349_v22 = vpack.c.bf16 %v329_v21, %v328_v20  ;;  %v311_v26 = vld [vmem:[%s3368_s6 + $0x69] sm:$0xff]  ;;  %v320_v27 = vld [vmem:[%s3368_s6 + $0xb1] sm:$0xff]  ;;  %v321_v28 = vld [vmem:[%s3368_s6 + $0xb9] sm:$0xff] }
  0x13   : > { %3005 = vmatmul.msk.bf16.vlgmr.msra.gmra.mxu1 %vm354_vm2, %v339_v14  ;;  %3010 = vmatmul.msk.bf16.vlgmr.msra.gmra.mxu2 %vm354_vm2, %v344_v18  ;;  %v300_v29 = vld [vmem:[%s3368_s6 + $0x11] sm:$0xff]  ;;  %v301_v30 = vld [vmem:[%s3368_s6 + $0x19] sm:$0xff]  ;;  %v340_v31 = vpack.c.bf16 %v311_v26, %v310_v25  ;;  %v345_v32 = vpack.c.bf16 %v321_v28, %v320_v27  ;;  %v330_v34 = vld [vmem:[%s3368_s6 + $0x101] sm:$0xff] }
  0x14   : > { %791 = vmatpush.bf16.msrb.mxu2 %v782_v8  ;;  %579 = vmatpush.bf16.msrb.mxu1 %v570_v9  ;;  %v335_v33 = vpack.c.bf16 %v301_v30, %v300_v29  ;;  %v331_v35 = vld [vmem:[%s3368_s6 + $0x109] sm:$0xff]  ;;  %v312_v37 = vld [vmem:[%s3368_s6 + $0x71] sm:$0xff]  ;;  %v313_v38 = vld [vmem:[%s3368_s6 + $0x79] sm:$0xff] }
  0x15   : > { %1287 = vmatpush.bf16.msrb.mxu0 %v1278_v10  ;;  %3015 = vmatmul.msk.bf16.vlgmr.msra.gmra.mxu3 %vm354_vm2, %v349_v22  ;;  %v350_v36 = vpack.c.bf16 %v331_v35, %v330_v34  ;;  %v322_v39 = vld [vmem:[%s3368_s6 + $0xc1] sm:$0xff]  ;;  %v323_v40 = vld [vmem:[%s3368_s6 + $0xc9] sm:$0xff]  ;;  %v341_v43 = vpack.c.bf16 %v313_v38, %v312_v37  ;;  %v332_v46 = vld [vmem:[%s3368_s6 + $0x111] sm:$0xff] }
  0x16   : > { %3000 = vmatmul.msk.bf16.vlgmr.msra.gmra.mxu0 %vm354_vm2, %v334_v19  ;;  %1039 = vmatpush.bf16.msrb.mxu3 %v1030_v24  ;;  %v302_v41 = vld [vmem:[%s3368_s6 + $0x21] sm:$0xff]  ;;  %v303_v42 = vld [vmem:[%s3368_s6 + $0x29] sm:$0xff]  ;;  %v346_v44 = vpack.c.bf16 %v323_v40, %v322_v39  ;;  %v333_v47 = vld [vmem:[%s3368_s6 + $0x119] sm:$0xff] }
  0x17   : > { %v336_v45 = vpack.c.bf16 %v303_v42, %v302_v41  ;;  %v351_v48 = vpack.c.bf16 %v333_v47, %v332_v46  ;;  %v314_v49 = vld [vmem:[%s3368_s6 + $0x81] sm:$0xff]  ;;  %v315_v50 = vld [vmem:[%s3368_s6 + $0x89] sm:$0xff]  ;;  %v324_v51 = vld [vmem:[%s3368_s6 + $0xd1] sm:$0xff] }
  0x18   : > { %v325_v52 = vld [vmem:[%s3368_s6 + $0xd9] sm:$0xff]  ;;  %v304_v53 = vld [vmem:[%s3368_s6 + $0x31] sm:$0xff]  ;;  %v342_v55 = vpack.c.bf16 %v315_v50, %v314_v49  ;;  %1783 = vmatpush.bf16.msra.mxu2 %v1774_v0  ;;  %1535 = vmatpush.bf16.msra.mxu1 %v1526_v2  ;;  %v326_v8 = vld [vmem:[%s3368_s6 + $0xe1] sm:$0xff] }
  0x19   : > { %v305_v54 = vld [vmem:[%s3368_s6 + $0x39] sm:$0xff]  ;;  %v347_v56 = vpack.c.bf16 %v325_v52, %v324_v51  ;;  %v3150_v3 = vld [vmem:[%s4336_s1 + $0x10] sm:$0x3]  ;;  %v306_v10 = vld [vmem:[%s3368_s6 + $0x41] sm:$0xff] }
  0x1a   : > { %v337_v57 = vpack.c.bf16 %v305_v54, %v304_v53  ;;  %v919_v58 = vld [vmem:[%s3368_s6 + $0x12] sm:$0xff]  ;;  %v920_v59 = vld [vmem:[%s3368_s6 + $0x1a] sm:$0xff]  ;;  %v2270_v4 = vand.u32 %v3150_v3, %v3353_v5  ;;  %2031 = vmatpush.bf16.msra.mxu3 %v2022_v1  ;;  %v327_v9 = vld [vmem:[%s3368_s6 + $0xe9] sm:$0xff] }
  0x1b   : > { %v955_v60 = vpack.c.bf16 %v920_v59, %v919_v58  ;;  %v316_v6 = vld [vmem:[%s3368_s6 + $0x91] sm:$0xff]  ;;  %v317_v7 = vld [vmem:[%s3368_s6 + $0x99] sm:$0xff]  ;;  %v307_v11 = vld [vmem:[%s3368_s6 + $0x49] sm:$0xff]  ;;  %v348_v12 = vpack.c.bf16 %v327_v9, %v326_v8 }
  0x1c   : > { %2279 = vmatpush.bf16.msra.mxu0 %v2270_v4  ;;  %v343_v5 = vpack.c.bf16 %v317_v7, %v316_v6  ;;  %v338_v13 = vpack.c.bf16 %v307_v11, %v306_v10  ;;  %v921_v14 = vld [vmem:[%s3368_s6 + $0x22] sm:$0xff]  ;;  %v922_v15 = vld [vmem:[%s3368_s6 + $0x2a] sm:$0xff]  ;;  %v1167_v21 = vld [vmem:[%s3368_s6 + $0x13] sm:$0xff] }
  0x1d   : > { %v956_v16 = vpack.c.bf16 %v922_v15, %v921_v14  ;;  %v243_v17 = vld [vmem:[%s3368_s6] sm:$0xff]  ;;  %v244_v18 = vld [vmem:[%s3368_s6 + $0x8] sm:$0xff]  ;;  %v923_v26 = vld [vmem:[%s3368_s6 + $0x32] sm:$0xff] }
  0x1e   : > { %v671_v19 = vld [vmem:[%s3368_s6 + $0x2] sm:$0xff]  ;;  %v672_v20 = vld [vmem:[%s3368_s6 + $0xa] sm:$0xff]  ;;  %v279_v23 = vpack.c.bf16 %v244_v18, %v243_v17  ;;  %v924_v27 = vld [vmem:[%s3368_s6 + $0x3a] sm:$0xff] }
  0x1f   : > { %v1168_v22 = vld [vmem:[%s3368_s6 + $0x1b] sm:$0xff]  ;;  %v707_v24 = vpack.c.bf16 %v672_v20, %v671_v19  ;;  %v957_v28 = vpack.c.bf16 %v924_v27, %v923_v26  ;;  %v245_v29 = vld [vmem:[%s3368_s6 + $0x10] sm:$0xff]  ;;  %v248_v39 = vld [vmem:[%s3368_s6 + $0x28] sm:$0xff] }
  0x20   : > { %v1203_v25 = vpack.c.bf16 %v1168_v22, %v1167_v21  ;;  %v246_v30 = vld [vmem:[%s3368_s6 + $0x18] sm:$0xff]  ;;  %v925_v35 = vld [vmem:[%s3368_s6 + $0x42] sm:$0xff]  ;;  %v249_v47 = vld [vmem:[%s3368_s6 + $0x30] sm:$0xff] }
  0x21   : > { %v247_v38 = vld [vmem:[%s3368_s6 + $0x20] sm:$0xff]  ;;  %v1171_v40 = vld [vmem:[%s3368_s6 + $0x33] sm:$0xff]  ;;  %v1174_v50 = vld [vmem:[%s3368_s6 + $0x4b] sm:$0xff] }
  0x22   : > { %v1172_v41 = vld [vmem:[%s3368_s6 + $0x3b] sm:$0xff]  ;;  %v281_v42 = vpack.c.bf16 %v248_v39, %v247_v38  ;;  %v1173_v49 = vld [vmem:[%s3368_s6 + $0x43] sm:$0xff]  ;;  %v1175_v0 = vld [vmem:[%s3368_s6 + $0x53] sm:$0xff] }
  0x23   : > { %3006 = vmatmul.msk.bf16.gmra.mxu1 %vm354_vm2, %v340_v31  ;;  %3011 = vmatmul.msk.bf16.gmra.mxu2 %vm354_vm2, %v345_v32  ;;  %v1169_v31 = vld [vmem:[%s3368_s6 + $0x23] sm:$0xff]  ;;  %v1170_v32 = vld [vmem:[%s3368_s6 + $0x2b] sm:$0xff]  ;;  %v1206_v53 = vpack.c.bf16 %v1174_v50, %v1173_v49  ;;  %v1176_v1 = vld [vmem:[%s3368_s6 + $0x5b] sm:$0xff] }
  0x24   : > { %v1204_v34 = vpack.c.bf16 %v1170_v32, %v1169_v31  ;;  %v929_v54 = vld [vmem:[%s3368_s6 + $0x62] sm:$0xff]  ;;  %v1207_v6 = vpack.c.bf16 %v1176_v1, %v1175_v0  ;;  %v931_v7 = vld [vmem:[%s3368_s6 + $0x72] sm:$0xff]  ;;  %v932_v8 = vld [vmem:[%s3368_s6 + $0x7a] sm:$0xff] }
  0x25   : > { %3016 = vmatmul.msk.bf16.gmra.mxu3 %vm354_vm2, %v350_v36  ;;  %v926_v36 = vld [vmem:[%s3368_s6 + $0x4a] sm:$0xff]  ;;  %v251_v62 = vld [vmem:[%s3368_s6 + $0x40] sm:$0xff]  ;;  %v3522_v11 = vpack.c.bf16 %v932_v8, %v931_v7  ;;  %v258_v50 = vld [vmem:[%s3368_s6 + $0x78] sm:$0xff] }
  0x26   : > { %3001 = vmatmul.msk.bf16.gmra.mxu0 %vm354_vm2, %v335_v33  ;;  %v280_v33 = vpack.c.bf16 %v246_v30, %v245_v29  ;;  %v958_v37 = vpack.c.bf16 %v926_v36, %v925_v35  ;;  %v252_v63 = vld [vmem:[%s3368_s6 + $0x48] sm:$0xff]  ;;  %v253_v15 = vld [vmem:[%s3368_s6 + $0x50] sm:$0xff]  ;;  %v255_v32 = vld [vmem:[%s3368_s6 + $0x60] sm:$0xff] }
  0x27   : > { %v283_v3 = vpack.c.bf16 %v252_v63, %v251_v62  ;;  %v1177_v17 = vld [vmem:[%s3368_s6 + $0x63] sm:$0xff]  ;;  %v1178_v18 = vld [vmem:[%s3368_s6 + $0x6b] sm:$0xff]  ;;  %v1180_v35 = vld [vmem:[%s3368_s6 + $0x7b] sm:$0xff] }
  0x28   : > { %v1208_v22 = vpack.c.bf16 %v1178_v18, %v1177_v17  ;;  %v257_v49 = vld [vmem:[%s3368_s6 + $0x70] sm:$0xff]  ;;  %v937_v63 = vld [vmem:[%s3368_s6 + $0xa2] sm:$0xff] }
  0x29   : > { %v938_v0 = vld [vmem:[%s3368_s6 + $0xaa] sm:$0xff]  ;;  %v259_v17 = vld [vmem:[%s3368_s6 + $0x80] sm:$0xff] }
  0x2a   : > { %v260_v18 = vld [vmem:[%s3368_s6 + $0x88] sm:$0xff] }
  0x33   : > { %3007 = vmatmul.msk.bf16.gmra.mxu1 %vm354_vm2, %v341_v43  ;;  %3012 = vmatmul.msk.bf16.gmra.mxu2 %vm354_vm2, %v346_v44  ;;  %v1205_v43 = vpack.c.bf16 %v1172_v41, %v1171_v40  ;;  %v927_v44 = vld [vmem:[%s3368_s6 + $0x52] sm:$0xff]  ;;  %v936_v41 = vld [vmem:[%s3368_s6 + $0x9a] sm:$0xff] }
  0x34   : > { %v935_v40 = vld [vmem:[%s3368_s6 + $0x92] sm:$0xff] }
  0x35   : > { %3017 = vmatmul.msk.bf16.gmra.mxu3 %vm354_vm2, %v351_v48  ;;  %v250_v48 = vld [vmem:[%s3368_s6 + $0x38] sm:$0xff] }
  0x36   : > { %3002 = vmatmul.msk.bf16.gmra.mxu0 %vm354_vm2, %v336_v45  ;;  %v928_v45 = vld [vmem:[%s3368_s6 + $0x5a] sm:$0xff]  ;;  %v282_v51 = vpack.c.bf16 %v250_v48, %v249_v47 }
  0x37   : > { %v959_v46 = vpack.c.bf16 %v928_v45, %v927_v44  ;;  %v3580_v44 = vpack.c.bf16 %v936_v41, %v935_v40 }
  0x43   : > { %3008 = vmatmul.msk.bf16.gmra.mxu1 %vm354_vm2, %v342_v55  ;;  %3013 = vmatmul.msk.bf16.gmra.mxu2 %vm354_vm2, %v347_v56  ;;  %v930_v55 = vld [vmem:[%s3368_s6 + $0x6a] sm:$0xff] }
  0x45   : > { %3056 = vmatmul.msk.bf16.vlgmr.msrb.gmra.mxu3 %vm354_vm2, %v955_v60 }
  0x46   : > { %3003 = vmatmul.msk.bf16.gmra.mxu0 %vm354_vm2, %v337_v57  ;;  %v3493_v57 = vpack.c.bf16 %v930_v55, %v929_v54  ;;  %v286_v55 = vpack.c.bf16 %v258_v50, %v257_v49 }
  0x53   : > { %3009 = vmatmul.msk.bf16.gmra.mxu1 %vm354_vm2, %v343_v5  ;;  %3014 = vmatmul.msk.bf16.gmra.mxu2 %vm354_vm2, %v348_v12 }
  0x55   : > { %3057 = vmatmul.msk.bf16.gmra.mxu3 %vm354_vm2, %v956_v16 }
  0x56   : > { %3004 = vmatmul.msk.bf16.gmra.mxu0 %vm354_vm2, %v338_v13 }
  0x63   : > { %3018 = vmatmul.msk.bf16.vlgmr.msrb.gmra.mxu1 %vm354_vm2, %v279_v23  ;;  %3037 = vmatmul.msk.bf16.vlgmr.msrb.gmra.mxu2 %vm354_vm2, %v707_v24  ;;  %v933_v23 = vld [vmem:[%s3368_s6 + $0x82] sm:$0xff]  ;;  %v934_v24 = vld [vmem:[%s3368_s6 + $0x8a] sm:$0xff] }
  0x64   : > { %v3551_v27 = vpack.c.bf16 %v934_v24, %v933_v23 }
  0x65   : > { %3058 = vmatmul.msk.bf16.gmra.mxu3 %vm354_vm2, %v957_v28 }
  0x66   : > { %3075 = vmatmul.msk.bf16.vlgmr.msrb.gmra.mxu0 %vm354_vm2, %v1203_v25 }
  0x73   : > { %3019 = vmatmul.msk.bf16.gmra.mxu1 %vm354_vm2, %v280_v33  ;;  %3038 = vmatmul.msk.bf16.gmra.mxu2 %vm354_vm2, %v955_v60  ;;  %v256_v33 = vld [vmem:[%s3368_s6 + $0x68] sm:$0xff] }
  0x75   : > { %3059 = vmatmul.msk.bf16.gmra.mxu3 %vm354_vm2, %v958_v37 }
  0x76   : > { %3076 = vmatmul.msk.bf16.gmra.mxu0 %vm354_vm2, %v1204_v34  ;;  %v1179_v34 = vld [vmem:[%s3368_s6 + $0x73] sm:$0xff] }
  0x77   : > { %v1209_v39 = vpack.c.bf16 %v1180_v35, %v1179_v34  ;;  %v940_v34 = vld [vmem:[%s3368_s6 + $0xba] sm:$0xff] }
  0x83   : > { %3020 = vmatmul.msk.bf16.gmra.mxu1 %vm354_vm2, %v281_v42  ;;  %3039 = vmatmul.msk.bf16.gmra.mxu2 %vm354_vm2, %v956_v16  ;;  %v254_v16 = vld [vmem:[%s3368_s6 + $0x58] sm:$0xff] }
  0x84   : > { %v284_v20 = vpack.c.bf16 %v254_v16, %v253_v15 }
  0x85   : > { %3060 = vmatmul.msk.bf16.gmra.mxu3 %vm354_vm2, %v959_v46 }
  0x86   : > { %3077 = vmatmul.msk.bf16.gmra.mxu0 %vm354_vm2, %v1205_v43 }
  0x90   : > { %v3486_v52 = vpop.f32.mrf.mxu1 }
  0x93   : > { %v3490_v56 = vpop.f32.mrf.mxu0  ;;  %3021 = vmatmul.msk.bf16.gmra.mxu1 %vm354_vm2, %v282_v51  ;;  %3040 = vmatmul.msk.bf16.gmra.mxu2 %vm354_vm2, %v957_v28  ;;  %v1181_v51 = vld [vmem:[%s3368_s6 + $0x83] sm:$0xff] }
  0x95   : > { %3061 = vmatmul.msk.bf16.gmra.mxu3 %vm354_vm2, %v3493_v57 }
  0x96   : > { %3078 = vmatmul.msk.bf16.gmra.mxu0 %vm354_vm2, %v1206_v53  ;;  %v3497_v58 = vpop.f32.mrf.mxu2  ;;  %v1182_v53 = vld [vmem:[%s3368_s6 + $0x8b] sm:$0xff] }
  0x97   : > { %v1210_v62 = vpack.c.bf16 %v1182_v53, %v1181_v51 }
  0x98   : > { %v3501_v59 = vpop.f32.mrf.mxu1  ;;  %v3505_v61 = vpop.f32.mrf.mxu3 }
  0x9b   : > { %v3503_v60 = vpop.f32.mrf.mxu0 }
  0x9e   : > { %v3511_v2 = vpop.f32.mrf.mxu2 }
  0xa0   : > { %v3513_v4 = vpop.f32.mrf.mxu1  ;;  %v3519_v10 = vpop.f32.mrf.mxu3 }
  0xa3   : > { %v3517_v9 = vpop.f32.mrf.mxu0  ;;  %3022 = vmatmul.msk.bf16.gmra.mxu1 %vm354_vm2, %v283_v3  ;;  %3041 = vmatmul.msk.bf16.gmra.mxu2 %vm354_vm2, %v958_v37  ;;  %v285_v37 = vpack.c.bf16 %v256_v33, %v255_v32  ;;  %v939_v33 = vld [vmem:[%s3368_s6 + $0xb2] sm:$0xff] }
  0xa5   : > { %3062 = vmatmul.msk.bf16.gmra.mxu3 %vm354_vm2, %v3522_v11 }
  0xa6   : > { %3079 = vmatmul.msk.bf16.gmra.mxu0 %vm354_vm2, %v1207_v6  ;;  %v3526_v5 = vpop.f32.mrf.mxu2  ;;  %v3606_v6 = vpack.c.bf16 %v938_v0, %v937_v63  ;;  %v262_v63 = vld [vmem:[%s3368_s6 + $0x98] sm:$0xff] }
  0xa8   : > { %v3530_v12 = vpop.f32.mrf.mxu1  ;;  %v3534_v14 = vpop.f32.mrf.mxu3 }
  0xab   : > { %v3532_v13 = vpop.f32.mrf.mxu0 }
  0xae   : > { %v3540_v19 = vpop.f32.mrf.mxu2 }
  0xb0   : > { %v3542_v21 = vpop.f32.mrf.mxu1  ;;  %v3548_v26 = vpop.f32.mrf.mxu3 }
  0xb3   : > { %v3546_v25 = vpop.f32.mrf.mxu0  ;;  %3023 = vmatmul.msk.bf16.gmra.mxu1 %vm354_vm2, %v284_v20  ;;  %3042 = vmatmul.msk.bf16.gmra.mxu2 %vm354_vm2, %v959_v46  ;;  %v1183_v20 = vld [vmem:[%s3368_s6 + $0x93] sm:$0xff] }
  0xb5   : > { %3063 = vmatmul.msk.bf16.gmra.mxu3 %vm354_vm2, %v3551_v27 }
  0xb6   : > { %3080 = vmatmul.msk.bf16.gmra.mxu0 %vm354_vm2, %v1208_v22  ;;  %v3555_v28 = vpop.f32.mrf.mxu2  ;;  %v1184_v22 = vld [vmem:[%s3368_s6 + $0x9b] sm:$0xff] }
  0xb7   : > { %v1211_v32 = vpack.c.bf16 %v1184_v22, %v1183_v20 }
  0xb8   : > { %v3559_v29 = vpop.f32.mrf.mxu1  ;;  %v3563_v31 = vpop.f32.mrf.mxu3 }
  0xbb   : > { %v3561_v30 = vpop.f32.mrf.mxu0 }
  0xbe   : > { %v3569_v36 = vpop.f32.mrf.mxu2 }
  0xc0   : > { %v3571_v38 = vpop.f32.mrf.mxu1  ;;  %v3577_v43 = vpop.f32.mrf.mxu3 }
  0xc3   : > { %v3575_v42 = vpop.f32.mrf.mxu0  ;;  %3024 = vmatmul.msk.bf16.gmra.mxu1 %vm354_vm2, %v285_v37  ;;  %3043 = vmatmul.msk.bf16.gmra.mxu2 %vm354_vm2, %v3493_v57 }
  0xc5   : > { %3064 = vmatmul.msk.bf16.gmra.mxu3 %vm354_vm2, %v3580_v44 }
  0xc6   : > { %3081 = vmatmul.msk.bf16.gmra.mxu0 %vm354_vm2, %v1209_v39  ;;  %v3585_v45 = vpop.f32.mrf.mxu2  ;;  %v3628_v39 = vpack.c.bf16 %v940_v34, %v939_v33  ;;  %v942_v33 = vld [vmem:[%s3368_s6 + $0xca] sm:$0xff] }
  0xc8   : > { %v3589_v46 = vpop.f32.mrf.mxu1  ;;  %v1041_v48 = vpop.f32.mrf.mxu3 }
  0xcb   : > { %v3591_v47 = vpop.f32.mrf.mxu0 }
  0xce   : > { %v3597_v54 = vpop.f32.mrf.mxu2 }
  0xd0   : > { %v3599_v57 = vpop.f32.mrf.mxu1  ;;  %v1043_v3 = vpop.f32.mrf.mxu3 }
  0xd3   : > { %v3603_v1 = vpop.f32.mrf.mxu0  ;;  %3025 = vmatmul.msk.bf16.gmra.mxu1 %vm354_vm2, %v286_v55  ;;  %3044 = vmatmul.msk.bf16.gmra.mxu2 %vm354_vm2, %v3522_v11  ;;  %v287_v11 = vpack.c.bf16 %v260_v18, %v259_v17  ;;  %v1186_v17 = vld [vmem:[%s3368_s6 + $0xab] sm:$0xff] }
  0xd5   : > { %3065 = vmatmul.msk.bf16.gmra.mxu3 %vm354_vm2, %v3606_v6 }
  0xd6   : > { %3082 = vmatmul.msk.bf16.gmra.mxu0 %vm354_vm2, %v1210_v62  ;;  %v3611_v7 = vpop.f32.mrf.mxu2  ;;  %v261_v62 = vld [vmem:[%s3368_s6 + $0x90] sm:$0xff] }
  0xd7   : > { %v288_v20 = vpack.c.bf16 %v262_v63, %v261_v62 }
  0xd8   : > { %v3615_v8 = vpop.f32.mrf.mxu1  ;;  %v1046_v16 = vpop.f32.mrf.mxu3 }
  0xdb   : > { %v3617_v15 = vpop.f32.mrf.mxu0 }
  0xde   : > { %v3623_v23 = vpop.f32.mrf.mxu2 }
  0xe0   : > { %v581_v24 = vpop.f32.mrf.mxu1  ;;  %v1048_v37 = vpop.f32.mrf.mxu3 }
  0xe1   : > { %v582_v40 = vadd.f32 %v581_v24, %v3490_v56 }
  0xe3   : > { %v1289_v35 = vpop.f32.mrf.mxu0  ;;  %3026 = vmatmul.msk.bf16.gmra.mxu1 %vm354_vm2, %v287_v11  ;;  %3045 = vmatmul.msk.bf16.gmra.mxu2 %vm354_vm2, %v3551_v27  ;;  %v1185_v27 = vld [vmem:[%s3368_s6 + $0xa3] sm:$0xff] }
  0xe4   : > { %v1212_v24 = vpack.c.bf16 %v1186_v17, %v1185_v27  ;;  %v263_v27 = vld [vmem:[%s3368_s6 + $0xa0] sm:$0xff]  ;;  %v264_v17 = vld [vmem:[%s3368_s6 + $0xa8] sm:$0xff] }
  0xe5   : > { %3066 = vmatmul.msk.bf16.gmra.mxu3 %vm354_vm2, %v3628_v39 }
  0xe6   : > { %3083 = vmatmul.msk.bf16.gmra.mxu0 %vm354_vm2, %v1211_v32  ;;  %v793_v41 = vpop.f32.mrf.mxu2  ;;  %v941_v32 = vld [vmem:[%s3368_s6 + $0xc2] sm:$0xff] }
  0xe7   : > { %v883_v49 = vadd.f32 %v793_v41, %v582_v40 }
  0xe8   : > { %v583_v50 = vpop.f32.mrf.mxu1  ;;  %v1051_v55 = vpop.f32.mrf.mxu3 }
  0xe9   : > { %v1131_v53 = vadd.f32 %v1041_v48, %v883_v49  ;;  %v584_v18 = vadd.f32 %v583_v50, %v3503_v60 }
  0xeb   : > { %v1291_v51 = vpop.f32.mrf.mxu0  ;;  %v3638_v0 = vadd.f32 %v1289_v35, %v1131_v53  ;;  %v3646_v35 = vpack.c.bf16 %v942_v33, %v941_v32  ;;  %v943_v32 = vld [vmem:[%s3368_s6 + $0xd2] sm:$0xff]  ;;  %v944_v33 = vld [vmem:[%s3368_s6 + $0xda] sm:$0xff] }
  0xee   : > { %v795_v56 = vpop.f32.mrf.mxu2 }
  0xef   : > { %v884_v22 = vadd.f32 %v795_v56, %v584_v18  ;;  %v1187_v18 = vld [vmem:[%s3368_s6 + $0xb3] sm:$0xff] }
  0xf0   : > { %v586_v11 = vpop.f32.mrf.mxu1  ;;  %v1053_v48 = vpop.f32.mrf.mxu3 }
  0xf1   : > { %v1132_v40 = vadd.f32 %v1043_v3, %v884_v22  ;;  %v587_v41 = vadd.f32 %v586_v11, %v3517_v9 }
  0xf3   : > { %v1294_v34 = vpop.f32.mrf.mxu0  ;;  %3027 = vmatmul.msk.bf16.gmra.mxu1 %vm354_vm2, %v288_v20  ;;  %3046 = vmatmul.msk.bf16.gmra.mxu2 %vm354_vm2, %v3580_v44  ;;  %v3651_v60 = vadd.f32 %v1291_v51, %v1132_v40  ;;  %v1188_v51 = vld [vmem:[%s3368_s6 + $0xbb] sm:$0xff]  ;;  %v289_v20 = vpack.c.bf16 %v264_v17, %v263_v27 }
  0xf5   : > { %3067 = vmatmul.msk.bf16.gmra.mxu3 %vm354_vm2, %v3646_v35 }
  0xf6   : > { %3084 = vmatmul.msk.bf16.gmra.mxu0 %vm354_vm2, %v1212_v24  ;;  %v798_v49 = vpop.f32.mrf.mxu2  ;;  %v1213_v24 = vpack.c.bf16 %v1188_v51, %v1187_v18  ;;  %v265_v18 = vld [vmem:[%s3368_s6 + $0xb0] sm:$0xff]  ;;  %v266_v51 = vld [vmem:[%s3368_s6 + $0xb8] sm:$0xff] }
  0xf7   : > { %v885_v3 = vadd.f32 %v798_v49, %v587_v41 }
  0xf8   : > { %v588_v50 = vpop.f32.mrf.mxu1  ;;  %v1056_v63 = vpop.f32.mrf.mxu3 }
  0xf9   : > { %v1133_v62 = vadd.f32 %v1046_v16, %v885_v3  ;;  %v589_v56 = vadd.f32 %v588_v50, %v3532_v13 }
  0xfb   : > { %v1296_v53 = vpop.f32.mrf.mxu0  ;;  %v3658_v44 = vadd.f32 %v1294_v34, %v1133_v62  ;;  %v3666_v34 = vpack.c.bf16 %v944_v33, %v943_v32  ;;  %v945_v32 = vld [vmem:[%s3368_s6 + $0xe2] sm:$0xff]  ;;  %v946_v33 = vld [vmem:[%s3368_s6 + $0xea] sm:$0xff] }
  0xfe   : > { %v800_v9 = vpop.f32.mrf.mxu2 }
  0xff   : > { %v886_v22 = vadd.f32 %v800_v9, %v589_v56  ;;  %v1189_v56 = vld [vmem:[%s3368_s6 + $0xc3] sm:$0xff] }
 0x100   : > { %v591_v11 = vpop.f32.mrf.mxu1  ;;  %v1058_v16 = vpop.f32.mrf.mxu3 }
 0x101   : > { %v1134_v41 = vadd.f32 %v1048_v37, %v886_v22  ;;  %v592_v49 = vadd.f32 %v591_v11, %v3546_v25 }
 0x103   : > { %v1299_v40 = vpop.f32.mrf.mxu0  ;;  %3028 = vmatmul.msk.bf16.gmra.mxu1 %vm354_vm2, %v289_v20  ;;  %3047 = vmatmul.msk.bf16.gmra.mxu2 %vm354_vm2, %v3606_v6  ;;  %v3671_v13 = vadd.f32 %v1296_v53, %v1134_v41  ;;  %v1190_v53 = vld [vmem:[%s3368_s6 + $0xcb] sm:$0xff]  ;;  %v290_v20 = vpack.c.bf16 %v266_v51, %v265_v18 }
 0x105   : > { %3068 = vmatmul.msk.bf16.gmra.mxu3 %vm354_vm2, %v3666_v34 }
 0x106   : > { %3085 = vmatmul.msk.bf16.gmra.mxu0 %vm354_vm2, %v1213_v24  ;;  %v803_v3 = vpop.f32.mrf.mxu2  ;;  %v1214_v24 = vpack.c.bf16 %v1190_v53, %v1189_v56  ;;  %v267_v56 = vld [vmem:[%s3368_s6 + $0xc0] sm:$0xff]  ;;  %v268_v53 = vld [vmem:[%s3368_s6 + $0xc8] sm:$0xff] }
 0x107   : > { %v887_v37 = vadd.f32 %v803_v3, %v592_v49 }
 0x108   : > { %v593_v50 = vpop.f32.mrf.mxu1  ;;  %v1061_v17 = vpop.f32.mrf.mxu3 }
 0x109   : > { %v1135_v27 = vadd.f32 %v1051_v55, %v887_v37  ;;  %v594_v9 = vadd.f32 %v593_v50, %v3561_v30 }
 0x10b   : > { %v1301_v62 = vpop.f32.mrf.mxu0  ;;  %v3678_v6 = vadd.f32 %v1299_v40, %v1135_v27  ;;  %v3686_v40 = vpack.c.bf16 %v946_v33, %v945_v32  ;;  %v947_v32 = vld [vmem:[%s3368_s6 + $0xf2] sm:$0xff]  ;;  %v948_v33 = vld [vmem:[%s3368_s6 + $0xfa] sm:$0xff] }
 0x10e   : > { %v805_v25 = vpop.f32.mrf.mxu2 }
 0x10f   : > { %v888_v22 = vadd.f32 %v805_v25, %v594_v9  ;;  %v1191_v9 = vld [vmem:[%s3368_s6 + $0xd3] sm:$0xff] }
 0x110   : > { %v596_v11 = vpop.f32.mrf.mxu1  ;;  %v1063_v55 = vpop.f32.mrf.mxu3 }
 0x111   : > { %v1136_v49 = vadd.f32 %v1053_v48, %v888_v22  ;;  %v597_v3 = vadd.f32 %v596_v11, %v3575_v42 }
 0x113   : > { %v1304_v41 = vpop.f32.mrf.mxu0  ;;  %3029 = vmatmul.msk.bf16.gmra.mxu1 %vm354_vm2, %v290_v20  ;;  %3048 = vmatmul.msk.bf16.gmra.mxu2 %vm354_vm2, %v3628_v39  ;;  %v3691_v30 = vadd.f32 %v1301_v62, %v1136_v49  ;;  %v1192_v62 = vld [vmem:[%s3368_s6 + $0xdb] sm:$0xff]  ;;  %v291_v20 = vpack.c.bf16 %v268_v53, %v267_v56 }
 0x115   : > { %3069 = vmatmul.msk.bf16.gmra.mxu3 %vm354_vm2, %v3686_v40 }
 0x116   : > { %3086 = vmatmul.msk.bf16.gmra.mxu0 %vm354_vm2, %v1214_v24  ;;  %v808_v37 = vpop.f32.mrf.mxu2  ;;  %v1215_v24 = vpack.c.bf16 %v1192_v62, %v1191_v9  ;;  %v269_v9 = vld [vmem:[%s3368_s6 + $0xd0] sm:$0xff]  ;;  %v270_v62 = vld [vmem:[%s3368_s6 + $0xd8] sm:$0xff] }
 0x117   : > { %v889_v48 = vadd.f32 %v808_v37, %v597_v3 }
 0x118   : > { %v598_v50 = vpop.f32.mrf.mxu1  ;;  %v1066_v51 = vpop.f32.mrf.mxu3 }
 0x119   : > { %v1137_v18 = vadd.f32 %v1056_v63, %v889_v48  ;;  %v599_v25 = vadd.f32 %v598_v50, %v3591_v47 }
 0x11b   : > { %v1306_v27 = vpop.f32.mrf.mxu0  ;;  %v3698_v39 = vadd.f32 %v1304_v41, %v1137_v18  ;;  %v3706_v41 = vpack.c.bf16 %v948_v33, %v947_v32  ;;  %v949_v32 = vld [vmem:[%s3368_s6 + $0x102] sm:$0xff]  ;;  %v950_v33 = vld [vmem:[%s3368_s6 + $0x10a] sm:$0xff] }
 0x11e   : > { %v810_v42 = vpop.f32.mrf.mxu2 }
 0x11f   : > { %v890_v22 = vadd.f32 %v810_v42, %v599_v25  ;;  %v1193_v25 = vld [vmem:[%s3368_s6 + $0xe3] sm:$0xff] }
 0x120   : > { %v601_v11 = vpop.f32.mrf.mxu1  ;;  %v1068_v63 = vpop.f32.mrf.mxu3 }
 0x121   : > { %v1138_v3 = vadd.f32 %v1058_v16, %v890_v22  ;;  %v602_v37 = vadd.f32 %v601_v11, %v3603_v1 }
 0x123   : > { %v1309_v49 = vpop.f32.mrf.mxu0  ;;  %3030 = vmatmul.msk.bf16.gmra.mxu1 %vm354_vm2, %v291_v20  ;;  %3049 = vmatmul.msk.bf16.gmra.mxu2 %vm354_vm2, %v3646_v35  ;;  %v3711_v47 = vadd.f32 %v1306_v27, %v1138_v3  ;;  %v1194_v27 = vld [vmem:[%s3368_s6 + $0xeb] sm:$0xff]  ;;  %v292_v20 = vpack.c.bf16 %v270_v62, %v269_v9 }
 0x125   : > { %3070 = vmatmul.msk.bf16.gmra.mxu3 %vm354_vm2, %v3706_v41 }
 0x126   : > { %3087 = vmatmul.msk.bf16.gmra.mxu0 %vm354_vm2, %v1215_v24  ;;  %v813_v48 = vpop.f32.mrf.mxu2  ;;  %v1216_v24 = vpack.c.bf16 %v1194_v27, %v1193_v25  ;;  %v271_v25 = vld [vmem:[%s3368_s6 + $0xe0] sm:$0xff]  ;;  %v272_v27 = vld [vmem:[%s3368_s6 + $0xe8] sm:$0xff] }
 0x127   : > { %v891_v16 = vadd.f32 %v813_v48, %v602_v37 }
 0x128   : > { %v603_v50 = vpop.f32.mrf.mxu1  ;;  %v1071_v53 = vpop.f32.mrf.mxu3 }
 0x129   : > { %v1139_v56 = vadd.f32 %v1061_v17, %v891_v16  ;;  %v604_v42 = vadd.f32 %v603_v50, %v3617_v15 }
 0x12b   : > { %v1311_v18 = vpop.f32.mrf.mxu0  ;;  %v3718_v35 = vadd.f32 %v1309_v49, %v1139_v56  ;;  %v3726_v49 = vpack.c.bf16 %v950_v33, %v949_v32  ;;  %v951_v32 = vld [vmem:[%s3368_s6 + $0x112] sm:$0xff]  ;;  %v952_v33 = vld [vmem:[%s3368_s6 + $0x11a] sm:$0xff] }
 0x12e   : > { %v815_v1 = vpop.f32.mrf.mxu2 }
 0x12f   : > { %v892_v22 = vadd.f32 %v815_v1, %v604_v42  ;;  %v1195_v42 = vld [vmem:[%s3368_s6 + $0xf3] sm:$0xff] }
 0x130   : > { %v606_v11 = vpop.f32.mrf.mxu1  ;;  %v1073_v17 = vpop.f32.mrf.mxu3 }
 0x131   : > { %v1140_v37 = vadd.f32 %v1063_v55, %v892_v22  ;;  %v607_v48 = vadd.f32 %v606_v11, %v3486_v52 }
 0x133   : > { %v1314_v3 = vpop.f32.mrf.mxu0  ;;  %3031 = vmatmul.msk.bf16.gmra.mxu1 %vm354_vm2, %v292_v20  ;;  %3050 = vmatmul.msk.bf16.gmra.mxu2 %vm354_vm2, %v3666_v34  ;;  %v3731_v15 = vadd.f32 %v1311_v18, %v1140_v37  ;;  %v1196_v18 = vld [vmem:[%s3368_s6 + $0xfb] sm:$0xff]  ;;  %v293_v20 = vpack.c.bf16 %v272_v27, %v271_v25 }
 0x135   : > { %3071 = vmatmul.msk.bf16.gmra.mxu3 %vm354_vm2, %v3726_v49 }
 0x136   : > { %3088 = vmatmul.msk.bf16.gmra.mxu0 %vm354_vm2, %v1216_v24  ;;  %v818_v16 = vpop.f32.mrf.mxu2  ;;  %v1217_v24 = vpack.c.bf16 %v1196_v18, %v1195_v42  ;;  %v273_v42 = vld [vmem:[%s3368_s6 + $0xf0] sm:$0xff]  ;;  %v274_v18 = vld [vmem:[%s3368_s6 + $0xf8] sm:$0xff] }
 0x137   : > { %v893_v55 = vadd.f32 %v818_v16, %v607_v48 }
 0x138   : > { %v608_v50 = vpop.f32.mrf.mxu1  ;;  %v1076_v62 = vpop.f32.mrf.mxu3 }
 0x139   : > { %v1141_v9 = vadd.f32 %v1066_v51, %v893_v55  ;;  %v609_v1 = vadd.f32 %v608_v50, %v3501_v59 }
 0x13b   : > { %v1316_v56 = vpop.f32.mrf.mxu0  ;;  %v3738_v34 = vadd.f32 %v1314_v3, %v1141_v9  ;;  %v3746_v3 = vpack.c.bf16 %v952_v33, %v951_v32  ;;  %v953_v32 = vld [vmem:[%s3368_s6 + $0x122] sm:$0xff]  ;;  %v954_v33 = vld [vmem:[%s3368_s6 + $0x12a] sm:$0xff] }
 0x13e   : > { %v820_v52 = vpop.f32.mrf.mxu2 }
 0x13f   : > { %v894_v22 = vadd.f32 %v820_v52, %v609_v1  ;;  %v1197_v1 = vld [vmem:[%s3368_s6 + $0x103] sm:$0xff] }
 0x140   : > { %v611_v11 = vpop.f32.mrf.mxu1  ;;  %v1078_v51 = vpop.f32.mrf.mxu3 }
 0x141   : > { %v1142_v48 = vadd.f32 %v1068_v63, %v894_v22  ;;  %v612_v16 = vadd.f32 %v611_v11, %v3513_v4 }
 0x143   : > { %v1319_v37 = vpop.f32.mrf.mxu0  ;;  %3032 = vmatmul.msk.bf16.gmra.mxu1 %vm354_vm2, %v293_v20  ;;  %3051 = vmatmul.msk.bf16.gmra.mxu2 %vm354_vm2, %v3686_v40  ;;  %v3751_v59 = vadd.f32 %v1316_v56, %v1142_v48  ;;  %v1198_v56 = vld [vmem:[%s3368_s6 + $0x10b] sm:$0xff]  ;;  %v294_v20 = vpack.c.bf16 %v274_v18, %v273_v42 }
 0x145   : > { %3072 = vmatmul.msk.bf16.gmra.mxu3 %vm354_vm2, %v3746_v3 }
 0x146   : > { %3089 = vmatmul.msk.bf16.gmra.mxu0 %vm354_vm2, %v1217_v24  ;;  %v823_v55 = vpop.f32.mrf.mxu2  ;;  %v1218_v24 = vpack.c.bf16 %v1198_v56, %v1197_v1  ;;  %v275_v1 = vld [vmem:[%s3368_s6 + $0x100] sm:$0xff]  ;;  %v276_v56 = vld [vmem:[%s3368_s6 + $0x108] sm:$0xff] }
 0x147   : > { %v895_v63 = vadd.f32 %v823_v55, %v612_v16 }
 0x148   : > { %v613_v50 = vpop.f32.mrf.mxu1  ;;  %v1081_v27 = vpop.f32.mrf.mxu3 }
 0x149   : > { %v1143_v25 = vadd.f32 %v1071_v53, %v895_v63  ;;  %v614_v52 = vadd.f32 %v613_v50, %v3530_v12 }
 0x14b   : > { %v1321_v9 = vpop.f32.mrf.mxu0  ;;  %v3758_v40 = vadd.f32 %v1319_v37, %v1143_v25  ;;  %v972_v37 = vpack.c.bf16 %v954_v33, %v953_v32  ;;  %v1911_v32 = vld [vmem:[%s3368_s6 + $0x25] sm:$0xff]  ;;  %v1912_v33 = vld [vmem:[%s3368_s6 + $0x2d] sm:$0xff] }
 0x14e   : > { %v825_v4 = vpop.f32.mrf.mxu2 }
 0x14f   : > { %v896_v22 = vadd.f32 %v825_v4, %v614_v52  ;;  %v1200_v4 = vld [vmem:[%s3368_s6 + $0x11b] sm:$0xff] }
 0x150   : > { %v616_v11 = vpop.f32.mrf.mxu1  ;;  %v1083_v53 = vpop.f32.mrf.mxu3 }
 0x151   : > { %v1144_v16 = vadd.f32 %v1073_v17, %v896_v22  ;;  %v617_v55 = vadd.f32 %v616_v11, %v3542_v21  ;;  %v295_v21 = vpack.c.bf16 %v276_v56, %v275_v1  ;;  %v277_v56 = vld [vmem:[%s3368_s6 + $0x110] sm:$0xff] }
 0x153   : > { %v1324_v48 = vpop.f32.mrf.mxu0  ;;  %3033 = vmatmul.msk.bf16.gmra.mxu1 %vm354_vm2, %v294_v20  ;;  %3052 = vmatmul.msk.bf16.gmra.mxu2 %vm354_vm2, %v3706_v41  ;;  %v3769_v12 = vadd.f32 %v1321_v9, %v1144_v16  ;;  %v1199_v41 = vld [vmem:[%s3368_s6 + $0x113] sm:$0xff] }
 0x155   : > { %3073 = vmatmul.msk.bf16.gmra.mxu3 %vm354_vm2, %v972_v37 }
 0x156   : > { %3090 = vmatmul.msk.bf16.gmra.mxu0 %vm354_vm2, %v1218_v24  ;;  %v828_v63 = vpop.f32.mrf.mxu2  ;;  %v1219_v24 = vpack.c.bf16 %v1200_v4, %v1199_v41  ;;  %v278_v41 = vld [vmem:[%s3368_s6 + $0x118] sm:$0xff]  ;;  %v1201_v4 = vld [vmem:[%s3368_s6 + $0x123] sm:$0xff] }
 0x157   : > { %v897_v17 = vadd.f32 %v828_v63, %v617_v55 }
 0x158   : > { %v618_v50 = vpop.f32.mrf.mxu1  ;;  %v1086_v18 = vpop.f32.mrf.mxu3 }
 0x159   : > { %v1145_v42 = vadd.f32 %v1076_v62, %v897_v17  ;;  %v619_v9 = vadd.f32 %v618_v50, %v3559_v29 }
 0x15b   : > { %v1326_v25 = vpop.f32.mrf.mxu0  ;;  %v3775_v52 = vadd.f32 %v1324_v48, %v1145_v42  ;;  %v1947_v48 = vpack.c.bf16 %v1912_v33, %v1911_v32  ;;  %v1914_v32 = vld [vmem:[%s3368_s6 + $0x3d] sm:$0xff] }
 0x15e   : > { %v830_v20 = vpop.f32.mrf.mxu2 }
 0x15f   : > { %v898_v22 = vadd.f32 %v830_v20, %v619_v9  ;;  %v296_v20 = vpack.c.bf16 %v278_v41, %v277_v56  ;;  %v1416_v56 = vld [vmem:[%s3368_s6 + $0x1c] sm:$0xff]  ;;  %v1663_v41 = vld [vmem:[%s3368_s6 + $0x24] sm:$0xff] }
 0x160   : > { %v621_v11 = vpop.f32.mrf.mxu1  ;;  %v3782_v62 = vpop.f32.mrf.mxu3 }
 0x161   : > { %v1146_v37 = vadd.f32 %v1078_v51, %v898_v22  ;;  %v622_v55 = vadd.f32 %v621_v11, %v3571_v38 }
 0x163   : > { %v1329_v16 = vpop.f32.mrf.mxu0  ;;  %3034 = vmatmul.msk.bf16.gmra.mxu1 %vm354_vm2, %v295_v21  ;;  %3053 = vmatmul.msk.bf16.gmra.mxu2 %vm354_vm2, %v3726_v49  ;;  %v3788_v29 = vadd.f32 %v1326_v25, %v1146_v37  ;;  %v1202_v25 = vld [vmem:[%s3368_s6 + $0x12b] sm:$0xff] }
 0x164   : > { %v1220_v11 = vpack.c.bf16 %v1202_v25, %v1201_v4  ;;  %v1664_v25 = vld [vmem:[%s3368_s6 + $0x2c] sm:$0xff] }
 0x165   : > { %3132 = vmatmul.msk.bf16.vlgmr.msra.gmra.mxu3 %vm354_vm2, %v1947_v48 }
 0x166   : > { %3091 = vmatmul.msk.bf16.gmra.mxu0 %vm354_vm2, %v1219_v24  ;;  %v833_v63 = vpop.f32.mrf.mxu2  ;;  %v1913_v24 = vld [vmem:[%s3368_s6 + $0x35] sm:$0xff] }
 0x167   : > { %v899_v51 = vadd.f32 %v833_v63, %v622_v55  ;;  %v1948_v48 = vpack.c.bf16 %v1914_v32, %v1913_v24  ;;  %v1699_v24 = vpack.c.bf16 %v1664_v25, %v1663_v41  ;;  %v1665_v25 = vld [vmem:[%s3368_s6 + $0x34] sm:$0xff] }
 0x168   : > { %v623_v17 = vpop.f32.mrf.mxu1  ;;  %v3792_v1 = vpop.f32.mrf.mxu3 }
 0x169   : > { %v1147_v42 = vadd.f32 %v1081_v27, %v899_v51  ;;  %v624_v9 = vadd.f32 %v623_v17, %v3589_v46 }
 0x16b   : > { %v1331_v50 = vpop.f32.mrf.mxu0  ;;  %v3796_v49 = vadd.f32 %v1329_v16, %v1147_v42 }
 0x16e   : > { %v835_v38 = vpop.f32.mrf.mxu2 }
 0x16f   : > { %v900_v21 = vadd.f32 %v835_v38, %v624_v9  ;;  %v2160_v9 = vld [vmem:[%s3368_s6 + $0x2e] sm:$0xff] }
 0x170   : > { %v626_v22 = vpop.f32.mrf.mxu1  ;;  %v3803_v27 = vpop.f32.mrf.mxu3 }
 0x171   : > { %v1148_v37 = vadd.f32 %v1083_v53, %v900_v21  ;;  %v627_v16 = vadd.f32 %v626_v22, %v3599_v57  ;;  %v1415_v57 = vld [vmem:[%s3368_s6 + $0x14] sm:$0xff] }
 0x172   : > { %v1451_v21 = vpack.c.bf16 %v1416_v56, %v1415_v57 }
 0x173   : > { %v1334_v33 = vpop.f32.mrf.mxu0  ;;  %3035 = vmatmul.msk.bf16.gmra.mxu1 %vm354_vm2, %v296_v20  ;;  %3054 = vmatmul.msk.bf16.gmra.mxu2 %vm354_vm2, %v3746_v3  ;;  %v3809_v46 = vadd.f32 %v1331_v50, %v1148_v37  ;;  %v2443_v3 = vld [vmem:[%s4337_s2] sm:$0xff]  ;;  %v3305_v50 = vmov 0  }
 0x174   : > { %3293 = vset.pattern.permute.xlu0 %v3305_v50  ;;  %3294 = vset.pattern.permute.xlu1 %v3305_v50  ;;  %v1915_v37 = vld [vmem:[%s3368_s6 + $0x45] sm:$0xff] }
 0x175   : > { %3133 = vmatmul.msk.bf16.gmra.mxu3 %vm354_vm2, %v1948_v48  ;;  %2481 = vperm.xlu0 %3293, %v2443_v3   ;;  %v1916_v48 = vld [vmem:[%s3368_s6 + $0x4d] sm:$0xff] }
 0x176   : > { %3092 = vmatmul.msk.bf16.gmra.mxu0 %vm354_vm2, %v1220_v11  ;;  %v838_v55 = vpop.f32.mrf.mxu2  ;;  %3295 = vset.pattern.permute.xlu2 %v3305_v50 }
 0x177   : > { %v901_v53 = vadd.f32 %v838_v55, %v627_v16 }
 0x178   : > { %v628_v63 = vpop.f32.mrf.mxu1  ;;  %v3813_v42 = vpop.f32.mrf.mxu3 }
 0x179   : > { %v1149_v17 = vadd.f32 %v1086_v18, %v901_v53  ;;  %v2159_v18 = vld [vmem:[%s3368_s6 + $0x26] sm:$0xff]  ;;  %v629_v38 = vadd.f32 %v628_v63, %v3615_v8 }
 0x17a   : > { %v2195_v32 = vpack.c.bf16 %v2160_v9, %v2159_v18  ;;  %v2444_v8 = vld [vmem:[%s4337_s2 + $0x8] sm:$0xff]  ;;  %v2161_v9 = vld [vmem:[%s3368_s6 + $0x36] sm:$0xff] }
 0x17b   : > { %v1336_v51 = vpop.f32.mrf.mxu0  ;;  %v3821_v4 = vadd.f32 %v1334_v33, %v1149_v17  ;;  %v1949_v33 = vpack.c.bf16 %v1916_v48, %v1915_v37  ;;  %v1917_v37 = vld [vmem:[%s3368_s6 + $0x55] sm:$0xff]  ;;  %v1918_v48 = vld [vmem:[%s3368_s6 + $0x5d] sm:$0xff] }
 0x17d   : > { %2486 = vperm.xlu0 %3293, %v2444_v8  }
 0x17e   : > { %v840_v20 = vpop.f32.mrf.mxu2 }
 0x17f   : > { %v902_v22 = vadd.f32 %v840_v20, %v629_v38  ;;  %v2162_v38 = vld [vmem:[%s3368_s6 + $0x3e] sm:$0xff] }
 0x180   : > { %v631_v11 = vpop.f32.mrf.mxu1  ;;  %v3830_v53 = vpop.f32.mrf.mxu3 }
 0x181   : > { %v1150_v55 = vadd.f32 %v3782_v62, %v902_v22  ;;  %v632_v62 = vadd.f32 %v631_v11, %v3497_v58  ;;  %v1666_v58 = vld [vmem:[%s3368_s6 + $0x3c] sm:$0xff] }
 0x183   : > { %v1339_v16 = vpop.f32.mrf.mxu0  ;;  %3094 = vmatmul.msk.bf16.vlgmr.msra.gmra.mxu1 %vm354_vm2, %v1451_v21  ;;  %3113 = vmatmul.msk.bf16.vlgmr.msra.gmra.mxu2 %vm354_vm2, %v1699_v24  ;;  %v3838_v63 = vadd.f32 %v1336_v51, %v1150_v55  ;;  %v2445_v51 = vld [vmem:[%s4337_s2 + $0x10] sm:$0xff] }
 0x184   : > { %2491 = vperm.xlu1 %3294, %v2445_v51  }
 0x185   : > { %3134 = vmatmul.msk.bf16.gmra.mxu3 %vm354_vm2, %v1949_v33 }
 0x186   : > { %3151 = vmatmul.msk.bf16.vlgmr.msra.gmra.mxu0 %vm354_vm2, %v2195_v32  ;;  %v843_v17 = vpop.f32.mrf.mxu2  ;;  %v1700_v32 = vpack.c.bf16 %v1666_v58, %v1665_v25  ;;  %v1667_v25 = vld [vmem:[%s3368_s6 + $0x44] sm:$0xff] }
 0x187   : > { %v903_v3 = vadd.f32 %v843_v17, %v632_v62 }
 0x188   : > { %v633_v50 = vpop.f32.mrf.mxu1  ;;  %v1101_v41 = vpop.f32.mrf.mxu3 }
 0x189   : > { %v1151_v56 = vadd.f32 %v3792_v1, %v903_v3  ;;  %v634_v20 = vadd.f32 %v633_v50, %v3511_v2  ;;  %v2196_v1 = vpack.c.bf16 %v2162_v38, %v2161_v9  ;;  %v2446_v2 = vld [vmem:[%s4337_s2 + $0x18] sm:$0xff]  ;;  %v2163_v9 = vld [vmem:[%s3368_s6 + $0x46] sm:$0xff]  ;;  %v2164_v38 = vld [vmem:[%s3368_s6 + $0x4e] sm:$0xff] }
 0x18b   : > { %v1341_v57 = vpop.f32.mrf.mxu0  ;;  %v3847_v18 = vadd.f32 %v1339_v16, %v1151_v56  ;;  %v1950_v16 = vpack.c.bf16 %v1918_v48, %v1917_v37  ;;  %v1919_v37 = vld [vmem:[%s3368_s6 + $0x65] sm:$0xff]  ;;  %v1920_v48 = vld [vmem:[%s3368_s6 + $0x6d] sm:$0xff] }
 0x18c   : > { %2496 = vperm.xlu1 %3294, %v2446_v2  }
 0x18e   : > { %v845_v21 = vpop.f32.mrf.mxu2 }
 0x18f   : > { %v904_v22 = vadd.f32 %v845_v21, %v634_v20 }
 0x190   : > { %v636_v11 = vpop.f32.mrf.mxu1  ;;  %v1103_v8 = vpop.f32.mrf.mxu3 }
 0x191   : > { %v1152_v33 = vadd.f32 %v3803_v27, %v904_v22  ;;  %v637_v27 = vadd.f32 %v636_v11, %v3526_v5 }
 0x193   : > { %v1344_v55 = vpop.f32.mrf.mxu0  ;;  %3095 = vmatmul.msk.bf16.gmra.mxu1 %vm354_vm2, %v1699_v24  ;;  %3114 = vmatmul.msk.bf16.gmra.mxu2 %vm354_vm2, %v1700_v32  ;;  %v3862_v62 = vadd.f32 %v1341_v57, %v1152_v33  ;;  %v1668_v57 = vld [vmem:[%s3368_s6 + $0x4c] sm:$0xff] }
 0x194   : > { %v1701_v11 = vpack.c.bf16 %v1668_v57, %v1667_v25  ;;  %v2165_v57 = vld [vmem:[%s3368_s6 + $0x56] sm:$0xff] }
 0x195   : > { %3135 = vmatmul.msk.bf16.gmra.mxu3 %vm354_vm2, %v1950_v16 }
 0x196   : > { %3152 = vmatmul.msk.bf16.gmra.mxu0 %vm354_vm2, %v2196_v1  ;;  %v848_v17 = vpop.f32.mrf.mxu2  ;;  %v2197_v1 = vpack.c.bf16 %v2164_v38, %v2163_v9  ;;  %v2166_v9 = vld [vmem:[%s3368_s6 + $0x5e] sm:$0xff] }
 0x197   : > { %v905_v24 = vadd.f32 %v848_v17, %v637_v27 }
 0x198   : > { %v638_v3 = vpop.f32.mrf.mxu1  ;;  %v3867_v51 = vpop.f32.mrf.mxu3 }
 0x199   : > { %v1153_v56 = vadd.f32 %v3813_v42, %v905_v24  ;;  %v639_v5 = vadd.f32 %v638_v3, %v3540_v19 }
 0x19b   : > { %v1346_v50 = vpop.f32.mrf.mxu0  ;;  %v3870_v58 = vadd.f32 %v1344_v55, %v1153_v56  ;;  %v1951_v55 = vpack.c.bf16 %v1920_v48, %v1919_v37  ;;  %v2449_v56 = vld [vmem:[%s4337_s2 + $0x30] sm:$0xff]  ;;  %v1922_v37 = vld [vmem:[%s3368_s6 + $0x7d] sm:$0xff] }
 0x19c   : > { %2511 = vperm.xlu0 %3293, %v2449_v56  }
 0x19e   : > { %v850_v20 = vpop.f32.mrf.mxu2 }
 0x19f   : > { %v906_v21 = vadd.f32 %v850_v20, %v639_v5 }
 0x1a0   : > { %v641_v22 = vpop.f32.mrf.mxu1  ;;  %v3879_v16 = vpop.f32.mrf.mxu3 }
 0x1a1   : > { %v1154_v42 = vadd.f32 %v3830_v53, %v906_v21  ;;  %v642_v2 = vadd.f32 %v641_v22, %v3555_v28  ;;  %v1670_v28 = vld [vmem:[%s3368_s6 + $0x5c] sm:$0xff]  ;;  %v2198_v22 = vpack.c.bf16 %v2166_v9, %v2165_v57  ;;  %v2167_v9 = vld [vmem:[%s3368_s6 + $0x66] sm:$0xff] }
 0x1a3   : > { %v1349_v33 = vpop.f32.mrf.mxu0  ;;  %3096 = vmatmul.msk.bf16.gmra.mxu1 %vm354_vm2, %v1700_v32  ;;  %3115 = vmatmul.msk.bf16.gmra.mxu2 %vm354_vm2, %v1701_v11  ;;  %v3884_v19 = vadd.f32 %v1346_v50, %v1154_v42  ;;  %v1669_v50 = vld [vmem:[%s3368_s6 + $0x54] sm:$0xff] }
 0x1a5   : > { %3136 = vmatmul.msk.bf16.gmra.mxu3 %vm354_vm2, %v1951_v55 }
 0x1a6   : > { %3153 = vmatmul.msk.bf16.gmra.mxu0 %vm354_vm2, %v2197_v1  ;;  %v853_v27 = vpop.f32.mrf.mxu2  ;;  %v1921_v1 = vld [vmem:[%s3368_s6 + $0x75] sm:$0xff] }
 0x1a7   : > { %v907_v53 = vadd.f32 %v853_v27, %v642_v2  ;;  %v2450_v2 = vld [vmem:[%s4337_s2 + $0x38] sm:$0xff] }
 0x1a8   : > { %v643_v17 = vpop.f32.mrf.mxu1  ;;  %v3888_v3 = vpop.f32.mrf.mxu3  ;;  %2516 = vperm.xlu1 %3294, %v2450_v2  }
 0x1a9   : > { %v1155_v32 = vadd.f32 %v1101_v41, %v907_v53  ;;  %v644_v38 = vadd.f32 %v643_v17, %v3569_v36  ;;  %v1702_v41 = vpack.c.bf16 %v1670_v28, %v1669_v50  ;;  %v2447_v36 = vld [vmem:[%s4337_s2 + $0x20] sm:$0xff] }
 0x1aa   : > { %2501 = vperm.xlu2 %3295, %v2447_v36   ;;  %v1671_v28 = vld [vmem:[%s3368_s6 + $0x64] sm:$0xff] }
 0x1ab   : > { %v1351_v24 = vpop.f32.mrf.mxu0  ;;  %v3894_v25 = vadd.f32 %v1349_v33, %v1155_v32  ;;  %v1952_v33 = vpack.c.bf16 %v1922_v37, %v1921_v1  ;;  %v1923_v37 = vld [vmem:[%s3368_s6 + $0x85] sm:$0xff] }
 0x1ae   : > { %v855_v5 = vpop.f32.mrf.mxu2 }
 0x1af   : > { %v908_v20 = vadd.f32 %v855_v5, %v644_v38  ;;  %v2168_v38 = vld [vmem:[%s3368_s6 + $0x6e] sm:$0xff] }
 0x1b0   : > { %v646_v21 = vpop.f32.mrf.mxu1  ;;  %v3902_v55 = vpop.f32.mrf.mxu3  ;;  %v2199_v1 = vpack.c.bf16 %v2168_v38, %v2167_v9  ;;  %v2169_v9 = vld [vmem:[%s3368_s6 + $0x76] sm:$0xff]  ;;  %v2170_v38 = vld [vmem:[%s3368_s6 + $0x7e] sm:$0xff] }
 0x1b1   : > { %v1156_v42 = vadd.f32 %v1103_v8, %v908_v20 }
 0x1b3   : > { %v1354_v48 = vpop.f32.mrf.mxu0  ;;  %3097 = vmatmul.msk.bf16.gmra.mxu1 %vm354_vm2, %v1701_v11  ;;  %3116 = vmatmul.msk.bf16.gmra.mxu2 %vm354_vm2, %v1702_v41  ;;  %v3913_v8 = vadd.f32 %v1351_v24, %v1156_v42  ;;  %v647_v11 = vadd.f32 %v646_v21, %v3585_v45  ;;  %v2448_v24 = vld [vmem:[%s4337_s2 + $0x28] sm:$0xff] }
 0x1b4   : > { %v1672_v45 = vld [vmem:[%s3368_s6 + $0x6c] sm:$0xff]  ;;  %2506 = vperm.xlu2 %3295, %v2448_v24  }
 0x1b5   : > { %3137 = vmatmul.msk.bf16.gmra.mxu3 %vm354_vm2, %v1952_v33  ;;  %v1924_v42 = vld [vmem:[%s3368_s6 + $0x8d] sm:$0xff] }
 0x1b6   : > { %3154 = vmatmul.msk.bf16.gmra.mxu0 %vm354_vm2, %v2198_v22  ;;  %v858_v27 = vpop.f32.mrf.mxu2 }
 0x1b7   : > { %v909_v53 = vadd.f32 %v858_v27, %v647_v11 }
 0x1b8   : > { %v648_v17 = vpop.f32.mrf.mxu1  ;;  %v3918_v50 = vpop.f32.mrf.mxu3 }
 0x1b9   : > { %v1157_v56 = vadd.f32 %v3867_v51, %v909_v53  ;;  %v649_v5 = vadd.f32 %v648_v17, %v3597_v54  ;;  %v1703_v51 = vpack.c.bf16 %v1672_v45, %v1671_v28  ;;  %v2452_v54 = vld [vmem:[%s4337_s2 + $0x48] sm:$0xff]  ;;  %v1673_v28 = vld [vmem:[%s3368_s6 + $0x74] sm:$0xff] }
 0x1ba   : > { %2526 = vperm.xlu0 %3293, %v2452_v54  }
 0x1bb   : > { %v1356_v32 = vpop.f32.mrf.mxu0  ;;  %v3924_v57 = vadd.f32 %v1354_v48, %v1157_v56  ;;  %v1953_v48 = vpack.c.bf16 %v1924_v42, %v1923_v37  ;;  %v1925_v37 = vld [vmem:[%s3368_s6 + $0x95] sm:$0xff]  ;;  %v1926_v42 = vld [vmem:[%s3368_s6 + $0x9d] sm:$0xff] }
 0x1be   : > { %v860_v20 = vpop.f32.mrf.mxu2 }
 0x1bf   : > { %v910_v21 = vadd.f32 %v860_v20, %v649_v5 }
 0x1c0   : > { %v651_v22 = vpop.f32.mrf.mxu1  ;;  %v3933_v2 = vpop.f32.mrf.mxu3 }
 0x1c1   : > { %v1158_v36 = vadd.f32 %v3879_v16, %v910_v21  ;;  %v652_v16 = vadd.f32 %v651_v22, %v3611_v7  ;;  %v1674_v7 = vld [vmem:[%s3368_s6 + $0x7c] sm:$0xff] }
 0x1c3   : > { %v1359_v33 = vpop.f32.mrf.mxu0  ;;  %3098 = vmatmul.msk.bf16.gmra.mxu1 %vm354_vm2, %v1702_v41  ;;  %3117 = vmatmul.msk.bf16.gmra.mxu2 %vm354_vm2, %v1703_v51  ;;  %v3941_v11 = vadd.f32 %v1356_v32, %v1158_v36  ;;  %v2453_v32 = vld [vmem:[%s4337_s2 + $0x50] sm:$0xff] }
 0x1c4   : > { %2531 = vperm.xlu1 %3294, %v2453_v32  }
 0x1c5   : > { %3138 = vmatmul.msk.bf16.gmra.mxu3 %vm354_vm2, %v1953_v48 }
 0x1c6   : > { %3155 = vmatmul.msk.bf16.gmra.mxu0 %vm354_vm2, %v2199_v1  ;;  %v863_v27 = vpop.f32.mrf.mxu2  ;;  %v2200_v1 = vpack.c.bf16 %v2170_v38, %v2169_v9  ;;  %v2171_v9 = vld [vmem:[%s3368_s6 + $0x86] sm:$0xff]  ;;  %v2172_v38 = vld [vmem:[%s3368_s6 + $0x8e] sm:$0xff] }
 0x1c7   : > { %v911_v41 = vadd.f32 %v863_v27, %v652_v16 }
 0x1c8   : > { %v653_v53 = vpop.f32.mrf.mxu1  ;;  %v3946_v24 = vpop.f32.mrf.mxu3 }
 0x1c9   : > { %v1159_v56 = vadd.f32 %v3888_v3, %v911_v41  ;;  %v654_v5 = vadd.f32 %v653_v53, %v3623_v23  ;;  %v1704_v3 = vpack.c.bf16 %v1674_v7, %v1673_v28  ;;  %v2451_v23 = vld [vmem:[%s4337_s2 + $0x40] sm:$0xff] }
 0x1ca   : > { %2521 = vperm.xlu2 %3295, %v2451_v23   ;;  %v1675_v28 = vld [vmem:[%s3368_s6 + $0x84] sm:$0xff] }
 0x1cb   : > { %v1361_v17 = vpop.f32.mrf.mxu0  ;;  %v3952_v45 = vadd.f32 %v1359_v33, %v1159_v56  ;;  %v1954_v33 = vpack.c.bf16 %v1926_v42, %v1925_v37  ;;  %v1927_v37 = vld [vmem:[%s3368_s6 + $0xa5] sm:$0xff]  ;;  %v1928_v42 = vld [vmem:[%s3368_s6 + $0xad] sm:$0xff] }
 0x1ce   : > { %v865_v20 = vpop.f32.mrf.mxu2 }
 0x1cf   : > { %v912_v21 = vadd.f32 %v865_v20, %v654_v5 }
 0x1d0   : > { %v656_v22 = vpop.f32.mrf.mxu1  ;;  %v3961_v54 = vpop.f32.mrf.mxu3 }
 0x1d1   : > { %v1160_v48 = vadd.f32 %v3902_v55, %v912_v21  ;;  %v657_v55 = vadd.f32 %v656_v22, %v3505_v61  ;;  %v1676_v61 = vld [vmem:[%s3368_s6 + $0x8c] sm:$0xff] }
 0x1d3   : > { %v1364_v36 = vpop.f32.mrf.mxu0  ;;  %3099 = vmatmul.msk.bf16.gmra.mxu1 %vm354_vm2, %v1703_v51  ;;  %3118 = vmatmul.msk.bf16.gmra.mxu2 %vm354_vm2, %v1704_v3  ;;  %v3969_v16 = vadd.f32 %v1361_v17, %v1160_v48  ;;  %v2455_v17 = vld [vmem:[%s4337_s2 + $0x60] sm:$0xff] }
 0x1d4   : > { %2541 = vperm.xlu0 %3293, %v2455_v17  }
 0x1d5   : > { %3139 = vmatmul.msk.bf16.gmra.mxu3 %vm354_vm2, %v1954_v33 }
 0x1d6   : > { %3156 = vmatmul.msk.bf16.gmra.mxu0 %vm354_vm2, %v2200_v1  ;;  %v868_v27 = vpop.f32.mrf.mxu2  ;;  %v2201_v1 = vpack.c.bf16 %v2172_v38, %v2171_v9  ;;  %v2173_v9 = vld [vmem:[%s3368_s6 + $0x96] sm:$0xff]  ;;  %v2174_v38 = vld [vmem:[%s3368_s6 + $0x9e] sm:$0xff] }
 0x1d7   : > { %v913_v51 = vadd.f32 %v868_v27, %v657_v55 }
 0x1d8   : > { %v658_v41 = vpop.f32.mrf.mxu1  ;;  %v3974_v32 = vpop.f32.mrf.mxu3 }
 0x1d9   : > { %v1161_v56 = vadd.f32 %v3918_v50, %v913_v51  ;;  %v659_v5 = vadd.f32 %v658_v41, %v3519_v10  ;;  %v1705_v50 = vpack.c.bf16 %v1676_v61, %v1675_v28  ;;  %v2456_v10 = vld [vmem:[%s4337_s2 + $0x68] sm:$0xff]  ;;  %v1677_v28 = vld [vmem:[%s3368_s6 + $0x94] sm:$0xff] }
 0x1da   : > { %2546 = vperm.xlu1 %3294, %v2456_v10  }
 0x1db   : > { %v1366_v53 = vpop.f32.mrf.mxu0  ;;  %v3980_v7 = vadd.f32 %v1364_v36, %v1161_v56  ;;  %v1955_v36 = vpack.c.bf16 %v1928_v42, %v1927_v37  ;;  %v1929_v37 = vld [vmem:[%s3368_s6 + $0xb5] sm:$0xff]  ;;  %v1930_v42 = vld [vmem:[%s3368_s6 + $0xbd] sm:$0xff] }
 0x1de   : > { %v870_v20 = vpop.f32.mrf.mxu2 }
 0x1df   : > { %v914_v21 = vadd.f32 %v870_v20, %v659_v5 }
 0x1e0   : > { %v661_v22 = vpop.f32.mrf.mxu1  ;;  %v3989_v23 = vpop.f32.mrf.mxu3 }
 0x1e1   : > { %v1162_v33 = vadd.f32 %v3933_v2, %v914_v21  ;;  %v662_v2 = vadd.f32 %v661_v22, %v3534_v14  ;;  %v1678_v14 = vld [vmem:[%s3368_s6 + $0x9c] sm:$0xff] }
 0x1e3   : > { %v1369_v48 = vpop.f32.mrf.mxu0  ;;  %3100 = vmatmul.msk.bf16.gmra.mxu1 %vm354_vm2, %v1704_v3  ;;  %3119 = vmatmul.msk.bf16.gmra.mxu2 %vm354_vm2, %v1705_v50  ;;  %v3997_v55 = vadd.f32 %v1366_v53, %v1162_v33  ;;  %v2454_v53 = vld [vmem:[%s4337_s2 + $0x58] sm:$0xff] }
 0x1e4   : > { %2536 = vperm.xlu2 %3295, %v2454_v53  }
 0x1e5   : > { %3140 = vmatmul.msk.bf16.gmra.mxu3 %vm354_vm2, %v1955_v36 }
 0x1e6   : > { %3157 = vmatmul.msk.bf16.gmra.mxu0 %vm354_vm2, %v2201_v1  ;;  %v873_v27 = vpop.f32.mrf.mxu2  ;;  %v2202_v1 = vpack.c.bf16 %v2174_v38, %v2173_v9  ;;  %v2175_v9 = vld [vmem:[%s3368_s6 + $0xa6] sm:$0xff]  ;;  %v2176_v38 = vld [vmem:[%s3368_s6 + $0xae] sm:$0xff] }
 0x1e7   : > { %v915_v3 = vadd.f32 %v873_v27, %v662_v2 }
 0x1e8   : > { %v663_v51 = vpop.f32.mrf.mxu1  ;;  %v4002_v17 = vpop.f32.mrf.mxu3 }
 0x1e9   : > { %v1163_v56 = vadd.f32 %v3946_v24, %v915_v3  ;;  %v664_v5 = vadd.f32 %v663_v51, %v3548_v26  ;;  %v1706_v24 = vpack.c.bf16 %v1678_v14, %v1677_v28  ;;  %v2458_v26 = vld [vmem:[%s4337_s2 + $0x78] sm:$0xff]  ;;  %v1679_v28 = vld [vmem:[%s3368_s6 + $0xa4] sm:$0xff] }
 0x1ea   : > { %2556 = vperm.xlu0 %3293, %v2458_v26  }
 0x1eb   : > { %v1371_v41 = vpop.f32.mrf.mxu0  ;;  %v4008_v61 = vadd.f32 %v1369_v48, %v1163_v56  ;;  %v1956_v48 = vpack.c.bf16 %v1930_v42, %v1929_v37  ;;  %v1931_v37 = vld [vmem:[%s3368_s6 + $0xc5] sm:$0xff]  ;;  %v1932_v42 = vld [vmem:[%s3368_s6 + $0xcd] sm:$0xff] }
 0x1ee   : > { %v875_v20 = vpop.f32.mrf.mxu2 }
 0x1ef   : > { %v916_v21 = vadd.f32 %v875_v20, %v664_v5 }
 0x1f0   : > { %v666_v22 = vpop.f32.mrf.mxu1  ;;  %v4017_v10 = vpop.f32.mrf.mxu3 }
 0x1f1   : > { %v1164_v36 = vadd.f32 %v3961_v54, %v916_v21  ;;  %v667_v54 = vadd.f32 %v666_v22, %v3563_v31  ;;  %v1680_v31 = vld [vmem:[%s3368_s6 + $0xac] sm:$0xff] }
 0x1f3   : > { %v1374_v33 = vpop.f32.mrf.mxu0  ;;  %3101 = vmatmul.msk.bf16.gmra.mxu1 %vm354_vm2, %v1705_v50  ;;  %3120 = vmatmul.msk.bf16.gmra.mxu2 %vm354_vm2, %v1706_v24  ;;  %v4025_v2 = vadd.f32 %v1371_v41, %v1164_v36  ;;  %v2459_v41 = vld [vmem:[%s4337_s2 + $0x80] sm:$0xff] }
 0x1f4   : > { %2561 = vperm.xlu1 %3294, %v2459_v41   ;;  %v2482_v41 = vpop.permute.xlu0 %2481 }
 0x1f5   : > { %3141 = vmatmul.msk.bf16.gmra.mxu3 %vm354_vm2, %v1956_v48 }
 0x1f6   : > { %3158 = vmatmul.msk.bf16.gmra.mxu0 %vm354_vm2, %v2202_v1  ;;  %v878_v27 = vpop.f32.mrf.mxu2  ;;  %v2203_v1 = vpack.c.bf16 %v2176_v38, %v2175_v9  ;;  %v2177_v38 = vld [vmem:[%s3368_s6 + $0xb6] sm:$0xff] }
 0x1f7   : > { %v917_v50 = vadd.f32 %v878_v27, %v667_v54 }
 0x1f8   : > { %v668_v3 = vpop.f32.mrf.mxu1  ;;  %v4030_v53 = vpop.f32.mrf.mxu3 }
 0x1f9   : > { %v1165_v56 = vadd.f32 %v3974_v32, %v917_v50  ;;  %v669_v5 = vadd.f32 %v668_v3, %v3577_v43  ;;  %v1707_v32 = vpack.c.bf16 %v1680_v31, %v1679_v28  ;;  %v2457_v43 = vld [vmem:[%s4337_s2 + $0x70] sm:$0xff] }
 0x1fa   : > { %2551 = vperm.xlu2 %3295, %v2457_v43   ;;  %v1681_v31 = vld [vmem:[%s3368_s6 + $0xb4] sm:$0xff] }
 0x1fb   : > { %v1376_v51 = vpop.f32.mrf.mxu0  ;;  %v4036_v14 = vadd.f32 %v1374_v33, %v1165_v56  ;;  %v1957_v33 = vpack.c.bf16 %v1932_v42, %v1931_v37  ;;  %v1933_v42 = vld [vmem:[%s3368_s6 + $0xd5] sm:$0xff] }
 0x1fe   : > { %v880_v20 = vpop.f32.mrf.mxu2 }
 0x1ff   : > { %v918_v21 = vadd.f32 %v880_v20, %v669_v5  ;;  %v2178_v5 = vld [vmem:[%s3368_s6 + $0xbe] sm:$0xff] }
 0x200   : > { %v1537_v22 = vpop.f32.mrf.mxu1  ;;  %v4045_v26 = vpop.f32.mrf.mxu3  ;;  %v2204_v37 = vpack.c.bf16 %v2178_v5, %v2177_v38  ;;  %v2464_v38 = vld [vmem:[%s4337_s2 + $0xa8] sm:$0xff] }
 0x201   : > { %v1166_v48 = vadd.f32 %v3989_v23, %v918_v21  ;;  %v1627_v23 = vadd.f32 %v1537_v22, %v3638_v0  ;;  %v1682_v0 = vld [vmem:[%s3368_s6 + $0xbc] sm:$0xff] }
 0x203   : > { %v2281_v36 = vpop.f32.mrf.mxu0  ;;  %3102 = vmatmul.msk.bf16.gmra.mxu1 %vm354_vm2, %v1706_v24  ;;  %3121 = vmatmul.msk.bf16.gmra.mxu2 %vm354_vm2, %v1707_v32  ;;  %v4053_v54 = vadd.f32 %v1376_v51, %v1166_v48  ;;  %v2461_v51 = vld [vmem:[%s4337_s2 + $0x90] sm:$0xff]  ;;  %v1934_v48 = vld [vmem:[%s3368_s6 + $0xdd] sm:$0xff] }
 0x204   : > { %2571 = vperm.xlu0 %3293, %v2461_v51  }
 0x205   : > { %3142 = vmatmul.msk.bf16.gmra.mxu3 %vm354_vm2, %v1957_v33 }
 0x206   : > { %3159 = vmatmul.msk.bf16.gmra.mxu0 %vm354_vm2, %v2203_v1  ;;  %v1785_v27 = vpop.f32.mrf.mxu2  ;;  %v4068_v1 = vpack.c.bf16 %v1682_v0, %v1681_v31 }
 0x207   : > { %v1875_v24 = vadd.f32 %v1785_v27, %v1627_v23  ;;  %v2462_v27 = vld [vmem:[%s4337_s2 + $0x98] sm:$0xff] }
 0x208   : > { %v1539_v50 = vpop.f32.mrf.mxu1  ;;  %v4058_v28 = vpop.f32.mrf.mxu3  ;;  %2576 = vperm.xlu1 %3294, %v2462_v27   ;;  %v1684_v27 = vld [vmem:[%s3368_s6 + $0xcc] sm:$0xff] }
 0x209   : > { %v2123_v56 = vadd.f32 %v4002_v17, %v1875_v24  ;;  %v1628_v20 = vadd.f32 %v1539_v50, %v3651_v60  ;;  %v1958_v60 = vpack.c.bf16 %v1934_v48, %v1933_v42 }
 0x20b   : > { %v2283_v3 = vpop.f32.mrf.mxu0  ;;  %v2371_v9 = vadd.f32 %v2281_v36, %v2123_v56  ;;  %v2487_v56 = vpop.permute.xlu0 %2486 }
 0x20c   : > { %2586 = vperm.xlu0 %3293, %v2464_v38   ;;  %v1936_v38 = vld [vmem:[%s3368_s6 + $0xed] sm:$0xff] }
 0x20d   : > { %v2407_v33 = vmax.f32 %v2371_v9, 0.0 }
 0x20e   : > { %v1787_v21 = vpop.f32.mrf.mxu2 }
 0x20f   : > { %v1876_v22 = vadd.f32 %v1787_v21, %v1628_v20  ;;  %v2659_v50 = vmul.f32 %v2482_v41, %v2407_v33  ;;  %v1683_v33 = vld [vmem:[%s3368_s6 + $0xc4] sm:$0xff] }
 0x210   : > { %v1542_v17 = vpop.f32.mrf.mxu1  ;;  %v4073_v36 = vpop.f32.mrf.mxu3 }
 0x211   : > { %v2124_v23 = vadd.f32 %v4017_v10, %v1876_v22  ;;  %v1629_v10 = vadd.f32 %v1542_v17, %v3658_v44  ;;  %v2737_v5 = vmul.f32 %v2659_v50, %v2659_v50  ;;  %v2465_v17 = vld [vmem:[%s4337_s2 + $0xb0] sm:$0xff] }
 0x212   : > { %2591 = vperm.xlu1 %3294, %v2465_v17   ;;  %v2468_v17 = vld [vmem:[%s4337_s2 + $0xc8] sm:$0xff] }
 0x213   : > { %v2286_v43 = vpop.f32.mrf.mxu0  ;;  %3103 = vmatmul.msk.bf16.gmra.mxu1 %vm354_vm2, %v1707_v32  ;;  %3122 = vmatmul.msk.bf16.gmra.mxu2 %vm354_vm2, %v4068_v1  ;;  %v2372_v24 = vadd.f32 %v2283_v3, %v2124_v23  ;;  %v2460_v23 = vld [vmem:[%s4337_s2 + $0x88] sm:$0xff] }
 0x214   : > { %2566 = vperm.xlu2 %3295, %v2460_v23  }
 0x215   : > { %v2408_v31 = vmax.f32 %v2372_v24, 0.0  ;;  %3143 = vmatmul.msk.bf16.gmra.mxu3 %vm354_vm2, %v1958_v60  ;;  %v2180_v60 = vld [vmem:[%s3368_s6 + $0xce] sm:$0xff] }
 0x216   : > { %3160 = vmatmul.msk.bf16.gmra.mxu0 %vm354_vm2, %v2204_v37  ;;  %v1790_v51 = vpop.f32.mrf.mxu2  ;;  %v2492_v37 = vpop.permute.xlu1 %2491 }
 0x217   : > { %v2660_v9 = vmul.f32 %v2487_v56, %v2408_v31  ;;  %v1877_v0 = vadd.f32 %v1790_v51, %v1629_v10 }
 0x218   : > { %v1544_v32 = vpop.f32.mrf.mxu1  ;;  %v4094_v22 = vpop.f32.mrf.mxu3 }
 0x219   : > { %v2695_v3 = vadd.f32 %v2660_v9, %v2659_v50  ;;  %v2738_v41 = vmul.f32 %v2660_v9, %v2660_v9  ;;  %v3174_v20 = vpack.c.bf16 %v2660_v9, %v2659_v50  ;;  %v2125_v21 = vadd.f32 %v4030_v53, %v1877_v0  ;;  %v2179_v53 = vld [vmem:[%s3368_s6 + $0xc6] sm:$0xff] }
 0x21a   : > { %v1630_v24 = vadd.f32 %v1544_v32, %v3671_v13  ;;  %v4108_v9 = vpack.c.bf16 %v1684_v27, %v1683_v33  ;;  %v1935_v0 = vld [vmem:[%s3368_s6 + $0xe5] sm:$0xff]  ;;  %2606 = vperm.xlu1 %3294, %v2468_v17  }
 0x21b   : > { %v2288_v44 = vpop.f32.mrf.mxu0  ;;  %v2773_v42 = vadd.f32 %v2738_v41, %v2737_v5  ;;  %3175 = vst [vmem:[%s4091_s16] sm:$0xff] %v3174_v20   ;;  %v2373_v48 = vadd.f32 %v2286_v43, %v2125_v21  ;;  %v2205_v43 = vpack.c.bf16 %v2180_v60, %v2179_v53  ;;  %v2467_v5 = vld [vmem:[%s4337_s2 + $0xc0] sm:$0xff] }
 0x21c   : > { %2601 = vperm.xlu0 %3293, %v2467_v5   ;;  %v1685_v5 = vld [vmem:[%s3368_s6 + $0xd4] sm:$0xff] }
 0x21d   : > { %v2409_v50 = vmax.f32 %v2373_v48, 0.0 }
 0x21e   : > { %v1792_v56 = vpop.f32.mrf.mxu2  ;;  %v2497_v33 = vpop.permute.xlu1 %2496 }
 0x21f   : > { %v2661_v10 = vmul.f32 %v2492_v37, %v2409_v50  ;;  %v1878_v31 = vadd.f32 %v1792_v56, %v1630_v24  ;;  %v1959_v37 = vpack.c.bf16 %v1936_v38, %v1935_v0 }
 0x220   : > { %v1547_v51 = vpop.f32.mrf.mxu1  ;;  %v4116_v32 = vpop.f32.mrf.mxu3 }
 0x221   : > { %v2696_v20 = vadd.f32 %v2695_v3, %v2661_v10  ;;  %v2739_v21 = vmul.f32 %v2661_v10, %v2661_v10  ;;  %v2126_v13 = vadd.f32 %v4045_v26, %v1878_v31  ;;  %v1631_v26 = vadd.f32 %v1547_v51, %v3678_v6  ;;  %v2471_v51 = vld [vmem:[%s4337_s2 + $0xe0] sm:$0xff] }
 0x222   : > { %2621 = vperm.xlu1 %3294, %v2471_v51  }
 0x223   : > { %v2291_v41 = vpop.f32.mrf.mxu0  ;;  %3104 = vmatmul.msk.bf16.gmra.mxu1 %vm354_vm2, %v4068_v1  ;;  %v2774_v48 = vadd.f32 %v2773_v42, %v2739_v21  ;;  %3123 = vmatmul.msk.bf16.gmra.mxu2 %vm354_vm2, %v4108_v9  ;;  %v2374_v3 = vadd.f32 %v2288_v44, %v2126_v13  ;;  %v2470_v42 = vld [vmem:[%s4337_s2 + $0xd8] sm:$0xff] }
 0x224   : > { %2616 = vperm.xlu0 %3293, %v2470_v42   ;;  %v2182_v21 = vld [vmem:[%s3368_s6 + $0xde] sm:$0xff] }
 0x225   : > { %v2410_v23 = vmax.f32 %v2374_v3, 0.0  ;;  %3144 = vmatmul.msk.bf16.gmra.mxu3 %vm354_vm2, %v1959_v37 }
 0x226   : > { %3161 = vmatmul.msk.bf16.gmra.mxu0 %vm354_vm2, %v2205_v43  ;;  %v1795_v27 = vpop.f32.mrf.mxu2  ;;  %v2502_v43 = vpop.permute.xlu2 %2501 }
 0x227   : > { %v2662_v53 = vmul.f32 %v2497_v33, %v2410_v23  ;;  %v1879_v60 = vadd.f32 %v1795_v27, %v1631_v26  ;;  %v1937_v23 = vld [vmem:[%s3368_s6 + $0xf5] sm:$0xff]  ;;  %v1938_v27 = vld [vmem:[%s3368_s6 + $0xfd] sm:$0xff] }
 0x228   : > { %v1549_v1 = vpop.f32.mrf.mxu1  ;;  %v4132_v31 = vpop.f32.mrf.mxu3 }
 0x229   : > { %v2697_v44 = vadd.f32 %v2696_v20, %v2662_v53  ;;  %v2740_v6 = vmul.f32 %v2662_v53, %v2662_v53  ;;  %v3179_v50 = vpack.c.bf16 %v2662_v53, %v2661_v10  ;;  %v2127_v56 = vadd.f32 %v4058_v28, %v1879_v60  ;;  %v2463_v10 = vld [vmem:[%s4337_s2 + $0xa0] sm:$0xff]  ;;  %v2181_v28 = vld [vmem:[%s3368_s6 + $0xd6] sm:$0xff] }
 0x22a   : > { %v1686_v20 = vld [vmem:[%s3368_s6 + $0xdc] sm:$0xff]  ;;  %2581 = vperm.xlu2 %3295, %v2463_v10   ;;  %v1632_v13 = vadd.f32 %v1549_v1, %v3691_v30  ;;  %v2473_v53 = vld [vmem:[%s4337_s2 + $0xf0] sm:$0xff] }
 0x22b   : > { %v2293_v24 = vpop.f32.mrf.mxu0  ;;  %v2775_v0 = vadd.f32 %v2774_v48, %v2740_v6  ;;  %3261 = vst [vmem:[%s4091_s16 + $0x8] sm:$0xff] %v3179_v50   ;;  %v2375_v38 = vadd.f32 %v2291_v41, %v2127_v56  ;;  %v4146_v26 = vpack.c.bf16 %v1686_v20, %v1685_v5  ;;  %v2206_v41 = vpack.c.bf16 %v2182_v21, %v2181_v28  ;;  %v2474_v50 = vld [vmem:[%s4337_s2 + $0xf8] sm:$0xff] }
 0x22c   : > { %2631 = vperm.xlu0 %3293, %v2473_v53   ;;  %v1960_v56 = vpack.c.bf16 %v1938_v27, %v1937_v23  ;;  %2636 = vperm.xlu1 %3294, %v2474_v50   ;;  %v1687_v23 = vld [vmem:[%s3368_s6 + $0xe4] sm:$0xff]  ;;  %v2469_v27 = vld [vmem:[%s4337_s2 + $0xd0] sm:$0xff] }
 0x22d   : > { %v2411_v17 = vmax.f32 %v2375_v38, 0.0  ;;  %v1688_v53 = vld [vmem:[%s3368_s6 + $0xec] sm:$0xff] }
 0x22e   : > { %v1797_v37 = vpop.f32.mrf.mxu2 }
 0x22f   : > { %v2663_v3 = vmul.f32 %v2502_v43, %v2411_v17  ;;  %v1880_v33 = vadd.f32 %v1797_v37, %v1632_v13  ;;  %v2507_v43 = vpop.permute.xlu2 %2506 }
 0x230   : > { %v1552_v48 = vpop.f32.mrf.mxu1  ;;  %v4154_v1 = vpop.f32.mrf.mxu3 }
 0x231   : > { %v2698_v42 = vadd.f32 %v2697_v44, %v2663_v3  ;;  %v2741_v6 = vmul.f32 %v2663_v3, %v2663_v3  ;;  %v2128_v30 = vadd.f32 %v4073_v36, %v1880_v33  ;;  %v2466_v36 = vld [vmem:[%s4337_s2 + $0xb8] sm:$0xff]  ;;  %v1633_v38 = vadd.f32 %v1552_v48, %v3698_v39  ;;  %v2477_v33 = vld [vmem:[%s4337_s2 + $0x110] sm:$0xff] }
 0x232   : > { %2596 = vperm.xlu2 %3295, %v2466_v36  }
 0x233   : > { %v2296_v60 = vpop.f32.mrf.mxu0  ;;  %3105 = vmatmul.msk.bf16.gmra.mxu1 %vm354_vm2, %v4108_v9  ;;  %v2776_v51 = vadd.f32 %v2775_v0, %v2741_v6  ;;  %3124 = vmatmul.msk.bf16.gmra.mxu2 %vm354_vm2, %v4146_v26  ;;  %v2376_v44 = vadd.f32 %v2293_v24, %v2128_v30  ;;  %v2476_v24 = vld [vmem:[%s4337_s2 + $0x108] sm:$0xff] }
 0x234   : > { %2646 = vperm.xlu0 %3293, %v2476_v24   ;;  %2651 = vperm.xlu1 %3294, %v2477_v33  }
 0x235   : > { %v2412_v5 = vmax.f32 %v2376_v44, 0.0  ;;  %3145 = vmatmul.msk.bf16.gmra.mxu3 %vm354_vm2, %v1960_v56 }
 0x236   : > { %3162 = vmatmul.msk.bf16.gmra.mxu0 %vm354_vm2, %v2206_v41  ;;  %v1800_v10 = vpop.f32.mrf.mxu2 }
 0x237   : > { %v2664_v9 = vmul.f32 %v2507_v43, %v2412_v5  ;;  %v1881_v0 = vadd.f32 %v1800_v10, %v1633_v38  ;;  %v1939_v43 = vld [vmem:[%s3368_s6 + $0x105] sm:$0xff]  ;;  %v1940_v38 = vld [vmem:[%s3368_s6 + $0x10d] sm:$0xff] }
 0x238   : > { %v1554_v20 = vpop.f32.mrf.mxu1  ;;  %v4173_v37 = vpop.f32.mrf.mxu3 }
 0x239   : > { %v2699_v21 = vadd.f32 %v2698_v42, %v2664_v9  ;;  %v2742_v39 = vmul.f32 %v2664_v9, %v2664_v9  ;;  %v3184_v13 = vpack.c.bf16 %v2664_v9, %v2663_v3  ;;  %v2129_v17 = vadd.f32 %v4094_v22, %v1881_v0  ;;  %v2512_v3 = vpop.permute.xlu0 %2511  ;;  %v2183_v22 = vld [vmem:[%s3368_s6 + $0xe6] sm:$0xff]  ;;  %v2184_v42 = vld [vmem:[%s3368_s6 + $0xee] sm:$0xff] }
 0x23a   : > { %2611 = vperm.xlu2 %3295, %v2469_v27   ;;  %v1634_v6 = vadd.f32 %v1554_v20, %v3711_v47  ;;  %v2207_v36 = vpack.c.bf16 %v2184_v42, %v2183_v22  ;;  %v1961_v47 = vpack.c.bf16 %v1940_v38, %v1939_v43 }
 0x23b   : > { %v2298_v28 = vpop.f32.mrf.mxu0  ;;  %v2777_v48 = vadd.f32 %v2776_v51, %v2742_v39  ;;  %3262 = vst [vmem:[%s4091_s16 + $0x10] sm:$0xff] %v3184_v13   ;;  %v2377_v41 = vadd.f32 %v2296_v60, %v2129_v17  ;;  %v1711_v60 = vpack.c.bf16 %v1688_v53, %v1687_v23  ;;  %v2472_v13 = vld [vmem:[%s4337_s2 + $0xe8] sm:$0xff] }
 0x23d   : > { %v2413_v30 = vmax.f32 %v2377_v41, 0.0 }
 0x23e   : > { %v1802_v50 = vpop.f32.mrf.mxu2 }
 0x23f   : > { %v2665_v56 = vmul.f32 %v2512_v3, %v2413_v30  ;;  %v1882_v51 = vadd.f32 %v1802_v50, %v1634_v6  ;;  %v1689_v6 = vld [vmem:[%s3368_s6 + $0xf4] sm:$0xff]  ;;  %v2475_v30 = vld [vmem:[%s4337_s2 + $0x100] sm:$0xff]  ;;  %v2522_v50 = vpop.permute.xlu2 %2521 }
 0x240   : > { %v1557_v44 = vpop.f32.mrf.mxu1  ;;  %v4190_v24 = vpop.f32.mrf.mxu3 }
 0x241   : > { %v2700_v10 = vadd.f32 %v2699_v21, %v2665_v56  ;;  %v2743_v9 = vmul.f32 %v2665_v56, %v2665_v56  ;;  %v2130_v0 = vadd.f32 %v4116_v32, %v1882_v51  ;;  %v2517_v21 = vpop.permute.xlu1 %2516  ;;  %v1635_v32 = vadd.f32 %v1557_v44, %v3718_v35  ;;  %v1690_v51 = vld [vmem:[%s3368_s6 + $0xfc] sm:$0xff] }
 0x242   : > { %2626 = vperm.xlu2 %3295, %v2472_v13   ;;  %v2185_v44 = vld [vmem:[%s3368_s6 + $0xf6] sm:$0xff] }
 0x243   : > { %v2301_v5 = vpop.f32.mrf.mxu0  ;;  %3106 = vmatmul.msk.bf16.gmra.mxu1 %vm354_vm2, %v4146_v26  ;;  %v2778_v20 = vadd.f32 %v2777_v48, %v2743_v9  ;;  %3125 = vmatmul.msk.bf16.gmra.mxu2 %vm354_vm2, %v1711_v60  ;;  %v2378_v39 = vadd.f32 %v2298_v28, %v2130_v0 }
 0x245   : > { %v2414_v17 = vmax.f32 %v2378_v39, 0.0  ;;  %3146 = vmatmul.msk.bf16.gmra.mxu3 %vm354_vm2, %v1961_v47  ;;  %v1941_v47 = vld [vmem:[%s3368_s6 + $0x115] sm:$0xff] }
 0x246   : > { %3163 = vmatmul.msk.bf16.gmra.mxu0 %vm354_vm2, %v2207_v36  ;;  %v1805_v33 = vpop.f32.mrf.mxu2  ;;  %v2186_v36 = vld [vmem:[%s3368_s6 + $0xfe] sm:$0xff] }
 0x247   : > { %v2666_v26 = vmul.f32 %v2517_v21, %v2414_v17  ;;  %v1883_v48 = vadd.f32 %v1805_v33, %v1635_v32  ;;  %v2208_v0 = vpack.c.bf16 %v2186_v36, %v2185_v44  ;;  %v1691_v44 = vld [vmem:[%s3368_s6 + $0x104] sm:$0xff] }
 0x248   : > { %v1559_v28 = vpop.f32.mrf.mxu1  ;;  %v4202_v22 = vpop.f32.mrf.mxu3 }
 0x249   : > { %v2701_v23 = vadd.f32 %v2700_v10, %v2666_v26  ;;  %v2744_v27 = vmul.f32 %v2666_v26, %v2666_v26  ;;  %v3189_v3 = vpack.c.bf16 %v2666_v26, %v2665_v56  ;;  %v2131_v53 = vadd.f32 %v4132_v31, %v1883_v48  ;;  %v2478_v48 = vld [vmem:[%s4337_s2 + $0x118] sm:$0xff]  ;;  %v2532_v36 = vpop.permute.xlu1 %2531 }
 0x24a   : > { %2641 = vperm.xlu2 %3295, %v2475_v30   ;;  %v1636_v56 = vadd.f32 %v1559_v28, %v3731_v15  ;;  %v2527_v28 = vpop.permute.xlu0 %2526 }
 0x24b   : > { %v2303_v41 = vpop.f32.mrf.mxu0  ;;  %v2779_v35 = vadd.f32 %v2778_v20, %v2744_v27  ;;  %3263 = vst [vmem:[%s4091_s16 + $0x18] sm:$0xff] %v3189_v3   ;;  %v2379_v42 = vadd.f32 %v2301_v5, %v2131_v53  ;;  %v1712_v5 = vpack.c.bf16 %v1690_v51, %v1689_v6  ;;  %v1942_v20 = vld [vmem:[%s3368_s6 + $0x11d] sm:$0xff] }
 0x24c   : > { %v1962_v33 = vpack.c.bf16 %v1942_v20, %v1941_v47 }
 0x24d   : > { %v2415_v31 = vmax.f32 %v2379_v42, 0.0 }
 0x24e   : > { %v1807_v43 = vpop.f32.mrf.mxu2 }
 0x24f   : > { %v2667_v38 = vmul.f32 %v2522_v50, %v2415_v31  ;;  %v1884_v10 = vadd.f32 %v1807_v43, %v1636_v56  ;;  %v1692_v56 = vld [vmem:[%s3368_s6 + $0x10c] sm:$0xff] }
 0x250   : > { %v1562_v9 = vpop.f32.mrf.mxu1  ;;  %v4216_v17 = vpop.f32.mrf.mxu3  ;;  %v2187_v31 = vld [vmem:[%s3368_s6 + $0x106] sm:$0xff]  ;;  %v2188_v43 = vld [vmem:[%s3368_s6 + $0x10e] sm:$0xff] }
 0x251   : > { %v2702_v13 = vadd.f32 %v2701_v23, %v2667_v38  ;;  %v2745_v21 = vmul.f32 %v2667_v38, %v2667_v38  ;;  %v2132_v32 = vadd.f32 %v4154_v1, %v1884_v10  ;;  %v1637_v1 = vadd.f32 %v1562_v9, %v3738_v34 }
 0x252   : > { %2656 = vperm.xlu2 %3295, %v2478_v48  }
 0x253   : > { %v2306_v39 = vpop.f32.mrf.mxu0  ;;  %3107 = vmatmul.msk.bf16.gmra.mxu1 %vm354_vm2, %v1711_v60  ;;  %v2780_v15 = vadd.f32 %v2779_v35, %v2745_v21  ;;  %3126 = vmatmul.msk.bf16.gmra.mxu2 %vm354_vm2, %v1712_v5  ;;  %v2380_v26 = vadd.f32 %v2303_v41, %v2132_v32  ;;  %v1943_v21 = vld [vmem:[%s3368_s6 + $0x125] sm:$0xff]  ;;  %v1944_v32 = vld [vmem:[%s3368_s6 + $0x12d] sm:$0xff] }
 0x255   : > { %v2416_v23 = vmax.f32 %v2380_v26, 0.0  ;;  %3147 = vmatmul.msk.bf16.gmra.mxu3 %vm354_vm2, %v1962_v33 }
 0x256   : > { %3164 = vmatmul.msk.bf16.gmra.mxu0 %vm354_vm2, %v2208_v0  ;;  %v1810_v27 = vpop.f32.mrf.mxu2 }
 0x257   : > { %v2668_v60 = vmul.f32 %v2527_v28, %v2416_v23  ;;  %v1885_v3 = vadd.f32 %v1810_v27, %v1637_v1  ;;  %v1963_v28 = vpack.c.bf16 %v1944_v32, %v1943_v21  ;;  %v2537_v23 = vpop.permute.xlu2 %2536  ;;  %v1945_v21 = vld [vmem:[%s3368_s6 + $0x135] sm:$0xff]  ;;  %v1946_v32 = vld [vmem:[%s3368_s6 + $0x13d] sm:$0xff] }
 0x258   : > { %v1564_v41 = vpop.f32.mrf.mxu1  ;;  %v4227_v50 = vpop.f32.mrf.mxu3 }
 0x259   : > { %v2703_v35 = vadd.f32 %v2702_v13, %v2668_v60  ;;  %v2746_v42 = vmul.f32 %v2668_v60, %v2668_v60  ;;  %v3194_v6 = vpack.c.bf16 %v2668_v60, %v2667_v38  ;;  %v2133_v30 = vadd.f32 %v4173_v37, %v1885_v3 }
 0x25a   : > { %v1638_v10 = vadd.f32 %v1564_v41, %v3751_v59  ;;  %v1713_v37 = vpack.c.bf16 %v1692_v56, %v1691_v44  ;;  %v2209_v13 = vpack.c.bf16 %v2188_v43, %v2187_v31  ;;  %v1693_v44 = vld [vmem:[%s3368_s6 + $0x114] sm:$0xff]  ;;  %v1694_v56 = vld [vmem:[%s3368_s6 + $0x11c] sm:$0xff] }
 0x25b   : > { %v2308_v53 = vpop.f32.mrf.mxu0  ;;  %v2781_v34 = vadd.f32 %v2780_v15, %v2746_v42  ;;  %3264 = vst [vmem:[%s4091_s16 + $0x20] sm:$0xff] %v3194_v6   ;;  %v2381_v51 = vadd.f32 %v2306_v39, %v2133_v30  ;;  %v2189_v31 = vld [vmem:[%s3368_s6 + $0x116] sm:$0xff]  ;;  %v2190_v43 = vld [vmem:[%s3368_s6 + $0x11e] sm:$0xff] }
 0x25d   : > { %v2417_v9 = vmax.f32 %v2381_v51, 0.0 }
 0x25e   : > { %v1812_v0 = vpop.f32.mrf.mxu2 }
 0x25f   : > { %v2669_v47 = vmul.f32 %v2532_v36, %v2417_v9  ;;  %v1886_v38 = vadd.f32 %v1812_v0, %v1638_v10  ;;  %v2542_v36 = vpop.permute.xlu0 %2541 }
 0x260   : > { %v1567_v20 = vpop.f32.mrf.mxu1  ;;  %v4238_v48 = vpop.f32.mrf.mxu3 }
 0x261   : > { %v2704_v15 = vadd.f32 %v2703_v35, %v2669_v47  ;;  %v2747_v26 = vmul.f32 %v2669_v47, %v2669_v47  ;;  %v2134_v39 = vadd.f32 %v4190_v24, %v1886_v38  ;;  %v1639_v27 = vadd.f32 %v1567_v20, %v3758_v40 }
 0x263   : > { %v2311_v33 = vpop.f32.mrf.mxu0  ;;  %3108 = vmatmul.msk.bf16.gmra.mxu1 %vm354_vm2, %v1712_v5  ;;  %v2782_v59 = vadd.f32 %v2781_v34, %v2747_v26  ;;  %3127 = vmatmul.msk.bf16.gmra.mxu2 %vm354_vm2, %v1713_v37  ;;  %v2382_v1 = vadd.f32 %v2308_v53, %v2134_v39 }
 0x265   : > { %v2418_v60 = vmax.f32 %v2382_v1, 0.0  ;;  %3148 = vmatmul.msk.bf16.gmra.mxu3 %vm354_vm2, %v1963_v28 }
 0x266   : > { %3165 = vmatmul.msk.bf16.gmra.mxu0 %vm354_vm2, %v2209_v13  ;;  %v1815_v3 = vpop.f32.mrf.mxu2  ;;  %v2210_v13 = vpack.c.bf16 %v2190_v43, %v2189_v31 }
 0x267   : > { %v2670_v24 = vmul.f32 %v2537_v23, %v2418_v60  ;;  %v1887_v5 = vadd.f32 %v1815_v3, %v1639_v27  ;;  %v2547_v23 = vpop.permute.xlu1 %2546 }
 0x268   : > { %v1569_v41 = vpop.f32.mrf.mxu1  ;;  %v4246_v34 = vpop.f32.mrf.mxu3 }
 0x269   : > { %v2705_v42 = vadd.f32 %v2704_v15, %v2670_v24  ;;  %v2748_v6 = vmul.f32 %v2670_v24, %v2670_v24  ;;  %v3199_v30 = vpack.c.bf16 %v2670_v24, %v2669_v47  ;;  %v2135_v53 = vadd.f32 %v4202_v22, %v1887_v5 }
 0x26a   : > { %v1640_v10 = vadd.f32 %v1569_v41, %v3769_v12  ;;  %v1714_v22 = vpack.c.bf16 %v1694_v56, %v1693_v44  ;;  %v1696_v44 = vld [vmem:[%s3368_s6 + $0x12c] sm:$0xff] }
 0x26b   : > { %v2313_v35 = vpop.f32.mrf.mxu0  ;;  %v2783_v40 = vadd.f32 %v2782_v59, %v2748_v6  ;;  %3265 = vst [vmem:[%s4091_s16 + $0x28] sm:$0xff] %v3199_v30   ;;  %v2383_v51 = vadd.f32 %v2311_v33, %v2135_v53  ;;  %v1964_v59 = vpack.c.bf16 %v1946_v32, %v1945_v21  ;;  %v2192_v56 = vld [vmem:[%s3368_s6 + $0x12e] sm:$0xff] }
 0x26d   : > { %v2419_v9 = vmax.f32 %v2383_v51, 0.0  ;;  %v2552_v51 = vpop.permute.xlu2 %2551 }
 0x26e   : > { %v1817_v0 = vpop.f32.mrf.mxu2 }
 0x26f   : > { %v2671_v38 = vmul.f32 %v2542_v36, %v2419_v9  ;;  %v1888_v47 = vadd.f32 %v1817_v0, %v1640_v10  ;;  %v2191_v36 = vld [vmem:[%s3368_s6 + $0x126] sm:$0xff] }
 0x270   : > { %v1572_v20 = vpop.f32.mrf.mxu1  ;;  %v4257_v28 = vpop.f32.mrf.mxu3 }
 0x271   : > { %v2706_v26 = vadd.f32 %v2705_v42, %v2671_v38  ;;  %v2749_v39 = vmul.f32 %v2671_v38, %v2671_v38  ;;  %v2136_v33 = vadd.f32 %v4216_v17, %v1888_v47  ;;  %v1641_v27 = vadd.f32 %v1572_v20, %v3775_v52 }
 0x272   : > { %v2211_v20 = vpack.c.bf16 %v2192_v56, %v2191_v36 }
 0x273   : > { %v2316_v15 = vpop.f32.mrf.mxu0  ;;  %3109 = vmatmul.msk.bf16.gmra.mxu1 %vm354_vm2, %v1713_v37  ;;  %v2784_v12 = vadd.f32 %v2783_v40, %v2749_v39  ;;  %3128 = vmatmul.msk.bf16.gmra.mxu2 %vm354_vm2, %v1714_v22  ;;  %v2384_v1 = vadd.f32 %v2313_v35, %v2136_v33  ;;  %v1695_v40 = vld [vmem:[%s3368_s6 + $0x124] sm:$0xff]  ;;  %v2557_v39 = vpop.permute.xlu0 %2556 }
 0x275   : > { %v2420_v60 = vmax.f32 %v2384_v1, 0.0  ;;  %3149 = vmatmul.msk.bf16.gmra.mxu3 %vm354_vm2, %v1964_v59 }
 0x276   : > { %3166 = vmatmul.msk.bf16.gmra.mxu0 %vm354_vm2, %v2210_v13  ;;  %v1820_v3 = vpop.f32.mrf.mxu2 }
 0x277   : > { %v2672_v17 = vmul.f32 %v2547_v23, %v2420_v60  ;;  %v1889_v37 = vadd.f32 %v1820_v3, %v1641_v27 }
 0x278   : > { %v1574_v24 = vpop.f32.mrf.mxu1  ;;  %v4265_v30 = vpop.f32.mrf.mxu3 }
 0x279   : > { %v2707_v41 = vadd.f32 %v2706_v26, %v2672_v17  ;;  %v2750_v42 = vmul.f32 %v2672_v17, %v2672_v17  ;;  %v3204_v6 = vpack.c.bf16 %v2672_v17, %v2671_v38  ;;  %v2137_v35 = vadd.f32 %v4227_v50, %v1889_v37 }
 0x27a   : > { %v1642_v31 = vadd.f32 %v1574_v24, %v3788_v29  ;;  %v1715_v38 = vpack.c.bf16 %v1696_v44, %v1695_v40 }
 0x27b   : > { %v2318_v5 = vpop.f32.mrf.mxu0  ;;  %v2785_v52 = vadd.f32 %v2784_v12, %v2750_v42  ;;  %3266 = vst [vmem:[%s4091_s16 + $0x30] sm:$0xff] %v3204_v6   ;;  %v2385_v53 = vadd.f32 %v2316_v15, %v2137_v35  ;;  %v1698_v42 = vld [vmem:[%s3368_s6 + $0x13c] sm:$0xff] }
 0x27c   : > { %v2193_v6 = vld [vmem:[%s3368_s6 + $0x136] sm:$0xff]  ;;  %v2194_v35 = vld [vmem:[%s3368_s6 + $0x13e] sm:$0xff] }
 0x27d   : > { %v2421_v43 = vmax.f32 %v2385_v53, 0.0 }
 0x27e   : > { %v1822_v10 = vpop.f32.mrf.mxu2 }
 0x27f   : > { %v2673_v9 = vmul.f32 %v2552_v51, %v2421_v43  ;;  %v1890_v0 = vadd.f32 %v1822_v10, %v1642_v31  ;;  %v2212_v31 = vpack.c.bf16 %v2194_v35, %v2193_v6 }
 0x280   : > { %v1577_v47 = vpop.f32.mrf.mxu1  ;;  %v4274_v15 = vpop.f32.mrf.mxu3 }
 0x281   : > { %v2708_v13 = vadd.f32 %v2707_v41, %v2673_v9  ;;  %v2751_v21 = vmul.f32 %v2673_v9, %v2673_v9  ;;  %v2138_v32 = vadd.f32 %v4238_v48, %v1890_v0  ;;  %v1643_v33 = vadd.f32 %v1577_v47, %v3796_v49  ;;  %v1697_v49 = vld [vmem:[%s3368_s6 + $0x134] sm:$0xff]  ;;  %v2562_v41 = vpop.permute.xlu1 %2561  ;;  %v2567_v47 = vpop.permute.xlu2 %2566 }
 0x282   : > { %v1716_v56 = vpack.c.bf16 %v1698_v42, %v1697_v49 }
 0x283   : > { %v2321_v50 = vpop.f32.mrf.mxu0  ;;  %3110 = vmatmul.msk.bf16.gmra.mxu1 %vm354_vm2, %v1714_v22  ;;  %v2786_v26 = vadd.f32 %v2785_v52, %v2751_v21  ;;  %3129 = vmatmul.msk.bf16.gmra.mxu2 %vm354_vm2, %v1715_v38  ;;  %v2386_v29 = vadd.f32 %v2318_v5, %v2138_v32 }
 0x285   : > { %v2422_v59 = vmax.f32 %v2386_v29, 0.0 }
 0x286   : > { %3167 = vmatmul.msk.bf16.gmra.mxu0 %vm354_vm2, %v2211_v20  ;;  %v1825_v12 = vpop.f32.mrf.mxu2 }
 0x287   : > { %v2674_v48 = vmul.f32 %v2557_v39, %v2422_v59  ;;  %v1891_v1 = vadd.f32 %v1825_v12, %v1643_v33 }
 0x288   : > { %v1579_v23 = vpop.f32.mrf.mxu1  ;;  %v4281_v37 = vpop.f32.mrf.mxu3 }
 0x289   : > { %v2709_v27 = vadd.f32 %v2708_v13, %v2674_v48  ;;  %v2752_v60 = vmul.f32 %v2674_v48, %v2674_v48  ;;  %v3209_v3 = vpack.c.bf16 %v2674_v48, %v2673_v9  ;;  %v2139_v17 = vadd.f32 %v4246_v34, %v1891_v1  ;;  %v2572_v1 = vpop.permute.xlu0 %2571 }
 0x28a   : > { %v1644_v52 = vadd.f32 %v1579_v23, %v3809_v46 }
 0x28b   : > { %v2323_v22 = vpop.f32.mrf.mxu0  ;;  %v2787_v24 = vadd.f32 %v2786_v26, %v2752_v60  ;;  %3267 = vst [vmem:[%s4091_s16 + $0x38] sm:$0xff] %v3209_v3   ;;  %v2387_v5 = vadd.f32 %v2321_v50, %v2139_v17 }
 0x28d   : > { %v2423_v53 = vmax.f32 %v2387_v5, 0.0 }
 0x28e   : > { %v1827_v40 = vpop.f32.mrf.mxu2 }
 0x28f   : > { %v2675_v51 = vmul.f32 %v2562_v41, %v2423_v53  ;;  %v1892_v44 = vadd.f32 %v1827_v40, %v1644_v52  ;;  %v2577_v52 = vpop.permute.xlu1 %2576 }
 0x290   : > { %v1582_v36 = vpop.f32.mrf.mxu1  ;;  %v2085_v20 = vpop.f32.mrf.mxu3 }
 0x291   : > { %v2710_v43 = vadd.f32 %v2709_v27, %v2675_v51  ;;  %v2753_v10 = vmul.f32 %v2675_v51, %v2675_v51  ;;  %v2140_v9 = vadd.f32 %v4257_v28, %v1892_v44  ;;  %v1645_v50 = vadd.f32 %v1582_v36, %v3821_v4 }
 0x293   : > { %v2326_v34 = vpop.f32.mrf.mxu0  ;;  %3111 = vmatmul.msk.bf16.gmra.mxu1 %vm354_vm2, %v1715_v38  ;;  %v2788_v0 = vadd.f32 %v2787_v24, %v2753_v10  ;;  %3130 = vmatmul.msk.bf16.gmra.mxu2 %vm354_vm2, %v1716_v56  ;;  %v2388_v46 = vadd.f32 %v2323_v22, %v2140_v9 }
 0x295   : > { %v2424_v13 = vmax.f32 %v2388_v46, 0.0 }
 0x296   : > { %3168 = vmatmul.msk.bf16.gmra.mxu0 %vm354_vm2, %v2212_v31  ;;  %v1830_v21 = vpop.f32.mrf.mxu2 }
 0x297   : > { %v2676_v32 = vmul.f32 %v2567_v47, %v2424_v13  ;;  %v1893_v26 = vadd.f32 %v1830_v21, %v1645_v50 }
 0x298   : > { %v1584_v29 = vpop.f32.mrf.mxu1  ;;  %v2088_v4 = vpop.f32.mrf.mxu3 }
 0x299   : > { %v2711_v28 = vadd.f32 %v2710_v43, %v2676_v32  ;;  %v2754_v33 = vmul.f32 %v2676_v32, %v2676_v32  ;;  %v3214_v38 = vpack.c.bf16 %v2676_v32, %v2675_v51  ;;  %v2141_v59 = vadd.f32 %v4265_v30, %v1893_v26 }
 0x29a   : > { %v1646_v23 = vadd.f32 %v1584_v29, %v3838_v63 }
 0x29b   : > { %v2328_v39 = vpop.f32.mrf.mxu0  ;;  %v2789_v12 = vadd.f32 %v2788_v0, %v2754_v33  ;;  %3268 = vst [vmem:[%s4091_s16 + $0x40] sm:$0xff] %v3214_v38   ;;  %v2389_v48 = vadd.f32 %v2326_v34, %v2141_v59  ;;  %v2587_v59 = vpop.permute.xlu0 %2586 }
 0x29d   : > { %v2425_v22 = vmax.f32 %v2389_v48, 0.0 }
 0x29e   : > { %v1832_v27 = vpop.f32.mrf.mxu2 }
 0x29f   : > { %v2677_v60 = vmul.f32 %v2572_v1, %v2425_v22  ;;  %v1894_v3 = vadd.f32 %v1832_v27, %v1646_v23 }
 0x2a0   : > { %v1587_v17 = vpop.f32.mrf.mxu1  ;;  %v2090_v36 = vpop.f32.mrf.mxu3 }
 0x2a1   : > { %v2712_v5 = vadd.f32 %v2711_v28, %v2677_v60  ;;  %v2755_v49 = vmul.f32 %v2677_v60, %v2677_v60  ;;  %v2142_v41 = vadd.f32 %v4274_v15, %v1894_v3  ;;  %v1647_v6 = vadd.f32 %v1587_v17, %v3847_v18  ;;  %v2582_v18 = vpop.permute.xlu2 %2581 }
 0x2a3   : > { %v2331_v24 = vpop.f32.mrf.mxu0  ;;  %v2790_v42 = vadd.f32 %v2789_v12, %v2755_v49  ;;  %v2390_v30 = vadd.f32 %v2328_v39, %v2142_v41  ;;  %v2592_v41 = vpop.permute.xlu1 %2591 }
 0x2a5   : > { %v2426_v35 = vmax.f32 %v2390_v30, 0.0 }
 0x2a6   : > { %v1835_v53 = vpop.f32.mrf.mxu2 }
 0x2a7   : > { %v2678_v63 = vmul.f32 %v2577_v52, %v2426_v35  ;;  %v1895_v40 = vadd.f32 %v1835_v53, %v1647_v6 }
 0x2a8   : > { %v1589_v51 = vpop.f32.mrf.mxu1  ;;  %v2093_v39 = vpop.f32.mrf.mxu3 }
 0x2a9   : > { %v2713_v56 = vadd.f32 %v2712_v5, %v2678_v63  ;;  %v2756_v31 = vmul.f32 %v2678_v63, %v2678_v63  ;;  %v3219_v34 = vpack.c.bf16 %v2678_v63, %v2677_v60  ;;  %v2143_v43 = vadd.f32 %v4281_v37, %v1895_v40 }
 0x2aa   : > { %v1648_v0 = vadd.f32 %v1589_v51, %v3862_v62 }
 0x2ab   : > { %v2333_v44 = vpop.f32.mrf.mxu0  ;;  %v2791_v10 = vadd.f32 %v2790_v42, %v2756_v31  ;;  %3269 = vst [vmem:[%s4091_s16 + $0x48] sm:$0xff] %v3219_v34   ;;  %v2391_v15 = vadd.f32 %v2331_v24, %v2143_v43 }
 0x2ad   : > { %v2427_v9 = vmax.f32 %v2391_v15, 0.0 }
 0x2ae   : > { %v1837_v46 = vpop.f32.mrf.mxu2 }
 0x2af   : > { %v2679_v47 = vmul.f32 %v2582_v18, %v2427_v9  ;;  %v1896_v50 = vadd.f32 %v1837_v46, %v1648_v0 }
 0x2b0   : > { %v1592_v13 = vpop.f32.mrf.mxu1  ;;  %v2095_v24 = vpop.f32.mrf.mxu3 }
 0x2b1   : > { %v2714_v32 = vadd.f32 %v2713_v56, %v2679_v47  ;;  %v2757_v26 = vmul.f32 %v2679_v47, %v2679_v47  ;;  %v2144_v29 = vadd.f32 %v2085_v20, %v1896_v50  ;;  %v1649_v38 = vadd.f32 %v1592_v13, %v3870_v58 }
 0x2b3   : > { %v2336_v21 = vpop.f32.mrf.mxu0  ;;  %v2792_v28 = vadd.f32 %v2791_v10, %v2757_v26  ;;  %v2392_v33 = vadd.f32 %v2333_v44, %v2144_v29 }
 0x2b5   : > { %v2428_v37 = vmax.f32 %v2392_v33, 0.0 }
 0x2b6   : > { %v1840_v12 = vpop.f32.mrf.mxu2 }
 0x2b7   : > { %v2680_v48 = vmul.f32 %v2587_v59, %v2428_v37  ;;  %v1897_v62 = vadd.f32 %v1840_v12, %v1649_v38 }
 0x2b8   : > { %v1594_v1 = vpop.f32.mrf.mxu1  ;;  %v2098_v34 = vpop.f32.mrf.mxu3 }
 0x2b9   : > { %v2715_v22 = vadd.f32 %v2714_v32, %v2680_v48  ;;  %v2758_v27 = vmul.f32 %v2680_v48, %v2680_v48  ;;  %v3224_v60 = vpack.c.bf16 %v2680_v48, %v2679_v47  ;;  %v2145_v3 = vadd.f32 %v2088_v4, %v1897_v62  ;;  %v2597_v4 = vpop.permute.xlu2 %2596 }
 0x2ba   : > { %v1650_v49 = vadd.f32 %v1594_v1, %v3884_v19  ;;  %v2607_v1 = vpop.permute.xlu1 %2606 }
 0x2bb   : > { %v2338_v23 = vpop.f32.mrf.mxu0  ;;  %v2793_v17 = vadd.f32 %v2792_v28, %v2758_v27  ;;  %3270 = vst [vmem:[%s4091_s16 + $0x50] sm:$0xff] %v3224_v60   ;;  %v2393_v20 = vadd.f32 %v2336_v21, %v2145_v3  ;;  %v2602_v21 = vpop.permute.xlu0 %2601 }
 0x2bd   : > { %v2429_v5 = vmax.f32 %v2393_v20, 0.0 }
 0x2be   : > { %v1842_v42 = vpop.f32.mrf.mxu2 }
 0x2bf   : > { %v2681_v58 = vmul.f32 %v2592_v41, %v2429_v5  ;;  %v1898_v30 = vadd.f32 %v1842_v42, %v1650_v49 }
 0x2c0   : > { %v1597_v6 = vpop.f32.mrf.mxu1  ;;  %v2100_v33 = vpop.f32.mrf.mxu3 }
 0x2c1   : > { %v2716_v52 = vadd.f32 %v2715_v22, %v2681_v58  ;;  %v2759_v53 = vmul.f32 %v2681_v58, %v2681_v58  ;;  %v2146_v63 = vadd.f32 %v2090_v36, %v1898_v30  ;;  %v1651_v56 = vadd.f32 %v1597_v6, %v3894_v25  ;;  %v2612_v30 = vpop.permute.xlu2 %2611 }
 0x2c3   : > { %v2341_v35 = vpop.f32.mrf.mxu0  ;;  %v2794_v40 = vadd.f32 %v2793_v17, %v2759_v53  ;;  %v2394_v51 = vadd.f32 %v2338_v23, %v2146_v63 }
 0x2c5   : > { %v2430_v44 = vmax.f32 %v2394_v51, 0.0 }
 0x2c6   : > { %v1845_v31 = vpop.f32.mrf.mxu2 }
 0x2c7   : > { %v2682_v43 = vmul.f32 %v2597_v4, %v2430_v44  ;;  %v1899_v19 = vadd.f32 %v1845_v31, %v1651_v56 }
 0x2c8   : > { %v1599_v10 = vpop.f32.mrf.mxu1  ;;  %v2103_v49 = vpop.f32.mrf.mxu3 }
 0x2c9   : > { %v2717_v9 = vadd.f32 %v2716_v52, %v2682_v43  ;;  %v2760_v0 = vmul.f32 %v2682_v43, %v2682_v43  ;;  %v3229_v18 = vpack.c.bf16 %v2682_v43, %v2681_v58  ;;  %v2147_v46 = vadd.f32 %v2093_v39, %v1899_v19  ;;  %v2617_v43 = vpop.permute.xlu0 %2616 }
 0x2ca   : > { %v1652_v13 = vadd.f32 %v1599_v10, %v3913_v8 }
 0x2cb   : > { %v2343_v15 = vpop.f32.mrf.mxu0  ;;  %v2795_v47 = vadd.f32 %v2794_v40, %v2760_v0  ;;  %3271 = vst [vmem:[%s4091_s16 + $0x58] sm:$0xff] %v3229_v18   ;;  %v2395_v36 = vadd.f32 %v2341_v35, %v2147_v46 }
 0x2cd   : > { %v2431_v50 = vmax.f32 %v2395_v36, 0.0 }
 0x2ce   : > { %v1847_v32 = vpop.f32.mrf.mxu2 }
 0x2cf   : > { %v2683_v26 = vmul.f32 %v2602_v21, %v2431_v50  ;;  %v1900_v25 = vadd.f32 %v1847_v32, %v1652_v13  ;;  %v2622_v13 = vpop.permute.xlu1 %2621 }
 0x2d0   : > { %v1602_v29 = vpop.f32.mrf.mxu1  ;;  %v2105_v56 = vpop.f32.mrf.mxu3 }
 0x2d1   : > { %v2718_v37 = vadd.f32 %v2717_v9, %v2683_v26  ;;  %v2761_v38 = vmul.f32 %v2683_v26, %v2683_v26  ;;  %v2148_v59 = vadd.f32 %v2095_v24, %v1900_v25  ;;  %v1653_v62 = vadd.f32 %v1602_v29, %v3924_v57 }
 0x2d3   : > { %v2346_v28 = vpop.f32.mrf.mxu0  ;;  %v2796_v12 = vadd.f32 %v2795_v47, %v2761_v38  ;;  %v2396_v48 = vadd.f32 %v2343_v15, %v2148_v59 }
 0x2d5   : > { %v2432_v39 = vmax.f32 %v2396_v48, 0.0 }
 0x2d6   : > { %v1850_v23 = vpop.f32.mrf.mxu2 }
 0x2d7   : > { %v2684_v22 = vmul.f32 %v2607_v1, %v2432_v39  ;;  %v1901_v8 = vadd.f32 %v1850_v23, %v1653_v62  ;;  %v2627_v1 = vpop.permute.xlu2 %2626 }
 0x2d8   : > { %v1604_v27 = vpop.f32.mrf.mxu1  ;;  %v2108_v25 = vpop.f32.mrf.mxu3 }
 0x2d9   : > { %v2719_v3 = vadd.f32 %v2718_v37, %v2684_v22  ;;  %v2762_v17 = vmul.f32 %v2684_v22, %v2684_v22  ;;  %v3234_v20 = vpack.c.bf16 %v2684_v22, %v2683_v26  ;;  %v2149_v5 = vadd.f32 %v2098_v34, %v1901_v8 }
 0x2da   : > { %v1654_v58 = vadd.f32 %v1604_v27, %v3941_v11 }
 0x2db   : > { %v2348_v60 = vpop.f32.mrf.mxu0  ;;  %v2797_v41 = vadd.f32 %v2796_v12, %v2762_v17  ;;  %3272 = vst [vmem:[%s4091_s16 + $0x60] sm:$0xff] %v3234_v20   ;;  %v2397_v24 = vadd.f32 %v2346_v28, %v2149_v5 }
 0x2dd   : > { %v2433_v42 = vmax.f32 %v2397_v24, 0.0 }
 0x2de   : > { %v1852_v6 = vpop.f32.mrf.mxu2 }
 0x2df   : > { %v2685_v57 = vmul.f32 %v2612_v30, %v2433_v42  ;;  %v1902_v35 = vadd.f32 %v1852_v6, %v1654_v58  ;;  %v2632_v58 = vpop.permute.xlu0 %2631 }
 0x2e0   : > { %v1607_v52 = vpop.f32.mrf.mxu1  ;;  %v2110_v27 = vpop.f32.mrf.mxu3 }
 0x2e1   : > { %v2720_v63 = vadd.f32 %v2719_v3, %v2685_v57  ;;  %v2763_v40 = vmul.f32 %v2685_v57, %v2685_v57  ;;  %v2150_v51 = vadd.f32 %v2100_v33, %v1902_v35  ;;  %v1655_v34 = vadd.f32 %v1607_v52, %v3952_v45 }
 0x2e3   : > { %v2351_v53 = vpop.f32.mrf.mxu0  ;;  %v2798_v4 = vadd.f32 %v2797_v41, %v2763_v40  ;;  %v2398_v44 = vadd.f32 %v2348_v60, %v2150_v51 }
 0x2e5   : > { %v2434_v31 = vmax.f32 %v2398_v44, 0.0 }
 0x2e6   : > { %v1855_v19 = vpop.f32.mrf.mxu2 }
 0x2e7   : > { %v2686_v10 = vmul.f32 %v2617_v43, %v2434_v31  ;;  %v1903_v11 = vadd.f32 %v1855_v19, %v1655_v34  ;;  %v2637_v31 = vpop.permute.xlu1 %2636 }
 0x2e8   : > { %v1609_v15 = vpop.f32.mrf.mxu1 }
 0x2e9   : > { %v2721_v0 = vadd.f32 %v2720_v63, %v2686_v10  ;;  %v2764_v18 = vmul.f32 %v2686_v10, %v2686_v10  ;;  %v3239_v46 = vpack.c.bf16 %v2686_v10, %v2685_v57  ;;  %v2151_v47 = vadd.f32 %v2103_v49, %v1903_v11  ;;  %v2113_v63 = vpop.f32.mrf.mxu3 }
 0x2ea   : > { %v1656_v32 = vadd.f32 %v1609_v15, %v3969_v16 }
 0x2eb   : > { %v2353_v9 = vpop.f32.mrf.mxu0  ;;  %v2799_v36 = vadd.f32 %v2798_v4, %v2764_v18  ;;  %3273 = vst [vmem:[%s4091_s16 + $0x68] sm:$0xff] %v3239_v46   ;;  %v2399_v50 = vadd.f32 %v2351_v53, %v2151_v47  ;;  %v2642_v47 = vpop.permute.xlu2 %2641 }
 0x2ed   : > { %v2435_v21 = vmax.f32 %v2399_v50, 0.0 }
 0x2ee   : > { %v1857_v26 = vpop.f32.mrf.mxu2 }
 0x2ef   : > { %v2687_v45 = vmul.f32 %v2622_v13, %v2435_v21  ;;  %v1904_v29 = vadd.f32 %v1857_v26, %v1656_v32 }
 0x2f0   : > { %v1612_v28 = vpop.f32.mrf.mxu1 }
 0x2f1   : > { %v2722_v37 = vadd.f32 %v2721_v0, %v2687_v45  ;;  %v2765_v38 = vmul.f32 %v2687_v45, %v2687_v45  ;;  %v2152_v59 = vadd.f32 %v2105_v56, %v1904_v29  ;;  %v1657_v62 = vadd.f32 %v1612_v28, %v3980_v7  ;;  %v2115_v46 = vpop.f32.mrf.mxu3 }
 0x2f3   : > { %v2356_v33 = vpop.f32.mrf.mxu0  ;;  %v2800_v12 = vadd.f32 %v2799_v36, %v2765_v38  ;;  %v2400_v48 = vadd.f32 %v2353_v9, %v2152_v59 }
 0x2f5   : > { %v2436_v39 = vmax.f32 %v2400_v48, 0.0 }
 0x2f6   : > { %v1860_v23 = vpop.f32.mrf.mxu2 }
 0x2f7   : > { %v2688_v22 = vmul.f32 %v2627_v1, %v2436_v39  ;;  %v1905_v8 = vadd.f32 %v1860_v23, %v1657_v62 }
 0x2f8   : > { %v1614_v16 = vpop.f32.mrf.mxu1 }
 0x2f9   : > { %v2723_v60 = vadd.f32 %v2722_v37, %v2688_v22  ;;  %v2766_v3 = vmul.f32 %v2688_v22, %v2688_v22  ;;  %v3244_v17 = vpack.c.bf16 %v2688_v22, %v2687_v45  ;;  %v2153_v20 = vadd.f32 %v2108_v25, %v1905_v8  ;;  %v2647_v37 = vpop.permute.xlu0 %2646 }
 0x2fa   : > { %v1658_v42 = vadd.f32 %v1614_v16, %v3997_v55 }
 0x2fb   : > { %v2358_v5 = vpop.f32.mrf.mxu0  ;;  %v2801_v49 = vadd.f32 %v2800_v12, %v2766_v3  ;;  %3274 = vst [vmem:[%s4091_s16 + $0x70] sm:$0xff] %v3244_v17   ;;  %v2401_v41 = vadd.f32 %v2356_v33, %v2153_v20  ;;  %v2118_v12 = vpop.f32.mrf.mxu3 }
 0x2fc   : > { %v2652_v20 = vpop.permute.xlu1 %2651 }
 0x2fd   : > { %v2437_v24 = vmax.f32 %v2401_v41, 0.0 }
 0x2fe   : > { %v1862_v30 = vpop.f32.mrf.mxu2 }
 0x2ff   : > { %v2689_v7 = vmul.f32 %v2632_v58, %v2437_v24  ;;  %v1906_v6 = vadd.f32 %v1862_v30, %v1658_v42 }
 0x300   : > { %v1617_v57 = vpop.f32.mrf.mxu1 }
 0x301   : > { %v2724_v35 = vadd.f32 %v2723_v60, %v2689_v7  ;;  %v2767_v52 = vmul.f32 %v2689_v7, %v2689_v7  ;;  %v2154_v53 = vadd.f32 %v2110_v27, %v1906_v6  ;;  %v1659_v56 = vadd.f32 %v1617_v57, %v4008_v61 }
 0x303   : > { %v2802_v40 = vadd.f32 %v2801_v49, %v2767_v52  ;;  %v2402_v51 = vadd.f32 %v2358_v5, %v2154_v53  ;;  %v2361_v4 = vpop.f32.mrf.mxu0  ;;  %v2120_v41 = vpop.f32.mrf.mxu3 }
 0x305   : > { %v2438_v44 = vmax.f32 %v2402_v51, 0.0 }
 0x306   : > { %v1865_v34 = vpop.f32.mrf.mxu2 }
 0x307   : > { %v2690_v43 = vmul.f32 %v2637_v31, %v2438_v44  ;;  %v1907_v55 = vadd.f32 %v1865_v34, %v1659_v56 }
 0x308   : > { %v1619_v19 = vpop.f32.mrf.mxu1 }
 0x309   : > { %v2725_v10 = vadd.f32 %v2724_v35, %v2690_v43  ;;  %v2768_v11 = vmul.f32 %v2690_v43, %v2690_v43  ;;  %v3249_v15 = vpack.c.bf16 %v2690_v43, %v2689_v7  ;;  %v2155_v9 = vadd.f32 %v2113_v63, %v1907_v55  ;;  %v2657_v35 = vpop.permute.xlu2 %2656 }
 0x30a   : > { %v1660_v50 = vadd.f32 %v1619_v19, %v4025_v2 }
 0x30b   : > { %v2803_v0 = vadd.f32 %v2802_v40, %v2768_v11  ;;  %3275 = vst [vmem:[%s4091_s16 + $0x78] sm:$0xff] %v3249_v15   ;;  %v2403_v18 = vadd.f32 %v2361_v4, %v2155_v9  ;;  %v2363_v13 = vpop.f32.mrf.mxu0 }
 0x30d   : > { %v2439_v36 = vmax.f32 %v2403_v18, 0.0 }
 0x30e   : > { %v1867_v21 = vpop.f32.mrf.mxu2 }
 0x30f   : > { %v2691_v61 = vmul.f32 %v2642_v47, %v2439_v36  ;;  %v1908_v32 = vadd.f32 %v1867_v21, %v1660_v50 }
 0x310   : > { %v1622_v26 = vpop.f32.mrf.mxu1 }
 0x311   : > { %v2726_v25 = vadd.f32 %v2725_v10, %v2691_v61  ;;  %v2769_v45 = vmul.f32 %v2691_v61, %v2691_v61  ;;  %v2156_v29 = vadd.f32 %v2115_v46, %v1908_v32  ;;  %v1661_v59 = vadd.f32 %v1622_v26, %v4036_v14 }
 0x313   : > { %v2804_v28 = vadd.f32 %v2803_v0, %v2769_v45  ;;  %v2404_v33 = vadd.f32 %v2363_v13, %v2156_v29  ;;  %v2366_v2 = vpop.f32.mrf.mxu0 }
 0x315   : > { %v2440_v38 = vmax.f32 %v2404_v33, 0.0 }
 0x316   : > { %v1870_v48 = vpop.f32.mrf.mxu2 }
 0x317   : > { %v2692_v39 = vmul.f32 %v2647_v37, %v2440_v38  ;;  %v1909_v62 = vadd.f32 %v1870_v48, %v1661_v59 }
 0x318   : > { %v1624_v16 = vpop.f32.mrf.mxu1 }
 0x319   : > { %v2727_v1 = vadd.f32 %v2726_v25, %v2692_v39  ;;  %v2770_v23 = vmul.f32 %v2692_v39, %v2692_v39  ;;  %v3254_v22 = vpack.c.bf16 %v2692_v39, %v2691_v61  ;;  %v2157_v8 = vadd.f32 %v2118_v12, %v1909_v62 }
 0x31a   : > { %v1662_v17 = vadd.f32 %v1624_v16, %v4053_v54 }
 0x31b   : > { %v2805_v27 = vadd.f32 %v2804_v28, %v2770_v23  ;;  %3276 = vst [vmem:[%s4091_s16 + $0x80] sm:$0xff] %v3254_v22   ;;  %v2405_v60 = vadd.f32 %v2366_v2, %v2157_v8  ;;  %v2368_v30 = vpop.f32.mrf.mxu0 }
 0x31d   : > { %v2441_v3 = vmax.f32 %v2405_v60, 0.0 }
 0x31e   : > { %v1872_v5 = vpop.f32.mrf.mxu2 }
 0x31f   : > { %v2693_v49 = vmul.f32 %v2652_v20, %v2441_v3  ;;  %v1910_v14 = vadd.f32 %v1872_v5, %v1662_v17 }
 0x321   : > { %v2728_v24 = vadd.f32 %v2727_v1, %v2693_v49  ;;  %v2771_v42 = vmul.f32 %v2693_v49, %v2693_v49  ;;  %v2158_v58 = vadd.f32 %v2120_v41, %v1910_v14 }
 0x323   : > { %v2806_v7 = vadd.f32 %v2805_v27, %v2771_v42  ;;  %v2406_v6 = vadd.f32 %v2368_v30, %v2158_v58 }
 0x325   : > { %v2442_v57 = vmax.f32 %v2406_v6, 0.0 }
 0x327   : > { %v2694_v52 = vmul.f32 %v2657_v35, %v2442_v57 }
 0x329   : > { %v2729_v53 = vadd.f32 %v2728_v24, %v2694_v52  ;;  %v2772_v63 = vmul.f32 %v2694_v52, %v2694_v52  ;;  %v3259_v54 = vpack.c.bf16 %v2694_v52, %v2693_v49 }
 0x32b   : > { %v2730_v40 = vrot.slane %v2729_v53, 4  ;;  %v2807_v51 = vadd.f32 %v2806_v7, %v2772_v63  ;;  %3277 = vst [vmem:[%s4091_s16 + $0x88] sm:$0xff] %v3259_v54  }
 0x32d   : > { %v2731_v4 = vadd.f32 %v2730_v40, %v2729_v53  ;;  %v2808_v44 = vrot.slane %v2807_v51, 4 }
 0x32f   : > { %v2732_v56 = vrot.slane %v2731_v4, 2  ;;  %v2809_v31 = vadd.f32 %v2808_v44, %v2807_v51 }
 0x331   : > { %v2733_v34 = vadd.f32 %v2732_v56, %v2731_v4  ;;  %v2810_v43 = vrot.slane %v2809_v31, 2 }
 0x333   : > { %v2734_v55 = vrot.slane %v2733_v34, 1  ;;  %v2811_v19 = vadd.f32 %v2810_v43, %v2809_v31 }
 0x335   : > { %v2735_v10 = vadd.f32 %v2734_v55, %v2733_v34  ;;  %v2812_v11 = vrot.slane %v2811_v19, 1 }
 0x337   : > { %2736 = vst [vmem:[%s238_s7] sm:$0x1] %v2735_v10  ;;  %v2813_v15 = vadd.f32 %v2812_v11, %v2811_v19 }
 0x339   : > { %2814 = vst [vmem:[%s241_s10] sm:$0x1] %v2813_v15 }
 0x33a PF: > { %s16_s18 = sadd.s32 1, %s3302_s18  }
 0x33b   : > { %p13_p4 = scmp.ge.s32.totalorder %s16_s18, 4  }
 0x33d   :  { %15 = sbr.rel (!%p13_p4) target bundleno = 1 (0x1), region = 94 }

// kernel: forward.15
= control target key start
LH: loop header
LB: loop body
LE: loop exit
PB: predicated region body
PF: predicated region fallthrough
CT: control target
= control target key end

     0   :  { %8 = vsyncpa [#allocation3], 0  ;;  %s708_s0 = inlined_call_operand.vmem [shape: bf16[2,288,128], index: 0, kind: input, shape index: {}]   ;;  %s709_s1 = inlined_call_operand.vmem [shape: f32[1,128], index: 1, kind: input, shape index: {}]   ;;  %s710_s2 = inlined_call_operand.vmem [shape: f32[1,128], index: 2, kind: input, shape index: {}]   ;;  %s711_s3 = inlined_call_operand.hbm [shape: f32[2,1,128], index: 3, kind: output, shape index: {}]  }
   0x1   :  { %10 = vsyncpa [#allocation3 + $0x1], 0  ;;  %s592_s12 = smov 0   ;;  %s594_s13 = smov 0  }
   0x2   :  { %s596_s14 = smov 0   ;;  %s598_s15 = smov 0  }
   0x3 LB: > { %s613_s16 = sadd.s32 4294967295, %s570_s15   ;;  %s370_s17 = sadd.s32 4294967294, %s570_s15   ;;  %s570_s15 = sphi %s598_s15, %s717_s15   ;;  %s566_s14 = sphi %s596_s14, %s716_s14   ;;  %s562_s13 = sphi %s594_s13, %s715_s13   ;;  %s558_s12 = sphi %s592_s12, %s714_s12  }
   0x4   : > { %s617_s18 = sadd.s32 1, %s570_s15   ;;  %s91_s19 = sadd.s32 1, %s566_s14 }
   0x5   : > { %s88_s20 = ssub.s32 %s570_s15, %s617_s18  ;;  %p101_p0 = scmp.ne.s32.totalorder %s566_s14, %s562_s13 }
   0x6   : > { %p89_p1 = scmp.eq.s32.totalorder %s88_s20, 0  ;;  %p102_p2 = scmp.eq.s32.totalorder %s613_s16, 1 }
   0x7   : > { %p107_p3 = scmp.ne.s32.totalorder %s562_s13, %s558_s12  ;;  %p108_p4 = scmp.eq.s32.totalorder %s370_s17, 1 }
   0x8   : > { %s628_s21 = scalar_select %p89_p1, %s566_s14, %s91_s19  }
   0x9   : > { %p630_p5 = por %p102_p2, %p101_p0  ;;  %p634_p6 = por %p108_p4, %p107_p3 }
   0xa   : > { %p373_p7 = scmp.ge.s32.totalorder %s570_s15, 1  ;;  %p140_p8 = scmp.lt.s32.totalorder %s570_s15, 3 }
   0xc   : > { %p141_p9 = pnand %p373_p7, %p140_p8 }
   0xd   : > { %p163_p10 = scmp.lt.s32.totalorder (!%p141_p9), %s613_s16, 1  ;;  %s161_s6 = sand.u32 (!%p141_p9), 1, %s562_s13  }
   0xe   : > { %144 = sbr.rel (%p141_p9) target bundleno = 118 (0x76), region = 32  ;;  %s311_s9 = scalar_lea.hbm (!%p141_p9), %s711_s3, %s613_s16 }
   0xf   : > { %s162_s10 = scalar_lea.vmem (!%p141_p9), [#allocation2], %s161_s6  ;;  %s315_s17 = sshll.u32 (!%p141_p9), %s311_s9, 4  ;;  %s316_s17 = int_to_ptr.hbm [resolvable:$true] %s315_s17 }
  0x10   : > { %s313_s11 = sshll.u32 (!%p141_p9), %s162_s10, 4  ;;  %s303_s19 = scalar_lea.sflag (!%p141_p9), [#allocation3], %s161_s6  ;;  %s314_s11 = int_to_ptr.vmem [resolvable:$true] %s313_s11 }
  0x11   : > { %s522_s20 = sshra.s32 (!%p141_p9), %s316_s17, 4  ;;  %s528_s26 = scalar_lea.hbm (!%p141_p9), %s711_s3, 2  ;;  %s523_s20 = int_to_ptr.hbm [resolvable:$true] %s522_s20 }
  0x12   : > { %p529_p0 = scmp.lt.s32.totalorder (!%p141_p9), %s523_s20, %s711_s3 }
  0x13   : > { %s164_s24 = scalar_select %p163_p10, %s613_s16, 1  ;;  %v168_v50 = vld [vmem:[%s709_s1] sm:$0x1] }
  0x14   : > { %v662_v54 = vmul.f32 0.001953125, %v168_v50  ;;  %v170_v57 = vld [vmem:[%s710_s2] sm:$0x1] }
  0x15   : > { %s466_s25 = smul.u32 144, %s164_s24  ;;  %v171_v61 = vmul.f32 0.001953125, %v170_v57  ;;  %s524_s24 = scalar_lea.hbm %s523_s20, 1 }
  0x16   : > { %v172_v62 = vmul.f32 %v662_v54, %v662_v54  ;;  %p525_p11 = scmp.ne.s32.totalorder %s523_s20, %s524_s24  ;;  %p530_p1 = scmp.lt.s32.totalorder %s528_s26, %s524_s24 }
  0x17   : > { %s645_s28 = scalar_lea.vmem %s708_s0, %s466_s25 }
  0x18   : > { %v378_v0 = vld [vmem:[%s645_s28] sm:$0xff]   ;;  %v449_v1 = vld [vmem:[%s645_s28 + $0x8] sm:$0xff]   ;;  %v450_v5 = vld [vmem:[%s645_s28 + $0x10] sm:$0xff]   ;;  %p526_p12 = pnand %p525_p11, %p630_p5  ;;  %p531_p2 = por %p530_p1, %p529_p0 }
  0x19   : > { %v379_v2 = vunpack.c.l.bf16 %v378_v0  ;;  %v380_v3 = vunpack.c.h.bf16 %v378_v0  ;;  %v383_v4 = vunpack.c.l.bf16 %v449_v1  ;;  %v384_v6 = vunpack.c.h.bf16 %v449_v1  ;;  %v451_v10 = vld [vmem:[%s645_s28 + $0x18] sm:$0xff]   ;;  %v452_v15 = vld [vmem:[%s645_s28 + $0x20] sm:$0xff]   ;;  %v453_v20 = vld [vmem:[%s645_s28 + $0x28] sm:$0xff]  }
  0x1a   : > { %v387_v8 = vunpack.c.l.bf16 %v450_v5  ;;  %v388_v11 = vunpack.c.h.bf16 %v450_v5  ;;  %v391_v13 = vunpack.c.l.bf16 %v451_v10  ;;  %v392_v16 = vunpack.c.h.bf16 %v451_v10  ;;  %v454_v25 = vld [vmem:[%s645_s28 + $0x30] sm:$0xff]   ;;  %v455_v30 = vld [vmem:[%s645_s28 + $0x38] sm:$0xff]   ;;  %v456_v35 = vld [vmem:[%s645_s28 + $0x40] sm:$0xff]   ;;  %p527_p13 = pneg %p526_p12 }
  0x1b   : > { %v257_v7 = vadd.f32 %v380_v3, %v379_v2  ;;  %v395_v18 = vunpack.c.l.bf16 %v452_v15  ;;  %v396_v21 = vunpack.c.h.bf16 %v452_v15  ;;  %v399_v23 = vunpack.c.l.bf16 %v453_v20  ;;  %v457_v40 = vld [vmem:[%s645_s28 + $0x48] sm:$0xff]   ;;  %v458_v45 = vld [vmem:[%s645_s28 + $0x50] sm:$0xff]   ;;  %v459_v51 = vld [vmem:[%s645_s28 + $0x58] sm:$0xff]  }
  0x1c   : > { %v400_v26 = vunpack.c.h.bf16 %v453_v20  ;;  %v403_v28 = vunpack.c.l.bf16 %v454_v25  ;;  %v404_v31 = vunpack.c.h.bf16 %v454_v25  ;;  %v407_v33 = vunpack.c.l.bf16 %v455_v30  ;;  %v460_v58 = vld [vmem:[%s645_s28 + $0x60] sm:$0xff]   ;;  %v461_v1 = vld [vmem:[%s645_s28 + $0x68] sm:$0xff]   ;;  %p532_p3 = pnand %p531_p2, %p527_p13 }
  0x1d   : > { %v258_v9 = vadd.f32 %v383_v4, %v257_v7  ;;  %v408_v36 = vunpack.c.h.bf16 %v455_v30  ;;  %v411_v38 = vunpack.c.l.bf16 %v456_v35  ;;  %v412_v41 = vunpack.c.h.bf16 %v456_v35  ;;  %v462_v7 = vld [vmem:[%s645_s28 + $0x70] sm:$0xff]  }
  0x1e   : > { %v415_v43 = vunpack.c.l.bf16 %v457_v40  ;;  %v416_v46 = vunpack.c.h.bf16 %v457_v40  ;;  %v419_v48 = vunpack.c.l.bf16 %v458_v45  ;;  %v420_v52 = vunpack.c.h.bf16 %v458_v45 }
  0x1f   : > { %v259_v12 = vadd.f32 %v384_v6, %v258_v9  ;;  %v423_v55 = vunpack.c.l.bf16 %v459_v51  ;;  %v424_v59 = vunpack.c.h.bf16 %v459_v51  ;;  %v427_v63 = vunpack.c.l.bf16 %v460_v58 }
  0x20   : > { %v428_v2 = vunpack.c.h.bf16 %v460_v58  ;;  %v173_v4 = vsub.f32 %v171_v61, %v172_v62  ;;  %v431_v5 = vunpack.c.l.bf16 %v461_v1 }
  0x21   : > { %v260_v14 = vadd.f32 %v387_v8, %v259_v12  ;;  %v432_v8 = vunpack.c.h.bf16 %v461_v1 }
  0x22   : > { %v174_v10 = vadd.f32 1e-05, %v173_v4 }
  0x23   : > { %v261_v17 = vadd.f32 %v388_v11, %v260_v14  ;;  %v435_v11 = vunpack.c.l.bf16 %v462_v7  ;;  %v436_v14 = vunpack.c.h.bf16 %v462_v7 }
  0x24   : > { %506 = vrsqrt.f32 %v174_v10  ;;  %vm181_vm0 = vweird.f32 %v174_v10 }
  0x25   : > { %v262_v19 = vadd.f32 %v391_v13, %v261_v17  ;;  %v463_v13 = vld [vmem:[%s645_s28 + $0x78] sm:$0xff]  }
  0x27   : > { %v263_v22 = vadd.f32 %v392_v16, %v262_v19  ;;  %v439_v16 = vunpack.c.l.bf16 %v463_v13  ;;  %v440_v19 = vunpack.c.h.bf16 %v463_v13 }
  0x29   : > { %v264_v24 = vadd.f32 %v395_v18, %v263_v22  ;;  %v464_v18 = vld [vmem:[%s645_s28 + $0x80] sm:$0xff]  }
  0x2a   : > { %v444_v25 = vunpack.c.h.bf16 %v464_v18 }
  0x2b   : > { %v265_v27 = vadd.f32 %v396_v21, %v264_v24  ;;  %v443_v21 = vunpack.c.l.bf16 %v464_v18  ;;  %v507_v24 = vpop.eup %506 }
  0x2c   : > { %vm182_vm1 = vweird.f32 %v507_v24 }
  0x2d   : > { %v266_v29 = vadd.f32 %v399_v23, %v265_v27  ;;  %v465_v23 = vld [vmem:[%s645_s28 + $0x88] sm:$0xff]   ;;  %vm183_vm2 = vmor %vm181_vm0, %vm182_vm1 }
  0x2e   : > { %v447_v27 = vunpack.c.l.bf16 %v465_v23  ;;  %v448_v30 = vunpack.c.h.bf16 %v465_v23 }
  0x2f   : > { %v267_v32 = vadd.f32 %v400_v26, %v266_v29  ;;  %v176_v29 = vmul.f32 %v507_v24, %v174_v10 }
  0x31   : > { %v268_v34 = vadd.f32 %v403_v28, %v267_v32 }
  0x33   : > { %v269_v37 = vadd.f32 %v404_v31, %v268_v34 }
  0x35   : > { %v270_v39 = vadd.f32 %v407_v33, %v269_v37  ;;  %v177_v33 = vmul.f32 %v507_v24, %v176_v29 }
  0x37   : > { %v271_v42 = vadd.f32 %v408_v36, %v270_v39  ;;  %v178_v36 = vmul.f32 0.5, %v177_v33 }
  0x39   : > { %v272_v44 = vadd.f32 %v411_v38, %v271_v42  ;;  %v179_v39 = vsub.f32 1.5, %v178_v36 }
  0x3b   : > { %v273_v47 = vadd.f32 %v412_v41, %v272_v44  ;;  %v180_v42 = vmul.f32 %v507_v24, %v179_v39 }
  0x3d   : > { %v274_v49 = vadd.f32 %v415_v43, %v273_v47  ;;  %v184_v45 = vsel %vm183_vm2, %v507_v24, %v180_v42 }
  0x3f   : > { %v275_v53 = vadd.f32 %v416_v46, %v274_v49 }
  0x41   : > { %v276_v56 = vadd.f32 %v419_v48, %v275_v53 }
  0x43   : > { %v277_v60 = vadd.f32 %v420_v52, %v276_v56 }
  0x45   : > { %v278_v0 = vadd.f32 %v423_v55, %v277_v60 }
  0x47   : > { %v279_v3 = vadd.f32 %v424_v59, %v278_v0 }
  0x49   : > { %v280_v6 = vadd.f32 %v427_v63, %v279_v3 }
  0x4b   : > { %v281_v9 = vadd.f32 %v428_v2, %v280_v6 }
  0x4d   : > { %v282_v12 = vadd.f32 %v431_v5, %v281_v9 }
  0x4f   : > { %v283_v15 = vadd.f32 %v432_v8, %v282_v12 }
  0x51   : > { %v284_v17 = vadd.f32 %v435_v11, %v283_v15 }
  0x53   : > { %v285_v20 = vadd.f32 %v436_v14, %v284_v17 }
  0x55   : > { %v286_v22 = vadd.f32 %v439_v16, %v285_v20 }
  0x57   : > { %v287_v26 = vadd.f32 %v440_v19, %v286_v22 }
  0x59   : > { %v288_v28 = vadd.f32 %v443_v21, %v287_v26 }
  0x5b   : > { %v289_v31 = vadd.f32 %v444_v25, %v288_v28 }
  0x5d   : > { %v290_v32 = vadd.f32 %v447_v27, %v289_v31 }
  0x5f   : > { %v291_v34 = vadd.f32 %v448_v30, %v290_v32 }
  0x61   : > { %v292_v35 = vrot.slane %v291_v34, 4 }
  0x63   : > { %v293_v37 = vadd.f32 %v292_v35, %v291_v34 }
  0x65   : > { %v294_v38 = vrot.slane %v293_v37, 2 }
  0x67   : > { %v295_v40 = vadd.f32 %v294_v38, %v293_v37 }
  0x69   : > { %v296_v41 = vrot.slane %v295_v40, 1 }
  0x6b   : > { %v297_v43 = vadd.f32 %v296_v41, %v295_v40 }
  0x6d   : > { %v298_v44 = vmul.f32 0.00390625, %v297_v43 }
  0x6f   : > { %v299_v46 = vsub.f32 %v298_v44, %v662_v54 }
  0x71   : > { %v300_v47 = vmul.f32 %v299_v46, %v184_v45 }
  0x73   : > { %301 = vst [vmem:[%s162_s10] sm:$0x1] %v300_v47 }
  0x74   : > { %535 = shalt.err (!%p532_p3)
}
  0x75   : > { %467 = dma.vmem_to_hbm [thread:$0]  (%p630_p5), %s314_s11, 16, %s316_s17, %s303_s19  }
  0x76 PF: > { %p473_p4 = scmp.ge.s32.totalorder %s570_s15, 2  ;;  %s327_s29 = sand.u32 1, %s558_s12  }
  0x77   : > { %s328_s30 = scalar_lea.sflag [#allocation3], %s327_s29 }
  0x78   : > { %p470_p7 = pnand %p473_p4, %p634_p6 }
  0x7a   : > { %p471_p8 = pneg %p470_p7 }
  0x7c   : > { %553 = dma.done.wait (%p471_p8), %s328_s30, 16  }
  0x7d   : > { %555 = vsyncadd (%p471_p8), %s328_s30, 4294967280  ;;  %p13_p9 = scmp.ge.s32.totalorder %s617_s18, 4   ;;  %s714_s12 = smov %s562_s13 }
  0x7e   : > { %s715_s13 = smov %s566_s14  ;;  %s716_s14 = smov %s628_s21 }
  0x7f   : > { %s717_s15 = smov %s617_s18  ;;  %15 = sbr.rel (!%p13_p9) target bundleno = 3 (0x3), region = 67 }
  0x84   :  { %333 = vsyncpa [#allocation3], 1 }
  0x85   :  { %335 = vsyncpa [#allocation3 + $0x1], 1 }

// kernel: forward.12
= control target key start
LH: loop header
LB: loop body
LE: loop exit
PB: predicated region body
PF: predicated region fallthrough
CT: control target
= control target key end

     0   :  { %s3419_s18 = smov 0   ;;  %s4407_s0 = inlined_call_operand.vmem [shape: f32[2,328,16], index: 0, kind: input, shape index: {}]   ;;  %s4408_s1 = inlined_call_operand.vmem [shape: bf16[9,16,128], index: 1, kind: input, shape index: {}]   ;;  %s4409_s2 = inlined_call_operand.vmem [shape: f32[288,1], index: 2, kind: input, shape index: {}]   ;;  %s4410_s3 = inlined_call_operand.vmem [shape: bf16[2,288,128], index: 3, kind: output, shape index: {0}]   ;;  %s4411_s4 = inlined_call_operand.vmem [shape: f32[2,1,128], index: 4, kind: output, shape index: {1}]   ;;  %s4412_s5 = inlined_call_operand.vmem [shape: f32[2,1,128], index: 5, kind: output, shape index: {2}]  }
   0x1 LB: > { %s3024_s19 = sadd.s32 4294967295, %s3386_s18   ;;  %p3028_p0 = scmp.ge.s32.totalorder %s3386_s18, 1  ;;  %s3386_s18 = sphi %s3419_s18, %s16_s18  }
   0x2   : > { %p192_p1 = scmp.lt.s32.totalorder %s3386_s18, 3 }
   0x4   : > { %p193_p2 = pnand %p3028_p0, %p192_p1 }
   0x5   : > { %p226_p3 = scmp.lt.s32.totalorder (!%p193_p2), %s3024_s19, 1 }
   0x6   : > { %196 = sbr.rel (%p193_p2) target bundleno = 826 (0x33a), region = 32 }
   0xb   : > { %v3248_v0 = vld [vmem:[%s4408_s1 + $0x8] sm:$0xff]  ;;  %v3249_v1 = vld [vmem:[%s4408_s1 + $0x10] sm:$0xff]  ;;  %v3247_v2 = vld [vmem:[%s4408_s1] sm:$0xff]  ;;  %s4414_s19 = smov (!%p226_p3, %s3024_s19), 1  ;;  %vm362_vm0 = vcmask 130048  }
   0xc   : > { %v3251_v3 = vld [vmem:[%s4408_s1 + $0x20] sm:$0xff]  ;;  %3363 = vmatpush.bf16.msra.mxu1 %v3248_v0  ;;  %3364 = vmatpush.bf16.msra.mxu2 %v3248_v0  ;;  %s3366_s28 = smul.u32 328, %s4414_s19  ;;  %v3250_v16 = vld [vmem:[%s4408_s1 + $0x18] sm:$0xff]  ;;  %v3253_v53 = vld [vmem:[%s4408_s1 + $0x30] sm:$0xff]  ;;  %s238_s7 = scalar_lea.vmem %s4411_s4, %s4414_s19 }
   0xd   : > { %424 = vmatpush.bf16.msra.mxu0 %v3248_v0  ;;  %3365 = vmatpush.bf16.msra.mxu3 %v3248_v0  ;;  %v3254_v54 = vld [vmem:[%s4408_s1 + $0x38] sm:$0xff]  ;;  %v3252_v55 = vld [vmem:[%s4408_s1 + $0x28] sm:$0xff]  ;;  %v3255_v56 = vld [vmem:[%s4408_s1 + $0x40] sm:$0xff]  ;;  %s3367_s11 = smul.u32 144, %s4414_s19  ;;  %s241_s10 = scalar_lea.vmem %s4412_s5, %s4414_s19 }
   0xe   : > { %s3445_s6 = scalar_lea.vmem %s4407_s0, %s3366_s28 }
   0xf   : > { %v309_v4 = vld [vmem:[%s3445_s6 + $0x51] sm:$0xff]  ;;  %v310_v5 = vld [vmem:[%s3445_s6 + $0x59] sm:$0xff]  ;;  %v319_v6 = vld [vmem:[%s3445_s6 + $0xa1] sm:$0xff]  ;;  %s4163_s16 = scalar_lea.vmem %s4410_s3, %s3367_s11 }
  0x10   : > { %799 = vmatpush.bf16.msrb.mxu2 %v3249_v1  ;;  %583 = vmatpush.bf16.msrb.mxu1 %v3247_v2  ;;  %v340_v7 = vpack.c.bf16 %v310_v5, %v309_v4  ;;  %v320_v8 = vld [vmem:[%s3445_s6 + $0xa9] sm:$0xff]  ;;  %v299_v9 = vld [vmem:[%s3445_s6 + $0x1] sm:$0xff]  ;;  %v329_v13 = vld [vmem:[%s3445_s6 + $0xf1] sm:$0xff] }
  0x11   : > { %1303 = vmatpush.bf16.msrb.mxu0 %v3251_v3  ;;  %v300_v10 = vld [vmem:[%s3445_s6 + $0x9] sm:$0xff]  ;;  %v345_v11 = vpack.c.bf16 %v320_v8, %v319_v6  ;;  %v330_v14 = vld [vmem:[%s3445_s6 + $0xf9] sm:$0xff]  ;;  %1051 = vmatpush.bf16.msrb.mxu3 %v3250_v16  ;;  %v311_v17 = vld [vmem:[%s3445_s6 + $0x61] sm:$0xff] }
  0x12   : > { %v335_v12 = vpack.c.bf16 %v300_v10, %v299_v9  ;;  %3042 = vmatmul.msk.bf16.vlgmr.msra.gmra.mxu1 %vm362_vm0, %v340_v7  ;;  %v350_v15 = vpack.c.bf16 %v330_v14, %v329_v13  ;;  %v312_v18 = vld [vmem:[%s3445_s6 + $0x69] sm:$0xff]  ;;  %v321_v19 = vld [vmem:[%s3445_s6 + $0xb1] sm:$0xff]  ;;  %v322_v20 = vld [vmem:[%s3445_s6 + $0xb9] sm:$0xff] }
  0x13   : > { %3047 = vmatmul.msk.bf16.vlgmr.msra.gmra.mxu2 %vm362_vm0, %v345_v11  ;;  %v301_v21 = vld [vmem:[%s3445_s6 + $0x11] sm:$0xff]  ;;  %v302_v22 = vld [vmem:[%s3445_s6 + $0x19] sm:$0xff]  ;;  %v341_v23 = vpack.c.bf16 %v312_v18, %v311_v17  ;;  %v346_v24 = vpack.c.bf16 %v322_v20, %v321_v19  ;;  %v331_v26 = vld [vmem:[%s3445_s6 + $0x101] sm:$0xff] }
  0x14   : > { %3037 = vmatmul.msk.bf16.vlgmr.msra.gmra.mxu0 %vm362_vm0, %v335_v12  ;;  %3052 = vmatmul.msk.bf16.vlgmr.msra.gmra.mxu3 %vm362_vm0, %v350_v15  ;;  %v336_v25 = vpack.c.bf16 %v302_v22, %v301_v21  ;;  %v332_v27 = vld [vmem:[%s3445_s6 + $0x109] sm:$0xff]  ;;  %v313_v29 = vld [vmem:[%s3445_s6 + $0x71] sm:$0xff]  ;;  %v314_v30 = vld [vmem:[%s3445_s6 + $0x79] sm:$0xff] }
  0x15   : > { %v351_v28 = vpack.c.bf16 %v332_v27, %v331_v26  ;;  %v323_v31 = vld [vmem:[%s3445_s6 + $0xc1] sm:$0xff]  ;;  %v324_v32 = vld [vmem:[%s3445_s6 + $0xc9] sm:$0xff]  ;;  %v342_v35 = vpack.c.bf16 %v314_v30, %v313_v29  ;;  %v333_v38 = vld [vmem:[%s3445_s6 + $0x111] sm:$0xff]  ;;  %1807 = vmatpush.bf16.msra.mxu2 %v3253_v53  ;;  %2059 = vmatpush.bf16.msra.mxu3 %v3254_v54 }
  0x16   : > { %v303_v33 = vld [vmem:[%s3445_s6 + $0x21] sm:$0xff]  ;;  %v304_v34 = vld [vmem:[%s3445_s6 + $0x29] sm:$0xff]  ;;  %v347_v36 = vpack.c.bf16 %v324_v32, %v323_v31  ;;  %v334_v39 = vld [vmem:[%s3445_s6 + $0x119] sm:$0xff]  ;;  %1555 = vmatpush.bf16.msra.mxu1 %v3252_v55  ;;  %2311 = vmatpush.bf16.msra.mxu0 %v3255_v56 }
  0x17   : > { %v337_v37 = vpack.c.bf16 %v304_v34, %v303_v33  ;;  %v352_v40 = vpack.c.bf16 %v334_v39, %v333_v38  ;;  %v315_v41 = vld [vmem:[%s3445_s6 + $0x81] sm:$0xff]  ;;  %v316_v42 = vld [vmem:[%s3445_s6 + $0x89] sm:$0xff]  ;;  %v325_v43 = vld [vmem:[%s3445_s6 + $0xd1] sm:$0xff] }
  0x18   : > { %v326_v44 = vld [vmem:[%s3445_s6 + $0xd9] sm:$0xff]  ;;  %v305_v45 = vld [vmem:[%s3445_s6 + $0x31] sm:$0xff]  ;;  %v343_v47 = vpack.c.bf16 %v316_v42, %v315_v41  ;;  %v327_v59 = vld [vmem:[%s3445_s6 + $0xe1] sm:$0xff] }
  0x19   : > { %v306_v46 = vld [vmem:[%s3445_s6 + $0x39] sm:$0xff]  ;;  %v348_v48 = vpack.c.bf16 %v326_v44, %v325_v43  ;;  %v317_v57 = vld [vmem:[%s3445_s6 + $0x91] sm:$0xff]  ;;  %v328_v60 = vld [vmem:[%s3445_s6 + $0xe9] sm:$0xff] }
  0x1a   : > { %v338_v49 = vpack.c.bf16 %v306_v46, %v305_v45  ;;  %v927_v50 = vld [vmem:[%s3445_s6 + $0x12] sm:$0xff]  ;;  %v928_v51 = vld [vmem:[%s3445_s6 + $0x1a] sm:$0xff]  ;;  %v308_v62 = vld [vmem:[%s3445_s6 + $0x49] sm:$0xff]  ;;  %v349_v0 = vpack.c.bf16 %v328_v60, %v327_v59 }
  0x1b   : > { %v963_v52 = vpack.c.bf16 %v928_v51, %v927_v50  ;;  %v318_v58 = vld [vmem:[%s3445_s6 + $0x99] sm:$0xff]  ;;  %v307_v61 = vld [vmem:[%s3445_s6 + $0x41] sm:$0xff]  ;;  %v930_v3 = vld [vmem:[%s3445_s6 + $0x2a] sm:$0xff] }
  0x1c   : > { %v344_v63 = vpack.c.bf16 %v318_v58, %v317_v57  ;;  %v339_v1 = vpack.c.bf16 %v308_v62, %v307_v61  ;;  %v929_v2 = vld [vmem:[%s3445_s6 + $0x22] sm:$0xff]  ;;  %v676_v8 = vld [vmem:[%s3445_s6 + $0xa] sm:$0xff]  ;;  %v1179_v9 = vld [vmem:[%s3445_s6 + $0x13] sm:$0xff] }
  0x1d   : > { %v964_v4 = vpack.c.bf16 %v930_v3, %v929_v2  ;;  %v243_v5 = vld [vmem:[%s3445_s6] sm:$0xff]  ;;  %v244_v6 = vld [vmem:[%s3445_s6 + $0x8] sm:$0xff]  ;;  %v931_v14 = vld [vmem:[%s3445_s6 + $0x32] sm:$0xff] }
  0x1e   : > { %v675_v7 = vld [vmem:[%s3445_s6 + $0x2] sm:$0xff]  ;;  %v279_v11 = vpack.c.bf16 %v244_v6, %v243_v5  ;;  %v932_v15 = vld [vmem:[%s3445_s6 + $0x3a] sm:$0xff]  ;;  %v245_v17 = vld [vmem:[%s3445_s6 + $0x10] sm:$0xff] }
  0x1f   : > { %v1180_v10 = vld [vmem:[%s3445_s6 + $0x1b] sm:$0xff]  ;;  %v711_v12 = vpack.c.bf16 %v676_v8, %v675_v7  ;;  %v965_v16 = vpack.c.bf16 %v932_v15, %v931_v14  ;;  %v1181_v19 = vld [vmem:[%s3445_s6 + $0x23] sm:$0xff]  ;;  %v1182_v20 = vld [vmem:[%s3445_s6 + $0x2b] sm:$0xff] }
  0x20   : > { %v1215_v13 = vpack.c.bf16 %v1180_v10, %v1179_v9  ;;  %v246_v18 = vld [vmem:[%s3445_s6 + $0x18] sm:$0xff]  ;;  %v1216_v22 = vpack.c.bf16 %v1182_v20, %v1181_v19  ;;  %v247_v26 = vld [vmem:[%s3445_s6 + $0x20] sm:$0xff]  ;;  %v248_v27 = vld [vmem:[%s3445_s6 + $0x28] sm:$0xff] }
  0x21   : > { %v280_v21 = vpack.c.bf16 %v246_v18, %v245_v17  ;;  %v1184_v29 = vld [vmem:[%s3445_s6 + $0x3b] sm:$0xff]  ;;  %v281_v30 = vpack.c.bf16 %v248_v27, %v247_v26  ;;  %v935_v32 = vld [vmem:[%s3445_s6 + $0x52] sm:$0xff]  ;;  %v938_v43 = vld [vmem:[%s3445_s6 + $0x6a] sm:$0xff] }
  0x22   : > { %3043 = vmatmul.msk.bf16.gmra.mxu1 %vm362_vm0, %v341_v23  ;;  %v933_v23 = vld [vmem:[%s3445_s6 + $0x42] sm:$0xff]  ;;  %v936_v33 = vld [vmem:[%s3445_s6 + $0x5a] sm:$0xff]  ;;  %v1186_v38 = vld [vmem:[%s3445_s6 + $0x4b] sm:$0xff] }
  0x23   : > { %3048 = vmatmul.msk.bf16.gmra.mxu2 %vm362_vm0, %v346_v24  ;;  %v934_v24 = vld [vmem:[%s3445_s6 + $0x4a] sm:$0xff]  ;;  %v967_v34 = vpack.c.bf16 %v936_v33, %v935_v32  ;;  %v937_v42 = vld [vmem:[%s3445_s6 + $0x62] sm:$0xff]  ;;  %v939_v58 = vld [vmem:[%s3445_s6 + $0x72] sm:$0xff] }
  0x24   : > { %3038 = vmatmul.msk.bf16.gmra.mxu0 %vm362_vm0, %v336_v25  ;;  %3053 = vmatmul.msk.bf16.gmra.mxu3 %vm362_vm0, %v351_v28  ;;  %v966_v25 = vpack.c.bf16 %v934_v24, %v933_v23  ;;  %v1183_v28 = vld [vmem:[%s3445_s6 + $0x33] sm:$0xff]  ;;  %v3565_v45 = vpack.c.bf16 %v938_v43, %v937_v42  ;;  %v251_v50 = vld [vmem:[%s3445_s6 + $0x40] sm:$0xff]  ;;  %v252_v51 = vld [vmem:[%s3445_s6 + $0x48] sm:$0xff] }
  0x25   : > { %v1217_v31 = vpack.c.bf16 %v1184_v29, %v1183_v28  ;;  %v1188_v53 = vld [vmem:[%s3445_s6 + $0x5b] sm:$0xff]  ;;  %v283_v55 = vpack.c.bf16 %v252_v51, %v251_v50  ;;  %v253_v3 = vld [vmem:[%s3445_s6 + $0x50] sm:$0xff]  ;;  %v1189_v5 = vld [vmem:[%s3445_s6 + $0x63] sm:$0xff] }
  0x26   : > { %v940_v59 = vld [vmem:[%s3445_s6 + $0x7a] sm:$0xff]  ;;  %v1190_v6 = vld [vmem:[%s3445_s6 + $0x6b] sm:$0xff]  ;;  %v945_v51 = vld [vmem:[%s3445_s6 + $0xa2] sm:$0xff] }
  0x27   : > { %v3594_v62 = vpack.c.bf16 %v940_v59, %v939_v58  ;;  %v1220_v10 = vpack.c.bf16 %v1190_v6, %v1189_v5  ;;  %v255_v20 = vld [vmem:[%s3445_s6 + $0x60] sm:$0xff]  ;;  %v943_v28 = vld [vmem:[%s3445_s6 + $0x92] sm:$0xff]  ;;  %v260_v6 = vld [vmem:[%s3445_s6 + $0x88] sm:$0xff] }
  0x28   : > { %v1192_v23 = vld [vmem:[%s3445_s6 + $0x7b] sm:$0xff] }
  0x29   : > { %v944_v29 = vld [vmem:[%s3445_s6 + $0x9a] sm:$0xff] }
  0x2a   : > { %v3652_v32 = vpack.c.bf16 %v944_v29, %v943_v28  ;;  %v259_v5 = vld [vmem:[%s3445_s6 + $0x80] sm:$0xff] }
  0x32   : > { %3044 = vmatmul.msk.bf16.gmra.mxu1 %vm362_vm0, %v342_v35  ;;  %v249_v35 = vld [vmem:[%s3445_s6 + $0x30] sm:$0xff] }
  0x33   : > { %3049 = vmatmul.msk.bf16.gmra.mxu2 %vm362_vm0, %v347_v36  ;;  %v250_v36 = vld [vmem:[%s3445_s6 + $0x38] sm:$0xff] }
  0x34   : > { %3039 = vmatmul.msk.bf16.gmra.mxu0 %vm362_vm0, %v337_v37  ;;  %3054 = vmatmul.msk.bf16.gmra.mxu3 %vm362_vm0, %v352_v40  ;;  %v1185_v37 = vld [vmem:[%s3445_s6 + $0x43] sm:$0xff]  ;;  %v282_v39 = vpack.c.bf16 %v250_v36, %v249_v35 }
  0x35   : > { %v1218_v41 = vpack.c.bf16 %v1186_v38, %v1185_v37  ;;  %v257_v37 = vld [vmem:[%s3445_s6 + $0x70] sm:$0xff]  ;;  %v258_v38 = vld [vmem:[%s3445_s6 + $0x78] sm:$0xff] }
  0x36   : > { %v286_v43 = vpack.c.bf16 %v258_v38, %v257_v37 }
  0x42   : > { %3045 = vmatmul.msk.bf16.gmra.mxu1 %vm362_vm0, %v343_v47 }
  0x43   : > { %3050 = vmatmul.msk.bf16.gmra.mxu2 %vm362_vm0, %v348_v48 }
  0x44   : > { %3040 = vmatmul.msk.bf16.gmra.mxu0 %vm362_vm0, %v338_v49  ;;  %3107 = vmatmul.msk.bf16.vlgmr.msrb.gmra.mxu3 %vm362_vm0, %v963_v52 }
  0x52   : > { %3046 = vmatmul.msk.bf16.gmra.mxu1 %vm362_vm0, %v344_v63 }
  0x53   : > { %3051 = vmatmul.msk.bf16.gmra.mxu2 %vm362_vm0, %v349_v0 }
  0x54   : > { %3041 = vmatmul.msk.bf16.gmra.mxu0 %vm362_vm0, %v339_v1  ;;  %3108 = vmatmul.msk.bf16.gmra.mxu3 %vm362_vm0, %v964_v4 }
  0x62   : > { %3059 = vmatmul.msk.bf16.vlgmr.msrb.gmra.mxu1 %vm362_vm0, %v279_v11  ;;  %v941_v11 = vld [vmem:[%s3445_s6 + $0x82] sm:$0xff] }
  0x63   : > { %3083 = vmatmul.msk.bf16.vlgmr.msrb.gmra.mxu2 %vm362_vm0, %v711_v12  ;;  %v942_v12 = vld [vmem:[%s3445_s6 + $0x8a] sm:$0xff] }
  0x64   : > { %3131 = vmatmul.msk.bf16.vlgmr.msrb.gmra.mxu0 %vm362_vm0, %v1215_v13  ;;  %3109 = vmatmul.msk.bf16.gmra.mxu3 %vm362_vm0, %v965_v16  ;;  %v3623_v15 = vpack.c.bf16 %v942_v12, %v941_v11 }
  0x72   : > { %3060 = vmatmul.msk.bf16.gmra.mxu1 %vm362_vm0, %v280_v21  ;;  %v256_v21 = vld [vmem:[%s3445_s6 + $0x68] sm:$0xff] }
  0x73   : > { %3084 = vmatmul.msk.bf16.gmra.mxu2 %vm362_vm0, %v963_v52  ;;  %v1187_v52 = vld [vmem:[%s3445_s6 + $0x53] sm:$0xff] }
  0x74   : > { %3132 = vmatmul.msk.bf16.gmra.mxu0 %vm362_vm0, %v1216_v22  ;;  %3110 = vmatmul.msk.bf16.gmra.mxu3 %vm362_vm0, %v966_v25  ;;  %v1219_v57 = vpack.c.bf16 %v1188_v53, %v1187_v52  ;;  %v1191_v22 = vld [vmem:[%s3445_s6 + $0x73] sm:$0xff]  ;;  %v946_v52 = vld [vmem:[%s3445_s6 + $0xaa] sm:$0xff] }
  0x75   : > { %v1221_v27 = vpack.c.bf16 %v1192_v23, %v1191_v22  ;;  %v948_v22 = vld [vmem:[%s3445_s6 + $0xba] sm:$0xff] }
  0x82   : > { %3061 = vmatmul.msk.bf16.gmra.mxu1 %vm362_vm0, %v281_v30 }
  0x83   : > { %3085 = vmatmul.msk.bf16.gmra.mxu2 %vm362_vm0, %v964_v4  ;;  %v254_v4 = vld [vmem:[%s3445_s6 + $0x58] sm:$0xff] }
  0x84   : > { %3133 = vmatmul.msk.bf16.gmra.mxu0 %vm362_vm0, %v1217_v31  ;;  %3111 = vmatmul.msk.bf16.gmra.mxu3 %vm362_vm0, %v967_v34  ;;  %v284_v8 = vpack.c.bf16 %v254_v4, %v253_v3 }
  0x8f   : > { %v3558_v40 = vpop.f32.mrf.mxu1 }
  0x91   : > { %v3562_v44 = vpop.f32.mrf.mxu0 }
  0x92   : > { %3062 = vmatmul.msk.bf16.gmra.mxu1 %vm362_vm0, %v282_v39  ;;  %v1193_v39 = vld [vmem:[%s3445_s6 + $0x83] sm:$0xff] }
  0x93   : > { %3086 = vmatmul.msk.bf16.gmra.mxu2 %vm362_vm0, %v965_v16 }
  0x94   : > { %3134 = vmatmul.msk.bf16.gmra.mxu0 %vm362_vm0, %v1218_v41  ;;  %3112 = vmatmul.msk.bf16.gmra.mxu3 %vm362_vm0, %v3565_v45  ;;  %v1194_v41 = vld [vmem:[%s3445_s6 + $0x8b] sm:$0xff] }
  0x95   : > { %v1222_v50 = vpack.c.bf16 %v1194_v41, %v1193_v39 }
  0x96   : > { %v3569_v46 = vpop.f32.mrf.mxu2 }
  0x97   : > { %v3573_v47 = vpop.f32.mrf.mxu1  ;;  %v3577_v49 = vpop.f32.mrf.mxu3 }
  0x99   : > { %v3575_v48 = vpop.f32.mrf.mxu0 }
  0x9e   : > { %v3583_v54 = vpop.f32.mrf.mxu2 }
  0x9f   : > { %v3585_v56 = vpop.f32.mrf.mxu1  ;;  %v3591_v61 = vpop.f32.mrf.mxu3 }
  0xa1   : > { %v3589_v60 = vpop.f32.mrf.mxu0 }
  0xa2   : > { %3063 = vmatmul.msk.bf16.gmra.mxu1 %vm362_vm0, %v283_v55 }
  0xa3   : > { %3087 = vmatmul.msk.bf16.gmra.mxu2 %vm362_vm0, %v966_v25  ;;  %v285_v25 = vpack.c.bf16 %v256_v21, %v255_v20  ;;  %v947_v21 = vld [vmem:[%s3445_s6 + $0xb2] sm:$0xff] }
  0xa4   : > { %3135 = vmatmul.msk.bf16.gmra.mxu0 %vm362_vm0, %v1219_v57  ;;  %3113 = vmatmul.msk.bf16.gmra.mxu3 %vm362_vm0, %v3594_v62  ;;  %v3678_v57 = vpack.c.bf16 %v946_v52, %v945_v51  ;;  %v262_v51 = vld [vmem:[%s3445_s6 + $0x98] sm:$0xff] }
  0xa6   : > { %v3598_v63 = vpop.f32.mrf.mxu2 }
  0xa7   : > { %v3602_v0 = vpop.f32.mrf.mxu1  ;;  %v3606_v2 = vpop.f32.mrf.mxu3 }
  0xa9   : > { %v3604_v1 = vpop.f32.mrf.mxu0 }
  0xae   : > { %v3612_v7 = vpop.f32.mrf.mxu2 }
  0xaf   : > { %v3614_v9 = vpop.f32.mrf.mxu1  ;;  %v3620_v14 = vpop.f32.mrf.mxu3 }
  0xb1   : > { %v3618_v13 = vpop.f32.mrf.mxu0 }
  0xb2   : > { %3064 = vmatmul.msk.bf16.gmra.mxu1 %vm362_vm0, %v284_v8  ;;  %v1195_v8 = vld [vmem:[%s3445_s6 + $0x93] sm:$0xff] }
  0xb3   : > { %3088 = vmatmul.msk.bf16.gmra.mxu2 %vm362_vm0, %v967_v34 }
  0xb4   : > { %3136 = vmatmul.msk.bf16.gmra.mxu0 %vm362_vm0, %v1220_v10  ;;  %3114 = vmatmul.msk.bf16.gmra.mxu3 %vm362_vm0, %v3623_v15  ;;  %v1196_v10 = vld [vmem:[%s3445_s6 + $0x9b] sm:$0xff] }
  0xb5   : > { %v1223_v20 = vpack.c.bf16 %v1196_v10, %v1195_v8 }
  0xb6   : > { %v3627_v16 = vpop.f32.mrf.mxu2 }
  0xb7   : > { %v3631_v17 = vpop.f32.mrf.mxu1  ;;  %v3635_v19 = vpop.f32.mrf.mxu3 }
  0xb9   : > { %v3633_v18 = vpop.f32.mrf.mxu0 }
  0xbe   : > { %v3641_v24 = vpop.f32.mrf.mxu2 }
  0xbf   : > { %v3643_v26 = vpop.f32.mrf.mxu1  ;;  %v3649_v31 = vpop.f32.mrf.mxu3 }
  0xc1   : > { %v3647_v30 = vpop.f32.mrf.mxu0 }
  0xc2   : > { %3065 = vmatmul.msk.bf16.gmra.mxu1 %vm362_vm0, %v285_v25 }
  0xc3   : > { %3089 = vmatmul.msk.bf16.gmra.mxu2 %vm362_vm0, %v3565_v45 }
  0xc4   : > { %3137 = vmatmul.msk.bf16.gmra.mxu0 %vm362_vm0, %v1221_v27  ;;  %3115 = vmatmul.msk.bf16.gmra.mxu3 %vm362_vm0, %v3652_v32  ;;  %v3700_v27 = vpack.c.bf16 %v948_v22, %v947_v21  ;;  %v950_v21 = vld [vmem:[%s3445_s6 + $0xca] sm:$0xff] }
  0xc6   : > { %v3657_v33 = vpop.f32.mrf.mxu2 }
  0xc7   : > { %v3661_v34 = vpop.f32.mrf.mxu1  ;;  %v1053_v36 = vpop.f32.mrf.mxu3 }
  0xc9   : > { %v3663_v35 = vpop.f32.mrf.mxu0 }
  0xce   : > { %v3669_v42 = vpop.f32.mrf.mxu2 }
  0xcf   : > { %v3671_v45 = vpop.f32.mrf.mxu1  ;;  %v1055_v55 = vpop.f32.mrf.mxu3 }
  0xd1   : > { %v3675_v53 = vpop.f32.mrf.mxu0 }
  0xd2   : > { %3066 = vmatmul.msk.bf16.gmra.mxu1 %vm362_vm0, %v286_v43 }
  0xd3   : > { %3090 = vmatmul.msk.bf16.gmra.mxu2 %vm362_vm0, %v3594_v62  ;;  %v287_v62 = vpack.c.bf16 %v260_v6, %v259_v5  ;;  %v1198_v5 = vld [vmem:[%s3445_s6 + $0xab] sm:$0xff] }
  0xd4   : > { %3138 = vmatmul.msk.bf16.gmra.mxu0 %vm362_vm0, %v1222_v50  ;;  %3116 = vmatmul.msk.bf16.gmra.mxu3 %vm362_vm0, %v3678_v57  ;;  %v261_v50 = vld [vmem:[%s3445_s6 + $0x90] sm:$0xff] }
  0xd5   : > { %v288_v8 = vpack.c.bf16 %v262_v51, %v261_v50 }
  0xd6   : > { %v3683_v58 = vpop.f32.mrf.mxu2 }
  0xd7   : > { %v3687_v59 = vpop.f32.mrf.mxu1  ;;  %v1058_v4 = vpop.f32.mrf.mxu3 }
  0xd9   : > { %v3689_v3 = vpop.f32.mrf.mxu0 }
  0xde   : > { %v3695_v11 = vpop.f32.mrf.mxu2 }
  0xdf   : > { %v585_v12 = vpop.f32.mrf.mxu1  ;;  %v1060_v25 = vpop.f32.mrf.mxu3 }
  0xe0   : > { %v586_v28 = vadd.f32 %v585_v12, %v3562_v44 }
  0xe1   : > { %v1305_v23 = vpop.f32.mrf.mxu0 }
  0xe2   : > { %3067 = vmatmul.msk.bf16.gmra.mxu1 %vm362_vm0, %v287_v62 }
  0xe3   : > { %3091 = vmatmul.msk.bf16.gmra.mxu2 %vm362_vm0, %v3623_v15  ;;  %v1197_v15 = vld [vmem:[%s3445_s6 + $0xa3] sm:$0xff] }
  0xe4   : > { %3139 = vmatmul.msk.bf16.gmra.mxu0 %vm362_vm0, %v1223_v20  ;;  %3117 = vmatmul.msk.bf16.gmra.mxu3 %vm362_vm0, %v3700_v27  ;;  %v1224_v12 = vpack.c.bf16 %v1198_v5, %v1197_v15  ;;  %v949_v20 = vld [vmem:[%s3445_s6 + $0xc2] sm:$0xff] }
  0xe5   : > { %v263_v15 = vld [vmem:[%s3445_s6 + $0xa0] sm:$0xff]  ;;  %v264_v5 = vld [vmem:[%s3445_s6 + $0xa8] sm:$0xff] }
  0xe6   : > { %v801_v29 = vpop.f32.mrf.mxu2 }
  0xe7   : > { %v891_v37 = vadd.f32 %v801_v29, %v586_v28  ;;  %v587_v38 = vpop.f32.mrf.mxu1  ;;  %v1063_v43 = vpop.f32.mrf.mxu3 }
  0xe8   : > { %v588_v6 = vadd.f32 %v587_v38, %v3575_v48 }
  0xe9   : > { %v1307_v39 = vpop.f32.mrf.mxu0  ;;  %v1143_v41 = vadd.f32 %v1053_v36, %v891_v37 }
  0xeb   : > { %v3710_v52 = vadd.f32 %v1305_v23, %v1143_v41  ;;  %v3718_v23 = vpack.c.bf16 %v950_v21, %v949_v20  ;;  %v951_v20 = vld [vmem:[%s3445_s6 + $0xd2] sm:$0xff]  ;;  %v952_v21 = vld [vmem:[%s3445_s6 + $0xda] sm:$0xff] }
  0xee   : > { %v803_v44 = vpop.f32.mrf.mxu2 }
  0xef   : > { %v892_v10 = vadd.f32 %v803_v44, %v588_v6  ;;  %v590_v62 = vpop.f32.mrf.mxu1  ;;  %v1065_v36 = vpop.f32.mrf.mxu3  ;;  %v1199_v6 = vld [vmem:[%s3445_s6 + $0xb3] sm:$0xff] }
  0xf0   : > { %v591_v29 = vadd.f32 %v590_v62, %v3589_v60 }
  0xf1   : > { %v1310_v22 = vpop.f32.mrf.mxu0  ;;  %v1144_v28 = vadd.f32 %v1055_v55, %v892_v10 }
  0xf2   : > { %3068 = vmatmul.msk.bf16.gmra.mxu1 %vm362_vm0, %v288_v8  ;;  %v289_v8 = vpack.c.bf16 %v264_v5, %v263_v15 }
  0xf3   : > { %3092 = vmatmul.msk.bf16.gmra.mxu2 %vm362_vm0, %v3652_v32  ;;  %v3723_v48 = vadd.f32 %v1307_v39, %v1144_v28  ;;  %v1200_v39 = vld [vmem:[%s3445_s6 + $0xbb] sm:$0xff] }
  0xf4   : > { %3140 = vmatmul.msk.bf16.gmra.mxu0 %vm362_vm0, %v1224_v12  ;;  %3118 = vmatmul.msk.bf16.gmra.mxu3 %vm362_vm0, %v3718_v23  ;;  %v1225_v12 = vpack.c.bf16 %v1200_v39, %v1199_v6  ;;  %v265_v6 = vld [vmem:[%s3445_s6 + $0xb0] sm:$0xff]  ;;  %v266_v39 = vld [vmem:[%s3445_s6 + $0xb8] sm:$0xff] }
  0xf6   : > { %v806_v37 = vpop.f32.mrf.mxu2 }
  0xf7   : > { %v893_v55 = vadd.f32 %v806_v37, %v591_v29  ;;  %v592_v38 = vpop.f32.mrf.mxu1  ;;  %v1068_v51 = vpop.f32.mrf.mxu3 }
  0xf8   : > { %v593_v44 = vadd.f32 %v592_v38, %v3604_v1 }
  0xf9   : > { %v1312_v41 = vpop.f32.mrf.mxu0  ;;  %v1145_v50 = vadd.f32 %v1058_v4, %v893_v55 }
  0xfb   : > { %v3730_v32 = vadd.f32 %v1310_v22, %v1145_v50  ;;  %v3738_v22 = vpack.c.bf16 %v952_v21, %v951_v20  ;;  %v953_v20 = vld [vmem:[%s3445_s6 + $0xe2] sm:$0xff]  ;;  %v954_v21 = vld [vmem:[%s3445_s6 + $0xea] sm:$0xff] }
  0xfe   : > { %v808_v60 = vpop.f32.mrf.mxu2 }
  0xff   : > { %v894_v10 = vadd.f32 %v808_v60, %v593_v44  ;;  %v595_v62 = vpop.f32.mrf.mxu1  ;;  %v1070_v4 = vpop.f32.mrf.mxu3  ;;  %v1201_v44 = vld [vmem:[%s3445_s6 + $0xc3] sm:$0xff] }
 0x100   : > { %v596_v37 = vadd.f32 %v595_v62, %v3618_v13 }
 0x101   : > { %v1315_v28 = vpop.f32.mrf.mxu0  ;;  %v1146_v29 = vadd.f32 %v1060_v25, %v894_v10 }
 0x102   : > { %3069 = vmatmul.msk.bf16.gmra.mxu1 %vm362_vm0, %v289_v8  ;;  %v290_v8 = vpack.c.bf16 %v266_v39, %v265_v6 }
 0x103   : > { %3093 = vmatmul.msk.bf16.gmra.mxu2 %vm362_vm0, %v3678_v57  ;;  %v3743_v1 = vadd.f32 %v1312_v41, %v1146_v29  ;;  %v1202_v41 = vld [vmem:[%s3445_s6 + $0xcb] sm:$0xff] }
 0x104   : > { %3141 = vmatmul.msk.bf16.gmra.mxu0 %vm362_vm0, %v1225_v12  ;;  %3119 = vmatmul.msk.bf16.gmra.mxu3 %vm362_vm0, %v3738_v22  ;;  %v1226_v12 = vpack.c.bf16 %v1202_v41, %v1201_v44  ;;  %v267_v44 = vld [vmem:[%s3445_s6 + $0xc0] sm:$0xff]  ;;  %v268_v41 = vld [vmem:[%s3445_s6 + $0xc8] sm:$0xff] }
 0x106   : > { %v811_v55 = vpop.f32.mrf.mxu2 }
 0x107   : > { %v895_v25 = vadd.f32 %v811_v55, %v596_v37  ;;  %v597_v38 = vpop.f32.mrf.mxu1  ;;  %v1073_v5 = vpop.f32.mrf.mxu3 }
 0x108   : > { %v598_v60 = vadd.f32 %v597_v38, %v3633_v18 }
 0x109   : > { %v1317_v50 = vpop.f32.mrf.mxu0  ;;  %v1147_v15 = vadd.f32 %v1063_v43, %v895_v25 }
 0x10b   : > { %v3750_v57 = vadd.f32 %v1315_v28, %v1147_v15  ;;  %v3758_v28 = vpack.c.bf16 %v954_v21, %v953_v20  ;;  %v955_v20 = vld [vmem:[%s3445_s6 + $0xf2] sm:$0xff]  ;;  %v956_v21 = vld [vmem:[%s3445_s6 + $0xfa] sm:$0xff] }
 0x10e   : > { %v813_v13 = vpop.f32.mrf.mxu2 }
 0x10f   : > { %v896_v10 = vadd.f32 %v813_v13, %v598_v60  ;;  %v600_v62 = vpop.f32.mrf.mxu1  ;;  %v1075_v43 = vpop.f32.mrf.mxu3  ;;  %v1203_v60 = vld [vmem:[%s3445_s6 + $0xd3] sm:$0xff] }
 0x110   : > { %v601_v55 = vadd.f32 %v600_v62, %v3647_v30 }
 0x111   : > { %v1320_v29 = vpop.f32.mrf.mxu0  ;;  %v1148_v37 = vadd.f32 %v1065_v36, %v896_v10 }
 0x112   : > { %3070 = vmatmul.msk.bf16.gmra.mxu1 %vm362_vm0, %v290_v8  ;;  %v291_v8 = vpack.c.bf16 %v268_v41, %v267_v44 }
 0x113   : > { %3094 = vmatmul.msk.bf16.gmra.mxu2 %vm362_vm0, %v3700_v27  ;;  %v3763_v18 = vadd.f32 %v1317_v50, %v1148_v37  ;;  %v1204_v50 = vld [vmem:[%s3445_s6 + $0xdb] sm:$0xff] }
 0x114   : > { %3142 = vmatmul.msk.bf16.gmra.mxu0 %vm362_vm0, %v1226_v12  ;;  %3120 = vmatmul.msk.bf16.gmra.mxu3 %vm362_vm0, %v3758_v28  ;;  %v1227_v12 = vpack.c.bf16 %v1204_v50, %v1203_v60  ;;  %v269_v60 = vld [vmem:[%s3445_s6 + $0xd0] sm:$0xff]  ;;  %v270_v50 = vld [vmem:[%s3445_s6 + $0xd8] sm:$0xff] }
 0x116   : > { %v816_v25 = vpop.f32.mrf.mxu2 }
 0x117   : > { %v897_v36 = vadd.f32 %v816_v25, %v601_v55  ;;  %v602_v38 = vpop.f32.mrf.mxu1  ;;  %v1078_v39 = vpop.f32.mrf.mxu3 }
 0x118   : > { %v603_v13 = vadd.f32 %v602_v38, %v3663_v35 }
 0x119   : > { %v1322_v15 = vpop.f32.mrf.mxu0  ;;  %v1149_v6 = vadd.f32 %v1068_v51, %v897_v36 }
 0x11b   : > { %v3770_v27 = vadd.f32 %v1320_v29, %v1149_v6  ;;  %v3778_v29 = vpack.c.bf16 %v956_v21, %v955_v20  ;;  %v957_v20 = vld [vmem:[%s3445_s6 + $0x102] sm:$0xff]  ;;  %v958_v21 = vld [vmem:[%s3445_s6 + $0x10a] sm:$0xff] }
 0x11e   : > { %v818_v30 = vpop.f32.mrf.mxu2 }
 0x11f   : > { %v898_v10 = vadd.f32 %v818_v30, %v603_v13  ;;  %v605_v62 = vpop.f32.mrf.mxu1  ;;  %v1080_v51 = vpop.f32.mrf.mxu3  ;;  %v1205_v13 = vld [vmem:[%s3445_s6 + $0xe3] sm:$0xff] }
 0x120   : > { %v606_v25 = vadd.f32 %v605_v62, %v3675_v53 }
 0x121   : > { %v1325_v37 = vpop.f32.mrf.mxu0  ;;  %v1150_v55 = vadd.f32 %v1070_v4, %v898_v10 }
 0x122   : > { %3071 = vmatmul.msk.bf16.gmra.mxu1 %vm362_vm0, %v291_v8  ;;  %v292_v8 = vpack.c.bf16 %v270_v50, %v269_v60 }
 0x123   : > { %3095 = vmatmul.msk.bf16.gmra.mxu2 %vm362_vm0, %v3718_v23  ;;  %v3783_v35 = vadd.f32 %v1322_v15, %v1150_v55  ;;  %v1206_v15 = vld [vmem:[%s3445_s6 + $0xeb] sm:$0xff] }
 0x124   : > { %3143 = vmatmul.msk.bf16.gmra.mxu0 %vm362_vm0, %v1227_v12  ;;  %3121 = vmatmul.msk.bf16.gmra.mxu3 %vm362_vm0, %v3778_v29  ;;  %v1228_v12 = vpack.c.bf16 %v1206_v15, %v1205_v13  ;;  %v271_v13 = vld [vmem:[%s3445_s6 + $0xe0] sm:$0xff]  ;;  %v272_v15 = vld [vmem:[%s3445_s6 + $0xe8] sm:$0xff] }
 0x126   : > { %v821_v36 = vpop.f32.mrf.mxu2 }
 0x127   : > { %v899_v4 = vadd.f32 %v821_v36, %v606_v25  ;;  %v607_v38 = vpop.f32.mrf.mxu1  ;;  %v1083_v41 = vpop.f32.mrf.mxu3 }
 0x128   : > { %v608_v30 = vadd.f32 %v607_v38, %v3689_v3 }
 0x129   : > { %v1327_v6 = vpop.f32.mrf.mxu0  ;;  %v1151_v44 = vadd.f32 %v1073_v5, %v899_v4 }
 0x12b   : > { %v3790_v23 = vadd.f32 %v1325_v37, %v1151_v44  ;;  %v3798_v37 = vpack.c.bf16 %v958_v21, %v957_v20  ;;  %v959_v20 = vld [vmem:[%s3445_s6 + $0x112] sm:$0xff]  ;;  %v960_v21 = vld [vmem:[%s3445_s6 + $0x11a] sm:$0xff] }
 0x12e   : > { %v823_v53 = vpop.f32.mrf.mxu2 }
 0x12f   : > { %v900_v10 = vadd.f32 %v823_v53, %v608_v30  ;;  %v610_v62 = vpop.f32.mrf.mxu1  ;;  %v1085_v5 = vpop.f32.mrf.mxu3  ;;  %v1207_v30 = vld [vmem:[%s3445_s6 + $0xf3] sm:$0xff] }
 0x130   : > { %v611_v36 = vadd.f32 %v610_v62, %v3558_v40 }
 0x131   : > { %v1330_v55 = vpop.f32.mrf.mxu0  ;;  %v1152_v25 = vadd.f32 %v1075_v43, %v900_v10 }
 0x132   : > { %3072 = vmatmul.msk.bf16.gmra.mxu1 %vm362_vm0, %v292_v8  ;;  %v293_v8 = vpack.c.bf16 %v272_v15, %v271_v13 }
 0x133   : > { %3096 = vmatmul.msk.bf16.gmra.mxu2 %vm362_vm0, %v3738_v22  ;;  %v3803_v3 = vadd.f32 %v1327_v6, %v1152_v25  ;;  %v1208_v6 = vld [vmem:[%s3445_s6 + $0xfb] sm:$0xff] }
 0x134   : > { %3144 = vmatmul.msk.bf16.gmra.mxu0 %vm362_vm0, %v1228_v12  ;;  %3122 = vmatmul.msk.bf16.gmra.mxu3 %vm362_vm0, %v3798_v37  ;;  %v1229_v12 = vpack.c.bf16 %v1208_v6, %v1207_v30  ;;  %v273_v30 = vld [vmem:[%s3445_s6 + $0xf0] sm:$0xff]  ;;  %v274_v6 = vld [vmem:[%s3445_s6 + $0xf8] sm:$0xff] }
 0x136   : > { %v826_v4 = vpop.f32.mrf.mxu2 }
 0x137   : > { %v901_v43 = vadd.f32 %v826_v4, %v611_v36  ;;  %v612_v38 = vpop.f32.mrf.mxu1  ;;  %v1088_v50 = vpop.f32.mrf.mxu3 }
 0x138   : > { %v613_v53 = vadd.f32 %v612_v38, %v3573_v47 }
 0x139   : > { %v1332_v44 = vpop.f32.mrf.mxu0  ;;  %v1153_v60 = vadd.f32 %v1078_v39, %v901_v43 }
 0x13b   : > { %v3810_v22 = vadd.f32 %v1330_v55, %v1153_v60  ;;  %v3818_v55 = vpack.c.bf16 %v960_v21, %v959_v20  ;;  %v961_v20 = vld [vmem:[%s3445_s6 + $0x122] sm:$0xff]  ;;  %v962_v21 = vld [vmem:[%s3445_s6 + $0x12a] sm:$0xff] }
 0x13e   : > { %v828_v40 = vpop.f32.mrf.mxu2 }
 0x13f   : > { %v902_v10 = vadd.f32 %v828_v40, %v613_v53  ;;  %v615_v62 = vpop.f32.mrf.mxu1  ;;  %v1090_v39 = vpop.f32.mrf.mxu3  ;;  %v1209_v53 = vld [vmem:[%s3445_s6 + $0x103] sm:$0xff] }
 0x140   : > { %v616_v4 = vadd.f32 %v615_v62, %v3585_v56 }
 0x141   : > { %v1335_v25 = vpop.f32.mrf.mxu0  ;;  %v1154_v36 = vadd.f32 %v1080_v51, %v902_v10 }
 0x142   : > { %3073 = vmatmul.msk.bf16.gmra.mxu1 %vm362_vm0, %v293_v8  ;;  %v294_v8 = vpack.c.bf16 %v274_v6, %v273_v30 }
 0x143   : > { %3097 = vmatmul.msk.bf16.gmra.mxu2 %vm362_vm0, %v3758_v28  ;;  %v3823_v47 = vadd.f32 %v1332_v44, %v1154_v36  ;;  %v1210_v44 = vld [vmem:[%s3445_s6 + $0x10b] sm:$0xff] }
 0x144   : > { %3145 = vmatmul.msk.bf16.gmra.mxu0 %vm362_vm0, %v1229_v12  ;;  %3123 = vmatmul.msk.bf16.gmra.mxu3 %vm362_vm0, %v3818_v55  ;;  %v1230_v12 = vpack.c.bf16 %v1210_v44, %v1209_v53  ;;  %v275_v53 = vld [vmem:[%s3445_s6 + $0x100] sm:$0xff]  ;;  %v276_v44 = vld [vmem:[%s3445_s6 + $0x108] sm:$0xff] }
 0x146   : > { %v831_v43 = vpop.f32.mrf.mxu2 }
 0x147   : > { %v903_v51 = vadd.f32 %v831_v43, %v616_v4  ;;  %v617_v38 = vpop.f32.mrf.mxu1  ;;  %v1093_v15 = vpop.f32.mrf.mxu3 }
 0x148   : > { %v618_v40 = vadd.f32 %v617_v38, %v3602_v0 }
 0x149   : > { %v1337_v60 = vpop.f32.mrf.mxu0  ;;  %v1155_v13 = vadd.f32 %v1083_v41, %v903_v51 }
 0x14b   : > { %v3830_v28 = vadd.f32 %v1335_v25, %v1155_v13  ;;  %v980_v25 = vpack.c.bf16 %v962_v21, %v961_v20  ;;  %v1935_v20 = vld [vmem:[%s3445_s6 + $0x25] sm:$0xff]  ;;  %v1936_v21 = vld [vmem:[%s3445_s6 + $0x2d] sm:$0xff] }
 0x14e   : > { %v833_v56 = vpop.f32.mrf.mxu2 }
 0x14f   : > { %v904_v10 = vadd.f32 %v833_v56, %v618_v40  ;;  %v620_v62 = vpop.f32.mrf.mxu1  ;;  %v1095_v41 = vpop.f32.mrf.mxu3  ;;  %v1212_v56 = vld [vmem:[%s3445_s6 + $0x11b] sm:$0xff] }
 0x150   : > { %v621_v43 = vadd.f32 %v620_v62, %v3614_v9  ;;  %v295_v9 = vpack.c.bf16 %v276_v44, %v275_v53  ;;  %v277_v44 = vld [vmem:[%s3445_s6 + $0x110] sm:$0xff] }
 0x151   : > { %v1340_v36 = vpop.f32.mrf.mxu0  ;;  %v1156_v4 = vadd.f32 %v1085_v5, %v904_v10 }
 0x152   : > { %3074 = vmatmul.msk.bf16.gmra.mxu1 %vm362_vm0, %v294_v8 }
 0x153   : > { %3098 = vmatmul.msk.bf16.gmra.mxu2 %vm362_vm0, %v3778_v29  ;;  %v3841_v0 = vadd.f32 %v1337_v60, %v1156_v4  ;;  %v1211_v29 = vld [vmem:[%s3445_s6 + $0x113] sm:$0xff] }
 0x154   : > { %3146 = vmatmul.msk.bf16.gmra.mxu0 %vm362_vm0, %v1230_v12  ;;  %3124 = vmatmul.msk.bf16.gmra.mxu3 %vm362_vm0, %v980_v25  ;;  %v1231_v12 = vpack.c.bf16 %v1212_v56, %v1211_v29  ;;  %v278_v29 = vld [vmem:[%s3445_s6 + $0x118] sm:$0xff]  ;;  %v1213_v56 = vld [vmem:[%s3445_s6 + $0x123] sm:$0xff] }
 0x156   : > { %v836_v51 = vpop.f32.mrf.mxu2 }
 0x157   : > { %v905_v5 = vadd.f32 %v836_v51, %v621_v43  ;;  %v622_v38 = vpop.f32.mrf.mxu1  ;;  %v1098_v6 = vpop.f32.mrf.mxu3 }
 0x158   : > { %v623_v60 = vadd.f32 %v622_v38, %v3631_v17 }
 0x159   : > { %v1342_v13 = vpop.f32.mrf.mxu0  ;;  %v1157_v30 = vadd.f32 %v1088_v50, %v905_v5 }
 0x15b   : > { %v3847_v40 = vadd.f32 %v1340_v36, %v1157_v30  ;;  %v1971_v36 = vpack.c.bf16 %v1936_v21, %v1935_v20  ;;  %v1938_v20 = vld [vmem:[%s3445_s6 + $0x3d] sm:$0xff] }
 0x15e   : > { %v838_v8 = vpop.f32.mrf.mxu2 }
 0x15f   : > { %v906_v10 = vadd.f32 %v838_v8, %v623_v60  ;;  %v625_v62 = vpop.f32.mrf.mxu1  ;;  %v3854_v50 = vpop.f32.mrf.mxu3  ;;  %v296_v8 = vpack.c.bf16 %v278_v29, %v277_v44  ;;  %v1432_v44 = vld [vmem:[%s3445_s6 + $0x1c] sm:$0xff]  ;;  %v1683_v29 = vld [vmem:[%s3445_s6 + $0x24] sm:$0xff] }
 0x160   : > { %v626_v43 = vadd.f32 %v625_v62, %v3643_v26 }
 0x161   : > { %v1345_v4 = vpop.f32.mrf.mxu0  ;;  %v1158_v25 = vadd.f32 %v1090_v39, %v906_v10 }
 0x162   : > { %3075 = vmatmul.msk.bf16.gmra.mxu1 %vm362_vm0, %v295_v9 }
 0x163   : > { %3099 = vmatmul.msk.bf16.gmra.mxu2 %vm362_vm0, %v3798_v37  ;;  %v3860_v17 = vadd.f32 %v1342_v13, %v1158_v25  ;;  %v1214_v13 = vld [vmem:[%s3445_s6 + $0x12b] sm:$0xff] }
 0x164   : > { %3147 = vmatmul.msk.bf16.gmra.mxu0 %vm362_vm0, %v1231_v12  ;;  %3203 = vmatmul.msk.bf16.vlgmr.msra.gmra.mxu3 %vm362_vm0, %v1971_v36  ;;  %v1232_v62 = vpack.c.bf16 %v1214_v13, %v1213_v56  ;;  %v1937_v12 = vld [vmem:[%s3445_s6 + $0x35] sm:$0xff]  ;;  %v1684_v13 = vld [vmem:[%s3445_s6 + $0x2c] sm:$0xff] }
 0x165   : > { %v1972_v36 = vpack.c.bf16 %v1938_v20, %v1937_v12  ;;  %v1719_v12 = vpack.c.bf16 %v1684_v13, %v1683_v29  ;;  %v1685_v13 = vld [vmem:[%s3445_s6 + $0x34] sm:$0xff] }
 0x166   : > { %v841_v51 = vpop.f32.mrf.mxu2 }
 0x167   : > { %v907_v39 = vadd.f32 %v841_v51, %v626_v43  ;;  %v627_v5 = vpop.f32.mrf.mxu1  ;;  %v3864_v53 = vpop.f32.mrf.mxu3 }
 0x168   : > { %v628_v60 = vadd.f32 %v627_v5, %v3661_v34 }
 0x169   : > { %v1347_v38 = vpop.f32.mrf.mxu0  ;;  %v1159_v30 = vadd.f32 %v1093_v15, %v907_v39 }
 0x16b   : > { %v3868_v37 = vadd.f32 %v1345_v4, %v1159_v30 }
 0x16e   : > { %v843_v26 = vpop.f32.mrf.mxu2 }
 0x16f   : > { %v908_v9 = vadd.f32 %v843_v26, %v628_v60  ;;  %v630_v10 = vpop.f32.mrf.mxu1  ;;  %v3875_v15 = vpop.f32.mrf.mxu3  ;;  %v2188_v60 = vld [vmem:[%s3445_s6 + $0x2e] sm:$0xff] }
 0x170   : > { %v631_v4 = vadd.f32 %v630_v10, %v3671_v45  ;;  %v1431_v45 = vld [vmem:[%s3445_s6 + $0x14] sm:$0xff] }
 0x171   : > { %v1350_v21 = vpop.f32.mrf.mxu0  ;;  %v1160_v25 = vadd.f32 %v1095_v41, %v908_v9  ;;  %v1467_v9 = vpack.c.bf16 %v1432_v44, %v1431_v45 }
 0x172   : > { %3076 = vmatmul.msk.bf16.gmra.mxu1 %vm362_vm0, %v296_v8 }
 0x173   : > { %3100 = vmatmul.msk.bf16.gmra.mxu2 %vm362_vm0, %v3818_v55  ;;  %v3881_v34 = vadd.f32 %v1347_v38, %v1160_v25  ;;  %v2475_v55 = vld [vmem:[%s4409_s2] sm:$0xff]  ;;  %v3388_v38 = vmov 0  }
 0x174   : > { %3148 = vmatmul.msk.bf16.gmra.mxu0 %vm362_vm0, %v1232_v62  ;;  %3204 = vmatmul.msk.bf16.gmra.mxu3 %vm362_vm0, %v1972_v36  ;;  %v1939_v25 = vld [vmem:[%s3445_s6 + $0x45] sm:$0xff]  ;;  %v1940_v36 = vld [vmem:[%s3445_s6 + $0x4d] sm:$0xff] }
 0x175   : > { %3377 = vset.pattern.permute.xlu0 %v3388_v38  ;;  %3378 = vset.pattern.permute.xlu1 %v3388_v38 }
 0x176   : > { %v846_v43 = vpop.f32.mrf.mxu2  ;;  %2513 = vperm.xlu0 %3377, %v2475_v55   ;;  %3379 = vset.pattern.permute.xlu2 %v3388_v38 }
 0x177   : > { %v909_v41 = vadd.f32 %v846_v43, %v631_v4  ;;  %v632_v51 = vpop.f32.mrf.mxu1  ;;  %v3885_v30 = vpop.f32.mrf.mxu3 }
 0x178   : > { %v633_v26 = vadd.f32 %v632_v51, %v3687_v59  ;;  %v2476_v59 = vld [vmem:[%s4409_s2 + $0x8] sm:$0xff] }
 0x179   : > { %v1352_v39 = vpop.f32.mrf.mxu0  ;;  %v1161_v5 = vadd.f32 %v1098_v6, %v909_v41  ;;  %v2187_v6 = vld [vmem:[%s3445_s6 + $0x26] sm:$0xff] }
 0x17a   : > { %v2223_v20 = vpack.c.bf16 %v2188_v60, %v2187_v6  ;;  %v2189_v60 = vld [vmem:[%s3445_s6 + $0x36] sm:$0xff] }
 0x17b   : > { %v3893_v56 = vadd.f32 %v1350_v21, %v1161_v5  ;;  %v1973_v21 = vpack.c.bf16 %v1940_v36, %v1939_v25  ;;  %v1941_v25 = vld [vmem:[%s3445_s6 + $0x55] sm:$0xff]  ;;  %v1942_v36 = vld [vmem:[%s3445_s6 + $0x5d] sm:$0xff] }
 0x17e   : > { %v848_v8 = vpop.f32.mrf.mxu2  ;;  %2518 = vperm.xlu0 %3377, %v2476_v59  }
 0x17f   : > { %v910_v10 = vadd.f32 %v848_v8, %v633_v26  ;;  %v635_v62 = vpop.f32.mrf.mxu1  ;;  %v3902_v41 = vpop.f32.mrf.mxu3  ;;  %v2190_v26 = vld [vmem:[%s3445_s6 + $0x3e] sm:$0xff] }
 0x181   : > { %v1355_v4 = vpop.f32.mrf.mxu0  ;;  %v1162_v43 = vadd.f32 %v3854_v50, %v910_v10  ;;  %v636_v50 = vadd.f32 %v635_v62, %v3569_v46  ;;  %v1686_v46 = vld [vmem:[%s3445_s6 + $0x3c] sm:$0xff] }
 0x182   : > { %3155 = vmatmul.msk.bf16.vlgmr.msra.gmra.mxu1 %vm362_vm0, %v1467_v9 }
 0x183   : > { %3179 = vmatmul.msk.bf16.vlgmr.msra.gmra.mxu2 %vm362_vm0, %v1719_v12  ;;  %v3910_v51 = vadd.f32 %v1352_v39, %v1162_v43  ;;  %v2477_v39 = vld [vmem:[%s4409_s2 + $0x10] sm:$0xff] }
 0x184   : > { %3227 = vmatmul.msk.bf16.vlgmr.msra.gmra.mxu0 %vm362_vm0, %v2223_v20  ;;  %3205 = vmatmul.msk.bf16.gmra.mxu3 %vm362_vm0, %v1973_v21  ;;  %v1720_v20 = vpack.c.bf16 %v1686_v46, %v1685_v13  ;;  %v1687_v13 = vld [vmem:[%s3445_s6 + $0x44] sm:$0xff] }
 0x185   : > { %2523 = vperm.xlu1 %3378, %v2477_v39  }
 0x186   : > { %v851_v5 = vpop.f32.mrf.mxu2 }
 0x187   : > { %v911_v55 = vadd.f32 %v851_v5, %v636_v50  ;;  %v637_v38 = vpop.f32.mrf.mxu1  ;;  %v1113_v29 = vpop.f32.mrf.mxu3 }
 0x188   : > { %v638_v8 = vadd.f32 %v637_v38, %v3583_v54  ;;  %v2478_v54 = vld [vmem:[%s4409_s2 + $0x18] sm:$0xff] }
 0x189   : > { %v1357_v45 = vpop.f32.mrf.mxu0  ;;  %v1163_v44 = vadd.f32 %v3864_v53, %v911_v55  ;;  %v2224_v53 = vpack.c.bf16 %v2190_v26, %v2189_v60  ;;  %v2191_v60 = vld [vmem:[%s3445_s6 + $0x46] sm:$0xff]  ;;  %v2192_v26 = vld [vmem:[%s3445_s6 + $0x4e] sm:$0xff] }
 0x18b   : > { %v3919_v6 = vadd.f32 %v1355_v4, %v1163_v44  ;;  %v1974_v4 = vpack.c.bf16 %v1942_v36, %v1941_v25  ;;  %v1943_v25 = vld [vmem:[%s3445_s6 + $0x65] sm:$0xff]  ;;  %v1944_v36 = vld [vmem:[%s3445_s6 + $0x6d] sm:$0xff] }
 0x18d   : > { %2528 = vperm.xlu1 %3378, %v2478_v54  }
 0x18e   : > { %v853_v9 = vpop.f32.mrf.mxu2 }
 0x18f   : > { %v912_v10 = vadd.f32 %v853_v9, %v638_v8  ;;  %v640_v62 = vpop.f32.mrf.mxu1  ;;  %v1115_v59 = vpop.f32.mrf.mxu3 }
 0x191   : > { %v1360_v43 = vpop.f32.mrf.mxu0  ;;  %v1164_v21 = vadd.f32 %v3875_v15, %v912_v10  ;;  %v641_v15 = vadd.f32 %v640_v62, %v3598_v63 }
 0x192   : > { %3156 = vmatmul.msk.bf16.gmra.mxu1 %vm362_vm0, %v1719_v12 }
 0x193   : > { %3180 = vmatmul.msk.bf16.gmra.mxu2 %vm362_vm0, %v1720_v20  ;;  %v3934_v50 = vadd.f32 %v1357_v45, %v1164_v21  ;;  %v1688_v45 = vld [vmem:[%s3445_s6 + $0x4c] sm:$0xff] }
 0x194   : > { %3228 = vmatmul.msk.bf16.gmra.mxu0 %vm362_vm0, %v2224_v53  ;;  %3206 = vmatmul.msk.bf16.gmra.mxu3 %vm362_vm0, %v1974_v4  ;;  %v1721_v62 = vpack.c.bf16 %v1688_v45, %v1687_v13  ;;  %v2225_v53 = vpack.c.bf16 %v2192_v26, %v2191_v60  ;;  %v2193_v45 = vld [vmem:[%s3445_s6 + $0x56] sm:$0xff]  ;;  %v2194_v60 = vld [vmem:[%s3445_s6 + $0x5e] sm:$0xff] }
 0x196   : > { %v856_v5 = vpop.f32.mrf.mxu2 }
 0x197   : > { %v913_v12 = vadd.f32 %v856_v5, %v641_v15  ;;  %v642_v55 = vpop.f32.mrf.mxu1  ;;  %v3939_v39 = vpop.f32.mrf.mxu3 }
 0x198   : > { %v643_v63 = vadd.f32 %v642_v55, %v3612_v7 }
 0x199   : > { %v1362_v38 = vpop.f32.mrf.mxu0  ;;  %v1165_v44 = vadd.f32 %v3885_v30, %v913_v12 }
 0x19b   : > { %v3942_v46 = vadd.f32 %v1360_v43, %v1165_v44  ;;  %v1975_v43 = vpack.c.bf16 %v1944_v36, %v1943_v25  ;;  %v2481_v44 = vld [vmem:[%s4409_s2 + $0x30] sm:$0xff]  ;;  %v1946_v25 = vld [vmem:[%s3445_s6 + $0x7d] sm:$0xff] }
 0x19c   : > { %2543 = vperm.xlu0 %3377, %v2481_v44  }
 0x19e   : > { %v858_v8 = vpop.f32.mrf.mxu2 }
 0x19f   : > { %v914_v9 = vadd.f32 %v858_v8, %v643_v63  ;;  %v645_v10 = vpop.f32.mrf.mxu1  ;;  %v3951_v4 = vpop.f32.mrf.mxu3 }
 0x1a0   : > { %v646_v54 = vadd.f32 %v645_v10, %v3627_v16  ;;  %v1690_v16 = vld [vmem:[%s3445_s6 + $0x5c] sm:$0xff]  ;;  %v2226_v10 = vpack.c.bf16 %v2194_v60, %v2193_v45  ;;  %v2195_v60 = vld [vmem:[%s3445_s6 + $0x66] sm:$0xff] }
 0x1a1   : > { %v1365_v21 = vpop.f32.mrf.mxu0  ;;  %v1166_v30 = vadd.f32 %v3902_v41, %v914_v9 }
 0x1a2   : > { %3157 = vmatmul.msk.bf16.gmra.mxu1 %vm362_vm0, %v1720_v20 }
 0x1a3   : > { %3181 = vmatmul.msk.bf16.gmra.mxu2 %vm362_vm0, %v1721_v62  ;;  %v3956_v7 = vadd.f32 %v1362_v38, %v1166_v30  ;;  %v1689_v38 = vld [vmem:[%s3445_s6 + $0x54] sm:$0xff] }
 0x1a4   : > { %3229 = vmatmul.msk.bf16.gmra.mxu0 %vm362_vm0, %v2225_v53  ;;  %3207 = vmatmul.msk.bf16.gmra.mxu3 %vm362_vm0, %v1975_v43  ;;  %v1945_v53 = vld [vmem:[%s3445_s6 + $0x75] sm:$0xff] }
 0x1a6   : > { %v861_v15 = vpop.f32.mrf.mxu2 }
 0x1a7   : > { %v915_v41 = vadd.f32 %v861_v15, %v646_v54  ;;  %v647_v5 = vpop.f32.mrf.mxu1  ;;  %v3960_v55 = vpop.f32.mrf.mxu3  ;;  %v2482_v54 = vld [vmem:[%s4409_s2 + $0x38] sm:$0xff] }
 0x1a8   : > { %v648_v26 = vadd.f32 %v647_v5, %v3641_v24  ;;  %v2479_v24 = vld [vmem:[%s4409_s2 + $0x20] sm:$0xff]  ;;  %2548 = vperm.xlu1 %3378, %v2482_v54  }
 0x1a9   : > { %v1367_v12 = vpop.f32.mrf.mxu0  ;;  %v1167_v20 = vadd.f32 %v1113_v29, %v915_v41  ;;  %v1722_v29 = vpack.c.bf16 %v1690_v16, %v1689_v38  ;;  %2533 = vperm.xlu2 %3379, %v2479_v24   ;;  %v1691_v16 = vld [vmem:[%s3445_s6 + $0x64] sm:$0xff] }
 0x1ab   : > { %v3966_v13 = vadd.f32 %v1365_v21, %v1167_v20  ;;  %v1976_v21 = vpack.c.bf16 %v1946_v25, %v1945_v53  ;;  %v1947_v25 = vld [vmem:[%s3445_s6 + $0x85] sm:$0xff] }
 0x1ae   : > { %v863_v63 = vpop.f32.mrf.mxu2 }
 0x1af   : > { %v916_v8 = vadd.f32 %v863_v63, %v648_v26  ;;  %v650_v9 = vpop.f32.mrf.mxu1  ;;  %v3974_v43 = vpop.f32.mrf.mxu3  ;;  %v2196_v26 = vld [vmem:[%s3445_s6 + $0x6e] sm:$0xff] }
 0x1b0   : > { %v2227_v53 = vpack.c.bf16 %v2196_v26, %v2195_v60  ;;  %v2197_v60 = vld [vmem:[%s3445_s6 + $0x76] sm:$0xff]  ;;  %v2198_v26 = vld [vmem:[%s3445_s6 + $0x7e] sm:$0xff] }
 0x1b1   : > { %v1370_v36 = vpop.f32.mrf.mxu0  ;;  %v1168_v30 = vadd.f32 %v1115_v59, %v916_v8 }
 0x1b2   : > { %3158 = vmatmul.msk.bf16.gmra.mxu1 %vm362_vm0, %v1721_v62  ;;  %v651_v62 = vadd.f32 %v650_v9, %v3657_v33  ;;  %v1692_v33 = vld [vmem:[%s3445_s6 + $0x6c] sm:$0xff] }
 0x1b3   : > { %3182 = vmatmul.msk.bf16.gmra.mxu2 %vm362_vm0, %v1722_v29  ;;  %v3985_v59 = vadd.f32 %v1367_v12, %v1168_v30  ;;  %v2480_v12 = vld [vmem:[%s4409_s2 + $0x28] sm:$0xff] }
 0x1b4   : > { %3230 = vmatmul.msk.bf16.gmra.mxu0 %vm362_vm0, %v2226_v10  ;;  %3208 = vmatmul.msk.bf16.gmra.mxu3 %vm362_vm0, %v1976_v21  ;;  %v1948_v30 = vld [vmem:[%s3445_s6 + $0x8d] sm:$0xff] }
 0x1b5   : > { %2538 = vperm.xlu2 %3379, %v2480_v12  }
 0x1b6   : > { %v866_v15 = vpop.f32.mrf.mxu2 }
 0x1b7   : > { %v917_v41 = vadd.f32 %v866_v15, %v651_v62  ;;  %v652_v5 = vpop.f32.mrf.mxu1  ;;  %v3990_v38 = vpop.f32.mrf.mxu3 }
 0x1b8   : > { %v653_v63 = vadd.f32 %v652_v5, %v3669_v42  ;;  %v2484_v42 = vld [vmem:[%s4409_s2 + $0x48] sm:$0xff] }
 0x1b9   : > { %v1372_v20 = vpop.f32.mrf.mxu0  ;;  %v1169_v44 = vadd.f32 %v3939_v39, %v917_v41  ;;  %v1723_v39 = vpack.c.bf16 %v1692_v33, %v1691_v16  ;;  %2558 = vperm.xlu0 %3377, %v2484_v42   ;;  %v1693_v16 = vld [vmem:[%s3445_s6 + $0x74] sm:$0xff] }
 0x1bb   : > { %v3996_v45 = vadd.f32 %v1370_v36, %v1169_v44  ;;  %v1977_v36 = vpack.c.bf16 %v1948_v30, %v1947_v25  ;;  %v1949_v25 = vld [vmem:[%s3445_s6 + $0x95] sm:$0xff]  ;;  %v1950_v30 = vld [vmem:[%s3445_s6 + $0x9d] sm:$0xff] }
 0x1be   : > { %v868_v8 = vpop.f32.mrf.mxu2 }
 0x1bf   : > { %v918_v9 = vadd.f32 %v868_v8, %v653_v63  ;;  %v655_v10 = vpop.f32.mrf.mxu1  ;;  %v4005_v54 = vpop.f32.mrf.mxu3 }
 0x1c1   : > { %v1375_v21 = vpop.f32.mrf.mxu0  ;;  %v1170_v24 = vadd.f32 %v3951_v4, %v918_v9  ;;  %v656_v4 = vadd.f32 %v655_v10, %v3683_v58  ;;  %v1694_v58 = vld [vmem:[%s3445_s6 + $0x7c] sm:$0xff] }
 0x1c2   : > { %3159 = vmatmul.msk.bf16.gmra.mxu1 %vm362_vm0, %v1722_v29 }
 0x1c3   : > { %3183 = vmatmul.msk.bf16.gmra.mxu2 %vm362_vm0, %v1723_v39  ;;  %v4013_v62 = vadd.f32 %v1372_v20, %v1170_v24  ;;  %v2485_v20 = vld [vmem:[%s4409_s2 + $0x50] sm:$0xff] }
 0x1c4   : > { %3231 = vmatmul.msk.bf16.gmra.mxu0 %vm362_vm0, %v2227_v53  ;;  %3209 = vmatmul.msk.bf16.gmra.mxu3 %vm362_vm0, %v1977_v36  ;;  %v2228_v53 = vpack.c.bf16 %v2198_v26, %v2197_v60  ;;  %v2199_v60 = vld [vmem:[%s3445_s6 + $0x86] sm:$0xff]  ;;  %v2200_v26 = vld [vmem:[%s3445_s6 + $0x8e] sm:$0xff] }
 0x1c5   : > { %2563 = vperm.xlu1 %3378, %v2485_v20  }
 0x1c6   : > { %v871_v15 = vpop.f32.mrf.mxu2 }
 0x1c7   : > { %v919_v29 = vadd.f32 %v871_v15, %v656_v4  ;;  %v657_v41 = vpop.f32.mrf.mxu1  ;;  %v4018_v12 = vpop.f32.mrf.mxu3 }
 0x1c8   : > { %v658_v63 = vadd.f32 %v657_v41, %v3695_v11  ;;  %v2483_v11 = vld [vmem:[%s4409_s2 + $0x40] sm:$0xff] }
 0x1c9   : > { %v1377_v5 = vpop.f32.mrf.mxu0  ;;  %v1171_v44 = vadd.f32 %v3960_v55, %v919_v29  ;;  %v1724_v55 = vpack.c.bf16 %v1694_v58, %v1693_v16  ;;  %2553 = vperm.xlu2 %3379, %v2483_v11   ;;  %v1695_v16 = vld [vmem:[%s3445_s6 + $0x84] sm:$0xff] }
 0x1cb   : > { %v4024_v33 = vadd.f32 %v1375_v21, %v1171_v44  ;;  %v1978_v21 = vpack.c.bf16 %v1950_v30, %v1949_v25  ;;  %v1951_v25 = vld [vmem:[%s3445_s6 + $0xa5] sm:$0xff]  ;;  %v1952_v30 = vld [vmem:[%s3445_s6 + $0xad] sm:$0xff] }
 0x1ce   : > { %v873_v8 = vpop.f32.mrf.mxu2 }
 0x1cf   : > { %v920_v9 = vadd.f32 %v873_v8, %v658_v63  ;;  %v660_v10 = vpop.f32.mrf.mxu1  ;;  %v4033_v42 = vpop.f32.mrf.mxu3 }
 0x1d1   : > { %v1380_v24 = vpop.f32.mrf.mxu0  ;;  %v1172_v36 = vadd.f32 %v3974_v43, %v920_v9  ;;  %v661_v43 = vadd.f32 %v660_v10, %v3577_v49  ;;  %v1696_v49 = vld [vmem:[%s3445_s6 + $0x8c] sm:$0xff] }
 0x1d2   : > { %3160 = vmatmul.msk.bf16.gmra.mxu1 %vm362_vm0, %v1723_v39 }
 0x1d3   : > { %3184 = vmatmul.msk.bf16.gmra.mxu2 %vm362_vm0, %v1724_v55  ;;  %v4041_v4 = vadd.f32 %v1377_v5, %v1172_v36  ;;  %v2487_v5 = vld [vmem:[%s4409_s2 + $0x60] sm:$0xff] }
 0x1d4   : > { %3232 = vmatmul.msk.bf16.gmra.mxu0 %vm362_vm0, %v2228_v53  ;;  %3210 = vmatmul.msk.bf16.gmra.mxu3 %vm362_vm0, %v1978_v21  ;;  %v2229_v53 = vpack.c.bf16 %v2200_v26, %v2199_v60  ;;  %v2201_v60 = vld [vmem:[%s3445_s6 + $0x96] sm:$0xff]  ;;  %v2202_v26 = vld [vmem:[%s3445_s6 + $0x9e] sm:$0xff] }
 0x1d5   : > { %2573 = vperm.xlu0 %3377, %v2487_v5  }
 0x1d6   : > { %v876_v15 = vpop.f32.mrf.mxu2 }
 0x1d7   : > { %v921_v39 = vadd.f32 %v876_v15, %v661_v43  ;;  %v662_v29 = vpop.f32.mrf.mxu1  ;;  %v4046_v20 = vpop.f32.mrf.mxu3 }
 0x1d8   : > { %v663_v63 = vadd.f32 %v662_v29, %v3591_v61  ;;  %v2488_v61 = vld [vmem:[%s4409_s2 + $0x68] sm:$0xff] }
 0x1d9   : > { %v1382_v41 = vpop.f32.mrf.mxu0  ;;  %v1173_v44 = vadd.f32 %v3990_v38, %v921_v39  ;;  %v1725_v38 = vpack.c.bf16 %v1696_v49, %v1695_v16  ;;  %2578 = vperm.xlu1 %3378, %v2488_v61   ;;  %v1697_v16 = vld [vmem:[%s3445_s6 + $0x94] sm:$0xff] }
 0x1db   : > { %v4052_v58 = vadd.f32 %v1380_v24, %v1173_v44  ;;  %v1979_v24 = vpack.c.bf16 %v1952_v30, %v1951_v25  ;;  %v1953_v25 = vld [vmem:[%s3445_s6 + $0xb5] sm:$0xff]  ;;  %v1954_v30 = vld [vmem:[%s3445_s6 + $0xbd] sm:$0xff] }
 0x1de   : > { %v878_v8 = vpop.f32.mrf.mxu2 }
 0x1df   : > { %v922_v9 = vadd.f32 %v878_v8, %v663_v63  ;;  %v665_v10 = vpop.f32.mrf.mxu1  ;;  %v4061_v11 = vpop.f32.mrf.mxu3 }
 0x1e1   : > { %v1385_v36 = vpop.f32.mrf.mxu0  ;;  %v1174_v21 = vadd.f32 %v4005_v54, %v922_v9  ;;  %v666_v54 = vadd.f32 %v665_v10, %v3606_v2  ;;  %v1698_v2 = vld [vmem:[%s3445_s6 + $0x9c] sm:$0xff] }
 0x1e2   : > { %3161 = vmatmul.msk.bf16.gmra.mxu1 %vm362_vm0, %v1724_v55 }
 0x1e3   : > { %3185 = vmatmul.msk.bf16.gmra.mxu2 %vm362_vm0, %v1725_v38  ;;  %v4069_v43 = vadd.f32 %v1382_v41, %v1174_v21  ;;  %v2486_v41 = vld [vmem:[%s4409_s2 + $0x58] sm:$0xff] }
 0x1e4   : > { %3233 = vmatmul.msk.bf16.gmra.mxu0 %vm362_vm0, %v2229_v53  ;;  %3211 = vmatmul.msk.bf16.gmra.mxu3 %vm362_vm0, %v1979_v24  ;;  %v2230_v53 = vpack.c.bf16 %v2202_v26, %v2201_v60  ;;  %v2203_v60 = vld [vmem:[%s3445_s6 + $0xa6] sm:$0xff]  ;;  %v2204_v26 = vld [vmem:[%s3445_s6 + $0xae] sm:$0xff] }
 0x1e5   : > { %2568 = vperm.xlu2 %3379, %v2486_v41  }
 0x1e6   : > { %v881_v15 = vpop.f32.mrf.mxu2 }
 0x1e7   : > { %v923_v55 = vadd.f32 %v881_v15, %v666_v54  ;;  %v667_v39 = vpop.f32.mrf.mxu1  ;;  %v4074_v5 = vpop.f32.mrf.mxu3 }
 0x1e8   : > { %v668_v63 = vadd.f32 %v667_v39, %v3620_v14  ;;  %v2490_v14 = vld [vmem:[%s4409_s2 + $0x78] sm:$0xff] }
 0x1e9   : > { %v1387_v29 = vpop.f32.mrf.mxu0  ;;  %v1175_v44 = vadd.f32 %v4018_v12, %v923_v55  ;;  %v1726_v12 = vpack.c.bf16 %v1698_v2, %v1697_v16  ;;  %2588 = vperm.xlu0 %3377, %v2490_v14   ;;  %v1699_v16 = vld [vmem:[%s3445_s6 + $0xa4] sm:$0xff] }
 0x1eb   : > { %v4080_v49 = vadd.f32 %v1385_v36, %v1175_v44  ;;  %v1980_v36 = vpack.c.bf16 %v1954_v30, %v1953_v25  ;;  %v1955_v25 = vld [vmem:[%s3445_s6 + $0xc5] sm:$0xff]  ;;  %v1956_v30 = vld [vmem:[%s3445_s6 + $0xcd] sm:$0xff] }
 0x1ee   : > { %v883_v8 = vpop.f32.mrf.mxu2 }
 0x1ef   : > { %v924_v9 = vadd.f32 %v883_v8, %v668_v63  ;;  %v670_v10 = vpop.f32.mrf.mxu1  ;;  %v4089_v61 = vpop.f32.mrf.mxu3 }
 0x1f1   : > { %v1390_v21 = vpop.f32.mrf.mxu0  ;;  %v1176_v24 = vadd.f32 %v4033_v42, %v924_v9  ;;  %v671_v42 = vadd.f32 %v670_v10, %v3635_v19  ;;  %v1700_v19 = vld [vmem:[%s3445_s6 + $0xac] sm:$0xff] }
 0x1f2   : > { %3162 = vmatmul.msk.bf16.gmra.mxu1 %vm362_vm0, %v1725_v38 }
 0x1f3   : > { %3186 = vmatmul.msk.bf16.gmra.mxu2 %vm362_vm0, %v1726_v12  ;;  %v4097_v54 = vadd.f32 %v1387_v29, %v1176_v24  ;;  %v2491_v29 = vld [vmem:[%s4409_s2 + $0x80] sm:$0xff] }
 0x1f4   : > { %3234 = vmatmul.msk.bf16.gmra.mxu0 %vm362_vm0, %v2230_v53  ;;  %3212 = vmatmul.msk.bf16.gmra.mxu3 %vm362_vm0, %v1980_v36  ;;  %v2231_v53 = vpack.c.bf16 %v2204_v26, %v2203_v60  ;;  %v2205_v26 = vld [vmem:[%s3445_s6 + $0xb6] sm:$0xff] }
 0x1f5   : > { %2593 = vperm.xlu1 %3378, %v2491_v29   ;;  %v2514_v29 = vpop.permute.xlu0 %2513 }
 0x1f6   : > { %v886_v15 = vpop.f32.mrf.mxu2 }
 0x1f7   : > { %v925_v38 = vadd.f32 %v886_v15, %v671_v42  ;;  %v672_v55 = vpop.f32.mrf.mxu1  ;;  %v4102_v41 = vpop.f32.mrf.mxu3 }
 0x1f8   : > { %v673_v63 = vadd.f32 %v672_v55, %v3649_v31  ;;  %v2489_v31 = vld [vmem:[%s4409_s2 + $0x70] sm:$0xff] }
 0x1f9   : > { %v1392_v39 = vpop.f32.mrf.mxu0  ;;  %v1177_v44 = vadd.f32 %v4046_v20, %v925_v38  ;;  %v1727_v20 = vpack.c.bf16 %v1700_v19, %v1699_v16  ;;  %2583 = vperm.xlu2 %3379, %v2489_v31   ;;  %v1701_v19 = vld [vmem:[%s3445_s6 + $0xb4] sm:$0xff] }
 0x1fb   : > { %v4108_v2 = vadd.f32 %v1390_v21, %v1177_v44  ;;  %v1981_v21 = vpack.c.bf16 %v1956_v30, %v1955_v25  ;;  %v1957_v30 = vld [vmem:[%s3445_s6 + $0xd5] sm:$0xff] }
 0x1fe   : > { %v888_v8 = vpop.f32.mrf.mxu2 }
 0x1ff   : > { %v926_v9 = vadd.f32 %v888_v8, %v673_v63  ;;  %v1557_v10 = vpop.f32.mrf.mxu1  ;;  %v4117_v14 = vpop.f32.mrf.mxu3  ;;  %v2206_v63 = vld [vmem:[%s3445_s6 + $0xbe] sm:$0xff] }
 0x200   : > { %v2232_v25 = vpack.c.bf16 %v2206_v63, %v2205_v26  ;;  %v2496_v26 = vld [vmem:[%s4409_s2 + $0xa8] sm:$0xff] }
 0x201   : > { %v2313_v24 = vpop.f32.mrf.mxu0  ;;  %v1178_v36 = vadd.f32 %v4061_v11, %v926_v9  ;;  %v1647_v11 = vadd.f32 %v1557_v10, %v3710_v52  ;;  %v1702_v52 = vld [vmem:[%s3445_s6 + $0xbc] sm:$0xff] }
 0x202   : > { %3163 = vmatmul.msk.bf16.gmra.mxu1 %vm362_vm0, %v1726_v12 }
 0x203   : > { %3187 = vmatmul.msk.bf16.gmra.mxu2 %vm362_vm0, %v1727_v20  ;;  %v4125_v42 = vadd.f32 %v1392_v39, %v1178_v36  ;;  %v2493_v39 = vld [vmem:[%s4409_s2 + $0x90] sm:$0xff]  ;;  %v1958_v36 = vld [vmem:[%s3445_s6 + $0xdd] sm:$0xff] }
 0x204   : > { %3235 = vmatmul.msk.bf16.gmra.mxu0 %vm362_vm0, %v2231_v53  ;;  %3213 = vmatmul.msk.bf16.gmra.mxu3 %vm362_vm0, %v1981_v21  ;;  %v4140_v53 = vpack.c.bf16 %v1702_v52, %v1701_v19 }
 0x205   : > { %2603 = vperm.xlu0 %3377, %v2493_v39  }
 0x206   : > { %v1809_v15 = vpop.f32.mrf.mxu2 }
 0x207   : > { %v1899_v12 = vadd.f32 %v1809_v15, %v1647_v11  ;;  %v1559_v38 = vpop.f32.mrf.mxu1  ;;  %v4130_v16 = vpop.f32.mrf.mxu3  ;;  %v2494_v15 = vld [vmem:[%s4409_s2 + $0x98] sm:$0xff] }
 0x208   : > { %v1648_v8 = vadd.f32 %v1559_v38, %v3723_v48  ;;  %v1982_v48 = vpack.c.bf16 %v1958_v36, %v1957_v30  ;;  %2608 = vperm.xlu1 %3378, %v2494_v15   ;;  %v1704_v15 = vld [vmem:[%s3445_s6 + $0xcc] sm:$0xff] }
 0x209   : > { %v2315_v55 = vpop.f32.mrf.mxu0  ;;  %v2151_v44 = vadd.f32 %v4074_v5, %v1899_v12 }
 0x20b   : > { %v2403_v60 = vadd.f32 %v2313_v24, %v2151_v44  ;;  %v2519_v44 = vpop.permute.xlu0 %2518 }
 0x20d   : > { %v2439_v21 = vmax.f32 %v2403_v60, 0.0  ;;  %2618 = vperm.xlu0 %3377, %v2496_v26   ;;  %v1960_v26 = vld [vmem:[%s3445_s6 + $0xed] sm:$0xff] }
 0x20e   : > { %v1811_v9 = vpop.f32.mrf.mxu2 }
 0x20f   : > { %v1900_v10 = vadd.f32 %v1811_v9, %v1648_v8  ;;  %v1562_v5 = vpop.f32.mrf.mxu1  ;;  %v4145_v24 = vpop.f32.mrf.mxu3  ;;  %v2691_v38 = vmul.f32 %v2514_v29, %v2439_v21  ;;  %v1703_v21 = vld [vmem:[%s3445_s6 + $0xc4] sm:$0xff] }
 0x211   : > { %v2318_v31 = vpop.f32.mrf.mxu0  ;;  %v2152_v11 = vadd.f32 %v4089_v61, %v1900_v10  ;;  %v1649_v61 = vadd.f32 %v1562_v5, %v3730_v32  ;;  %v2769_v63 = vmul.f32 %v2691_v38, %v2691_v38  ;;  %v2497_v5 = vld [vmem:[%s4409_s2 + $0xb0] sm:$0xff] }
 0x212   : > { %3164 = vmatmul.msk.bf16.gmra.mxu1 %vm362_vm0, %v1727_v20  ;;  %2623 = vperm.xlu1 %3378, %v2497_v5   ;;  %v2500_v5 = vld [vmem:[%s4409_s2 + $0xc8] sm:$0xff] }
 0x213   : > { %3188 = vmatmul.msk.bf16.gmra.mxu2 %vm362_vm0, %v4140_v53  ;;  %v2404_v12 = vadd.f32 %v2315_v55, %v2152_v11  ;;  %v2492_v11 = vld [vmem:[%s4409_s2 + $0x88] sm:$0xff] }
 0x214   : > { %3236 = vmatmul.msk.bf16.gmra.mxu0 %vm362_vm0, %v2232_v25  ;;  %3214 = vmatmul.msk.bf16.gmra.mxu3 %vm362_vm0, %v1982_v48  ;;  %v2524_v25 = vpop.permute.xlu1 %2523  ;;  %v2208_v48 = vld [vmem:[%s3445_s6 + $0xce] sm:$0xff] }
 0x215   : > { %v2440_v19 = vmax.f32 %v2404_v12, 0.0  ;;  %2598 = vperm.xlu2 %3379, %v2492_v11  }
 0x216   : > { %v1814_v39 = vpop.f32.mrf.mxu2 }
 0x217   : > { %v2692_v60 = vmul.f32 %v2519_v44, %v2440_v19  ;;  %v1901_v52 = vadd.f32 %v1814_v39, %v1649_v61  ;;  %v1564_v20 = vpop.f32.mrf.mxu1  ;;  %v4166_v10 = vpop.f32.mrf.mxu3 }
 0x218   : > { %v1650_v12 = vadd.f32 %v1564_v20, %v3743_v1 }
 0x219   : > { %v2320_v32 = vpop.f32.mrf.mxu0  ;;  %v2727_v55 = vadd.f32 %v2692_v60, %v2691_v38  ;;  %v2770_v29 = vmul.f32 %v2692_v60, %v2692_v60  ;;  %v3259_v8 = vpack.c.bf16 %v2692_v60, %v2691_v38  ;;  %v2153_v9 = vadd.f32 %v4102_v41, %v1901_v52  ;;  %v2207_v41 = vld [vmem:[%s3445_s6 + $0xc6] sm:$0xff] }
 0x21a   : > { %v4180_v60 = vpack.c.bf16 %v1704_v15, %v1703_v21  ;;  %v1959_v52 = vld [vmem:[%s3445_s6 + $0xe5] sm:$0xff]  ;;  %2638 = vperm.xlu1 %3378, %v2500_v5  }
 0x21b   : > { %v2805_v30 = vadd.f32 %v2770_v29, %v2769_v63  ;;  %3260 = vst [vmem:[%s4163_s16] sm:$0xff] %v3259_v8   ;;  %v2405_v36 = vadd.f32 %v2318_v31, %v2153_v9  ;;  %v2233_v31 = vpack.c.bf16 %v2208_v48, %v2207_v41  ;;  %v2499_v63 = vld [vmem:[%s4409_s2 + $0xc0] sm:$0xff] }
 0x21c   : > { %2633 = vperm.xlu0 %3377, %v2499_v63   ;;  %v2529_v21 = vpop.permute.xlu1 %2528  ;;  %v1705_v63 = vld [vmem:[%s3445_s6 + $0xd4] sm:$0xff] }
 0x21d   : > { %v2441_v38 = vmax.f32 %v2405_v36, 0.0 }
 0x21e   : > { %v1816_v44 = vpop.f32.mrf.mxu2 }
 0x21f   : > { %v2693_v61 = vmul.f32 %v2524_v25, %v2441_v38  ;;  %v1902_v19 = vadd.f32 %v1816_v44, %v1650_v12  ;;  %v1567_v39 = vpop.f32.mrf.mxu1  ;;  %v4188_v20 = vpop.f32.mrf.mxu3  ;;  %v1983_v25 = vpack.c.bf16 %v1960_v26, %v1959_v52 }
 0x221   : > { %v2323_v29 = vpop.f32.mrf.mxu0  ;;  %v2728_v8 = vadd.f32 %v2727_v55, %v2693_v61  ;;  %v2771_v9 = vmul.f32 %v2693_v61, %v2693_v61  ;;  %v2154_v1 = vadd.f32 %v4117_v14, %v1902_v19  ;;  %v1651_v14 = vadd.f32 %v1567_v39, %v3750_v57  ;;  %v2503_v39 = vld [vmem:[%s4409_s2 + $0xe0] sm:$0xff] }
 0x222   : > { %3165 = vmatmul.msk.bf16.gmra.mxu1 %vm362_vm0, %v4140_v53  ;;  %2653 = vperm.xlu1 %3378, %v2503_v39  }
 0x223   : > { %v2806_v36 = vadd.f32 %v2805_v30, %v2771_v9  ;;  %3189 = vmatmul.msk.bf16.gmra.mxu2 %vm362_vm0, %v4180_v60  ;;  %v2406_v55 = vadd.f32 %v2320_v32, %v2154_v1  ;;  %v2502_v30 = vld [vmem:[%s4409_s2 + $0xd8] sm:$0xff] }
 0x224   : > { %3237 = vmatmul.msk.bf16.gmra.mxu0 %vm362_vm0, %v2233_v31  ;;  %3215 = vmatmul.msk.bf16.gmra.mxu3 %vm362_vm0, %v1983_v25  ;;  %v2534_v31 = vpop.permute.xlu2 %2533  ;;  %v2210_v9 = vld [vmem:[%s3445_s6 + $0xde] sm:$0xff] }
 0x225   : > { %v2442_v11 = vmax.f32 %v2406_v55, 0.0  ;;  %2648 = vperm.xlu0 %3377, %v2502_v30  }
 0x226   : > { %v1819_v15 = vpop.f32.mrf.mxu2 }
 0x227   : > { %v2694_v41 = vmul.f32 %v2529_v21, %v2442_v11  ;;  %v1903_v48 = vadd.f32 %v1819_v15, %v1651_v14  ;;  %v1569_v53 = vpop.f32.mrf.mxu1  ;;  %v4204_v19 = vpop.f32.mrf.mxu3  ;;  %v1961_v11 = vld [vmem:[%s3445_s6 + $0xf5] sm:$0xff]  ;;  %v1962_v15 = vld [vmem:[%s3445_s6 + $0xfd] sm:$0xff] }
 0x228   : > { %v1652_v1 = vadd.f32 %v1569_v53, %v3763_v18 }
 0x229   : > { %v2325_v12 = vpop.f32.mrf.mxu0  ;;  %v2729_v32 = vadd.f32 %v2728_v8, %v2694_v41  ;;  %v2772_v57 = vmul.f32 %v2694_v41, %v2694_v41  ;;  %v3264_v38 = vpack.c.bf16 %v2694_v41, %v2693_v61  ;;  %v2155_v44 = vadd.f32 %v4130_v16, %v1903_v48  ;;  %v2495_v61 = vld [vmem:[%s4409_s2 + $0xa0] sm:$0xff]  ;;  %v2209_v16 = vld [vmem:[%s3445_s6 + $0xd6] sm:$0xff] }
 0x22a   : > { %v1706_v8 = vld [vmem:[%s3445_s6 + $0xdc] sm:$0xff]  ;;  %2613 = vperm.xlu2 %3379, %v2495_v61   ;;  %v2505_v41 = vld [vmem:[%s4409_s2 + $0xf0] sm:$0xff] }
 0x22b   : > { %v2807_v52 = vadd.f32 %v2806_v36, %v2772_v57  ;;  %3346 = vst [vmem:[%s4163_s16 + $0x8] sm:$0xff] %v3264_v38   ;;  %v2407_v26 = vadd.f32 %v2323_v29, %v2155_v44  ;;  %v4218_v14 = vpack.c.bf16 %v1706_v8, %v1705_v63  ;;  %v2234_v29 = vpack.c.bf16 %v2210_v9, %v2209_v16  ;;  %v2506_v38 = vld [vmem:[%s4409_s2 + $0xf8] sm:$0xff] }
 0x22c   : > { %v1984_v44 = vpack.c.bf16 %v1962_v15, %v1961_v11  ;;  %2668 = vperm.xlu1 %3378, %v2506_v38   ;;  %v1707_v11 = vld [vmem:[%s3445_s6 + $0xe4] sm:$0xff]  ;;  %v2501_v15 = vld [vmem:[%s4409_s2 + $0xd0] sm:$0xff] }
 0x22d   : > { %v2443_v5 = vmax.f32 %v2407_v26, 0.0  ;;  %2663 = vperm.xlu0 %3377, %v2505_v41   ;;  %v1708_v41 = vld [vmem:[%s3445_s6 + $0xec] sm:$0xff] }
 0x22e   : > { %v1821_v25 = vpop.f32.mrf.mxu2 }
 0x22f   : > { %v2695_v55 = vmul.f32 %v2534_v31, %v2443_v5  ;;  %v1904_v21 = vadd.f32 %v1821_v25, %v1652_v1  ;;  %v1572_v36 = vpop.f32.mrf.mxu1  ;;  %v4226_v53 = vpop.f32.mrf.mxu3 }
 0x230   : > { %v2539_v31 = vpop.permute.xlu2 %2538  ;;  %v1653_v26 = vadd.f32 %v1572_v36, %v3770_v27 }
 0x231   : > { %v2328_v48 = vpop.f32.mrf.mxu0  ;;  %v2730_v30 = vadd.f32 %v2729_v32, %v2695_v55  ;;  %v2773_v57 = vmul.f32 %v2695_v55, %v2695_v55  ;;  %v2156_v18 = vadd.f32 %v4145_v24, %v1904_v21  ;;  %v2498_v24 = vld [vmem:[%s4409_s2 + $0xb8] sm:$0xff]  ;;  %v2509_v21 = vld [vmem:[%s4409_s2 + $0x110] sm:$0xff] }
 0x232   : > { %3166 = vmatmul.msk.bf16.gmra.mxu1 %vm362_vm0, %v4180_v60  ;;  %2628 = vperm.xlu2 %3379, %v2498_v24  }
 0x233   : > { %v2808_v39 = vadd.f32 %v2807_v52, %v2773_v57  ;;  %3190 = vmatmul.msk.bf16.gmra.mxu2 %vm362_vm0, %v4218_v14  ;;  %v2408_v32 = vadd.f32 %v2325_v12, %v2156_v18  ;;  %v2508_v12 = vld [vmem:[%s4409_s2 + $0x108] sm:$0xff] }
 0x234   : > { %3238 = vmatmul.msk.bf16.gmra.mxu0 %vm362_vm0, %v2234_v29  ;;  %3216 = vmatmul.msk.bf16.gmra.mxu3 %vm362_vm0, %v1984_v44 }
 0x235   : > { %v2444_v63 = vmax.f32 %v2408_v32, 0.0  ;;  %2678 = vperm.xlu0 %3377, %v2508_v12   ;;  %2683 = vperm.xlu1 %3378, %v2509_v21  }
 0x236   : > { %v1824_v61 = vpop.f32.mrf.mxu2 }
 0x237   : > { %v2696_v60 = vmul.f32 %v2539_v31, %v2444_v63  ;;  %v1905_v52 = vadd.f32 %v1824_v61, %v1653_v26  ;;  %v1574_v8 = vpop.f32.mrf.mxu1  ;;  %v4245_v25 = vpop.f32.mrf.mxu3  ;;  %v1963_v31 = vld [vmem:[%s3445_s6 + $0x105] sm:$0xff]  ;;  %v1964_v26 = vld [vmem:[%s3445_s6 + $0x10d] sm:$0xff] }
 0x238   : > { %v1654_v57 = vadd.f32 %v1574_v8, %v3783_v35  ;;  %v1985_v35 = vpack.c.bf16 %v1964_v26, %v1963_v31 }
 0x239   : > { %v2330_v16 = vpop.f32.mrf.mxu0  ;;  %v2731_v9 = vadd.f32 %v2730_v30, %v2696_v60  ;;  %v2774_v27 = vmul.f32 %v2696_v60, %v2696_v60  ;;  %v3269_v1 = vpack.c.bf16 %v2696_v60, %v2695_v55  ;;  %v2157_v5 = vadd.f32 %v4166_v10, %v1905_v52  ;;  %v2544_v55 = vpop.permute.xlu0 %2543  ;;  %v2211_v10 = vld [vmem:[%s3445_s6 + $0xe6] sm:$0xff]  ;;  %v2212_v30 = vld [vmem:[%s3445_s6 + $0xee] sm:$0xff] }
 0x23a   : > { %2643 = vperm.xlu2 %3379, %v2501_v15   ;;  %v2235_v24 = vpack.c.bf16 %v2212_v30, %v2211_v10 }
 0x23b   : > { %v2809_v36 = vadd.f32 %v2808_v39, %v2774_v27  ;;  %3347 = vst [vmem:[%s4163_s16 + $0x10] sm:$0xff] %v3269_v1   ;;  %v2409_v29 = vadd.f32 %v2328_v48, %v2157_v5  ;;  %v1731_v48 = vpack.c.bf16 %v1708_v41, %v1707_v11  ;;  %v2504_v1 = vld [vmem:[%s4409_s2 + $0xe8] sm:$0xff] }
 0x23d   : > { %v2445_v18 = vmax.f32 %v2409_v29, 0.0 }
 0x23e   : > { %v1826_v38 = vpop.f32.mrf.mxu2 }
 0x23f   : > { %v2697_v44 = vmul.f32 %v2544_v55, %v2445_v18  ;;  %v1906_v39 = vadd.f32 %v1826_v38, %v1654_v57  ;;  %v1577_v32 = vpop.f32.mrf.mxu1  ;;  %v4262_v12 = vpop.f32.mrf.mxu3  ;;  %v1709_v57 = vld [vmem:[%s3445_s6 + $0xf4] sm:$0xff]  ;;  %v2507_v18 = vld [vmem:[%s4409_s2 + $0x100] sm:$0xff] }
 0x240   : > { %v2554_v38 = vpop.permute.xlu2 %2553 }
 0x241   : > { %v2333_v63 = vpop.f32.mrf.mxu0  ;;  %v2732_v61 = vadd.f32 %v2731_v9, %v2697_v44  ;;  %v2775_v60 = vmul.f32 %v2697_v44, %v2697_v44  ;;  %v2158_v52 = vadd.f32 %v4188_v20, %v1906_v39  ;;  %v2549_v9 = vpop.permute.xlu1 %2548  ;;  %v1655_v20 = vadd.f32 %v1577_v32, %v3790_v23  ;;  %v1710_v39 = vld [vmem:[%s3445_s6 + $0xfc] sm:$0xff] }
 0x242   : > { %3167 = vmatmul.msk.bf16.gmra.mxu1 %vm362_vm0, %v4218_v14  ;;  %2658 = vperm.xlu2 %3379, %v2504_v1   ;;  %v2213_v32 = vld [vmem:[%s3445_s6 + $0xf6] sm:$0xff] }
 0x243   : > { %v2810_v8 = vadd.f32 %v2809_v36, %v2775_v60  ;;  %3191 = vmatmul.msk.bf16.gmra.mxu2 %vm362_vm0, %v1731_v48  ;;  %v2410_v27 = vadd.f32 %v2330_v16, %v2158_v52 }
 0x244   : > { %3239 = vmatmul.msk.bf16.gmra.mxu0 %vm362_vm0, %v2235_v24  ;;  %3217 = vmatmul.msk.bf16.gmra.mxu3 %vm362_vm0, %v1985_v35  ;;  %v2214_v24 = vld [vmem:[%s3445_s6 + $0xfe] sm:$0xff]  ;;  %v1965_v35 = vld [vmem:[%s3445_s6 + $0x115] sm:$0xff] }
 0x245   : > { %v2446_v5 = vmax.f32 %v2410_v27, 0.0  ;;  %v2236_v52 = vpack.c.bf16 %v2214_v24, %v2213_v32  ;;  %v1711_v32 = vld [vmem:[%s3445_s6 + $0x104] sm:$0xff] }
 0x246   : > { %v1829_v21 = vpop.f32.mrf.mxu2 }
 0x247   : > { %v2698_v14 = vmul.f32 %v2549_v9, %v2446_v5  ;;  %v1907_v36 = vadd.f32 %v1829_v21, %v1655_v20  ;;  %v1579_v16 = vpop.f32.mrf.mxu1  ;;  %v4274_v10 = vpop.f32.mrf.mxu3 }
 0x249   : > { %v2335_v29 = vpop.f32.mrf.mxu0  ;;  %v2733_v11 = vadd.f32 %v2732_v61, %v2698_v14  ;;  %v2776_v15 = vmul.f32 %v2698_v14, %v2698_v14  ;;  %v3274_v55 = vpack.c.bf16 %v2698_v14, %v2697_v44  ;;  %v2159_v41 = vadd.f32 %v4204_v19, %v1907_v36  ;;  %v2510_v36 = vld [vmem:[%s4409_s2 + $0x118] sm:$0xff]  ;;  %v2564_v24 = vpop.permute.xlu1 %2563 }
 0x24a   : > { %2673 = vperm.xlu2 %3379, %v2507_v18   ;;  %v1656_v44 = vadd.f32 %v1579_v16, %v3803_v3  ;;  %v2559_v16 = vpop.permute.xlu0 %2558 }
 0x24b   : > { %v2811_v23 = vadd.f32 %v2810_v8, %v2776_v15  ;;  %3348 = vst [vmem:[%s4163_s16 + $0x18] sm:$0xff] %v3274_v55   ;;  %v2411_v30 = vadd.f32 %v2333_v63, %v2159_v41  ;;  %v1732_v63 = vpack.c.bf16 %v1710_v39, %v1709_v57  ;;  %v1966_v8 = vld [vmem:[%s3445_s6 + $0x11d] sm:$0xff] }
 0x24c   : > { %v1986_v21 = vpack.c.bf16 %v1966_v8, %v1965_v35 }
 0x24d   : > { %v2447_v19 = vmax.f32 %v2411_v30, 0.0 }
 0x24e   : > { %v1831_v31 = vpop.f32.mrf.mxu2 }
 0x24f   : > { %v2699_v26 = vmul.f32 %v2554_v38, %v2447_v19  ;;  %v1908_v61 = vadd.f32 %v1831_v31, %v1656_v44  ;;  %v1582_v60 = vpop.f32.mrf.mxu1  ;;  %v4288_v5 = vpop.f32.mrf.mxu3  ;;  %v1712_v44 = vld [vmem:[%s3445_s6 + $0x10c] sm:$0xff] }
 0x250   : > { %v2215_v19 = vld [vmem:[%s3445_s6 + $0x106] sm:$0xff]  ;;  %v2216_v31 = vld [vmem:[%s3445_s6 + $0x10e] sm:$0xff] }
 0x251   : > { %v2338_v27 = vpop.f32.mrf.mxu0  ;;  %v2734_v1 = vadd.f32 %v2733_v11, %v2699_v26  ;;  %v2777_v9 = vmul.f32 %v2699_v26, %v2699_v26  ;;  %v2160_v20 = vadd.f32 %v4226_v53, %v1908_v61  ;;  %v1657_v53 = vadd.f32 %v1582_v60, %v3810_v22 }
 0x252   : > { %3168 = vmatmul.msk.bf16.gmra.mxu1 %vm362_vm0, %v1731_v48  ;;  %2688 = vperm.xlu2 %3379, %v2510_v36  }
 0x253   : > { %v2812_v3 = vadd.f32 %v2811_v23, %v2777_v9  ;;  %3192 = vmatmul.msk.bf16.gmra.mxu2 %vm362_vm0, %v1732_v63  ;;  %v2412_v14 = vadd.f32 %v2335_v29, %v2160_v20  ;;  %v1967_v9 = vld [vmem:[%s3445_s6 + $0x125] sm:$0xff]  ;;  %v1968_v20 = vld [vmem:[%s3445_s6 + $0x12d] sm:$0xff] }
 0x254   : > { %3240 = vmatmul.msk.bf16.gmra.mxu0 %vm362_vm0, %v2236_v52  ;;  %3218 = vmatmul.msk.bf16.gmra.mxu3 %vm362_vm0, %v1986_v21 }
 0x255   : > { %v2448_v11 = vmax.f32 %v2412_v14, 0.0 }
 0x256   : > { %v1834_v15 = vpop.f32.mrf.mxu2 }
 0x257   : > { %v2700_v48 = vmul.f32 %v2559_v16, %v2448_v11  ;;  %v1909_v55 = vadd.f32 %v1834_v15, %v1657_v53  ;;  %v1584_v29 = vpop.f32.mrf.mxu1  ;;  %v4299_v38 = vpop.f32.mrf.mxu3  ;;  %v1987_v16 = vpack.c.bf16 %v1968_v20, %v1967_v9  ;;  %v1969_v9 = vld [vmem:[%s3445_s6 + $0x135] sm:$0xff]  ;;  %v1970_v20 = vld [vmem:[%s3445_s6 + $0x13d] sm:$0xff] }
 0x258   : > { %v1658_v61 = vadd.f32 %v1584_v29, %v3823_v47  ;;  %v2569_v11 = vpop.permute.xlu2 %2568 }
 0x259   : > { %v2340_v41 = vpop.f32.mrf.mxu0  ;;  %v2735_v23 = vadd.f32 %v2734_v1, %v2700_v48  ;;  %v2778_v30 = vmul.f32 %v2700_v48, %v2700_v48  ;;  %v3279_v57 = vpack.c.bf16 %v2700_v48, %v2699_v26  ;;  %v2161_v18 = vadd.f32 %v4245_v25, %v1909_v55 }
 0x25a   : > { %v1733_v25 = vpack.c.bf16 %v1712_v44, %v1711_v32  ;;  %v2237_v1 = vpack.c.bf16 %v2216_v31, %v2215_v19  ;;  %v1713_v32 = vld [vmem:[%s3445_s6 + $0x114] sm:$0xff]  ;;  %v1714_v44 = vld [vmem:[%s3445_s6 + $0x11c] sm:$0xff] }
 0x25b   : > { %v2813_v22 = vadd.f32 %v2812_v3, %v2778_v30  ;;  %3349 = vst [vmem:[%s4163_s16 + $0x20] sm:$0xff] %v3279_v57   ;;  %v2413_v39 = vadd.f32 %v2338_v27, %v2161_v18  ;;  %v2217_v19 = vld [vmem:[%s3445_s6 + $0x116] sm:$0xff]  ;;  %v2218_v31 = vld [vmem:[%s3445_s6 + $0x11e] sm:$0xff] }
 0x25d   : > { %v2449_v60 = vmax.f32 %v2413_v39, 0.0 }
 0x25e   : > { %v1836_v52 = vpop.f32.mrf.mxu2 }
 0x25f   : > { %v2701_v35 = vmul.f32 %v2564_v24, %v2449_v60  ;;  %v1910_v26 = vadd.f32 %v1836_v52, %v1658_v61  ;;  %v1587_v8 = vpop.f32.mrf.mxu1  ;;  %v4310_v36 = vpop.f32.mrf.mxu3 }
 0x260   : > { %v1659_v15 = vadd.f32 %v1587_v8, %v3830_v28  ;;  %v2574_v24 = vpop.permute.xlu0 %2573 }
 0x261   : > { %v2343_v21 = vpop.f32.mrf.mxu0  ;;  %v2736_v3 = vadd.f32 %v2735_v23, %v2701_v35  ;;  %v2779_v14 = vmul.f32 %v2701_v35, %v2701_v35  ;;  %v2162_v27 = vadd.f32 %v4262_v12, %v1910_v26 }
 0x262   : > { %3169 = vmatmul.msk.bf16.gmra.mxu1 %vm362_vm0, %v1732_v63 }
 0x263   : > { %v2814_v47 = vadd.f32 %v2813_v22, %v2779_v14  ;;  %3193 = vmatmul.msk.bf16.gmra.mxu2 %vm362_vm0, %v1733_v25  ;;  %v2414_v53 = vadd.f32 %v2340_v41, %v2162_v27 }
 0x264   : > { %3241 = vmatmul.msk.bf16.gmra.mxu0 %vm362_vm0, %v2237_v1  ;;  %3219 = vmatmul.msk.bf16.gmra.mxu3 %vm362_vm0, %v1987_v16  ;;  %v2238_v1 = vpack.c.bf16 %v2218_v31, %v2217_v19 }
 0x265   : > { %v2450_v48 = vmax.f32 %v2414_v53, 0.0 }
 0x266   : > { %v1839_v55 = vpop.f32.mrf.mxu2 }
 0x267   : > { %v2702_v12 = vmul.f32 %v2569_v11, %v2450_v48  ;;  %v1911_v63 = vadd.f32 %v1839_v55, %v1659_v15  ;;  %v1589_v29 = vpop.f32.mrf.mxu1  ;;  %v4318_v22 = vpop.f32.mrf.mxu3 }
 0x268   : > { %v1660_v61 = vadd.f32 %v1589_v29, %v3841_v0  ;;  %v2579_v11 = vpop.permute.xlu1 %2578 }
 0x269   : > { %v2345_v23 = vpop.f32.mrf.mxu0  ;;  %v2737_v30 = vadd.f32 %v2736_v3, %v2702_v12  ;;  %v2780_v57 = vmul.f32 %v2702_v12, %v2702_v12  ;;  %v3284_v18 = vpack.c.bf16 %v2702_v12, %v2701_v35  ;;  %v2163_v41 = vadd.f32 %v4274_v10, %v1911_v63 }
 0x26a   : > { %v1734_v10 = vpack.c.bf16 %v1714_v44, %v1713_v32  ;;  %v1716_v32 = vld [vmem:[%s3445_s6 + $0x12c] sm:$0xff] }
 0x26b   : > { %v2815_v28 = vadd.f32 %v2814_v47, %v2780_v57  ;;  %3350 = vst [vmem:[%s4163_s16 + $0x28] sm:$0xff] %v3284_v18   ;;  %v2415_v39 = vadd.f32 %v2343_v21, %v2163_v41  ;;  %v1988_v47 = vpack.c.bf16 %v1970_v20, %v1969_v9  ;;  %v2220_v44 = vld [vmem:[%s3445_s6 + $0x12e] sm:$0xff] }
 0x26d   : > { %v2451_v60 = vmax.f32 %v2415_v39, 0.0  ;;  %v2584_v39 = vpop.permute.xlu2 %2583 }
 0x26e   : > { %v1841_v52 = vpop.f32.mrf.mxu2 }
 0x26f   : > { %v2703_v26 = vmul.f32 %v2574_v24, %v2451_v60  ;;  %v1912_v35 = vadd.f32 %v1841_v52, %v1660_v61  ;;  %v1592_v8 = vpop.f32.mrf.mxu1  ;;  %v4329_v16 = vpop.f32.mrf.mxu3  ;;  %v2219_v24 = vld [vmem:[%s3445_s6 + $0x126] sm:$0xff] }
 0x270   : > { %v1661_v15 = vadd.f32 %v1592_v8, %v3847_v40  ;;  %v2239_v8 = vpack.c.bf16 %v2220_v44, %v2219_v24 }
 0x271   : > { %v2348_v3 = vpop.f32.mrf.mxu0  ;;  %v2738_v14 = vadd.f32 %v2737_v30, %v2703_v26  ;;  %v2781_v27 = vmul.f32 %v2703_v26, %v2703_v26  ;;  %v2164_v21 = vadd.f32 %v4288_v5, %v1912_v35 }
 0x272   : > { %3170 = vmatmul.msk.bf16.gmra.mxu1 %vm362_vm0, %v1733_v25 }
 0x273   : > { %v2816_v0 = vadd.f32 %v2815_v28, %v2781_v27  ;;  %3194 = vmatmul.msk.bf16.gmra.mxu2 %vm362_vm0, %v1734_v10  ;;  %v2416_v53 = vadd.f32 %v2345_v23, %v2164_v21  ;;  %v1715_v28 = vld [vmem:[%s3445_s6 + $0x124] sm:$0xff]  ;;  %v2589_v27 = vpop.permute.xlu0 %2588 }
 0x274   : > { %3242 = vmatmul.msk.bf16.gmra.mxu0 %vm362_vm0, %v2238_v1  ;;  %3220 = vmatmul.msk.bf16.gmra.mxu3 %vm362_vm0, %v1988_v47 }
 0x275   : > { %v2452_v48 = vmax.f32 %v2416_v53, 0.0 }
 0x276   : > { %v1844_v55 = vpop.f32.mrf.mxu2 }
 0x277   : > { %v2704_v5 = vmul.f32 %v2579_v11, %v2452_v48  ;;  %v1913_v25 = vadd.f32 %v1844_v55, %v1661_v15  ;;  %v1594_v12 = vpop.f32.mrf.mxu1  ;;  %v4337_v18 = vpop.f32.mrf.mxu3 }
 0x278   : > { %v1662_v19 = vadd.f32 %v1594_v12, %v3860_v17 }
 0x279   : > { %v2350_v63 = vpop.f32.mrf.mxu0  ;;  %v2739_v29 = vadd.f32 %v2738_v14, %v2704_v5  ;;  %v2782_v30 = vmul.f32 %v2704_v5, %v2704_v5  ;;  %v3289_v57 = vpack.c.bf16 %v2704_v5, %v2703_v26  ;;  %v2165_v23 = vadd.f32 %v4299_v38, %v1913_v25 }
 0x27a   : > { %v1735_v26 = vpack.c.bf16 %v1716_v32, %v1715_v28 }
 0x27b   : > { %v2817_v40 = vadd.f32 %v2816_v0, %v2782_v30  ;;  %3351 = vst [vmem:[%s4163_s16 + $0x30] sm:$0xff] %v3289_v57   ;;  %v2417_v41 = vadd.f32 %v2348_v3, %v2165_v23  ;;  %v1718_v30 = vld [vmem:[%s3445_s6 + $0x13c] sm:$0xff] }
 0x27c   : > { %v2221_v57 = vld [vmem:[%s3445_s6 + $0x136] sm:$0xff]  ;;  %v2222_v23 = vld [vmem:[%s3445_s6 + $0x13e] sm:$0xff] }
 0x27d   : > { %v2453_v31 = vmax.f32 %v2417_v41, 0.0 }
 0x27e   : > { %v1846_v61 = vpop.f32.mrf.mxu2 }
 0x27f   : > { %v2705_v60 = vmul.f32 %v2584_v39, %v2453_v31  ;;  %v1914_v52 = vadd.f32 %v1846_v61, %v1662_v19  ;;  %v1597_v35 = vpop.f32.mrf.mxu1  ;;  %v4346_v3 = vpop.f32.mrf.mxu3  ;;  %v2240_v19 = vpack.c.bf16 %v2222_v23, %v2221_v57 }
 0x280   : > { %v1663_v21 = vadd.f32 %v1597_v35, %v3868_v37  ;;  %v1717_v37 = vld [vmem:[%s3445_s6 + $0x134] sm:$0xff]  ;;  %v2599_v35 = vpop.permute.xlu2 %2598 }
 0x281   : > { %v2353_v38 = vpop.f32.mrf.mxu0  ;;  %v2740_v1 = vadd.f32 %v2739_v29, %v2705_v60  ;;  %v2783_v9 = vmul.f32 %v2705_v60, %v2705_v60  ;;  %v2166_v20 = vadd.f32 %v4310_v36, %v1914_v52  ;;  %v2594_v29 = vpop.permute.xlu1 %2593  ;;  %v1736_v44 = vpack.c.bf16 %v1718_v30, %v1717_v37 }
 0x282   : > { %3171 = vmatmul.msk.bf16.gmra.mxu1 %vm362_vm0, %v1734_v10 }
 0x283   : > { %v2818_v14 = vadd.f32 %v2817_v40, %v2783_v9  ;;  %3195 = vmatmul.msk.bf16.gmra.mxu2 %vm362_vm0, %v1735_v26  ;;  %v2418_v17 = vadd.f32 %v2350_v63, %v2166_v20 }
 0x284   : > { %3243 = vmatmul.msk.bf16.gmra.mxu0 %vm362_vm0, %v2239_v8 }
 0x285   : > { %v2454_v47 = vmax.f32 %v2418_v17, 0.0 }
 0x286   : > { %v1849_v0 = vpop.f32.mrf.mxu2 }
 0x287   : > { %v2706_v36 = vmul.f32 %v2589_v27, %v2454_v47  ;;  %v1915_v53 = vadd.f32 %v1849_v0, %v1663_v21  ;;  %v1599_v11 = vpop.f32.mrf.mxu1  ;;  %v4353_v25 = vpop.f32.mrf.mxu3 }
 0x288   : > { %v1664_v40 = vadd.f32 %v1599_v11, %v3881_v34 }
 0x289   : > { %v2355_v10 = vpop.f32.mrf.mxu0  ;;  %v2741_v15 = vadd.f32 %v2740_v1, %v2706_v36  ;;  %v2784_v48 = vmul.f32 %v2706_v36, %v2706_v36  ;;  %v3294_v55 = vpack.c.bf16 %v2706_v36, %v2705_v60  ;;  %v2167_v5 = vadd.f32 %v4318_v22, %v1915_v53  ;;  %v2604_v53 = vpop.permute.xlu0 %2603 }
 0x28b   : > { %v2819_v12 = vadd.f32 %v2818_v14, %v2784_v48  ;;  %3352 = vst [vmem:[%s4163_s16 + $0x38] sm:$0xff] %v3294_v55   ;;  %v2419_v63 = vadd.f32 %v2353_v38, %v2167_v5 }
 0x28d   : > { %v2455_v41 = vmax.f32 %v2419_v63, 0.0 }
 0x28e   : > { %v1851_v28 = vpop.f32.mrf.mxu2 }
 0x28f   : > { %v2707_v39 = vmul.f32 %v2594_v29, %v2455_v41  ;;  %v1916_v32 = vadd.f32 %v1851_v28, %v1664_v40  ;;  %v1602_v24 = vpop.f32.mrf.mxu1  ;;  %v2113_v8 = vpop.f32.mrf.mxu3 }
 0x290   : > { %v1665_v38 = vadd.f32 %v1602_v24, %v3893_v56  ;;  %v2609_v40 = vpop.permute.xlu1 %2608 }
 0x291   : > { %v2358_v22 = vpop.f32.mrf.mxu0  ;;  %v2742_v31 = vadd.f32 %v2741_v15, %v2707_v39  ;;  %v2785_v61 = vmul.f32 %v2707_v39, %v2707_v39  ;;  %v2168_v60 = vadd.f32 %v4329_v16, %v1916_v32 }
 0x292   : > { %3172 = vmatmul.msk.bf16.gmra.mxu1 %vm362_vm0, %v1735_v26 }
 0x293   : > { %v2820_v52 = vadd.f32 %v2819_v12, %v2785_v61  ;;  %3196 = vmatmul.msk.bf16.gmra.mxu2 %vm362_vm0, %v1736_v44  ;;  %v2420_v34 = vadd.f32 %v2355_v10, %v2168_v60 }
 0x294   : > { %3244 = vmatmul.msk.bf16.gmra.mxu0 %vm362_vm0, %v2240_v19 }
 0x295   : > { %v2456_v1 = vmax.f32 %v2420_v34, 0.0 }
 0x296   : > { %v1854_v9 = vpop.f32.mrf.mxu2 }
 0x297   : > { %v2708_v20 = vmul.f32 %v2599_v35, %v2456_v1  ;;  %v1917_v14 = vadd.f32 %v1854_v9, %v1665_v38  ;;  %v1604_v17 = vpop.f32.mrf.mxu1  ;;  %v2116_v56 = vpop.f32.mrf.mxu3 }
 0x298   : > { %v1666_v11 = vadd.f32 %v1604_v17, %v3910_v51 }
 0x299   : > { %v2360_v27 = vpop.f32.mrf.mxu0  ;;  %v2743_v16 = vadd.f32 %v2742_v31, %v2708_v20  ;;  %v2786_v21 = vmul.f32 %v2708_v20, %v2708_v20  ;;  %v3299_v26 = vpack.c.bf16 %v2708_v20, %v2707_v39  ;;  %v2169_v47 = vadd.f32 %v4337_v18, %v1917_v14 }
 0x29b   : > { %v2821_v0 = vadd.f32 %v2820_v52, %v2786_v21  ;;  %3353 = vst [vmem:[%s4163_s16 + $0x40] sm:$0xff] %v3299_v26   ;;  %v2421_v36 = vadd.f32 %v2358_v22, %v2169_v47  ;;  %v2619_v47 = vpop.permute.xlu0 %2618 }
 0x29d   : > { %v2457_v10 = vmax.f32 %v2421_v36, 0.0 }
 0x29e   : > { %v1856_v15 = vpop.f32.mrf.mxu2 }
 0x29f   : > { %v2709_v48 = vmul.f32 %v2604_v53, %v2457_v10  ;;  %v1918_v55 = vadd.f32 %v1856_v15, %v1666_v11  ;;  %v1607_v5 = vpop.f32.mrf.mxu1  ;;  %v2118_v24 = vpop.f32.mrf.mxu3 }
 0x2a0   : > { %v1667_v57 = vadd.f32 %v1607_v5, %v3919_v6  ;;  %v2614_v6 = vpop.permute.xlu2 %2613 }
 0x2a1   : > { %v2363_v12 = vpop.f32.mrf.mxu0  ;;  %v2744_v63 = vadd.f32 %v2743_v16, %v2709_v48  ;;  %v2787_v37 = vmul.f32 %v2709_v48, %v2709_v48  ;;  %v2170_v29 = vadd.f32 %v4346_v3, %v1918_v55 }
 0x2a3   : > { %v2822_v30 = vadd.f32 %v2821_v0, %v2787_v37  ;;  %v2422_v18 = vadd.f32 %v2360_v27, %v2170_v29  ;;  %v2624_v29 = vpop.permute.xlu1 %2623 }
 0x2a5   : > { %v2458_v23 = vmax.f32 %v2422_v18, 0.0 }
 0x2a6   : > { %v1859_v41 = vpop.f32.mrf.mxu2 }
 0x2a7   : > { %v2710_v51 = vmul.f32 %v2609_v40, %v2458_v23  ;;  %v1919_v28 = vadd.f32 %v1859_v41, %v1667_v57  ;;  %v1609_v39 = vpop.f32.mrf.mxu1  ;;  %v2121_v27 = vpop.f32.mrf.mxu3 }
 0x2a8   : > { %v1668_v52 = vadd.f32 %v1609_v39, %v3934_v50 }
 0x2a9   : > { %v2365_v32 = vpop.f32.mrf.mxu0  ;;  %v2745_v44 = vadd.f32 %v2744_v63, %v2710_v51  ;;  %v2788_v19 = vmul.f32 %v2710_v51, %v2710_v51  ;;  %v3304_v22 = vpack.c.bf16 %v2710_v51, %v2709_v48  ;;  %v2171_v31 = vadd.f32 %v4353_v25, %v1919_v28 }
 0x2ab   : > { %v2823_v61 = vadd.f32 %v2822_v30, %v2788_v19  ;;  %3354 = vst [vmem:[%s4163_s16 + $0x48] sm:$0xff] %v3304_v22   ;;  %v2423_v3 = vadd.f32 %v2363_v12, %v2171_v31 }
 0x2ad   : > { %v2459_v60 = vmax.f32 %v2423_v3, 0.0 }
 0x2ae   : > { %v1861_v34 = vpop.f32.mrf.mxu2 }
 0x2af   : > { %v2711_v35 = vmul.f32 %v2614_v6, %v2459_v60  ;;  %v1920_v38 = vadd.f32 %v1861_v34, %v1668_v52  ;;  %v1612_v1 = vpop.f32.mrf.mxu1  ;;  %v2123_v12 = vpop.f32.mrf.mxu3 }
 0x2b0   : > { %v1669_v26 = vadd.f32 %v1612_v1, %v3942_v46 }
 0x2b1   : > { %v2368_v9 = vpop.f32.mrf.mxu0  ;;  %v2746_v20 = vadd.f32 %v2745_v44, %v2711_v35  ;;  %v2789_v14 = vmul.f32 %v2711_v35, %v2711_v35  ;;  %v2172_v17 = vadd.f32 %v2113_v8, %v1920_v38 }
 0x2b3   : > { %v2824_v16 = vadd.f32 %v2823_v61, %v2789_v14  ;;  %v2424_v21 = vadd.f32 %v2365_v32, %v2172_v17 }
 0x2b5   : > { %v2460_v25 = vmax.f32 %v2424_v21, 0.0 }
 0x2b6   : > { %v1864_v0 = vpop.f32.mrf.mxu2 }
 0x2b7   : > { %v2712_v36 = vmul.f32 %v2619_v47, %v2460_v25  ;;  %v1921_v50 = vadd.f32 %v1864_v0, %v1669_v26  ;;  %v1614_v53 = vpop.f32.mrf.mxu1  ;;  %v2126_v22 = vpop.f32.mrf.mxu3 }
 0x2b8   : > { %v1670_v37 = vadd.f32 %v1614_v53, %v3956_v7  ;;  %v2639_v53 = vpop.permute.xlu1 %2638 }
 0x2b9   : > { %v2370_v11 = vpop.f32.mrf.mxu0  ;;  %v2747_v10 = vadd.f32 %v2746_v20, %v2712_v36  ;;  %v2790_v15 = vmul.f32 %v2712_v36, %v2712_v36  ;;  %v3309_v48 = vpack.c.bf16 %v2712_v36, %v2711_v35  ;;  %v2173_v55 = vadd.f32 %v2116_v56, %v1921_v50  ;;  %v2629_v56 = vpop.permute.xlu2 %2628 }
 0x2bb   : > { %v2825_v5 = vadd.f32 %v2824_v16, %v2790_v15  ;;  %3355 = vst [vmem:[%s4163_s16 + $0x50] sm:$0xff] %v3309_v48   ;;  %v2425_v8 = vadd.f32 %v2368_v9, %v2173_v55  ;;  %v2634_v9 = vpop.permute.xlu0 %2633 }
 0x2bd   : > { %v2461_v63 = vmax.f32 %v2425_v8, 0.0 }
 0x2be   : > { %v1866_v30 = vpop.f32.mrf.mxu2 }
 0x2bf   : > { %v2713_v46 = vmul.f32 %v2624_v29, %v2461_v63  ;;  %v1922_v18 = vadd.f32 %v1866_v30, %v1670_v37  ;;  %v1617_v57 = vpop.f32.mrf.mxu1  ;;  %v2128_v21 = vpop.f32.mrf.mxu3 }
 0x2c0   : > { %v1671_v44 = vadd.f32 %v1617_v57, %v3966_v13 }
 0x2c1   : > { %v2373_v23 = vpop.f32.mrf.mxu0  ;;  %v2748_v40 = vadd.f32 %v2747_v10, %v2713_v46  ;;  %v2791_v41 = vmul.f32 %v2713_v46, %v2713_v46  ;;  %v2174_v51 = vadd.f32 %v2118_v24, %v1922_v18  ;;  %v2644_v18 = vpop.permute.xlu2 %2643 }
 0x2c3   : > { %v2826_v28 = vadd.f32 %v2825_v5, %v2791_v41  ;;  %v2426_v39 = vadd.f32 %v2370_v11, %v2174_v51 }
 0x2c5   : > { %v2462_v32 = vmax.f32 %v2426_v39, 0.0 }
 0x2c6   : > { %v1869_v19 = vpop.f32.mrf.mxu2 }
 0x2c7   : > { %v2714_v31 = vmul.f32 %v2629_v56, %v2462_v32  ;;  %v1923_v7 = vadd.f32 %v1869_v19, %v1671_v44  ;;  %v1619_v61 = vpop.f32.mrf.mxu1  ;;  %v2131_v37 = vpop.f32.mrf.mxu3 }
 0x2c8   : > { %v1672_v1 = vadd.f32 %v1619_v61, %v3985_v59 }
 0x2c9   : > { %v2375_v3 = vpop.f32.mrf.mxu0  ;;  %v2749_v60 = vadd.f32 %v2748_v40, %v2714_v31  ;;  %v2792_v52 = vmul.f32 %v2714_v31, %v2714_v31  ;;  %v3314_v6 = vpack.c.bf16 %v2714_v31, %v2713_v46  ;;  %v2175_v34 = vadd.f32 %v2121_v27, %v1923_v7  ;;  %v2649_v31 = vpop.permute.xlu0 %2648 }
 0x2cb   : > { %v2827_v35 = vadd.f32 %v2826_v28, %v2792_v52  ;;  %3356 = vst [vmem:[%s4163_s16 + $0x58] sm:$0xff] %v3314_v6   ;;  %v2427_v24 = vadd.f32 %v2373_v23, %v2175_v34 }
 0x2cd   : > { %v2463_v38 = vmax.f32 %v2427_v24, 0.0 }
 0x2ce   : > { %v1871_v20 = vpop.f32.mrf.mxu2 }
 0x2cf   : > { %v2715_v14 = vmul.f32 %v2634_v9, %v2463_v38  ;;  %v1924_v13 = vadd.f32 %v1871_v20, %v1672_v1  ;;  %v1622_v17 = vpop.f32.mrf.mxu1  ;;  %v2133_v44 = vpop.f32.mrf.mxu3 }
 0x2d0   : > { %v1673_v50 = vadd.f32 %v1622_v17, %v3996_v45  ;;  %v2654_v1 = vpop.permute.xlu1 %2653 }
 0x2d1   : > { %v2378_v16 = vpop.f32.mrf.mxu0  ;;  %v2750_v25 = vadd.f32 %v2749_v60, %v2715_v14  ;;  %v2793_v26 = vmul.f32 %v2715_v14, %v2715_v14  ;;  %v2176_v47 = vadd.f32 %v2123_v12, %v1924_v13 }
 0x2d3   : > { %v2828_v0 = vadd.f32 %v2827_v35, %v2793_v26  ;;  %v2428_v36 = vadd.f32 %v2375_v3, %v2176_v47 }
 0x2d5   : > { %v2464_v27 = vmax.f32 %v2428_v36, 0.0 }
 0x2d6   : > { %v1874_v11 = vpop.f32.mrf.mxu2 }
 0x2d7   : > { %v2716_v10 = vmul.f32 %v2639_v53, %v2464_v27  ;;  %v1925_v59 = vadd.f32 %v1874_v11, %v1673_v50  ;;  %v1624_v15 = vpop.f32.mrf.mxu1  ;;  %v2136_v13 = vpop.f32.mrf.mxu3 }
 0x2d8   : > { %v1674_v46 = vadd.f32 %v1624_v15, %v4013_v62  ;;  %v2659_v53 = vpop.permute.xlu2 %2658 }
 0x2d9   : > { %v2380_v48 = vpop.f32.mrf.mxu0  ;;  %v2751_v55 = vadd.f32 %v2750_v25, %v2716_v10  ;;  %v2794_v5 = vmul.f32 %v2716_v10, %v2716_v10  ;;  %v3319_v8 = vpack.c.bf16 %v2716_v10, %v2715_v14  ;;  %v2177_v63 = vadd.f32 %v2126_v22, %v1925_v59 }
 0x2db   : > { %v2829_v29 = vadd.f32 %v2828_v0, %v2794_v5  ;;  %3357 = vst [vmem:[%s4163_s16 + $0x60] sm:$0xff] %v3319_v8   ;;  %v2429_v12 = vadd.f32 %v2378_v16, %v2177_v63 }
 0x2dd   : > { %v2465_v30 = vmax.f32 %v2429_v12, 0.0 }
 0x2de   : > { %v1876_v57 = vpop.f32.mrf.mxu2 }
 0x2df   : > { %v2717_v45 = vmul.f32 %v2644_v18, %v2465_v30  ;;  %v1926_v23 = vadd.f32 %v1876_v57, %v1674_v46  ;;  %v1627_v40 = vpop.f32.mrf.mxu1  ;;  %v2138_v15 = vpop.f32.mrf.mxu3 }
 0x2e0   : > { %v1675_v22 = vadd.f32 %v1627_v40, %v4024_v33  ;;  %v2664_v46 = vpop.permute.xlu0 %2663 }
 0x2e1   : > { %v2383_v41 = vpop.f32.mrf.mxu0  ;;  %v2752_v51 = vadd.f32 %v2751_v55, %v2717_v45  ;;  %v2795_v28 = vmul.f32 %v2717_v45, %v2717_v45  ;;  %v2178_v39 = vadd.f32 %v2128_v21, %v1926_v23 }
 0x2e3   : > { %v2830_v56 = vadd.f32 %v2829_v29, %v2795_v28  ;;  %v2430_v32 = vadd.f32 %v2380_v48, %v2178_v39 }
 0x2e5   : > { %v2466_v19 = vmax.f32 %v2430_v32, 0.0 }
 0x2e6   : > { %v1879_v7 = vpop.f32.mrf.mxu2 }
 0x2e7   : > { %v2718_v61 = vmul.f32 %v2649_v31, %v2466_v19  ;;  %v1927_v62 = vadd.f32 %v1879_v7, %v1675_v22  ;;  %v1629_v3 = vpop.f32.mrf.mxu1  ;;  %v2669_v19 = vpop.permute.xlu1 %2668 }
 0x2e8   : > { %v1676_v20 = vadd.f32 %v1629_v3, %v4041_v4 }
 0x2e9   : > { %v2385_v60 = vpop.f32.mrf.mxu0  ;;  %v2753_v52 = vadd.f32 %v2752_v51, %v2718_v61  ;;  %v2796_v6 = vmul.f32 %v2718_v61, %v2718_v61  ;;  %v3324_v34 = vpack.c.bf16 %v2718_v61, %v2717_v45  ;;  %v2179_v35 = vadd.f32 %v2131_v37, %v1927_v62  ;;  %v2141_v51 = vpop.f32.mrf.mxu3 }
 0x2eb   : > { %v2831_v24 = vadd.f32 %v2830_v56, %v2796_v6  ;;  %3358 = vst [vmem:[%s4163_s16 + $0x68] sm:$0xff] %v3324_v34   ;;  %v2431_v38 = vadd.f32 %v2383_v41, %v2179_v35  ;;  %v2674_v35 = vpop.permute.xlu2 %2673 }
 0x2ed   : > { %v2467_v9 = vmax.f32 %v2431_v38, 0.0 }
 0x2ee   : > { %v1881_v14 = vpop.f32.mrf.mxu2 }
 0x2ef   : > { %v2719_v33 = vmul.f32 %v2654_v1, %v2467_v9  ;;  %v1928_v17 = vadd.f32 %v1881_v14, %v1676_v20  ;;  %v1632_v16 = vpop.f32.mrf.mxu1 }
 0x2f0   : > { %v1677_v50 = vadd.f32 %v1632_v16, %v4052_v58 }
 0x2f1   : > { %v2388_v21 = vpop.f32.mrf.mxu0  ;;  %v2754_v25 = vadd.f32 %v2753_v52, %v2719_v33  ;;  %v2797_v26 = vmul.f32 %v2719_v33, %v2719_v33  ;;  %v2180_v47 = vadd.f32 %v2133_v44, %v1928_v17  ;;  %v2143_v34 = vpop.f32.mrf.mxu3 }
 0x2f3   : > { %v2832_v0 = vadd.f32 %v2831_v24, %v2797_v26  ;;  %v2432_v36 = vadd.f32 %v2385_v60, %v2180_v47 }
 0x2f5   : > { %v2468_v27 = vmax.f32 %v2432_v36, 0.0 }
 0x2f6   : > { %v1884_v11 = vpop.f32.mrf.mxu2 }
 0x2f7   : > { %v2720_v10 = vmul.f32 %v2659_v53, %v2468_v27  ;;  %v1929_v59 = vadd.f32 %v1884_v11, %v1677_v50  ;;  %v1634_v4 = vpop.f32.mrf.mxu1 }
 0x2f8   : > { %v1678_v30 = vadd.f32 %v1634_v4, %v4069_v43 }
 0x2f9   : > { %v2755_v48 = vadd.f32 %v2754_v25, %v2720_v10  ;;  %v2798_v55 = vmul.f32 %v2720_v10, %v2720_v10  ;;  %v3329_v5 = vpack.c.bf16 %v2720_v10, %v2719_v33  ;;  %v2181_v8 = vadd.f32 %v2136_v13, %v1929_v59  ;;  %v2390_v63 = vpop.f32.mrf.mxu0  ;;  %v2679_v25 = vpop.permute.xlu0 %2678 }
 0x2fb   : > { %v2833_v37 = vadd.f32 %v2832_v0, %v2798_v55  ;;  %3359 = vst [vmem:[%s4163_s16 + $0x70] sm:$0xff] %v3329_v5   ;;  %v2433_v29 = vadd.f32 %v2388_v21, %v2181_v8  ;;  %v2146_v0 = vpop.f32.mrf.mxu3  ;;  %v2684_v8 = vpop.permute.xlu1 %2683 }
 0x2fd   : > { %v2469_v12 = vmax.f32 %v2433_v29, 0.0 }
 0x2fe   : > { %v1886_v18 = vpop.f32.mrf.mxu2 }
 0x2ff   : > { %v2721_v58 = vmul.f32 %v2664_v46, %v2469_v12  ;;  %v1930_v57 = vadd.f32 %v1886_v18, %v1678_v30  ;;  %v1637_v45 = vpop.f32.mrf.mxu1 }
 0x300   : > { %v1679_v44 = vadd.f32 %v1637_v45, %v4080_v49 }
 0x301   : > { %v2756_v23 = vadd.f32 %v2755_v48, %v2721_v58  ;;  %v2799_v40 = vmul.f32 %v2721_v58, %v2721_v58  ;;  %v2182_v41 = vadd.f32 %v2138_v15, %v1930_v57  ;;  %v2393_v56 = vpop.f32.mrf.mxu0 }
 0x303   : > { %v2834_v28 = vadd.f32 %v2833_v37, %v2799_v40  ;;  %v2434_v39 = vadd.f32 %v2390_v63, %v2182_v41  ;;  %v2148_v29 = vpop.f32.mrf.mxu3 }
 0x305   : > { %v2470_v32 = vmax.f32 %v2434_v39, 0.0 }
 0x306   : > { %v1889_v22 = vpop.f32.mrf.mxu2 }
 0x307   : > { %v2722_v31 = vmul.f32 %v2669_v19, %v2470_v32  ;;  %v1931_v43 = vadd.f32 %v1889_v22, %v1679_v44  ;;  %v1639_v7 = vpop.f32.mrf.mxu1 }
 0x308   : > { %v1680_v38 = vadd.f32 %v1639_v7, %v4097_v54 }
 0x309   : > { %v2757_v61 = vadd.f32 %v2756_v23, %v2722_v31  ;;  %v2800_v62 = vmul.f32 %v2722_v31, %v2722_v31  ;;  %v3334_v3 = vpack.c.bf16 %v2722_v31, %v2721_v58  ;;  %v2183_v60 = vadd.f32 %v2141_v51, %v1931_v43  ;;  %v2395_v1 = vpop.f32.mrf.mxu0  ;;  %v2689_v23 = vpop.permute.xlu2 %2688 }
 0x30b   : > { %v2835_v52 = vadd.f32 %v2834_v28, %v2800_v62  ;;  %3360 = vst [vmem:[%s4163_s16 + $0x78] sm:$0xff] %v3334_v3   ;;  %v2435_v6 = vadd.f32 %v2393_v56, %v2183_v60 }
 0x30d   : > { %v2471_v24 = vmax.f32 %v2435_v6, 0.0 }
 0x30e   : > { %v1891_v9 = vpop.f32.mrf.mxu2 }
 0x30f   : > { %v2723_v49 = vmul.f32 %v2674_v35, %v2471_v24  ;;  %v1932_v20 = vadd.f32 %v1891_v9, %v1680_v38  ;;  %v1642_v14 = vpop.f32.mrf.mxu1 }
 0x310   : > { %v1681_v47 = vadd.f32 %v1642_v14, %v4108_v2 }
 0x311   : > { %v2758_v13 = vadd.f32 %v2757_v61, %v2723_v49  ;;  %v2801_v33 = vmul.f32 %v2723_v49, %v2723_v49  ;;  %v2184_v17 = vadd.f32 %v2143_v34, %v1932_v20  ;;  %v2398_v54 = vpop.f32.mrf.mxu0 }
 0x313   : > { %v2836_v16 = vadd.f32 %v2835_v52, %v2801_v33  ;;  %v2436_v21 = vadd.f32 %v2395_v1, %v2184_v17 }
 0x315   : > { %v2472_v26 = vmax.f32 %v2436_v21, 0.0 }
 0x316   : > { %v1894_v36 = vpop.f32.mrf.mxu2 }
 0x317   : > { %v2724_v27 = vmul.f32 %v2679_v25, %v2472_v26  ;;  %v1933_v50 = vadd.f32 %v1894_v36, %v1681_v47  ;;  %v1644_v4 = vpop.f32.mrf.mxu1 }
 0x318   : > { %v1682_v5 = vadd.f32 %v1644_v4, %v4125_v42 }
 0x319   : > { %v2759_v53 = vadd.f32 %v2758_v13, %v2724_v27  ;;  %v2802_v11 = vmul.f32 %v2724_v27, %v2724_v27  ;;  %v3339_v10 = vpack.c.bf16 %v2724_v27, %v2723_v49  ;;  %v2185_v59 = vadd.f32 %v2146_v0, %v1933_v50  ;;  %v2400_v18 = vpop.f32.mrf.mxu0 }
 0x31b   : > { %v2837_v15 = vadd.f32 %v2836_v16, %v2802_v11  ;;  %3361 = vst [vmem:[%s4163_s16 + $0x80] sm:$0xff] %v3339_v10   ;;  %v2437_v48 = vadd.f32 %v2398_v54, %v2185_v59 }
 0x31d   : > { %v2473_v55 = vmax.f32 %v2437_v48, 0.0 }
 0x31e   : > { %v1896_v63 = vpop.f32.mrf.mxu2 }
 0x31f   : > { %v2725_v37 = vmul.f32 %v2684_v8, %v2473_v55  ;;  %v1934_v2 = vadd.f32 %v1896_v63, %v1682_v5 }
 0x321   : > { %v2760_v12 = vadd.f32 %v2759_v53, %v2725_v37  ;;  %v2803_v30 = vmul.f32 %v2725_v37, %v2725_v37  ;;  %v2186_v46 = vadd.f32 %v2148_v29, %v1934_v2 }
 0x323   : > { %v2838_v58 = vadd.f32 %v2837_v15, %v2803_v30  ;;  %v2438_v57 = vadd.f32 %v2400_v18, %v2186_v46 }
 0x325   : > { %v2474_v45 = vmax.f32 %v2438_v57, 0.0 }
 0x327   : > { %v2726_v40 = vmul.f32 %v2689_v23, %v2474_v45 }
 0x329   : > { %v2761_v41 = vadd.f32 %v2760_v12, %v2726_v40  ;;  %v2804_v51 = vmul.f32 %v2726_v40, %v2726_v40  ;;  %v3344_v42 = vpack.c.bf16 %v2726_v40, %v2725_v37 }
 0x32b   : > { %v2762_v28 = vrot.slane %v2761_v41, 4  ;;  %v2839_v39 = vadd.f32 %v2838_v58, %v2804_v51  ;;  %3362 = vst [vmem:[%s4163_s16 + $0x88] sm:$0xff] %v3344_v42  }
 0x32d   : > { %v2763_v56 = vadd.f32 %v2762_v28, %v2761_v41  ;;  %v2840_v32 = vrot.slane %v2839_v39, 4 }
 0x32f   : > { %v2764_v44 = vrot.slane %v2763_v56, 2  ;;  %v2841_v19 = vadd.f32 %v2840_v32, %v2839_v39 }
 0x331   : > { %v2765_v22 = vadd.f32 %v2764_v44, %v2763_v56  ;;  %v2842_v31 = vrot.slane %v2841_v19, 2 }
 0x333   : > { %v2766_v43 = vrot.slane %v2765_v22, 1  ;;  %v2843_v7 = vadd.f32 %v2842_v31, %v2841_v19 }
 0x335   : > { %v2767_v61 = vadd.f32 %v2766_v43, %v2765_v22  ;;  %v2844_v62 = vrot.slane %v2843_v7, 1 }
 0x337   : > { %2768 = vst [vmem:[%s238_s7] sm:$0x1] %v2767_v61  ;;  %v2845_v3 = vadd.f32 %v2844_v62, %v2843_v7 }
 0x339   : > { %2846 = vst [vmem:[%s241_s10] sm:$0x1] %v2845_v3 }
 0x33a PF: > { %s16_s18 = sadd.s32 1, %s3386_s18  }
 0x33b   : > { %p13_p4 = scmp.ge.s32.totalorder %s16_s18, 4  }
 0x33d   :  { %15 = sbr.rel (!%p13_p4) target bundleno = 1 (0x1), region = 94 }

</bundles_post_ra>
